<compile_context>
chip_gen: v5e
topology: v5e:2x2
jax: 0.10.0
libtpu: 0.0.40
codegen_flags: <defaults>
</compile_context>

<pallas_src>
import functools

import jax
import jax.numpy as jnp
from jax.experimental import pallas as pl
from jax.experimental.pallas import tpu as pltpu


def _envlight_kernel(cam_ref, tex_ref, out_ref, *, W, R, RB):
    # cam_ref: SMEM f32[16] = [cx, cy, 1/fx, 1/fy, m00..m22, pad] with
    #          M = c2w[:3, :3] @ diag(1, -1, -1).
    # tex_ref: VMEM bf16[3R, 6R], texT[c*R + x, face*R + y] = base[face, y, x, c]
    # out_ref: VMEM f32[3, RB*W] -- RB image rows, channels-first, lane-dense.
    P = RB * W
    cx = cam_ref[0]
    cy = cam_ref[1]
    inv_fx = cam_ref[2]
    inv_fy = cam_ref[3]
    m00 = cam_ref[4]; m01 = cam_ref[5]; m02 = cam_ref[6]
    m10 = cam_ref[7]; m11 = cam_ref[8]; m12 = cam_ref[9]
    m20 = cam_ref[10]; m21 = cam_ref[11]; m22 = cam_ref[12]

    # Pixel coordinates for RB consecutive rows, flattened lane-dense.
    # u = idx mod W via bit-mask (W is a power of two); the in-strip row comes
    # from (idx - u) * (1/W), which is exact in f32 (multiples of a power of 2),
    # so there is no vector integer div/mod.
    idx = jax.lax.broadcasted_iota(jnp.int32, (1, P), 1)
    u_i = jnp.bitwise_and(idx, W - 1)
    u = u_i.astype(jnp.float32)
    v_local = (idx - u_i).astype(jnp.float32) * (1.0 / W)
    v = pl.program_id(0).astype(jnp.float32) * float(RB) + v_local

    # Camera-space ray, eval path (train=False => +0.5 pixel-center offset).
    # TODO(synk): train=True adds torch.rand_like jitter; not implemented here.
    a = (u - cx + 0.5) * inv_fx            # (1, P)
    b = (v - cy + 0.5) * inv_fy            # (1, P)
    rn = jax.lax.rsqrt(a * a + b * b + 1.0)     # EUP rsqrt (not a VALU divide)
    an = a * rn
    bn = b * rn
    cn = rn

    # World-space direction: d = (c2w[:3,:3] @ R_edit) @ normalize([a, b, 1])
    dx = m00 * an + m01 * bn + m02 * cn
    dy = m10 * an + m11 * bn + m12 * cn
    dz = m20 * an + m21 * bn + m22 * cn

    # Cube-map face selection (+x,-x,+y,-y,+z,-z).
    ax = jnp.abs(dx)
    ay = jnp.abs(dy)
    az = jnp.abs(dz)
    use_z = az > jnp.maximum(ax, ay)
    use_y = jnp.logical_and(jnp.logical_not(use_z), ay > ax)

    ma = jnp.where(use_z, az, jnp.where(use_y, ay, ax))
    face = jnp.where(use_z, jnp.where(dz >= 0, 4, 5),
           jnp.where(use_y, jnp.where(dy >= 0, 2, 3),
                            jnp.where(dx >= 0, 0, 1)))
    sc = jnp.where(use_z, jnp.where(dz >= 0, dx, -dx),
         jnp.where(use_y, dx,
                          jnp.where(dx >= 0, -dz, dz)))
    tc = jnp.where(use_y, jnp.where(dy >= 0, dz, -dz), -dy)

    # 1/ma on the EUP plus one Newton step (keeps ~f32 accuracy off the VALU).
    r_ap = pl.reciprocal(ma, approx=True)
    inv_ma = r_ap * (2.0 - ma * r_ap)
    s = 0.5 * (sc * inv_ma + 1.0)
    t = 0.5 * (tc * inv_ma + 1.0)

    # Bilinear footprint in texel space.
    # TODO(synk): nvdiffrast boundary_mode='cube' blends across adjacent faces
    # at seams; here the footprint is clamped to the selected face.
    pxf = s * R - 0.5
    pyf = t * R - 0.5
    x0f = jnp.floor(pxf)
    y0f = jnp.floor(pyf)
    fu = pxf - x0f
    fv = pyf - y0f
    x0 = jnp.clip(x0f.astype(jnp.int32), 0, R - 1)
    x1 = jnp.clip(x0f.astype(jnp.int32) + 1, 0, R - 1)
    y0 = jnp.clip(y0f.astype(jnp.int32), 0, R - 1)
    y1 = jnp.clip(y0f.astype(jnp.int32) + 1, 0, R - 1)

    row0 = face * R + y0                   # texel-row index in [0, 6R)
    row1 = face * R + y1

    # --- factored gather ----------------------------------------------------
    # Stage 1 (MXU): ONE per-pixel texel-row selector with the y-bilinear
    # weight folded in: rowsel[k, p] = (1-fv)*[k == row0] + fv*[k == row1].
    # (When row0 == row1 at a clamped edge the weights sum to 1, matching the
    # unfused two-matmul formulation.)
    rr = jax.lax.broadcasted_iota(jnp.int32, (6 * R, P), 0)
    rowsel = (jnp.where(rr == row0, 1.0 - fv, 0.0)
              + jnp.where(rr == row1, fv, 0.0)).astype(jnp.bfloat16)  # (6R, P)
    tex = tex_ref[...]                                                # (3R, 6R)
    g = jnp.dot(tex, rowsel, preferred_element_type=jnp.float32)      # (3R, P)

    # Stage 2 (VPU): per-pixel column blend with the x-bilinear weight folded
    # into a single selector, then a sublane reduction over the R taps of each
    # channel. Channel rows are stored directly (no concatenate -> no sublane
    # relayout shuffle before the store).
    xx = jax.lax.broadcasted_iota(jnp.int32, (R, P), 0)
    colw = jnp.where(xx == x0, 1.0 - fu, 0.0) + jnp.where(xx == x1, fu, 0.0)
    for c in range(3):                     # unrolled; R is a multiple of 8
        pc = g[c * R:(c + 1) * R, :] * colw
        out_ref[pl.ds(c, 1), :] = jnp.sum(pc, axis=0,
                                          keepdims=True).astype(out_ref.dtype)


def envlight_forward(base, c2w, width, height, cx, cy, fx, fy, rows_per_step=None):
    """EnvLight.forward(camera, train=False). Returns (H, W, 3) float32."""
    R = base.shape[1]
    assert R % 8 == 0, "cube-map resolution must be a multiple of 8"
    assert width >= 128 and (width & (width - 1)) == 0, \
        "image width must be a power-of-two multiple of 128"
    npix = width * height

    # Rows per grid step: batch up to 8 rows so the output DMA and the gather
    # matmul work on a (1, rows*W) lane-dense strip, while keeping >= 2 grid
    # steps so both v7x TensorCores get work under "parallel" semantics.
    if rows_per_step is None:
        rows_per_step = 1
        for rb in (8, 4, 2):
            if height % rb == 0 and height // rb >= 2:
                rows_per_step = rb
                break
    assert height % rows_per_step == 0
    grid_len = height // rows_per_step
    pix_per_step = rows_per_step * width

    R_edit = jnp.diag(jnp.array([1.0, -1.0, -1.0], jnp.float32))
    M = c2w[:3, :3].astype(jnp.float32) @ R_edit
    cam = jnp.concatenate([
        jnp.array([cx, cy, 1.0 / fx, 1.0 / fy], jnp.float32),
        M.reshape(-1),
        jnp.zeros((3,), jnp.float32),
    ])

    # Channels-first texture: texT[c*R + x, face*R + y] = base[face, y, x, c].
    # bf16 halves the VMEM/HBM footprint and feeds the MXU natively.
    tex = jnp.transpose(base.astype(jnp.float32), (3, 2, 0, 1)).reshape(3 * R, 6 * R)
    tex = tex.astype(jnp.bfloat16)

    # Explicit VMEM budget, clamped to the chip's physical VMEM (v7x: 64 MiB/TC).
    P = pix_per_step
    vmem_bytes = (
        2 * 2 * (3 * R) * (6 * R)              # bf16 cube map (double-buffered)
        + 2 * 3 * P * 4 * 2                    # f32 output blocks (2 bufs)
        + (6 * R) * P * (4 + 4 + 2)            # row iota + f32 selector + bf16
        + (3 * R) * P * 4                      # stage-1 gather result
        + 3 * R * P * 4                        # stage-2 iota / weights / products
        + 64 * P * 4)                          # (1, P) ray/index temporaries
    try:
        vmem_cap = int(pltpu.get_tpu_info().vmem_capacity_bytes)
    except Exception:
        vmem_cap = 64 * 1024 * 1024            # conservative (v7x per-TC VMEM)
    vmem_limit = int(min(max(32 * 1024 * 1024, 2 * vmem_bytes),
                         (3 * vmem_cap) // 4))

    kernel = functools.partial(_envlight_kernel, W=width, R=R, RB=rows_per_step)
    light = pl.pallas_call(
        kernel,
        out_shape=jax.ShapeDtypeStruct((3, npix), jnp.float32),
        grid=(grid_len,),                      # rows_per_step image rows / step
        in_specs=[
            pl.BlockSpec(memory_space=pltpu.MemorySpace.SMEM),  # camera scalars
            # Grid-invariant cube map: constant index_map -> DMA'd only once.
            # TODO(synk): at production resolution (R=1024) the cube map no
            # longer fits VMEM (esp. v7x, 64 MiB) and the O(R^2)-per-pixel
            # factored gather is too expensive; keep it HBM-resident
            # (memory_space=pl.ANY) and DMA-gather per-face tiles instead
            # (single-buffering the texture would also halve its VMEM at R>=512).
            pl.BlockSpec((3 * R, 6 * R), lambda i: (0, 0)),     # full cube map
        ],
        out_specs=pl.BlockSpec((3, pix_per_step), lambda i: (0, i)),
        compiler_params=pltpu.CompilerParams(
            dimension_semantics=("parallel",),
            vmem_limit_bytes=vmem_limit),
    )(cam, tex)
    # Module semantics return (H, W, 3). If the consumer accepted channels-first
    # (3, H, W) this transpose (an extra HBM round trip) could be dropped.
    return jnp.transpose(light.reshape(3, height, width), (1, 2, 0))


def envlight_reference(base, c2w, width, height, cx, cy, fx, fy):
    """Pure-JAX reference of the same forward (same math, no Pallas)."""
    R = base.shape[1]
    u, v = jnp.meshgrid(jnp.arange(width, dtype=jnp.float32),
                        jnp.arange(height, dtype=jnp.float32), indexing="xy")
    u = u.reshape(-1)
    v = v.reshape(-1)
    a = (u - cx + 0.5) / fx
    b = (v - cy + 0.5) / fy
    c = jnp.ones_like(a)
    inv_n = 1.0 / jnp.sqrt(a * a + b * b + c * c)
    a, b, c = a * inv_n, b * inv_n, c * inv_n
    R_edit = jnp.diag(jnp.array([1.0, -1.0, -1.0], jnp.float32))
    M = c2w[:3, :3].astype(jnp.float32) @ R_edit
    dx = M[0, 0] * a + M[0, 1] * b + M[0, 2] * c
    dy = M[1, 0] * a + M[1, 1] * b + M[1, 2] * c
    dz = M[2, 0] * a + M[2, 1] * b + M[2, 2] * c

    ax, ay, az = jnp.abs(dx), jnp.abs(dy), jnp.abs(dz)
    use_z = az > jnp.maximum(ax, ay)
    use_y = (~use_z) & (ay > ax)
    ma = jnp.where(use_z, az, jnp.where(use_y, ay, ax))
    face = jnp.where(use_z, jnp.where(dz >= 0, 4, 5),
           jnp.where(use_y, jnp.where(dy >= 0, 2, 3),
                            jnp.where(dx >= 0, 0, 1)))
    sc = jnp.where(use_z, jnp.where(dz >= 0, dx, -dx),
         jnp.where(use_y, dx, jnp.where(dx >= 0, -dz, dz)))
    tc = jnp.where(use_y, jnp.where(dy >= 0, dz, -dz), -dy)
    s = 0.5 * (sc / ma + 1.0)
    t = 0.5 * (tc / ma + 1.0)
    px = s * R - 0.5
    py = t * R - 0.5
    x0f, y0f = jnp.floor(px), jnp.floor(py)
    fu, fv = px - x0f, py - y0f
    x0 = jnp.clip(x0f.astype(jnp.int32), 0, R - 1)
    x1 = jnp.clip(x0f.astype(jnp.int32) + 1, 0, R - 1)
    y0 = jnp.clip(y0f.astype(jnp.int32), 0, R - 1)
    y1 = jnp.clip(y0f.astype(jnp.int32) + 1, 0, R - 1)
    tex = base.reshape(-1, 3)
    fb = face * (R * R)
    g = lambda xi, yi: tex[fb + yi * R + xi]
    out = (g(x0, y0) * ((1 - fu) * (1 - fv))[:, None]
           + g(x1, y0) * (fu * (1 - fv))[:, None]
           + g(x0, y1) * ((1 - fu) * fv)[:, None]
           + g(x1, y1) * (fu * fv)[:, None])
    return out.reshape(height, width, 3)


if __name__ == "__main__":
    key = jax.random.PRNGKey(0)
    R = 16            # EnvLight(resolution=16) for this small test (default 1024)
    H, W = 32, 256    # image height / width (W is a power-of-two lane multiple)
    fx = fy = 60.0
    cx = W / 2.0
    cy = H / 2.0

    # Module __init__ uses base = 0.5 * ones(6, R, R, 3); same shape here but a
    # deterministic random texture so the cube-map sampling path is exercised.
    kb, _ = jax.random.split(key)
    base = 0.5 + 0.1 * jax.random.normal(kb, (6, R, R, 3), jnp.float32)

    th, ph = 0.3, 0.7
    Rz = jnp.array([[jnp.cos(th), -jnp.sin(th), 0.0],
                    [jnp.sin(th), jnp.cos(th), 0.0],
                    [0.0, 0.0, 1.0]], jnp.float32)
    Rx = jnp.array([[1.0, 0.0, 0.0],
                    [0.0, jnp.cos(ph), -jnp.sin(ph)],
                    [0.0, jnp.sin(ph), jnp.cos(ph)]], jnp.float32)
    rot = Rz @ Rx
    c2w = jnp.concatenate([rot, jnp.zeros((3, 1), jnp.float32)], axis=1)  # (3, 4)

    light = envlight_forward(base, c2w, W, H, cx, cy, fx, fy)
    light = jax.block_until_ready(light)

    ref = envlight_reference(base, c2w, W, H, cx, cy, fx, fy)
    assert light.shape == (H, W, 3)
    err = float(jnp.max(jnp.abs(light - ref)))
    # Texels and the folded y-weight go through the bf16 MXU path
    # -> ~2^-8..2^-9 relative rounding vs the f32 reference.
    assert jnp.allclose(light, ref, atol=6e-3, rtol=6e-3), err
    print("KERNEL_OK")
</pallas_src>

<mosaic_0001>
module attributes {stable_mosaic.version = 11 : i64} {
  func.func @_envlight_kernel(%arg0: i32, %arg1: memref<16xf32, #tpu.memory_space<smem>>, %arg2: memref<48x96xbf16, #tpu.memory_space<vmem>>, %arg3: memref<3x2048xf32, #tpu.memory_space<vmem>>) attributes {dimension_semantics = [#tpu.dimension_semantics<parallel>], iteration_bounds = array<i64: 4>, scalar_prefetch = 0 : i64, scratch_operands = 0 : i64, tpu.core_type = #tpu.core_type<tc>, window_params = [{transform_indices = @transform_0, window_bounds = array<i64: 16>}, {pipeline_mode = #tpu.pipeline_mode<synchronous>, transform_indices = @transform_1, window_bounds = array<i64: 48, 96>}, {transform_indices = @transform_2, window_bounds = array<i64: 3, 2048>}]} {
    %c0 = arith.constant 0 : index
    %0 = memref.load %arg1[%c0] : memref<16xf32, #tpu.memory_space<smem>>
    %c1 = arith.constant 1 : index
    %1 = memref.load %arg1[%c1] : memref<16xf32, #tpu.memory_space<smem>>
    %c2 = arith.constant 2 : index
    %2 = memref.load %arg1[%c2] : memref<16xf32, #tpu.memory_space<smem>>
    %c3 = arith.constant 3 : index
    %3 = memref.load %arg1[%c3] : memref<16xf32, #tpu.memory_space<smem>>
    %c4 = arith.constant 4 : index
    %4 = memref.load %arg1[%c4] : memref<16xf32, #tpu.memory_space<smem>>
    %c5 = arith.constant 5 : index
    %5 = memref.load %arg1[%c5] : memref<16xf32, #tpu.memory_space<smem>>
    %c6 = arith.constant 6 : index
    %6 = memref.load %arg1[%c6] : memref<16xf32, #tpu.memory_space<smem>>
    %c7 = arith.constant 7 : index
    %7 = memref.load %arg1[%c7] : memref<16xf32, #tpu.memory_space<smem>>
    %c8 = arith.constant 8 : index
    %8 = memref.load %arg1[%c8] : memref<16xf32, #tpu.memory_space<smem>>
    %c9 = arith.constant 9 : index
    %9 = memref.load %arg1[%c9] : memref<16xf32, #tpu.memory_space<smem>>
    %c10 = arith.constant 10 : index
    %10 = memref.load %arg1[%c10] : memref<16xf32, #tpu.memory_space<smem>>
    %c11 = arith.constant 11 : index
    %11 = memref.load %arg1[%c11] : memref<16xf32, #tpu.memory_space<smem>>
    %c12 = arith.constant 12 : index
    %12 = memref.load %arg1[%c12] : memref<16xf32, #tpu.memory_space<smem>>
    %13 = tpu.iota {dimensions = array<i32: 1>} : vector<1x2048xi32>
    %c255_i32 = arith.constant 255 : i32
    %14 = vector.broadcast %c255_i32 : i32 to vector<1x2048xi32>
    %15 = arith.andi %13, %14 : vector<1x2048xi32>
    %16 = arith.sitofp %15 : vector<1x2048xi32> to vector<1x2048xf32>
    %17 = arith.subi %13, %15 : vector<1x2048xi32>
    %18 = arith.sitofp %17 : vector<1x2048xi32> to vector<1x2048xf32>
    %cst = arith.constant 3.906250e-03 : f32
    %19 = vector.broadcast %cst : f32 to vector<1x2048xf32>
    %20 = arith.mulf %18, %19 : vector<1x2048xf32>
    %21 = arith.sitofp %arg0 : i32 to f32
    %cst_0 = arith.constant 8.000000e+00 : f32
    %22 = arith.mulf %21, %cst_0 : f32
    %23 = vector.broadcast %22 : f32 to vector<1x2048xf32>
    %24 = arith.addf %23, %20 : vector<1x2048xf32>
    %25 = vector.broadcast %0 : f32 to vector<1x2048xf32>
    %26 = arith.subf %16, %25 : vector<1x2048xf32>
    %cst_1 = arith.constant 5.000000e-01 : f32
    %27 = vector.broadcast %cst_1 : f32 to vector<1x2048xf32>
    %28 = arith.addf %26, %27 : vector<1x2048xf32>
    %29 = vector.broadcast %2 : f32 to vector<1x2048xf32>
    %30 = arith.mulf %28, %29 : vector<1x2048xf32>
    %31 = vector.broadcast %1 : f32 to vector<1x2048xf32>
    %32 = arith.subf %24, %31 : vector<1x2048xf32>
    %cst_2 = arith.constant 5.000000e-01 : f32
    %33 = vector.broadcast %cst_2 : f32 to vector<1x2048xf32>
    %34 = arith.addf %32, %33 : vector<1x2048xf32>
    %35 = vector.broadcast %3 : f32 to vector<1x2048xf32>
    %36 = arith.mulf %34, %35 : vector<1x2048xf32>
    %37 = arith.mulf %30, %30 : vector<1x2048xf32>
    %38 = arith.mulf %36, %36 : vector<1x2048xf32>
    %39 = arith.addf %37, %38 : vector<1x2048xf32>
    %cst_3 = arith.constant 1.000000e+00 : f32
    %40 = vector.broadcast %cst_3 : f32 to vector<1x2048xf32>
    %41 = arith.addf %39, %40 : vector<1x2048xf32>
    %42 = math.rsqrt %41 : vector<1x2048xf32>
    %43 = arith.mulf %30, %42 : vector<1x2048xf32>
    %44 = arith.mulf %36, %42 : vector<1x2048xf32>
    %45 = vector.broadcast %4 : f32 to vector<1x2048xf32>
    %46 = arith.mulf %45, %43 : vector<1x2048xf32>
    %47 = vector.broadcast %5 : f32 to vector<1x2048xf32>
    %48 = arith.mulf %47, %44 : vector<1x2048xf32>
    %49 = arith.addf %46, %48 : vector<1x2048xf32>
    %50 = vector.broadcast %6 : f32 to vector<1x2048xf32>
    %51 = arith.mulf %50, %42 : vector<1x2048xf32>
    %52 = arith.addf %49, %51 : vector<1x2048xf32>
    %53 = vector.broadcast %7 : f32 to vector<1x2048xf32>
    %54 = arith.mulf %53, %43 : vector<1x2048xf32>
    %55 = vector.broadcast %8 : f32 to vector<1x2048xf32>
    %56 = arith.mulf %55, %44 : vector<1x2048xf32>
    %57 = arith.addf %54, %56 : vector<1x2048xf32>
    %58 = vector.broadcast %9 : f32 to vector<1x2048xf32>
    %59 = arith.mulf %58, %42 : vector<1x2048xf32>
    %60 = arith.addf %57, %59 : vector<1x2048xf32>
    %61 = vector.broadcast %10 : f32 to vector<1x2048xf32>
    %62 = arith.mulf %61, %43 : vector<1x2048xf32>
    %63 = vector.broadcast %11 : f32 to vector<1x2048xf32>
    %64 = arith.mulf %63, %44 : vector<1x2048xf32>
    %65 = arith.addf %62, %64 : vector<1x2048xf32>
    %66 = vector.broadcast %12 : f32 to vector<1x2048xf32>
    %67 = arith.mulf %66, %42 : vector<1x2048xf32>
    %68 = arith.addf %65, %67 : vector<1x2048xf32>
    %69 = math.absf %52 : vector<1x2048xf32>
    %70 = math.absf %60 : vector<1x2048xf32>
    %71 = math.absf %68 : vector<1x2048xf32>
    %72 = arith.maximumf %69, %70 : vector<1x2048xf32>
    %73 = arith.cmpf ogt, %71, %72 : vector<1x2048xf32>
    %cst_4 = arith.constant dense<true> : vector<1x2048xi1>
    %74 = arith.xori %73, %cst_4 : vector<1x2048xi1>
    %75 = arith.cmpf ogt, %70, %69 : vector<1x2048xf32>
    %76 = arith.andi %74, %75 : vector<1x2048xi1>
    %77 = arith.select %76, %70, %69 : vector<1x2048xi1>, vector<1x2048xf32>
    %78 = arith.select %73, %71, %77 : vector<1x2048xi1>, vector<1x2048xf32>
    %cst_5 = arith.constant 0.000000e+00 : f32
    %79 = vector.broadcast %cst_5 : f32 to vector<1x2048xf32>
    %80 = arith.cmpf oge, %68, %79 : vector<1x2048xf32>
    %c4_i32 = arith.constant 4 : i32
    %c5_i32 = arith.constant 5 : i32
    %81 = vector.broadcast %c4_i32 : i32 to vector<1x2048xi32>
    %82 = vector.broadcast %c5_i32 : i32 to vector<1x2048xi32>
    %83 = arith.select %80, %81, %82 : vector<1x2048xi1>, vector<1x2048xi32>
    %cst_6 = arith.constant 0.000000e+00 : f32
    %84 = vector.broadcast %cst_6 : f32 to vector<1x2048xf32>
    %85 = arith.cmpf oge, %60, %84 : vector<1x2048xf32>
    %c2_i32 = arith.constant 2 : i32
    %c3_i32 = arith.constant 3 : i32
    %86 = vector.broadcast %c2_i32 : i32 to vector<1x2048xi32>
    %87 = vector.broadcast %c3_i32 : i32 to vector<1x2048xi32>
    %88 = arith.select %85, %86, %87 : vector<1x2048xi1>, vector<1x2048xi32>
    %cst_7 = arith.constant 0.000000e+00 : f32
    %89 = vector.broadcast %cst_7 : f32 to vector<1x2048xf32>
    %90 = arith.cmpf oge, %52, %89 : vector<1x2048xf32>
    %c0_i32 = arith.constant 0 : i32
    %c1_i32 = arith.constant 1 : i32
    %91 = vector.broadcast %c0_i32 : i32 to vector<1x2048xi32>
    %92 = vector.broadcast %c1_i32 : i32 to vector<1x2048xi32>
    %93 = arith.select %90, %91, %92 : vector<1x2048xi1>, vector<1x2048xi32>
    %94 = arith.select %76, %88, %93 : vector<1x2048xi1>, vector<1x2048xi32>
    %95 = arith.select %73, %83, %94 : vector<1x2048xi1>, vector<1x2048xi32>
    %cst_8 = arith.constant 0.000000e+00 : f32
    %96 = vector.broadcast %cst_8 : f32 to vector<1x2048xf32>
    %97 = arith.cmpf oge, %68, %96 : vector<1x2048xf32>
    %cst_9 = arith.constant 0.000000e+00 : f32
    %98 = vector.broadcast %cst_9 : f32 to vector<1x2048xf32>
    %99 = arith.subf %98, %52 : vector<1x2048xf32>
    %100 = arith.select %97, %52, %99 : vector<1x2048xi1>, vector<1x2048xf32>
    %cst_10 = arith.constant 0.000000e+00 : f32
    %101 = vector.broadcast %cst_10 : f32 to vector<1x2048xf32>
    %102 = arith.cmpf oge, %52, %101 : vector<1x2048xf32>
    %cst_11 = arith.constant 0.000000e+00 : f32
    %103 = vector.broadcast %cst_11 : f32 to vector<1x2048xf32>
    %104 = arith.subf %103, %68 : vector<1x2048xf32>
    %105 = arith.select %102, %104, %68 : vector<1x2048xi1>, vector<1x2048xf32>
    %106 = arith.select %76, %52, %105 : vector<1x2048xi1>, vector<1x2048xf32>
    %107 = arith.select %73, %100, %106 : vector<1x2048xi1>, vector<1x2048xf32>
    %cst_12 = arith.constant 0.000000e+00 : f32
    %108 = vector.broadcast %cst_12 : f32 to vector<1x2048xf32>
    %109 = arith.cmpf oge, %60, %108 : vector<1x2048xf32>
    %cst_13 = arith.constant 0.000000e+00 : f32
    %110 = vector.broadcast %cst_13 : f32 to vector<1x2048xf32>
    %111 = arith.subf %110, %68 : vector<1x2048xf32>
    %112 = arith.select %109, %68, %111 : vector<1x2048xi1>, vector<1x2048xf32>
    %cst_14 = arith.constant 0.000000e+00 : f32
    %113 = vector.broadcast %cst_14 : f32 to vector<1x2048xf32>
    %114 = arith.subf %113, %60 : vector<1x2048xf32>
    %115 = arith.select %76, %112, %114 : vector<1x2048xi1>, vector<1x2048xf32>
    %116 = tpu.reciprocal %78 {approx = true} : vector<1x2048xf32> -> vector<1x2048xf32>
    %117 = arith.mulf %78, %116 : vector<1x2048xf32>
    %cst_15 = arith.constant 2.000000e+00 : f32
    %118 = vector.broadcast %cst_15 : f32 to vector<1x2048xf32>
    %119 = arith.subf %118, %117 : vector<1x2048xf32>
    %120 = arith.mulf %116, %119 : vector<1x2048xf32>
    %121 = arith.mulf %107, %120 : vector<1x2048xf32>
    %cst_16 = arith.constant 1.000000e+00 : f32
    %122 = vector.broadcast %cst_16 : f32 to vector<1x2048xf32>
    %123 = arith.addf %121, %122 : vector<1x2048xf32>
    %cst_17 = arith.constant 5.000000e-01 : f32
    %124 = vector.broadcast %cst_17 : f32 to vector<1x2048xf32>
    %125 = arith.mulf %124, %123 : vector<1x2048xf32>
    %126 = arith.mulf %115, %120 : vector<1x2048xf32>
    %cst_18 = arith.constant 1.000000e+00 : f32
    %127 = vector.broadcast %cst_18 : f32 to vector<1x2048xf32>
    %128 = arith.addf %126, %127 : vector<1x2048xf32>
    %cst_19 = arith.constant 5.000000e-01 : f32
    %129 = vector.broadcast %cst_19 : f32 to vector<1x2048xf32>
    %130 = arith.mulf %129, %128 : vector<1x2048xf32>
    %cst_20 = arith.constant 1.600000e+01 : f32
    %131 = vector.broadcast %cst_20 : f32 to vector<1x2048xf32>
    %132 = arith.mulf %125, %131 : vector<1x2048xf32>
    %cst_21 = arith.constant 5.000000e-01 : f32
    %133 = vector.broadcast %cst_21 : f32 to vector<1x2048xf32>
    %134 = arith.subf %132, %133 : vector<1x2048xf32>
    %cst_22 = arith.constant 1.600000e+01 : f32
    %135 = vector.broadcast %cst_22 : f32 to vector<1x2048xf32>
    %136 = arith.mulf %130, %135 : vector<1x2048xf32>
    %cst_23 = arith.constant 5.000000e-01 : f32
    %137 = vector.broadcast %cst_23 : f32 to vector<1x2048xf32>
    %138 = arith.subf %136, %137 : vector<1x2048xf32>
    %139 = math.floor %134 : vector<1x2048xf32>
    %140 = math.floor %138 : vector<1x2048xf32>
    %141 = arith.subf %134, %139 : vector<1x2048xf32>
    %142 = arith.subf %138, %140 : vector<1x2048xf32>
    %143 = arith.fptosi %139 : vector<1x2048xf32> to vector<1x2048xi32>
    %c0_i32_24 = arith.constant 0 : i32
    %c15_i32 = arith.constant 15 : i32
    %144 = vector.broadcast %c0_i32_24 : i32 to vector<1x2048xi32>
    %145 = arith.maxsi %144, %143 : vector<1x2048xi32>
    %146 = vector.broadcast %c15_i32 : i32 to vector<1x2048xi32>
    %147 = arith.minsi %146, %145 : vector<1x2048xi32>
    %148 = arith.fptosi %139 : vector<1x2048xf32> to vector<1x2048xi32>
    %c1_i32_25 = arith.constant 1 : i32
    %149 = vector.broadcast %c1_i32_25 : i32 to vector<1x2048xi32>
    %150 = arith.addi %148, %149 : vector<1x2048xi32>
    %c0_i32_26 = arith.constant 0 : i32
    %c15_i32_27 = arith.constant 15 : i32
    %151 = vector.broadcast %c0_i32_26 : i32 to vector<1x2048xi32>
    %152 = arith.maxsi %151, %150 : vector<1x2048xi32>
    %153 = vector.broadcast %c15_i32_27 : i32 to vector<1x2048xi32>
    %154 = arith.minsi %153, %152 : vector<1x2048xi32>
    %155 = arith.fptosi %140 : vector<1x2048xf32> to vector<1x2048xi32>
    %c0_i32_28 = arith.constant 0 : i32
    %c15_i32_29 = arith.constant 15 : i32
    %156 = vector.broadcast %c0_i32_28 : i32 to vector<1x2048xi32>
    %157 = arith.maxsi %156, %155 : vector<1x2048xi32>
    %158 = vector.broadcast %c15_i32_29 : i32 to vector<1x2048xi32>
    %159 = arith.minsi %158, %157 : vector<1x2048xi32>
    %160 = arith.fptosi %140 : vector<1x2048xf32> to vector<1x2048xi32>
    %c1_i32_30 = arith.constant 1 : i32
    %161 = vector.broadcast %c1_i32_30 : i32 to vector<1x2048xi32>
    %162 = arith.addi %160, %161 : vector<1x2048xi32>
    %c0_i32_31 = arith.constant 0 : i32
    %c15_i32_32 = arith.constant 15 : i32
    %163 = vector.broadcast %c0_i32_31 : i32 to vector<1x2048xi32>
    %164 = arith.maxsi %163, %162 : vector<1x2048xi32>
    %165 = vector.broadcast %c15_i32_32 : i32 to vector<1x2048xi32>
    %166 = arith.minsi %165, %164 : vector<1x2048xi32>
    %c16_i32 = arith.constant 16 : i32
    %167 = vector.broadcast %c16_i32 : i32 to vector<1x2048xi32>
    %168 = arith.muli %95, %167 : vector<1x2048xi32>
    %169 = arith.addi %168, %159 : vector<1x2048xi32>
    %c16_i32_33 = arith.constant 16 : i32
    %170 = vector.broadcast %c16_i32_33 : i32 to vector<1x2048xi32>
    %171 = arith.muli %95, %170 : vector<1x2048xi32>
    %172 = arith.addi %171, %166 : vector<1x2048xi32>
    %173 = tpu.iota {dimensions = array<i32: 0>} : vector<96x2048xi32>
    %174 = vector.broadcast %169 : vector<1x2048xi32> to vector<96x2048xi32>
    %175 = arith.cmpi eq, %173, %174 : vector<96x2048xi32>
    %cst_34 = arith.constant 1.000000e+00 : f32
    %176 = vector.broadcast %cst_34 : f32 to vector<1x2048xf32>
    %177 = arith.subf %176, %142 : vector<1x2048xf32>
    %cst_35 = arith.constant 0.000000e+00 : f32
    %178 = vector.shape_cast %177 : vector<1x2048xf32> to vector<1x2048xf32>
    %179 = vector.broadcast %178 : vector<1x2048xf32> to vector<96x2048xf32>
    %180 = vector.broadcast %cst_35 : f32 to vector<96x2048xf32>
    %181 = arith.select %175, %179, %180 : vector<96x2048xi1>, vector<96x2048xf32>
    %182 = vector.broadcast %172 : vector<1x2048xi32> to vector<96x2048xi32>
    %183 = arith.cmpi eq, %173, %182 : vector<96x2048xi32>
    %cst_36 = arith.constant 0.000000e+00 : f32
    %184 = vector.shape_cast %142 : vector<1x2048xf32> to vector<1x2048xf32>
    %185 = vector.broadcast %184 : vector<1x2048xf32> to vector<96x2048xf32>
    %186 = vector.broadcast %cst_36 : f32 to vector<96x2048xf32>
    %187 = arith.select %183, %185, %186 : vector<96x2048xi1>, vector<96x2048xf32>
    %188 = arith.addf %181, %187 : vector<96x2048xf32>
    %189 = arith.truncf %188 : vector<96x2048xf32> to vector<96x2048xbf16>
    %c0_37 = arith.constant 0 : index
    %c0_38 = arith.constant 0 : index
    %190 = vector.load %arg2[%c0_37, %c0_38] : memref<48x96xbf16, #tpu.memory_space<vmem>>, vector<48x96xbf16>
    %cst_39 = arith.constant dense<0.000000e+00> : vector<48x2048xf32>
    %191 = tpu.matmul %190, %189, %cst_39 {dimension_numbers = #tpu.dot_dimension_numbers<[1], [0], [0], [1], [0, 0, 1, 1], [], []>} : vector<48x96xbf16>, vector<96x2048xbf16>, vector<48x2048xf32> -> vector<48x2048xf32>
    %192 = tpu.iota {dimensions = array<i32: 0>} : vector<16x2048xi32>
    %193 = vector.broadcast %147 : vector<1x2048xi32> to vector<16x2048xi32>
    %194 = arith.cmpi eq, %192, %193 : vector<16x2048xi32>
    %cst_40 = arith.constant 1.000000e+00 : f32
    %195 = vector.broadcast %cst_40 : f32 to vector<1x2048xf32>
    %196 = arith.subf %195, %141 : vector<1x2048xf32>
    %cst_41 = arith.constant 0.000000e+00 : f32
    %197 = vector.shape_cast %196 : vector<1x2048xf32> to vector<1x2048xf32>
    %198 = vector.broadcast %197 : vector<1x2048xf32> to vector<16x2048xf32>
    %199 = vector.broadcast %cst_41 : f32 to vector<16x2048xf32>
    %200 = arith.select %194, %198, %199 : vector<16x2048xi1>, vector<16x2048xf32>
    %201 = vector.broadcast %154 : vector<1x2048xi32> to vector<16x2048xi32>
    %202 = arith.cmpi eq, %192, %201 : vector<16x2048xi32>
    %cst_42 = arith.constant 0.000000e+00 : f32
    %203 = vector.shape_cast %141 : vector<1x2048xf32> to vector<1x2048xf32>
    %204 = vector.broadcast %203 : vector<1x2048xf32> to vector<16x2048xf32>
    %205 = vector.broadcast %cst_42 : f32 to vector<16x2048xf32>
    %206 = arith.select %202, %204, %205 : vector<16x2048xi1>, vector<16x2048xf32>
    %207 = arith.addf %200, %206 : vector<16x2048xf32>
    %208 = vector.extract_strided_slice %191 {offsets = [0, 0], sizes = [16, 2048], strides = [1, 1]} : vector<48x2048xf32> to vector<16x2048xf32>
    %209 = arith.mulf %208, %207 : vector<16x2048xf32>
    %cst_43 = arith.constant dense<0.000000e+00> : vector<2048xf32>
    %210 = vector.multi_reduction <add>, %209, %cst_43 [0] : vector<16x2048xf32> to vector<2048xf32>
    %211 = vector.shape_cast %210 : vector<2048xf32> to vector<1x2048xf32>
    %c0_44 = arith.constant 0 : index
    %c0_45 = arith.constant 0 : index
    %212 = vector.load %arg3[%c0_44, %c0_45] : memref<3x2048xf32, #tpu.memory_space<vmem>>, vector<1x2048xf32>
    tpu.vector_store %arg3[%c0_44, %c0_45], %211 {strides = array<i32>} : memref<3x2048xf32, #tpu.memory_space<vmem>>, vector<1x2048xf32>,
    %213 = vector.extract_strided_slice %191 {offsets = [16, 0], sizes = [16, 2048], strides = [1, 1]} : vector<48x2048xf32> to vector<16x2048xf32>
    %214 = arith.mulf %213, %207 : vector<16x2048xf32>
    %cst_46 = arith.constant dense<0.000000e+00> : vector<2048xf32>
    %215 = vector.multi_reduction <add>, %214, %cst_46 [0] : vector<16x2048xf32> to vector<2048xf32>
    %216 = vector.shape_cast %215 : vector<2048xf32> to vector<1x2048xf32>
    %c1_47 = arith.constant 1 : index
    %c0_48 = arith.constant 0 : index
    %217 = vector.load %arg3[%c1_47, %c0_48] : memref<3x2048xf32, #tpu.memory_space<vmem>>, vector<1x2048xf32>
    tpu.vector_store %arg3[%c1_47, %c0_48], %216 {strides = array<i32>} : memref<3x2048xf32, #tpu.memory_space<vmem>>, vector<1x2048xf32>,
    %218 = vector.extract_strided_slice %191 {offsets = [32, 0], sizes = [16, 2048], strides = [1, 1]} : vector<48x2048xf32> to vector<16x2048xf32>
    %219 = arith.mulf %218, %207 : vector<16x2048xf32>
    %cst_49 = arith.constant dense<0.000000e+00> : vector<2048xf32>
    %220 = vector.multi_reduction <add>, %219, %cst_49 [0] : vector<16x2048xf32> to vector<2048xf32>
    %221 = vector.shape_cast %220 : vector<2048xf32> to vector<1x2048xf32>
    %c2_50 = arith.constant 2 : index
    %c0_51 = arith.constant 0 : index
    %222 = vector.load %arg3[%c2_50, %c0_51] : memref<3x2048xf32, #tpu.memory_space<vmem>>, vector<1x2048xf32>
    tpu.vector_store %arg3[%c2_50, %c0_51], %221 {strides = array<i32>} : memref<3x2048xf32, #tpu.memory_space<vmem>>, vector<1x2048xf32>,
    return
  }
  func.func @transform_0(%arg0: i32) -> i32 {
    %c0_i32 = arith.constant 0 : i32
    %c0_i32_0 = arith.constant 0 : i32
    return %c0_i32 : i32
  }
  func.func @transform_1(%arg0: i32) -> (i32, i32) {
    %c0_i32 = arith.constant 0 : i32
    %c0_i32_0 = arith.constant 0 : i32
    %c0_i32_1 = arith.constant 0 : i32
    return %c0_i32, %c0_i32_0 : i32, i32
  }
  func.func @transform_2(%arg0: i32) -> (i32, i32) {
    %c0_i32 = arith.constant 0 : i32
    %c0_i32_0 = arith.constant 0 : i32
    return %c0_i32, %arg0 : i32, i32
  }
}

</mosaic_0001>

<bundles_post_ra>
// kernel: tpu_custom_call.1
= control target key start
LH: loop header
LB: loop body
LE: loop exit
PB: predicated region body
PF: predicated region fallthrough
CT: control target
= control target key end

     0   :  { %7 = vsyncpa [#allocation5], 0  ;;  %s8632_s0 = inlined_call_operand.hbm [shape: f32[16], index: 0, kind: input, shape index: {}]   ;;  %s8633_s1 = inlined_call_operand.hbm [shape: bf16[48,96], index: 1, kind: input, shape index: {}]   ;;  %s8634_s2 = inlined_call_operand.hbm [shape: f32[3,8192], index: 2, kind: output, shape index: {}]  }
   0x1   :  { %8 = vsyncpa [#allocation3], 0 }
   0x2   :  { %9 = vsyncpa [#allocation4], 0 }
   0x3   :  { %11 = vsyncpa [#allocation4 + $0x1], 0  ;;  %s4796_s9 = smov 0   ;;  %s4798_s10 = smov 0  }
   0x4   :  { %s4800_s11 = smov 0   ;;  %s4802_s12 = smov 0  }
   0x5 LB: > { %s4817_s13 = sadd.s32 4294967295, %s4771_s12   ;;  %s4329_s14 = sadd.s32 4294967294, %s4771_s12   ;;  %s4771_s12 = sphi %s4802_s12, %s9219_s12   ;;  %s4767_s11 = sphi %s4800_s11, %s9218_s11   ;;  %s4763_s10 = sphi %s4798_s10, %s9217_s10   ;;  %s4759_s9 = sphi %s4796_s9, %s9216_s9  }
   0x6   : > { %s4821_s15 = sadd.s32 1, %s4771_s12   ;;  %s66_s16 = sadd.s32 1, %s4767_s11 }
   0x7   : > { %s63_s17 = ssub.s32 %s4771_s12, %s4821_s15  ;;  %p76_p0 = scmp.ne.s32.totalorder %s4767_s11, %s4763_s10 }
   0x8   : > { %p64_p1 = scmp.eq.s32.totalorder %s63_s17, 0  ;;  %p77_p2 = scmp.eq.s32.totalorder %s4817_s13, 3 }
   0x9   : > { %p82_p3 = scmp.ne.s32.totalorder %s4763_s10, %s4759_s9  ;;  %p83_p4 = scmp.eq.s32.totalorder %s4329_s14, 3 }
   0xa   : > { %s4832_s18 = scalar_select %p64_p1, %s4767_s11, %s66_s16  }
   0xb   : > { %p4834_p5 = por %p77_p2, %p76_p0  ;;  %p4838_p6 = por %p83_p4, %p82_p3 }
   0xc   : > { %p4330_p7 = scmp.ge.s32.totalorder %s4771_s12, 1  ;;  %p90_p8 = scmp.lt.s32.totalorder %s4771_s12, 5 }
   0xd   : > { %p4540_p9 = scmp.eq.s32.totalorder %s4817_s13, 0  ;;  %s102_s24 = sshll.u32 %s8632_s0, 4  ;;  %s103_s24 = int_to_ptr.hbm [resolvable:$true] %s102_s24 }
   0xe   : > { %p4845_p10 = pnand %p4330_p7, %p90_p8  ;;  %s111_s27 = sshll.u32 %s8633_s1, 4  ;;  %s112_s27 = int_to_ptr.hbm [resolvable:$true] %s111_s27 }
   0xf   : > { %s4773_s28 = smov [#allocation6]   ;;  %s4774_s30 = smov [#allocation2]  }
  0x10   : > { %p4529_p11 = pneg %p4845_p10  ;;  %s113_s29 = sshll.u32 %s4773_s28, 4  ;;  %s114_s29 = int_to_ptr.vmem [resolvable:$true] %s113_s29 }
  0x11   : > { %s4775_s3 = smov 64   ;;  %s4776_s4 = smov 4  }
  0x12   : > { %p4530_p12 = pnand %p4540_p9, %p4529_p11  ;;  %129 = sbr.rel (%p4845_p10) target bundleno = 1023 (0x3ff), region = 28 }
  0x14   : > { %4532 = dma.hbm_to_smem (!%p4530_p12), %s103_s24, 16, %s4774_s30, [#allocation5]  }
  0x15   : > { %4535 = dma.hbm_to_vmem [thread:$0]  (!%p4530_p12), %s112_s27, 384, %s114_s29, [#allocation3], %s4775_s3, %s4775_s3, %s4776_s4  }
  0x17   : > { %4746 = dma.done.wait (%p4540_p9), [#allocation5], 16  }
  0x18   : > { %4748 = vsyncadd (%p4540_p9), [#allocation5], 4294967280 }
  0x19   : > { %4750 = dma.done.wait (%p4540_p9), [#allocation3], 384  }
  0x1a   : > { %4752 = vsyncadd (%p4540_p9), [#allocation3], 4294966912 }
  0x1b   : > { %141 = sfence }
  0x1c   : > { %s155_s5 = sld [smem:[#allocation2]]  ;;  %v168_v0 = vlaneseq  ;;  %s265_s6 = scvt.s32.f32 %s4817_s13  ;;  %vm8655_vm14 = vmmov 1  }
  0x1d   : > { %s4337_s7 = sld [smem:[#allocation2 + $0x1]]  ;;  %s150_s29 = sand.u32 1, %s4763_s10  }
  0x1e   : > { %v4871_v1 = vand.u32 127, %v168_v0  ;;  %s4338_s8 = sld [smem:[#allocation2 + $0x2]]  ;;  %s266_s14 = smul.f32 8.0, %s265_s6 }
  0x1f   : > { %s4339_s16 = sld [smem:[#allocation2 + $0x3]]  ;;  %s4336_s30 = sshll.u32 %s150_s29, 6 }
  0x20   : > { %v185_v2 = vand.u32 255, %v4871_v1  ;;  %v170_v3 = vadd.s32 128, %v4871_v1  ;;  %v171_v4 = vadd.s32 256, %v4871_v1  ;;  %v172_v5 = vadd.s32 384, %v4871_v1  ;;  %s4340_s17 = sld [smem:[#allocation2 + $0x4]]  ;;  %s8194_s3 = scalar_lea.vmem [#allocation7], %s4336_s30 }
  0x21   : > { %v4880_v12 = vstv %s266_s14  ;;  %s4341_s21 = sld [smem:[#allocation2 + $0x5]]  ;;  %s4454_s4 = sshll.u32 %s4817_s13, 6 }
  0x22   : > { %v201_v6 = vcvt.s32.f32 %v185_v2  ;;  %v217_v7 = vsub.s32 %v4871_v1, %v185_v2  ;;  %v4878_v8 = vstv %s155_s5  ;;  %v186_v9 = vand.u32 255, %v170_v3  ;;  %8828 = vst [vmem:[#allocation11_spill] sm:$0xff] %v4880_v12  ;;  %s4342_s22 = sld [smem:[#allocation2 + $0x6]]  ;;  %s4255_s13 = sshll.u32 %s8194_s3, 4  ;;  %s4256_s13 = int_to_ptr.vmem [resolvable:$true] %s4255_s13 }
  0x23   : > { %v187_v10 = vand.u32 255, %v171_v4  ;;  %v188_v18 = vand.u32 255, %v172_v5  ;;  %v4886_v23 = vstv %s4337_s7  ;;  %s4343_s23 = sld [smem:[#allocation2 + $0x7]]  ;;  %s4253_s7 = scalar_lea.hbm %s8634_s2, %s4454_s4 }
  0x24   : > { %v233_v11 = vcvt.s32.f32 %v217_v7  ;;  %v285_v13 = vsub.f32 %v201_v6, %v4878_v8  ;;  %v202_v14 = vcvt.s32.f32 %v186_v9  ;;  %v218_v15 = vsub.s32 %v170_v3, %v186_v9  ;;  %8830 = vst [vmem:[#allocation13_spill] sm:$0xff] %v4886_v23  ;;  %s4344_s24 = sld [smem:[#allocation2 + $0x8]]  ;;  %s4242_s14 = scalar_lea.sflag [#allocation4], %s150_s29 }
  0x25   : > { %v203_v16 = vcvt.s32.f32 %v187_v10  ;;  %v219_v17 = vsub.s32 %v171_v4, %v187_v10  ;;  %v4884_v22 = vstv %s4338_s8  ;;  %v220_v31 = vsub.s32 %v172_v5, %v188_v18  ;;  %s4345_s25 = sld [smem:[#allocation2 + $0x9]]  ;;  %s4257_s8 = sshll.u32 %s4253_s7, 4  ;;  %s4258_s8 = int_to_ptr.hbm [resolvable:$true] %s4257_s8 }
  0x26   : > { %v249_v19 = vmul.f32 0.00390625, %v233_v11  ;;  %v301_v20 = vadd.f32 0.5, %v285_v13  ;;  %v286_v21 = vsub.f32 %v202_v14, %v4878_v8  ;;  %8829 = vst [vmem:[#allocation12_spill] sm:$0xff] %v4884_v22  ;;  %v234_v24 = vcvt.s32.f32 %v218_v15  ;;  %s4346_s26 = sld [smem:[#allocation2 + $0xa]] }
  0x27   : > { %v235_v25 = vcvt.s32.f32 %v219_v17  ;;  %v287_v28 = vsub.f32 %v203_v16, %v4878_v8  ;;  %v204_v34 = vcvt.s32.f32 %v188_v18  ;;  %v4894_v35 = vstv %s4339_s16  ;;  %s4347_s27 = sld [smem:[#allocation2 + $0xb]]  ;;  %s4715_s16 = sshra.s32 %s4258_s8, 4  ;;  %s4716_s16 = int_to_ptr.hbm [resolvable:$true] %s4715_s16 }
  0x28   : > { %v268_v26 = vadd.f32 %v4880_v12, %v249_v19  ;;  %v302_v27 = vadd.f32 0.5, %v286_v21  ;;  %v250_v29 = vmul.f32 0.00390625, %v234_v24  ;;  %v4891_v32 = vmul.f32 %v4884_v22, %v301_v20  ;;  %8831 = vst [vmem:[#allocation14_spill] sm:$0xff] %v4894_v35  ;;  %s4348_s28 = sld [smem:[#allocation2 + $0xc]]  ;;  %p4722_p2 = scmp.lt.s32.totalorder %s4716_s16, %s8634_s2 }
  0x29   : > { %v251_v30 = vmul.f32 0.00390625, %v235_v25  ;;  %v303_v40 = vadd.f32 0.5, %v287_v28  ;;  %v236_v43 = vcvt.s32.f32 %v220_v31  ;;  %v288_v47 = vsub.f32 %v204_v34, %v4878_v8 }
  0x2a   : > { %v335_v33 = vsub.f32 %v268_v26, %v4886_v23  ;;  %v269_v36 = vadd.f32 %v4880_v12, %v250_v29  ;;  %v4899_v39 = vmul.f32 %v4884_v22, %v302_v27  ;;  %v384_v45 = vmul.f32 %v4891_v32, %v4891_v32 }
  0x2b   : > { %v270_v37 = vadd.f32 %v4880_v12, %v251_v30  ;;  %v4909_v46 = vmul.f32 %v4884_v22, %v303_v40  ;;  %v252_v50 = vmul.f32 0.00390625, %v236_v43  ;;  %v304_v53 = vadd.f32 0.5, %v288_v47 }
  0x2c   : > { %v351_v38 = vadd.f32 0.5, %v335_v33  ;;  %v336_v41 = vsub.f32 %v269_v36, %v4886_v23  ;;  %v385_v52 = vmul.f32 %v4899_v39, %v4899_v39  ;;  %v4946_v24 = vstv %s4340_s17  ;;  %s4717_s17 = scalar_lea.hbm %s4716_s16, 64 }
  0x2d   : > { %v337_v42 = vsub.f32 %v270_v37, %v4886_v23  ;;  %v386_v56 = vmul.f32 %v4909_v46, %v4909_v46  ;;  %v271_v57 = vadd.f32 %v4880_v12, %v252_v50  ;;  %v4931_v63 = vmul.f32 %v4884_v22, %v304_v53  ;;  %p4718_p13 = scmp.ne.s32.totalorder %s4716_s16, %s4717_s17 }
  0x2e   : > { %v4904_v44 = vmul.f32 %v4894_v35, %v351_v38  ;;  %v352_v48 = vadd.f32 0.5, %v336_v41  ;;  %v4948_v27 = vstv %s4341_s21  ;;  %v4950_v28 = vstv %s4343_s23  ;;  %s4721_s23 = scalar_lea.hbm %s8634_s2, 256 }
  0x2f   : > { %v353_v49 = vadd.f32 0.5, %v337_v42  ;;  %v338_v61 = vsub.f32 %v271_v57, %v4886_v23  ;;  %v387_v9 = vmul.f32 %v4931_v63, %v4931_v63  ;;  %v4952_v30 = vstv %s4342_s22  ;;  %p4719_p0 = pnand %p4718_p13, %p4834_p5  ;;  %p4723_p3 = scmp.lt.s32.totalorder %s4721_s23, %s4717_s17 }
  0x30   : > { %v400_v51 = vmul.f32 %v4904_v44, %v4904_v44  ;;  %v4917_v54 = vmul.f32 %v4894_v35, %v352_v48  ;;  %v4954_v31 = vstv %s4344_s24  ;;  %v4957_v37 = vstv %s4345_s25 }
  0x31   : > { %v4920_v55 = vmul.f32 %v4894_v35, %v353_v49  ;;  %v354_v4 = vadd.f32 0.5, %v338_v61  ;;  %v4959_v38 = vstv %s4346_s26  ;;  %v4961_v40 = vstv %s4347_s27  ;;  %p4720_p1 = pneg %p4719_p0  ;;  %p4724_p4 = por %p4723_p3, %p4722_p2 }
  0x32   : > { %v416_v58 = vadd.f32 %v400_v51, %v384_v45  ;;  %v401_v59 = vmul.f32 %v4917_v54, %v4917_v54  ;;  %v4963_v43 = vstv %s4348_s28 }
  0x33   : > { %v402_v60 = vmul.f32 %v4920_v55, %v4920_v55  ;;  %v4936_v7 = vmul.f32 %v4894_v35, %v354_v4  ;;  %p4725_p7 = pnand %p4724_p4, %p4720_p1 }
  0x34   : > { %v432_v62 = vadd.f32 1.0, %v416_v58  ;;  %v417_v2 = vadd.f32 %v401_v59, %v385_v52 }
  0x35   : > { %v418_v3 = vadd.f32 %v402_v60, %v386_v56  ;;  %v403_v10 = vmul.f32 %v4936_v7, %v4936_v7 }
  0x36   : > { %4585 = vrsqrt.f32 %v432_v62  ;;  %v433_v5 = vadd.f32 1.0, %v417_v2  ;;  %vm454_vm0 = vweird.f32 %v432_v62 }
  0x37   : > { %v4933_v6 = vadd.f32 1.0, %v418_v3  ;;  %v419_v13 = vadd.f32 %v403_v10, %v387_v9 }
  0x38   : > { %4587 = vrsqrt.f32 %v433_v5  ;;  %vm464_vm3 = vweird.f32 %v433_v5 }
  0x39   : > { %4589 = vrsqrt.f32 %v4933_v6  ;;  %v4943_v19 = vadd.f32 1.0, %v419_v13  ;;  %vm474_vm6 = vweird.f32 %v4933_v6 }
  0x3b   : > { %4591 = vrsqrt.f32 %v4943_v19 }
  0x3c   : > { %v4586_v11 = vpop.eup %4585 }
  0x3d   : > { %v449_v14 = vmul.f32 %v4586_v11, %v432_v62  ;;  %vm455_vm1 = vweird.f32 %v4586_v11 }
  0x3e   : > { %v4588_v15 = vpop.eup %4587  ;;  %vm456_vm2 = vmor %vm454_vm0, %vm455_vm1 }
  0x3f   : > { %v450_v16 = vmul.f32 %v4586_v11, %v449_v14  ;;  %v4590_v17 = vpop.eup %4589  ;;  %v459_v18 = vmul.f32 %v4588_v15, %v433_v5  ;;  %vm465_vm4 = vweird.f32 %v4588_v15 }
  0x40   : > { %v469_v21 = vmul.f32 %v4590_v17, %v4933_v6  ;;  %vm466_vm5 = vmor %vm464_vm3, %vm465_vm4  ;;  %vm475_vm7 = vweird.f32 %v4590_v17 }
  0x41   : > { %v451_v20 = vmul.f32 0.5, %v450_v16  ;;  %v460_v25 = vmul.f32 %v4588_v15, %v459_v18  ;;  %v4970_v53 = vpop.eup %4591  ;;  %vm476_vm8 = vmor %vm474_vm6, %vm475_vm7 }
  0x42   : > { %v470_v29 = vmul.f32 %v4590_v17, %v469_v21  ;;  %v479_v9 = vmul.f32 %v4970_v53, %v4943_v19 }
  0x43   : > { %v452_v26 = vsub.f32 1.5, %v451_v20  ;;  %v461_v33 = vmul.f32 0.5, %v460_v25 }
  0x44   : > { %v471_v36 = vmul.f32 0.5, %v470_v29 }
  0x45   : > { %v453_v34 = vmul.f32 %v4586_v11, %v452_v26  ;;  %v462_v41 = vsub.f32 1.5, %v461_v33 }
  0x46   : > { %v472_v45 = vsub.f32 1.5, %v471_v36 }
  0x47   : > { %v457_v42 = vsel %vm456_vm2, %v4586_v11, %v453_v34  ;;  %v463_v51 = vmul.f32 %v4588_v15, %v462_v41 }
  0x48   : > { %v608_v47 = vmul.f32 %v457_v42, %v4891_v32  ;;  %v624_v48 = vmul.f32 %v457_v42, %v4904_v44  ;;  %v691_v49 = vmul.f32 %v4952_v30, %v457_v42  ;;  %v774_v50 = vmul.f32 %v4957_v37, %v457_v42 }
  0x49   : > { %v473_v52 = vmul.f32 %v4590_v17, %v472_v45  ;;  %v857_v60 = vmul.f32 %v4963_v43, %v457_v42  ;;  %v467_v61 = vsel %vm466_vm5, %v4588_v15, %v463_v51  ;;  %v8834_v42 = vmov 0 }
  0x4a   : > { %v641_v56 = vmul.f32 %v4946_v24, %v608_v47  ;;  %v658_v57 = vmul.f32 %v4948_v27, %v624_v48  ;;  %v724_v32 = vmul.f32 %v4950_v28, %v608_v47  ;;  %v741_v44 = vmul.f32 %v4954_v31, %v624_v48 }
  0x4b   : > { %v807_v58 = vmul.f32 %v4959_v38, %v608_v47  ;;  %v824_v59 = vmul.f32 %v4961_v40, %v624_v48  ;;  %v609_v3 = vmul.f32 %v467_v61, %v4899_v39  ;;  %v625_v4 = vmul.f32 %v467_v61, %v4917_v54 }
  0x4c   : > { %v674_v62 = vadd.f32 %v658_v57, %v641_v56  ;;  %v757_v2 = vadd.f32 %v741_v44, %v724_v32  ;;  %v4988_v14 = vsel %vm476_vm8, %v4590_v17, %v473_v52  ;;  %v692_v20 = vmul.f32 %v4952_v30, %v467_v61 }
  0x4d   : > { %v840_v5 = vadd.f32 %v824_v59, %v807_v58  ;;  %v642_v13 = vmul.f32 %v4946_v24, %v609_v3  ;;  %v659_v6 = vmul.f32 %v4948_v27, %v625_v4  ;;  %v725_v16 = vmul.f32 %v4950_v28, %v609_v3 }
  0x4e   : > { %v4985_v10 = vadd.f32 %v691_v49, %v674_v62  ;;  %v790_v11 = vadd.f32 %v774_v50, %v757_v2  ;;  %v742_v39 = vmul.f32 %v4954_v31, %v625_v4  ;;  %v775_v21 = vmul.f32 %v4957_v37, %v467_v61 }
  0x4f   : > { %v4990_v15 = vadd.f32 %v857_v60, %v840_v5  ;;  %v808_v17 = vmul.f32 %v4959_v38, %v609_v3  ;;  %v858_v26 = vmul.f32 %v4963_v43, %v467_v61  ;;  %v675_v34 = vadd.f32 %v659_v6, %v642_v13 }
  0x50   : > { %8832 = vst [vmem:[#allocation15_spill] sm:$0xff] %v4985_v10  ;;  %v889_v54 = vand.u32 2147483647, %v4985_v10  ;;  %v905_v18 = vand.u32 2147483647, %v790_v11  ;;  %vm1081_vm9 = vcmp.ge.f32.partialorder %v790_v11, 0.0  ;;  %v758_v36 = vadd.f32 %v742_v39, %v725_v16 }
  0x51   : > { %8833 = vst [vmem:[#allocation16_spill] sm:$0xff] %v4990_v15  ;;  %v921_v25 = vand.u32 2147483647, %v4990_v15  ;;  %vm8654_vm10 = vcmp.ge.f32.partialorder %v4990_v15, 0.0  ;;  %vm8652_vm11 = vcmp.ge.f32.partialorder %v4985_v10, 0.0  ;;  %v8639_v33 = vsub.f32 0.0, %v4990_v15 }
  0x52   : > { %v937_v29 = vmax.f32 %v889_v54, %v905_v18  ;;  %vm985_vm12 = vcmp.gt.f32.partialorder %v905_v18, %v889_v54  ;;  %v825_v41 = vmul.f32 %v4961_v40, %v625_v4  ;;  %v8642_v45 = vmov 3  }
  0x53   : > { %v1097_v47 = vsel %vm1081_vm9, 2, %v8642_v45  ;;  %v610_v48 = vmul.f32 %v4988_v14, %v4909_v46  ;;  %v626_v49 = vmul.f32 %v4988_v14, %v4920_v55  ;;  %v8640_v50 = vmov 1  }
  0x54   : > { %vm5005_vm13 = vcmp.gt.f32.partialorder %v921_v25, %v937_v29  ;;  %v1129_v51 = vsel %vm8652_vm11, 0, %v8640_v50  ;;  %v5021_v52 = vadd.f32 %v692_v20, %v675_v34  ;;  %v5023_v56 = vadd.f32 %v775_v21, %v758_v36 }
  0x55   : > { %v8835_v42 = vsel %vm5005_vm13, 4294967295, %v8834_v42  ;;  %vm969_vm15 = vmxor %vm5005_vm13, %vm8655_vm14  ;;  %v841_v57 = vadd.f32 %v825_v41, %v808_v17  ;;  %v8838_v46 = vmov 0  ;;  %v8644_v55 = vmov 5  }
  0x56   : > { %8836 = vst [vmem:[#allocation17_spill] sm:$0xff] %v8835_v42  ;;  %vm5026_vm0 = vmand %vm969_vm15, %vm985_vm12  ;;  %v1065_v32 = vsel %vm8654_vm10, 4, %v8644_v55  ;;  %v1273_v44 = vsel %vm1081_vm9, %v4990_v15, %v8639_v33  ;;  %v1289_v58 = vsub.f32 0.0, %v790_v11  ;;  %v643_v59 = vmul.f32 %v4946_v24, %v610_v48 }
  0x57   : > { %8837 = vst [vmem:[#allocation18_spill] sm:$0xff] %v5021_v52  ;;  %v8839_v46 = vsel %vm5026_vm0, 4294967295, %v8838_v46  ;;  %v1017_v60 = vsel %vm5026_vm0, %v905_v18, %v889_v54  ;;  %v5040_v61 = vadd.f32 %v858_v26, %v841_v57  ;;  %v660_v62 = vmul.f32 %v4948_v27, %v626_v49 }
  0x58   : > { %8840 = vst [vmem:[#allocation19_spill] sm:$0xff] %v8839_v46  ;;  %v726_v2 = vmul.f32 %v4950_v28, %v610_v48  ;;  %v1033_v3 = vsel %vm5005_vm13, %v921_v25, %v1017_v60  ;;  %v1145_v4 = vsel %vm5026_vm0, %v1097_v47, %v1129_v51  ;;  %v890_v5 = vand.u32 2147483647, %v5021_v52 }
  0x59   : > { %8841 = vst [vmem:[#allocation20_spill] sm:$0xff] %v5040_v61  ;;  %v743_v11 = vmul.f32 %v4954_v31, %v626_v49  ;;  %4593 = vrcp.f32 %v1033_v3  ;;  %v906_v13 = vand.u32 2147483647, %v5023_v56  ;;  %v922_v6 = vand.u32 2147483647, %v5040_v61 }
  0x5a   : > { %v693_v16 = vmul.f32 %v4952_v30, %v4988_v14  ;;  %v1305_v39 = vsel %vm5026_vm0, %v1273_v44, %v1289_v58  ;;  %v480_v54 = vmul.f32 %v4970_v53, %v479_v9  ;;  %v5059_v18 = vsel %vm5005_vm13, %v1065_v32, %v1145_v4 }
  0x5b   : > { %v5062_v20 = vshrl.u32 %v168_v0, 7  ;;  %v938_v21 = vmax.f32 %v890_v5, %v906_v13  ;;  %v676_v25 = vadd.f32 %v660_v62, %v643_v59  ;;  %vm986_vm1 = vcmp.gt.f32.partialorder %v906_v13, %v890_v5 }
  0x5c   : > { %v759_v17 = vadd.f32 %v743_v11, %v726_v2  ;;  %v776_v26 = vmul.f32 %v4957_v37, %v4988_v14  ;;  %v809_v29 = vmul.f32 %v4959_v38, %v610_v48  ;;  %v8842_v34 = vmov 0 }
  0x5d   : > { %vm5067_vm2 = vcmp.gt.f32.partialorder %v922_v6, %v938_v21  ;;  %vm8636_vm3 = vcmp.ge.f32.partialorder %v5021_v52, 0.0  ;;  %v5072_v9 = vadd.f32 %v693_v16, %v676_v25  ;;  %v826_v0 = vmul.f32 %v4961_v40, %v626_v49 }
  0x5e   : > { %v8843_v34 = vsel %vm5067_vm2, 4294967295, %v8842_v34  ;;  %vm970_vm4 = vmxor %vm5067_vm2, %vm8655_vm14  ;;  %vm1082_vm5 = vcmp.ge.f32.partialorder %v5023_v56, 0.0  ;;  %v8638_v41 = vsub.f32 0.0, %v5040_v61  ;;  %v5081_v47 = vadd.f32 %v776_v26, %v759_v17 }
  0x5f   : > { %8844 = vst [vmem:[#allocation21_spill] sm:$0xff] %v8843_v34  ;;  %v4594_v48 = vpop.eup %4593  ;;  %vm5083_vm6 = vmand %vm970_vm4, %vm986_vm1  ;;  %v8846_v51 = vmov 0  ;;  %vm8635_vm7 = vcmp.ge.f32.partialorder %v5040_v61, 0.0  ;;  %v842_v49 = vadd.f32 %v826_v0, %v809_v29  ;;  %v859_v57 = vmul.f32 %v4963_v43, %v4988_v14 }
  0x60   : > { %8845 = vst [vmem:[#allocation22_spill] sm:$0xff] %v5072_v9  ;;  %v8847_v51 = vsel %vm5083_vm6, 4294967295, %v8846_v51  ;;  %v891_v32 = vand.u32 2147483647, %v5072_v9  ;;  %v1337_v44 = vmul.f32 %v4594_v48, %v1033_v3  ;;  %v1018_v58 = vsel %vm5083_vm6, %v906_v13, %v890_v5 }
  0x61   : > { %8848 = vst [vmem:[#allocation23_spill] sm:$0xff] %v8847_v51  ;;  %v1098_v59 = vsel %vm1082_vm5, 2, %v8642_v45  ;;  %v1130_v60 = vsel %vm8636_vm3, 0, %v8640_v50  ;;  %v5100_v62 = vadd.s32 80, %v5062_v20  ;;  %v1034_v14 = vsel %vm5067_vm2, %v922_v6, %v1018_v58 }
  0x62   : > { %v5104_v2 = vadd.f32 %v859_v57, %v842_v49  ;;  %v907_v3 = vand.u32 2147483647, %v5081_v47  ;;  %v1353_v4 = vsub.f32 2.0, %v1337_v44  ;;  %v1274_v5 = vsel %vm1082_vm5, %v5040_v61, %v8638_v41 }
  0x63   : > { %v1290_v11 = vsub.f32 0.0, %v5023_v56  ;;  %4595 = vrcp.f32 %v1034_v14  ;;  %v1066_v13 = vsel %vm8635_vm7, 4, %v8644_v55  ;;  %v1146_v6 = vsel %vm5083_vm6, %v1098_v59, %v1130_v60 }
  0x64   : > { %8849 = vst [vmem:[#allocation24_spill] sm:$0xff] %v5104_v2  ;;  %v923_v16 = vand.u32 2147483647, %v5104_v2  ;;  %v939_v21 = vmax.f32 %v891_v32, %v907_v3  ;;  %v5119_v25 = vmul.f32 %v4594_v48, %v1353_v4  ;;  %vm987_vm8 = vcmp.gt.f32.partialorder %v907_v3, %v891_v32 }
  0x65   : > { %vm1083_vm9 = vcmp.ge.f32.partialorder %v5081_v47, 0.0  ;;  %v481_v17 = vmul.f32 0.5, %v480_v54  ;;  %v8851_v26 = vmov 0  ;;  %vm8651_vm15 = vcmp.ge.f32.partialorder %v5072_v9, 0.0 }
  0x66   : > { %8850 = vst [vmem:[#allocation25_spill] sm:$0xff] %v5119_v25  ;;  %vm5122_vm12 = vcmp.gt.f32.partialorder %v923_v16, %v939_v21  ;;  %vm484_vm1 = vweird.f32 %v4943_v19  ;;  %vm485_vm4 = vweird.f32 %v4970_v53  ;;  %v1433_v56 = vmul.f32 %v5119_v25, %v1305_v39 }
  0x67   : > { %v8852_v26 = vsel %vm5122_vm12, 4294967295, %v8851_v26  ;;  %vm971_vm5 = vmxor %vm5122_vm12, %vm8655_vm14  ;;  %vm8650_vm7 = vcmp.ge.f32.partialorder %v5104_v2, 0.0  ;;  %v1099_v54 = vsel %vm1083_vm9, 2, %v8642_v45  ;;  %v1131_v29 = vsel %vm8651_vm15, 0, %v8640_v50 }
  0x68   : > { %8853 = vst [vmem:[#allocation26_spill] sm:$0xff] %v8852_v26  ;;  %v5141_v0 = vadd.s32 88, %v5062_v20  ;;  %v5145_v39 = vsel %vm5067_vm2, %v1066_v13, %v1146_v6  ;;  %vm5147_vm3 = vmand %vm971_vm5, %vm987_vm8  ;;  %v8855_v48 = vmov 0  ;;  %v8637_v49 = vsub.f32 0.0, %v5104_v2 }
  0x69   : > { %v8856_v48 = vsel %vm5147_vm3, 4294967295, %v8855_v48  ;;  %v482_v57 = vsub.f32 1.5, %v481_v17  ;;  %v4596_v44 = vpop.eup %4595  ;;  %v1449_v58 = vadd.f32 1.0, %v1433_v56  ;;  %v1019_v59 = vsel %vm5147_vm3, %v907_v3, %v891_v32  ;;  %vm486_vm8 = vmor %vm484_vm1, %vm485_vm4 }
  0x6a   : > { %8854 = vst [vmem:[#allocation27_spill] sm:$0xff] %v5141_v0  ;;  %v1067_v60 = vsel %vm8650_vm7, 4, %v8644_v55  ;;  %v1147_v4 = vsel %vm5147_vm3, %v1099_v54, %v1131_v29  ;;  %v1306_v13 = vsel %vm5083_vm6, %v1274_v5, %v1290_v11  ;;  %v1338_v6 = vmul.f32 %v4596_v44, %v1034_v14 }
  0x6b   : > { %8857 = vst [vmem:[#allocation28_spill] sm:$0xff] %v8856_v48  ;;  %v1035_v21 = vsel %vm5122_vm12, %v923_v16, %v1019_v59  ;;  %v483_v32 = vmul.f32 %v4970_v53, %v482_v57  ;;  %v1465_v3 = vmul.f32 0.5, %v1449_v58  ;;  %v1291_v56 = vsub.f32 0.0, %v5081_v47 }
  0x6c   : > { %4597 = vrcp.f32 %v1035_v21  ;;  %v1354_v54 = vsub.f32 2.0, %v1338_v6  ;;  %v5172_v19 = vsel %vm5122_vm12, %v1067_v60, %v1147_v4  ;;  %v1275_v14 = vsel %vm1083_vm9, %v5104_v2, %v8637_v49 }
  0x6d   : > { %v487_v5 = vsel %vm486_vm8, %v4970_v53, %v483_v32  ;;  %v1513_v11 = vmul.f32 16.0, %v1465_v3  ;;  %v5188_v4 = vadd.s32 768, %v4871_v1  ;;  %v1307_v49 = vsel %vm5147_vm3, %v1275_v14, %v1291_v56 }
  0x6e   : > { %v611_v16 = vmul.f32 %v487_v5, %v4931_v63  ;;  %v627_v29 = vmul.f32 %v487_v5, %v4936_v7  ;;  %v694_v57 = vmul.f32 %v4952_v30, %v487_v5  ;;  %v5183_v58 = vmul.f32 %v4596_v44, %v1354_v54 }
  0x6f   : > { %v777_v59 = vmul.f32 %v4957_v37, %v487_v5  ;;  %v860_v60 = vmul.f32 %v4963_v43, %v487_v5  ;;  %v4365_v47 = vadd.f32 -0.5, %v1513_v11  ;;  %v8657_v41 = vand.u32 255, %v5188_v4 }
  0x70   : > { %8858 = vst [vmem:[#allocation29_spill] sm:$0xff] %v5183_v58  ;;  %v644_v6 = vmul.f32 %v4946_v24, %v611_v16  ;;  %v661_v53 = vmul.f32 %v4948_v27, %v627_v29  ;;  %v727_v63 = vmul.f32 %v4950_v28, %v611_v16  ;;  %v1434_v7 = vmul.f32 %v5183_v58, %v1306_v13 }
  0x71   : > { %v744_v32 = vmul.f32 %v4954_v31, %v627_v29  ;;  %v810_v44 = vmul.f32 %v4959_v38, %v611_v16  ;;  %v827_v3 = vmul.f32 %v4961_v40, %v627_v29  ;;  %v1561_v5 = vfloor.f32 %v4365_v47 }
  0x72   : > { %v4598_v54 = vpop.eup %4597  ;;  %v677_v11 = vadd.f32 %v661_v53, %v644_v6  ;;  %v1450_v33 = vadd.f32 1.0, %v1434_v7  ;;  %v8871_v9 = vmul.u32 16, %v5145_v39  ;;  %vm8889_vm3 = vmmov 1  }
  0x73   : > { %v1339_v50 = vmul.f32 %v4598_v54, %v1035_v21  ;;  %v760_v45 = vadd.f32 %v744_v32, %v727_v63  ;;  %v843_v17 = vadd.f32 %v827_v3, %v810_v44  ;;  %v5200_v55 = vsub.f32 %v4365_v47, %v1561_v5 }
  0x74   : > { %v4488_v13 = vcvt.f32.s32 %v1561_v5  ;;  %v5203_v16 = vadd.f32 %v694_v57, %v677_v11  ;;  %v1466_v29 = vmul.f32 0.5, %v1450_v33  ;;  %v5213_v21 = vsub.s32 %v5188_v4, %v8657_v41 }
  0x75   : > { %v1355_v26 = vsub.f32 2.0, %v1339_v50  ;;  %v5205_v2 = vadd.f32 %v777_v59, %v760_v45  ;;  %v5207_v48 = vadd.f32 %v860_v60, %v843_v17  ;;  %v5219_v45 = vsub.f32 1.0, %v5200_v55 }
  0x76   : > { %8859 = vst [vmem:[#allocation30_spill] sm:$0xff] %v5203_v16  ;;  %vm1785_vm9 = vcmp.gt.s32.totalorder %v4488_v13, 0  ;;  %v1849_v56 = vadd.s32 1, %v4488_v13  ;;  %v892_v14 = vand.u32 2147483647, %v5203_v16  ;;  %v1514_v6 = vmul.f32 16.0, %v1466_v29 }
  0x77   : > { %8860 = vst [vmem:[#allocation31_spill] sm:$0xff] %v5207_v48  ;;  %v1786_v47 = vsel %vm1785_vm9, %v4488_v13, 0  ;;  %v5215_v53 = vmul.f32 %v4598_v54, %v1355_v26  ;;  %v908_v33 = vand.u32 2147483647, %v5205_v2  ;;  %v924_v50 = vand.u32 2147483647, %v5207_v48 }
  0x78   : > { %vm1817_vm1 = vcmp.lt.s32.totalorder %v1786_v47, 15  ;;  %vm1865_vm4 = vcmp.gt.s32.totalorder %v1849_v56, 0  ;;  %v4366_v59 = vadd.f32 -0.5, %v1514_v6  ;;  %v8862_v63 = vmul.u32 16, %v5059_v18 }
  0x79   : > { %8861 = vst [vmem:[#allocation32_spill] sm:$0xff] %v5215_v53  ;;  %v1818_v17 = vsel %vm1817_vm1, %v1786_v47, 15  ;;  %v1866_v57 = vsel %vm1865_vm4, %v1849_v56, 0  ;;  %v1435_v60 = vmul.f32 %v5215_v53, %v1307_v49  ;;  %v940_v26 = vmax.f32 %v892_v14, %v908_v33 }
  0x7a   : > { %vm1897_vm5 = vcmp.lt.s32.totalorder %v1866_v57, 15  ;;  %v5225_v7 = vadd.s32 %v8862_v63, %v1818_v17  ;;  %vm8653_vm8 = vcmp.ge.f32.partialorder %v5207_v48, 0.0  ;;  %v1562_v44 = vfloor.f32 %v4366_v59 }
  0x7b   : > { %v1898_v32 = vsel %vm1897_vm5, %v1866_v57, 15  ;;  %v1451_v3 = vadd.f32 1.0, %v1435_v60  ;;  %vm988_vm9 = vcmp.gt.f32.partialorder %v908_v33, %v892_v14  ;;  %v8863_v54 = vmov %v8862_v63 }
  0x7c   : > { %v5230_v5 = vadd.s32 %v8863_v54, %v1898_v32  ;;  %vm2150_vm1 = vcmp.eq.s32.totalorder %v5100_v62, %v5225_v7  ;;  %vm2166_vm4 = vcmp.eq.s32.totalorder %v5141_v0, %v5225_v7  ;;  %vm5236_vm7 = vcmp.gt.f32.partialorder %v924_v50, %v940_v26 }
  0x7d   : > { %v8864_v49 = vmov 0  ;;  %v2358_v11 = vsel %vm2150_vm1, %v5219_v45, 0.0  ;;  %v2374_v13 = vsel %vm2166_vm4, %v5219_v45, 0.0  ;;  %v4490_v29 = vcvt.f32.s32 %v1562_v44  ;;  %vm972_vm5 = vmxor %vm5236_vm7, %vm8655_vm14 }
  0x7e   : > { %v8865_v49 = vsel %vm5236_vm7, 4294967295, %v8864_v49  ;;  %v8867_v18 = vmov 5   ;;  %vm2550_vm15 = vcmp.eq.s32.totalorder %v5100_v62, %v5230_v5  ;;  %vm2566_vm11 = vcmp.eq.s32.totalorder %v5141_v0, %v5230_v5  ;;  %vm5254_vm1 = vmand %vm972_vm5, %vm988_vm9 }
  0x7f   : > { %8866 = vst [vmem:[#allocation33_spill] sm:$0xff] %v8865_v49  ;;  %v1068_v56 = vsel %vm8653_vm8, 4, %v8867_v18  ;;  %v5252_v47 = vsub.f32 %v4366_v59, %v1562_v44  ;;  %v1467_v6 = vmul.f32 0.5, %v1451_v3  ;;  %v8868_v17 = vmov 0 }
  0x80   : > { %v8869_v17 = vsel %vm5254_vm1, 4294967295, %v8868_v17  ;;  %v2742_v57 = vsel %vm2550_vm15, %v5200_v55, 0.0  ;;  %v2758_v60 = vsel %vm2566_vm11, %v5200_v55, 0.0  ;;  %vm1787_vm4 = vcmp.gt.s32.totalorder %v4490_v29, 0 }
  0x81   : > { %8870 = vst [vmem:[#allocation34_spill] sm:$0xff] %v8869_v17  ;;  %v1850_v63 = vadd.s32 1, %v4490_v29  ;;  %v2934_v26 = vadd.f32 %v2742_v57, %v2358_v11  ;;  %v2950_v32 = vadd.f32 %v2758_v60, %v2374_v13  ;;  %v1788_v54 = vsel %vm1787_vm4, %v4490_v29, 0 }
  0x82   : > { %vm1084_vm8 = vcmp.ge.f32.partialorder %v5205_v2, 0.0  ;;  %vm1819_vm10 = vcmp.lt.s32.totalorder %v1788_v54, 15  ;;  %v1515_v59 = vmul.f32 16.0, %v1467_v6  ;;  %v1020_v44 = vsel %vm5254_vm1, %v908_v33, %v892_v14 }
  0x83   : > { %vm1867_vm14 = vcmp.gt.s32.totalorder %v1850_v63, 0  ;;  %v3046_v3 = vpack.c.bf16 %v2950_v32, %v2934_v26  ;;  %v1820_v41 = vsel %vm1819_vm10, %v1788_v54, 15  ;;  %v5264_v53 = vsub.f32 1.0, %v5252_v47 }
  0x84   : > { %v1868_v36 = vsel %vm1867_vm14, %v1850_v63, 0  ;;  %v5268_v11 = vadd.s32 %v8871_v9, %v1820_v41  ;;  %v4367_v13 = vadd.f32 -0.5, %v1515_v59  ;;  %v1036_v29 = vsel %vm5236_vm7, %v924_v50, %v1020_v44 }
  0x85   : > { %vm1899_vm11 = vcmp.lt.s32.totalorder %v1868_v36, 15  ;;  %3095 = vmatpush.bf16.msra.mxu0 %v3046_v3  ;;  %v8872_v57 = vmov 3   ;;  %vm8672_vm10 = vcmp.ge.f32.partialorder %v5203_v16, 0.0  ;;  %v8666_v33 = vsub.f32 0.0, %v5207_v48 }
  0x86   : > { %v1900_v6 = vsel %vm1899_vm11, %v1868_v36, 15  ;;  %v1100_v14 = vsel %vm1084_vm8, 2, %v8872_v57  ;;  %v8873_v60 = vmov %v8871_v9  ;;  %vm2151_vm14 = vcmp.eq.s32.totalorder %v5100_v62, %v5268_v11 }
  0x87   : > { %v5279_v63 = vadd.s32 %v8873_v60, %v1900_v6  ;;  %vm2167_vm15 = vcmp.eq.s32.totalorder %v5141_v0, %v5268_v11  ;;  %v1563_v9 = vfloor.f32 %v4367_v13  ;;  %v2359_v36 = vsel %vm2151_vm14, %v5264_v53, 0.0 }
  0x88   : > { %v2375_v41 = vsel %vm2167_vm15, %v5264_v53, 0.0  ;;  %v8874_v50 = vmov 1   ;;  %v1292_v32 = vsub.f32 0.0, %v5205_v2  ;;  %v1276_v54 = vsel %vm1084_vm8, %v5207_v48, %v8666_v33 }
  0x89   : > { %v1132_v26 = vsel %vm8672_vm10, 0, %v8874_v50  ;;  %vm2551_vm9 = vcmp.eq.s32.totalorder %v5100_v62, %v5279_v63  ;;  %vm2567_vm5 = vcmp.eq.s32.totalorder %v5141_v0, %v5279_v63  ;;  %v4492_v39 = vcvt.f32.s32 %v1563_v9 }
  0x8a   : > { %v2743_v59 = vsel %vm2551_vm9, %v5252_v47, 0.0  ;;  %v2759_v44 = vsel %vm2567_vm5, %v5252_v47, 0.0  ;;  %v5302_v3 = vsub.f32 %v4367_v13, %v1563_v9  ;;  %v1148_v6 = vsel %vm5254_vm1, %v1100_v14, %v1132_v26 }
  0x8b   : > { %v2935_v60 = vadd.f32 %v2743_v59, %v2359_v36  ;;  %v2951_v16 = vadd.f32 %v2759_v44, %v2375_v41  ;;  %vm1789_vm4 = vcmp.gt.s32.totalorder %v4492_v39, 0  ;;  %v1851_v58 = vadd.s32 1, %v4492_v39 }
  0x8c   : > { %v1790_v34 = vsel %vm1789_vm4, %v4492_v39, 0  ;;  %v1308_v51 = vsel %vm5254_vm1, %v1276_v54, %v1292_v32  ;;  %4599 = vrcp.f32 %v1036_v29  ;;  %v5310_v33 = vsel %vm5236_vm7, %v1068_v56, %v1148_v6 }
  0x8d   : > { %v3047_v2 = vpack.c.bf16 %v2951_v16, %v2935_v60  ;;  %vm1821_vm8 = vcmp.lt.s32.totalorder %v1790_v34, 15  ;;  %vm1869_vm11 = vcmp.gt.s32.totalorder %v1851_v58, 0  ;;  %v5313_v14 = vsub.f32 1.0, %v5302_v3 }
  0x8e   : > { %v1822_v13 = vsel %vm1821_vm8, %v1790_v34, 15  ;;  %v1870_v9 = vsel %vm1869_vm11, %v1851_v58, 0  ;;  %v239_v36 = vcvt.s32.f32 %v5213_v21  ;;  %v8875_v41 = vmul.u32 16, %v5172_v19 }
  0x8f   : > { %3119 = vmatpush.bf16.msra.mxu1 %v3047_v2  ;;  %vm1901_vm14 = vcmp.lt.s32.totalorder %v1870_v9, 15  ;;  %v5321_v16 = vadd.s32 64, %v5062_v20  ;;  %v5324_v32 = vadd.s32 72, %v5062_v20  ;;  %v8878_v58 = vand.u32 255, %v5188_v4 }
  0x90   : > { %v5318_v26 = vadd.s32 %v8875_v41, %v1822_v13  ;;  %v1902_v56 = vsel %vm1901_vm14, %v1870_v9, 15  ;;  %v5331_v21 = vmul.f32 0.00390625, %v239_v36  ;;  %v8879_v54 = vmov %v8875_v41 }
  0x91   : > { %8876 = vst [vmem:[#allocation35_spill] sm:$0xff] %v5321_v16  ;;  %v5329_v39 = vcvt.s32.f32 %v8878_v58  ;;  %v5335_v59 = vadd.s32 %v8879_v54, %v1902_v56  ;;  %vm2118_vm5 = vcmp.eq.s32.totalorder %v5321_v16, %v5225_v7  ;;  %vm2134_vm4 = vcmp.eq.s32.totalorder %v5324_v32, %v5225_v7 }
  0x92   : > { %8877 = vst [vmem:[#allocation36_spill] sm:$0xff] %v5324_v32  ;;  %vm2152_vm15 = vcmp.eq.s32.totalorder %v5100_v62, %v5318_v26  ;;  %vm2168_vm9 = vcmp.eq.s32.totalorder %v5141_v0, %v5318_v26  ;;  %v4600_v44 = vpop.eup %4599  ;;  %v2326_v19 = vsel %vm2118_vm5, %v5219_v45, 0.0  ;;  %v2342_v2 = vsel %vm2134_vm4, %v5219_v45, 0.0 }
  0x93   : > { %v2360_v4 = vsel %vm2152_vm15, %v5313_v14, 0.0  ;;  %v2376_v6 = vsel %vm2168_vm9, %v5313_v14, 0.0  ;;  %vm2552_vm8 = vcmp.eq.s32.totalorder %v5100_v62, %v5335_v59  ;;  %vm2568_vm11 = vcmp.eq.s32.totalorder %v5141_v0, %v5335_v59 }
  0x94   : > { %v1340_v60 = vmul.f32 %v4600_v44, %v1036_v29  ;;  %v2744_v13 = vsel %vm2552_vm8, %v5302_v3, 0.0  ;;  %v2760_v9 = vsel %vm2568_vm11, %v5302_v3, 0.0  ;;  %vm2518_vm14 = vcmp.eq.s32.totalorder %v5321_v16, %v5230_v5 }
  0x95   : > { %vm2534_vm15 = vcmp.eq.s32.totalorder %v5324_v32, %v5230_v5  ;;  %v2936_v36 = vadd.f32 %v2744_v13, %v2360_v4  ;;  %v2952_v41 = vadd.f32 %v2760_v9, %v2376_v6  ;;  %v2710_v58 = vsel %vm2518_vm14, %v5200_v55, 0.0 }
  0x96   : > { %v1356_v56 = vsub.f32 2.0, %v1340_v60  ;;  %v2726_v54 = vsel %vm2534_vm15, %v5200_v55, 0.0  ;;  %v2902_v29 = vadd.f32 %v2710_v58, %v2326_v19  ;;  %vm2119_vm9 = vcmp.eq.s32.totalorder %v5321_v16, %v5268_v11 }
  0x97   : > { %vm2135_vm5 = vcmp.eq.s32.totalorder %v5324_v32, %v5268_v11  ;;  %v3048_v34 = vpack.c.bf16 %v2952_v41, %v2936_v36  ;;  %v2918_v17 = vadd.f32 %v2726_v54, %v2342_v2  ;;  %v2327_v48 = vsel %vm2119_vm9, %v5264_v53, 0.0 }
  0x98   : > { %v5365_v49 = vmul.f32 %v4600_v44, %v1356_v56  ;;  %v2343_v4 = vsel %vm2135_vm5, %v5264_v53, 0.0  ;;  %vm2519_vm4 = vcmp.eq.s32.totalorder %v5321_v16, %v5279_v63  ;;  %vm2535_vm8 = vcmp.eq.s32.totalorder %v5324_v32, %v5279_v63 }
  0x99   : > { %vm2120_vm11 = vcmp.eq.s32.totalorder %v5321_v16, %v5318_v26  ;;  %3143 = vmatpush.bf16.msra.mxu2 %v3048_v34  ;;  %v3030_v19 = vpack.c.bf16 %v2918_v17, %v2902_v29  ;;  %v2711_v44 = vsel %vm2519_vm4, %v5252_v47, 0.0  ;;  %v2727_v60 = vsel %vm2535_vm8, %v5252_v47, 0.0 }
  0x9a   : > { %8880 = vst [vmem:[#allocation37_spill] sm:$0xff] %v5365_v49  ;;  %v1436_v6 = vmul.f32 %v5365_v49, %v1308_v51  ;;  %v2903_v2 = vadd.f32 %v2711_v44, %v2327_v48  ;;  %v2919_v13 = vadd.f32 %v2727_v60, %v2343_v4  ;;  %vm2136_vm14 = vcmp.eq.s32.totalorder %v5324_v32, %v5318_v26 }
  0x9b   : > { %v2328_v9 = vsel %vm2120_vm11, %v5313_v14, 0.0  ;;  %3096 = vmatpush.bf16.msra.mxu0 %v3030_v19  ;;  %v2344_v41 = vsel %vm2136_vm14, %v5313_v14, 0.0  ;;  %vm2520_vm15 = vcmp.eq.s32.totalorder %v5321_v16, %v5335_v59  ;;  %vm2536_vm9 = vcmp.eq.s32.totalorder %v5324_v32, %v5335_v59 }
  0x9c   : > { %v1452_v36 = vadd.f32 1.0, %v1436_v6  ;;  %v3031_v51 = vpack.c.bf16 %v2919_v13, %v2903_v2  ;;  %v2712_v17 = vsel %vm2520_vm15, %v5302_v3, 0.0  ;;  %v2728_v48 = vsel %vm2536_vm9, %v5302_v3, 0.0 }
  0x9d   : > { %v5389_v34 = vadd.s32 48, %v5062_v20  ;;  %v2904_v58 = vadd.f32 %v2712_v17, %v2328_v9  ;;  %v2920_v54 = vadd.f32 %v2728_v48, %v2344_v41  ;;  %v5392_v29 = vadd.s32 56, %v5062_v20 }
  0x9e   : > { %v1468_v56 = vmul.f32 0.5, %v1452_v36  ;;  %3120 = vmatpush.bf16.msra.mxu1 %v3031_v51 }
  0x9f   : > { %vm2086_vm5 = vcmp.eq.s32.totalorder %v5389_v34, %v5225_v7  ;;  %vm2486_vm4 = vcmp.eq.s32.totalorder %v5389_v34, %v5230_v5  ;;  %vm2087_vm8 = vcmp.eq.s32.totalorder %v5389_v34, %v5268_v11  ;;  %vm2487_vm11 = vcmp.eq.s32.totalorder %v5389_v34, %v5279_v63 }
  0xa0   : > { %v1516_v4 = vmul.f32 16.0, %v1468_v56  ;;  %v3032_v6 = vpack.c.bf16 %v2920_v54, %v2904_v58  ;;  %vm2102_vm14 = vcmp.eq.s32.totalorder %v5392_v29, %v5225_v7  ;;  %v2294_v19 = vsel %vm2086_vm5, %v5219_v45, 0.0 }
  0xa1   : > { %v2310_v44 = vsel %vm2102_vm14, %v5219_v45, 0.0  ;;  %vm2502_vm15 = vcmp.eq.s32.totalorder %v5392_v29, %v5230_v5  ;;  %v2678_v60 = vsel %vm2486_vm4, %v5200_v55, 0.0  ;;  %vm2103_vm9 = vcmp.eq.s32.totalorder %v5392_v29, %v5268_v11 }
  0xa2   : > { %v4368_v2 = vadd.f32 -0.5, %v1516_v4  ;;  %3144 = vmatpush.bf16.msra.mxu2 %v3032_v6  ;;  %v2694_v13 = vsel %vm2502_vm15, %v5200_v55, 0.0  ;;  %v2870_v9 = vadd.f32 %v2678_v60, %v2294_v19  ;;  %v2295_v36 = vsel %vm2087_vm8, %v5264_v53, 0.0 }
  0xa3   : > { %v2886_v41 = vadd.f32 %v2694_v13, %v2310_v44  ;;  %v2311_v51 = vsel %vm2103_vm9, %v5264_v53, 0.0  ;;  %vm2503_vm5 = vcmp.eq.s32.totalorder %v5392_v29, %v5279_v63  ;;  %v2679_v17 = vsel %vm2487_vm11, %v5252_v47, 0.0 }
  0xa4   : > { %v1564_v48 = vfloor.f32 %v4368_v2  ;;  %v2695_v56 = vsel %vm2503_vm5, %v5252_v47, 0.0  ;;  %v2871_v58 = vadd.f32 %v2679_v17, %v2295_v36  ;;  %vm2088_vm4 = vcmp.eq.s32.totalorder %v5389_v34, %v5318_v26 }
  0xa5   : > { %v3014_v54 = vpack.c.bf16 %v2886_v41, %v2870_v9  ;;  %v2887_v4 = vadd.f32 %v2695_v56, %v2311_v51  ;;  %vm2104_vm8 = vcmp.eq.s32.totalorder %v5392_v29, %v5318_v26  ;;  %v2296_v6 = vsel %vm2088_vm4, %v5313_v14, 0.0 }
  0xa6   : > { %v5426_v19 = vsub.f32 %v4368_v2, %v1564_v48  ;;  %v4494_v44 = vcvt.f32.s32 %v1564_v48  ;;  %v2312_v60 = vsel %vm2104_vm8, %v5313_v14, 0.0  ;;  %vm2488_vm11 = vcmp.eq.s32.totalorder %v5389_v34, %v5335_v59 }
  0xa7   : > { %3097 = vmatpush.bf16.msra.mxu0 %v3014_v54  ;;  %v3015_v13 = vpack.c.bf16 %v2887_v4, %v2871_v58  ;;  %vm2504_vm14 = vcmp.eq.s32.totalorder %v5392_v29, %v5335_v59  ;;  %v2680_v9 = vsel %vm2488_vm11, %v5302_v3, 0.0  ;;  %v5435_v36 = vadd.s32 32, %v5062_v20 }
  0xa8   : > { %vm1791_vm15 = vcmp.gt.s32.totalorder %v4494_v44, 0  ;;  %v1852_v41 = vadd.s32 1, %v4494_v44  ;;  %v5438_v2 = vsub.f32 1.0, %v5426_v19  ;;  %v2696_v51 = vsel %vm2504_vm14, %v5302_v3, 0.0 }
  0xa9   : > { %v1792_v17 = vsel %vm1791_vm15, %v4494_v44, 0  ;;  %3121 = vmatpush.bf16.msra.mxu1 %v3015_v13  ;;  %v2872_v48 = vadd.f32 %v2680_v9, %v2296_v6  ;;  %v2888_v56 = vadd.f32 %v2696_v51, %v2312_v60  ;;  %v5442_v58 = vadd.s32 40, %v5062_v20 }
  0xaa   : > { %vm1823_vm9 = vcmp.lt.s32.totalorder %v1792_v17, 15  ;;  %vm1871_vm5 = vcmp.gt.s32.totalorder %v1852_v41, 0  ;;  %vm2054_vm4 = vcmp.eq.s32.totalorder %v5435_v36, %v5225_v7  ;;  %vm2454_vm8 = vcmp.eq.s32.totalorder %v5435_v36, %v5230_v5 }
  0xab   : > { %v1824_v54 = vsel %vm1823_vm9, %v1792_v17, 15  ;;  %v1872_v4 = vsel %vm1871_vm5, %v1852_v41, 0  ;;  %v3016_v49 = vpack.c.bf16 %v2888_v56, %v2872_v48  ;;  %vm2070_vm11 = vcmp.eq.s32.totalorder %v5442_v58, %v5225_v7 }
  0xac   : > { %vm1903_vm14 = vcmp.lt.s32.totalorder %v1872_v4, 15  ;;  %v8881_v6 = vmul.u32 16, %v5310_v33  ;;  %v2262_v60 = vsel %vm2054_vm4, %v5219_v45, 0.0  ;;  %v2278_v13 = vsel %vm2070_vm11, %v5219_v45, 0.0 }
  0xad   : > { %v1904_v9 = vsel %vm1903_vm14, %v1872_v4, 15  ;;  %3145 = vmatpush.bf16.msra.mxu2 %v3016_v49  ;;  %vm2470_vm15 = vcmp.eq.s32.totalorder %v5442_v58, %v5230_v5  ;;  %v2646_v41 = vsel %vm2454_vm8, %v5200_v55, 0.0 }
  0xae   : > { %v5452_v44 = vadd.s32 %v8881_v6, %v1824_v54  ;;  %v8882_v51 = vmov %v8881_v6 }
  0xaf   : > { %v5463_v17 = vadd.s32 %v8882_v51, %v1904_v9 }
  0xb0   : > { %vm2153_vm5 = vcmp.eq.s32.totalorder %v5100_v62, %v5452_v44  ;;  %vm2169_vm4 = vcmp.eq.s32.totalorder %v5141_v0, %v5452_v44  ;;  %vm2121_vm11 = vcmp.eq.s32.totalorder %v5321_v16, %v5452_v44  ;;  %vm2137_vm8 = vcmp.eq.s32.totalorder %v5324_v32, %v5452_v44 }
  0xb1   : > { %v2361_v49 = vsel %vm2153_vm5, %v5438_v2, 0.0  ;;  %v2377_v48 = vsel %vm2169_vm4, %v5438_v2, 0.0  ;;  %v2329_v33 = vsel %vm2121_vm11, %v5438_v2, 0.0  ;;  %vm2553_vm14 = vcmp.eq.s32.totalorder %v5100_v62, %v5463_v17 }
  0xb2   : > { %vm2569_vm10 = vcmp.eq.s32.totalorder %v5141_v0, %v5463_v17  ;;  %v2345_v56 = vsel %vm2137_vm8, %v5438_v2, 0.0  ;;  %vm2521_vm9 = vcmp.eq.s32.totalorder %v5321_v16, %v5463_v17  ;;  %v2745_v54 = vsel %vm2553_vm14, %v5426_v19, 0.0 }
  0xb3   : > { %v2761_v4 = vsel %vm2569_vm10, %v5426_v19, 0.0  ;;  %vm2537_vm5 = vcmp.eq.s32.totalorder %v5324_v32, %v5463_v17  ;;  %v2713_v6 = vsel %vm2521_vm9, %v5426_v19, 0.0  ;;  %v2937_v9 = vadd.f32 %v2745_v54, %v2361_v49 }
  0xb4   : > { %v2953_v51 = vadd.f32 %v2761_v4, %v2377_v48  ;;  %v2729_v25 = vsel %vm2537_vm5, %v5426_v19, 0.0  ;;  %v2905_v61 = vadd.f32 %v2713_v6, %v2329_v33  ;;  %vm2089_vm4 = vcmp.eq.s32.totalorder %v5389_v34, %v5452_v44 }
  0xb5   : > { %v2921_v42 = vadd.f32 %v2729_v25, %v2345_v56  ;;  %vm2105_vm11 = vcmp.eq.s32.totalorder %v5392_v29, %v5452_v44  ;;  %vm2489_vm10 = vcmp.eq.s32.totalorder %v5389_v34, %v5463_v17  ;;  %v2297_v46 = vsel %vm2089_vm4, %v5438_v2, 0.0 }
  0xb6   : > { %v3049_v52 = vpack.c.bf16 %v2953_v51, %v2937_v9  ;;  %v2313_v15 = vsel %vm2105_vm11, %v5438_v2, 0.0  ;;  %vm2505_vm9 = vcmp.eq.s32.totalorder %v5392_v29, %v5463_v17  ;;  %v2681_v25 = vsel %vm2489_vm10, %v5426_v19, 0.0 }
  0xb7   : > { %v3033_v49 = vpack.c.bf16 %v2921_v42, %v2905_v61  ;;  %v2697_v48 = vsel %vm2505_vm9, %v5426_v19, 0.0  ;;  %v2662_v33 = vsel %vm2470_vm15, %v5200_v55, 0.0  ;;  %v2873_v56 = vadd.f32 %v2681_v25, %v2297_v46 }
  0xb8   : > { %3167 = vmatpush.bf16.msra.mxu3 %v3049_v52  ;;  %v2889_v54 = vadd.f32 %v2697_v48, %v2313_v15  ;;  %v2838_v4 = vadd.f32 %v2646_v41, %v2262_v60  ;;  %v2854_v6 = vadd.f32 %v2662_v33, %v2278_v13  ;;  %vm2071_vm8 = vcmp.eq.s32.totalorder %v5442_v58, %v5268_v11 }
  0xb9   : > { %vm8883_vm14 = vcmp.eq.s32.totalorder %v5435_v36, %v5268_v11  ;;  %vm2455_vm5 = vcmp.eq.s32.totalorder %v5435_v36, %v5279_v63  ;;  %vm2471_vm4 = vcmp.eq.s32.totalorder %v5442_v58, %v5279_v63  ;;  %v2279_v15 = vsel %vm2071_vm8, %v5264_v53, 0.0 }
  0xba   : > { %v2263_v42 = vsel %vm8883_vm14, %v5264_v53, 0.0  ;;  %v3017_v61 = vpack.c.bf16 %v2889_v54, %v2873_v56  ;;  %v2998_v52 = vpack.c.bf16 %v2854_v6, %v2838_v4  ;;  %v2647_v46 = vsel %vm2455_vm5, %v5252_v47, 0.0 }
  0xbb   : > { %v2663_v60 = vsel %vm2471_vm4, %v5252_v47, 0.0  ;;  %v2839_v13 = vadd.f32 %v2647_v46, %v2263_v42  ;;  %vm2056_vm15 = vcmp.eq.s32.totalorder %v5435_v36, %v5318_v26  ;;  %vm2072_vm11 = vcmp.eq.s32.totalorder %v5442_v58, %v5318_v26 }
  0xbc   : > { %3168 = vmatpush.bf16.msra.mxu3 %v3033_v49  ;;  %3098 = vmatpush.bf16.msra.mxu0 %v2998_v52  ;;  %v2855_v41 = vadd.f32 %v2663_v60, %v2279_v15  ;;  %v2264_v9 = vsel %vm2056_vm15, %v5313_v14, 0.0  ;;  %v2280_v51 = vsel %vm2072_vm11, %v5313_v14, 0.0  ;;  %vm2456_vm10 = vcmp.eq.s32.totalorder %v5435_v36, %v5335_v59 }
  0xbd   : > { %vm2472_vm9 = vcmp.eq.s32.totalorder %v5442_v58, %v5335_v59  ;;  %v2648_v25 = vsel %vm2456_vm10, %v5302_v3, 0.0  ;;  %vm2057_vm8 = vcmp.eq.s32.totalorder %v5435_v36, %v5452_v44  ;;  %vm2073_vm14 = vcmp.eq.s32.totalorder %v5442_v58, %v5452_v44 }
  0xbe   : > { %v2999_v49 = vpack.c.bf16 %v2855_v41, %v2839_v13  ;;  %v2664_v48 = vsel %vm2472_vm9, %v5302_v3, 0.0  ;;  %v2840_v33 = vadd.f32 %v2648_v25, %v2264_v9  ;;  %v2265_v56 = vsel %vm2057_vm8, %v5438_v2, 0.0 }
  0xbf   : > { %v2856_v54 = vadd.f32 %v2664_v48, %v2280_v51  ;;  %v2281_v4 = vsel %vm2073_vm14, %v5438_v2, 0.0  ;;  %vm2457_vm5 = vcmp.eq.s32.totalorder %v5435_v36, %v5463_v17  ;;  %vm2473_vm4 = vcmp.eq.s32.totalorder %v5442_v58, %v5463_v17 }
  0xc0   : > { %3169 = vmatpush.bf16.msra.mxu3 %v3017_v61  ;;  %3122 = vmatpush.bf16.msra.mxu1 %v2999_v49  ;;  %v2649_v6 = vsel %vm2457_vm5, %v5426_v19, 0.0  ;;  %v2665_v42 = vsel %vm2473_vm4, %v5426_v19, 0.0  ;;  %v5543_v52 = vadd.s32 16, %v5062_v20  ;;  %v5546_v15 = vadd.s32 24, %v5062_v20 }
  0xc1   : > { %v3000_v46 = vpack.c.bf16 %v2856_v54, %v2840_v33  ;;  %v2841_v60 = vadd.f32 %v2649_v6, %v2265_v56  ;;  %v2857_v13 = vadd.f32 %v2665_v42, %v2281_v4  ;;  %v5549_v41 = vadd.s32 8, %v5062_v20 }
  0xc2   : > { %vm2022_vm15 = vcmp.eq.s32.totalorder %v5543_v52, %v5225_v7  ;;  %vm2038_vm11 = vcmp.eq.s32.totalorder %v5546_v15, %v5225_v7  ;;  %vm2422_vm10 = vcmp.eq.s32.totalorder %v5543_v52, %v5230_v5  ;;  %vm2438_vm9 = vcmp.eq.s32.totalorder %v5546_v15, %v5230_v5 }
  0xc3   : > { %3146 = vmatpush.bf16.msra.mxu2 %v3000_v46  ;;  %v3001_v61 = vpack.c.bf16 %v2857_v13, %v2841_v60  ;;  %v2230_v9 = vsel %vm2022_vm15, %v5219_v45, 0.0  ;;  %v2246_v51 = vsel %vm2038_vm11, %v5219_v45, 0.0  ;;  %v2614_v25 = vsel %vm2422_vm10, %v5200_v55, 0.0 }
  0xc4   : > { %v2630_v49 = vsel %vm2438_vm9, %v5200_v55, 0.0  ;;  %v2806_v48 = vadd.f32 %v2614_v25, %v2230_v9  ;;  %vm2023_vm8 = vcmp.eq.s32.totalorder %v5543_v52, %v5268_v11  ;;  %vm2039_vm14 = vcmp.eq.s32.totalorder %v5546_v15, %v5268_v11 }
  0xc5   : > { %3170 = vmatpush.bf16.msra.mxu3 %v3001_v61  ;;  %v2822_v33 = vadd.f32 %v2630_v49, %v2246_v51  ;;  %v2231_v56 = vsel %vm2023_vm8, %v5264_v53, 0.0  ;;  %v2247_v54 = vsel %vm2039_vm14, %v5264_v53, 0.0  ;;  %vm2423_vm5 = vcmp.eq.s32.totalorder %v5543_v52, %v5279_v63 }
  0xc6   : > { %vm2439_vm4 = vcmp.eq.s32.totalorder %v5546_v15, %v5279_v63  ;;  %v2615_v4 = vsel %vm2423_vm5, %v5252_v47, 0.0  ;;  %vm2024_vm15 = vcmp.eq.s32.totalorder %v5543_v52, %v5318_v26  ;;  %vm2040_vm11 = vcmp.eq.s32.totalorder %v5546_v15, %v5318_v26 }
  0xc7   : > { %v2982_v6 = vpack.c.bf16 %v2822_v33, %v2806_v48  ;;  %v2631_v42 = vsel %vm2439_vm4, %v5252_v47, 0.0  ;;  %v2807_v46 = vadd.f32 %v2615_v4, %v2231_v56  ;;  %v2232_v60 = vsel %vm2024_vm15, %v5313_v14, 0.0 }
  0xc8   : > { %v2823_v13 = vadd.f32 %v2631_v42, %v2247_v54  ;;  %v2248_v61 = vsel %vm2040_vm11, %v5313_v14, 0.0  ;;  %vm2424_vm10 = vcmp.eq.s32.totalorder %v5543_v52, %v5335_v59  ;;  %vm2440_vm9 = vcmp.eq.s32.totalorder %v5546_v15, %v5335_v59 }
  0xc9   : > { %3099 = vmatpush.bf16.msra.mxu0 %v2982_v6  ;;  %v2616_v9 = vsel %vm2424_vm10, %v5302_v3, 0.0  ;;  %v2632_v51 = vsel %vm2440_vm9, %v5302_v3, 0.0  ;;  %vm2025_vm8 = vcmp.eq.s32.totalorder %v5543_v52, %v5452_v44  ;;  %vm2041_vm14 = vcmp.eq.s32.totalorder %v5546_v15, %v5452_v44 }
  0xca   : > { %v2983_v25 = vpack.c.bf16 %v2823_v13, %v2807_v46  ;;  %v2808_v49 = vadd.f32 %v2616_v9, %v2232_v60  ;;  %v2824_v48 = vadd.f32 %v2632_v51, %v2248_v61  ;;  %v2233_v33 = vsel %vm2025_vm8, %v5438_v2, 0.0 }
  0xcb   : > { %v2249_v56 = vsel %vm2041_vm14, %v5438_v2, 0.0  ;;  %vm2425_vm5 = vcmp.eq.s32.totalorder %v5543_v52, %v5463_v17  ;;  %vm2441_vm4 = vcmp.eq.s32.totalorder %v5546_v15, %v5463_v17  ;;  %vm1990_vm15 = vcmp.eq.s32.totalorder %v5062_v20, %v5225_v7 }
  0xcc   : > { %3123 = vmatpush.bf16.msra.mxu1 %v2983_v25  ;;  %v2984_v54 = vpack.c.bf16 %v2824_v48, %v2808_v49  ;;  %v2617_v4 = vsel %vm2425_vm5, %v5426_v19, 0.0  ;;  %v2633_v6 = vsel %vm2441_vm4, %v5426_v19, 0.0  ;;  %vm2006_vm11 = vcmp.eq.s32.totalorder %v5549_v41, %v5225_v7 }
  0xcd   : > { %v2809_v42 = vadd.f32 %v2617_v4, %v2233_v33  ;;  %v2825_v46 = vadd.f32 %v2633_v6, %v2249_v56  ;;  %v2198_v60 = vsel %vm1990_vm15, %v5219_v45, 0.0  ;;  %v2214_v13 = vsel %vm2006_vm11, %v5219_v45, 0.0 }
  0xce   : > { %3147 = vmatpush.bf16.msra.mxu2 %v2984_v54  ;;  %vm2390_vm10 = vcmp.eq.s32.totalorder %v5062_v20, %v5230_v5  ;;  %vm2406_vm9 = vcmp.eq.s32.totalorder %v5549_v41, %v5230_v5  ;;  %vm1991_vm8 = vcmp.eq.s32.totalorder %v5062_v20, %v5268_v11  ;;  %vm2007_vm14 = vcmp.eq.s32.totalorder %v5549_v41, %v5268_v11 }
  0xcf   : > { %v2985_v7 = vpack.c.bf16 %v2825_v46, %v2809_v42  ;;  %v2582_v61 = vsel %vm2390_vm10, %v5200_v55, 0.0  ;;  %v2598_v9 = vsel %vm2406_vm9, %v5200_v55, 0.0  ;;  %v2199_v45 = vsel %vm1991_vm8, %v5264_v53, 0.0 }
  0xd0   : > { %v2774_v51 = vadd.f32 %v2582_v61, %v2198_v60  ;;  %v2790_v25 = vadd.f32 %v2598_v9, %v2214_v13  ;;  %v2215_v49 = vsel %vm2007_vm14, %v5264_v53, 0.0  ;;  %vm2391_vm5 = vcmp.eq.s32.totalorder %v5062_v20, %v5279_v63 }
  0xd1   : > { %3171 = vmatpush.bf16.msra.mxu3 %v2985_v7  ;;  %vm2407_vm4 = vcmp.eq.s32.totalorder %v5549_v41, %v5279_v63  ;;  %v2583_v5 = vsel %vm2391_vm5, %v5252_v47, 0.0  ;;  %vm1992_vm15 = vcmp.eq.s32.totalorder %v5062_v20, %v5318_v26  ;;  %vm2008_vm11 = vcmp.eq.s32.totalorder %v5549_v41, %v5318_v26  ;;  %v4451_v63 = vld [vmem:[#allocation6] sm:$0xff] }
  0xd2   : > { %v2966_v55 = vpack.c.bf16 %v2790_v25, %v2774_v51  ;;  %v2599_v11 = vsel %vm2407_vm4, %v5252_v47, 0.0  ;;  %v2775_v48 = vadd.f32 %v2583_v5, %v2199_v45  ;;  %v2200_v53 = vsel %vm1992_vm15, %v5313_v14, 0.0 }
  0xd3   : > { %v2791_v33 = vadd.f32 %v2599_v11, %v2215_v49  ;;  %v2216_v56 = vsel %vm2008_vm11, %v5313_v14, 0.0  ;;  %vm2392_vm10 = vcmp.eq.s32.totalorder %v5062_v20, %v5335_v59  ;;  %vm2408_vm9 = vcmp.eq.s32.totalorder %v5549_v41, %v5335_v59 }
  0xd4   : > { %3100 = vmatpush.bf16.msra.mxu0 %v2966_v55  ;;  %v2584_v54 = vsel %vm2392_vm10, %v5302_v3, 0.0  ;;  %v2600_v26 = vsel %vm2408_vm9, %v5302_v3, 0.0  ;;  %vm1993_vm8 = vcmp.eq.s32.totalorder %v5062_v20, %v5452_v44  ;;  %vm2009_vm14 = vcmp.eq.s32.totalorder %v5549_v41, %v5452_v44 }
  0xd5   : > { %v2967_v47 = vpack.c.bf16 %v2791_v33, %v2775_v48  ;;  %v2776_v14 = vadd.f32 %v2584_v54, %v2200_v53  ;;  %v2792_v4 = vadd.f32 %v2600_v26, %v2216_v56  ;;  %v2201_v6 = vsel %vm1993_vm8, %v5438_v2, 0.0 }
  0xd6   : > { %v2217_v42 = vsel %vm2009_vm14, %v5438_v2, 0.0  ;;  %vm2393_vm5 = vcmp.eq.s32.totalorder %v5062_v20, %v5463_v17  ;;  %vm2409_vm4 = vcmp.eq.s32.totalorder %v5549_v41, %v5463_v17  ;;  %vm8688_vm15 = vcmask 785408  }
  0xd7   : > { %3124 = vmatpush.bf16.msra.mxu1 %v2967_v47  ;;  %v2968_v3 = vpack.c.bf16 %v2792_v4, %v2776_v14  ;;  %v2585_v59 = vsel %vm2393_vm5, %v5426_v19, 0.0  ;;  %v2601_v44 = vsel %vm2409_vm4, %v5426_v19, 0.0  ;;  %4393 = vmatmul.msk.bf16.vlgmr.msra.gmra.mxu0 %vm8688_vm15, %v4451_v63  ;;  %v274_v46 = vadd.f32 %v4880_v12, %v5331_v21 }
  0xd8   : > { %v2777_v60 = vadd.f32 %v2585_v59, %v2201_v6  ;;  %v2793_v2 = vadd.f32 %v2601_v44, %v2217_v42  ;;  %v291_v13 = vsub.f32 %v5329_v39, %v4878_v8  ;;  %v176_v7 = vadd.s32 896, %v4871_v1 }
  0xd9   : > { %3148 = vmatpush.bf16.msra.mxu2 %v2968_v3  ;;  %v341_v17 = vsub.f32 %v274_v46, %v4886_v23  ;;  %v173_v61 = vadd.s32 512, %v4871_v1  ;;  %v174_v9 = vadd.s32 640, %v4871_v1 }
  0xda   : > { %v2969_v19 = vpack.c.bf16 %v2793_v2, %v2777_v60  ;;  %4396 = vmatmul.msk.bf16.vlgmr.msra.gmra.mxu1 %vm8688_vm15, %v4451_v63  ;;  %v307_v45 = vadd.f32 0.5, %v291_v13  ;;  %v192_v51 = vand.u32 255, %v176_v7 }
  0xdb   : > { %v357_v21 = vadd.f32 0.5, %v341_v17  ;;  %v189_v25 = vand.u32 255, %v173_v61  ;;  %v190_v49 = vand.u32 255, %v174_v9 }
  0xdc   : > { %3172 = vmatpush.bf16.msra.mxu3 %v2969_v19  ;;  %4399 = vmatmul.msk.bf16.vlgmr.msra.gmra.mxu2 %vm8688_vm15, %v4451_v63  ;;  %v5659_v39 = vmul.f32 %v4884_v22, %v307_v45  ;;  %v208_v5 = vcvt.s32.f32 %v192_v51  ;;  %v224_v55 = vsub.s32 %v176_v7, %v192_v51 }
  0xdd   : > { %v5662_v11 = vmul.f32 %v4894_v35, %v357_v21  ;;  %v205_v48 = vcvt.s32.f32 %v189_v25  ;;  %v221_v53 = vsub.s32 %v173_v61, %v189_v25  ;;  %v206_v33 = vcvt.s32.f32 %v190_v49 }
  0xde   : > { %v390_v56 = vmul.f32 %v5659_v39, %v5659_v39  ;;  %v240_v54 = vcvt.s32.f32 %v224_v55  ;;  %v292_v26 = vsub.f32 %v208_v5, %v4878_v8  ;;  %v222_v47 = vsub.s32 %v174_v9, %v190_v49 }
  0xdf   : > { %4402 = vmatmul.msk.bf16.vlgmr.msra.gmra.mxu3 %vm8688_vm15, %v4451_v63  ;;  %v406_v14 = vmul.f32 %v5662_v11, %v5662_v11  ;;  %v237_v4 = vcvt.s32.f32 %v221_v53  ;;  %v289_v6 = vsub.f32 %v205_v48, %v4878_v8  ;;  %v290_v42 = vsub.f32 %v206_v33, %v4878_v8 }
  0xe0   : > { %v256_v3 = vmul.f32 0.00390625, %v240_v54  ;;  %v308_v59 = vadd.f32 0.5, %v292_v26  ;;  %v238_v44 = vcvt.s32.f32 %v222_v47 }
  0xe1   : > { %v422_v46 = vadd.f32 %v406_v14, %v390_v56  ;;  %v253_v60 = vmul.f32 0.00390625, %v237_v4  ;;  %v305_v2 = vadd.f32 0.5, %v289_v6  ;;  %v306_v17 = vadd.f32 0.5, %v290_v42 }
  0xe2   : > { %v275_v13 = vadd.f32 %v4880_v12, %v256_v3  ;;  %v254_v7 = vmul.f32 0.00390625, %v238_v44  ;;  %v5675_v9 = vmul.f32 %v4884_v22, %v308_v59 }
  0xe3   : > { %v438_v61 = vadd.f32 1.0, %v422_v46  ;;  %v272_v63 = vadd.f32 %v4880_v12, %v253_v60  ;;  %v5680_v51 = vmul.f32 %v4884_v22, %v305_v2  ;;  %v5684_v49 = vmul.f32 %v4884_v22, %v306_v17 }
  0xe4   : > { %v342_v19 = vsub.f32 %v275_v13, %v4886_v23  ;;  %v273_v45 = vadd.f32 %v4880_v12, %v254_v7  ;;  %v391_v53 = vmul.f32 %v5675_v9, %v5675_v9 }
  0xe5   : > { %4601 = vrsqrt.f32 %v438_v61  ;;  %v339_v21 = vsub.f32 %v272_v63, %v4886_v23  ;;  %v388_v54 = vmul.f32 %v5680_v51, %v5680_v51  ;;  %v389_v14 = vmul.f32 %v5684_v49, %v5684_v49 }
  0xe6   : > { %v358_v25 = vadd.f32 0.5, %v342_v19  ;;  %v340_v5 = vsub.f32 %v273_v45, %v4886_v23  ;;  %vm514_vm11 = vweird.f32 %v438_v61 }
  0xe7   : > { %v355_v55 = vadd.f32 0.5, %v339_v21 }
  0xe8   : > { %v5688_v48 = vmul.f32 %v4894_v35, %v358_v25  ;;  %v356_v33 = vadd.f32 0.5, %v340_v5 }
  0xe9   : > { %v5693_v56 = vmul.f32 %v4894_v35, %v355_v55 }
  0xea   : > { %v407_v26 = vmul.f32 %v5688_v48, %v5688_v48  ;;  %v5700_v47 = vmul.f32 %v4894_v35, %v356_v33 }
  0xeb   : > { %v4602_v4 = vpop.eup %4601  ;;  %v404_v6 = vmul.f32 %v5693_v56, %v5693_v56 }
  0xec   : > { %v509_v42 = vmul.f32 %v4602_v4, %v438_v61  ;;  %v423_v3 = vadd.f32 %v407_v26, %v391_v53  ;;  %v405_v59 = vmul.f32 %v5700_v47, %v5700_v47  ;;  %vm515_vm10 = vweird.f32 %v4602_v4 }
  0xed   : > { %v420_v44 = vadd.f32 %v404_v6, %v388_v54  ;;  %vm516_vm9 = vmor %vm514_vm11, %vm515_vm10 }
  0xee   : > { %v510_v46 = vmul.f32 %v4602_v4, %v509_v42  ;;  %v439_v60 = vadd.f32 1.0, %v423_v3  ;;  %v421_v2 = vadd.f32 %v405_v59, %v389_v14 }
  0xef   : > { %v436_v13 = vadd.f32 1.0, %v420_v44 }
  0xf0   : > { %v511_v7 = vmul.f32 0.5, %v510_v46  ;;  %4603 = vrsqrt.f32 %v439_v60  ;;  %v5708_v17 = vadd.f32 1.0, %v421_v2  ;;  %vm524_vm8 = vweird.f32 %v439_v60 }
  0xf1   : > { %4605 = vrsqrt.f32 %v436_v13  ;;  %vm494_vm5 = vweird.f32 %v436_v13 }
  0xf2   : > { %v512_v63 = vsub.f32 1.5, %v511_v7  ;;  %4607 = vrsqrt.f32 %v5708_v17 }
  0xf4   : > { %v513_v19 = vmul.f32 %v4602_v4, %v512_v63 }
  0xf6   : > { %v4604_v45 = vpop.eup %4603  ;;  %v517_v21 = vsel %vm516_vm9, %v4602_v4, %v513_v19 }
  0xf7   : > { %v4606_v25 = vpop.eup %4605  ;;  %v614_v5 = vmul.f32 %v517_v21, %v5659_v39  ;;  %v630_v55 = vmul.f32 %v517_v21, %v5662_v11  ;;  %v697_v61 = vmul.f32 %v4952_v30, %v517_v21  ;;  %v780_v53 = vmul.f32 %v4957_v37, %v517_v21 }
  0xf8   : > { %v863_v33 = vmul.f32 %v4963_v43, %v517_v21  ;;  %v519_v54 = vmul.f32 %v4604_v45, %v439_v60  ;;  %v489_v26 = vmul.f32 %v4606_v25, %v436_v13  ;;  %v5720_v3 = vpop.eup %4607  ;;  %vm525_vm14 = vweird.f32 %v4604_v45 }
  0xf9   : > { %v647_v14 = vmul.f32 %v4946_v24, %v614_v5  ;;  %v664_v6 = vmul.f32 %v4948_v27, %v630_v55  ;;  %v730_v42 = vmul.f32 %v4950_v28, %v614_v5  ;;  %v747_v4 = vmul.f32 %v4954_v31, %v630_v55  ;;  %vm526_vm9 = vmor %vm524_vm8, %vm525_vm14 }
  0xfa   : > { %v813_v39 = vmul.f32 %v4959_v38, %v614_v5  ;;  %v830_v11 = vmul.f32 %v4961_v40, %v630_v55  ;;  %v520_v59 = vmul.f32 %v4604_v45, %v519_v54  ;;  %v490_v44 = vmul.f32 %v4606_v25, %v489_v26 }
  0xfb   : > { %v680_v46 = vadd.f32 %v664_v6, %v647_v14  ;;  %v763_v2 = vadd.f32 %v747_v4, %v730_v42  ;;  %v499_v35 = vmul.f32 %v5720_v3, %v5708_v17  ;;  %vm495_vm4 = vweird.f32 %v4606_v25 }
  0xfc   : > { %v846_v7 = vadd.f32 %v830_v11, %v813_v39  ;;  %v521_v63 = vmul.f32 0.5, %v520_v59  ;;  %v491_v19 = vmul.f32 0.5, %v490_v44  ;;  %v8886_v42 = vmov 0  ;;  %vm496_vm12 = vmor %vm494_vm5, %vm495_vm4 }
  0xfd   : > { %v5724_v21 = vadd.f32 %v697_v61, %v680_v46  ;;  %v5726_v10 = vadd.f32 %v780_v53, %v763_v2  ;;  %v500_v60 = vmul.f32 %v5720_v3, %v499_v35  ;;  %v8891_v11 = vmov 0 }
  0xfe   : > { %v5730_v23 = vadd.f32 %v863_v33, %v846_v7  ;;  %v522_v5 = vsub.f32 1.5, %v521_v63  ;;  %v492_v55 = vsub.f32 1.5, %v491_v19 }
  0xff   : > { %8884 = vst [vmem:[#allocation38_spill] sm:$0xff] %v5724_v21  ;;  %v895_v54 = vand.u32 2147483647, %v5724_v21  ;;  %v911_v26 = vand.u32 2147483647, %v5726_v10  ;;  %vm8702_vm10 = vcmp.ge.f32.partialorder %v5724_v21, 0.0 }
 0x100   : > { %8885 = vst [vmem:[#allocation39_spill] sm:$0xff] %v5730_v23  ;;  %v927_v14 = vand.u32 2147483647, %v5730_v23  ;;  %v8693_v53 = vsub.f32 0.0, %v5730_v23  ;;  %v523_v33 = vmul.f32 %v4604_v45, %v522_v5  ;;  %v493_v6 = vmul.f32 %v4606_v25, %v492_v55 }
 0x101   : > { %v943_v61 = vmax.f32 %v895_v54, %v911_v26  ;;  %vm991_vm15 = vcmp.gt.f32.partialorder %v911_v26, %v895_v54  ;;  %vm1087_vm1 = vcmp.ge.f32.partialorder %v5726_v10, 0.0  ;;  %vm8890_vm8 = vcmp.ge.f32.partialorder %v5730_v23, 0.0 }
 0x102   : > { %v5750_v35 = vsel %vm8890_vm8, 4, %v8867_v18  ;;  %v5753_v13 = vsel %vm1087_vm1, 2, %v8872_v57  ;;  %v5758_v4 = vsel %vm8702_vm10, 0, %v8874_v50  ;;  %v527_v39 = vsel %vm526_vm9, %v4604_v45, %v523_v33 }
 0x103   : > { %vm5739_vm7 = vcmp.gt.f32.partialorder %v927_v14, %v943_v61  ;;  %v1295_v59 = vsub.f32 0.0, %v5726_v10  ;;  %v615_v44 = vmul.f32 %v527_v39, %v5675_v9  ;;  %v631_v46 = vmul.f32 %v527_v39, %v5688_v48 }
 0x104   : > { %v8887_v42 = vsel %vm5739_vm7, 4294967295, %v8886_v42  ;;  %vm975_vm11 = vmxor %vm5739_vm7, %vm8889_vm3  ;;  %v5767_v2 = vmul.f32 0.5, %v500_v60  ;;  %v1279_v63 = vsel %vm1087_vm1, %v5730_v23, %v8693_v53  ;;  %v698_v45 = vmul.f32 %v4952_v30, %v527_v39 }
 0x105   : > { %8888 = vst [vmem:[#allocation40_spill] sm:$0xff] %v8887_v42  ;;  %vm5760_vm14 = vmand %vm975_vm11, %vm991_vm15  ;;  %v497_v19 = vsel %vm496_vm12, %v4606_v25, %v493_v6  ;;  %v648_v10 = vmul.f32 %v4946_v24, %v615_v44  ;;  %v665_v9 = vmul.f32 %v4948_v27, %v631_v46  ;;  %v781_v48 = vmul.f32 %v4957_v37, %v527_v39 }
 0x106   : > { %v8892_v11 = vsel %vm5760_vm14, 4294967295, %v8891_v11  ;;  %v1023_v7 = vsel %vm5760_vm14, %v911_v26, %v895_v54  ;;  %v731_v55 = vmul.f32 %v4950_v28, %v615_v44  ;;  %v748_v54 = vmul.f32 %v4954_v31, %v631_v46 }
 0x107   : > { %8893 = vst [vmem:[#allocation41_spill] sm:$0xff] %v8892_v11  ;;  %v1039_v5 = vsel %vm5739_vm7, %v927_v14, %v1023_v7  ;;  %v864_v26 = vmul.f32 %v4963_v43, %v527_v39  ;;  %v681_v61 = vadd.f32 %v665_v9, %v648_v10  ;;  %v814_v60 = vmul.f32 %v4959_v38, %v615_v44 }
 0x108   : > { %4609 = vrcp.f32 %v1039_v5  ;;  %v831_v25 = vmul.f32 %v4961_v40, %v631_v46  ;;  %v612_v14 = vmul.f32 %v497_v19, %v5680_v51  ;;  %v764_v33 = vadd.f32 %v748_v54, %v731_v55 }
 0x109   : > { %v628_v6 = vmul.f32 %v497_v19, %v5693_v56  ;;  %v695_v7 = vmul.f32 %v4952_v30, %v497_v19  ;;  %v502_v53 = vsub.f32 1.5, %v5767_v2  ;;  %v5789_v23 = vadd.f32 %v698_v45, %v681_v61 }
 0x10a   : > { %v847_v21 = vadd.f32 %v831_v25, %v814_v60  ;;  %v645_v22 = vmul.f32 %v4946_v24, %v612_v14  ;;  %v728_v39 = vmul.f32 %v4950_v28, %v612_v14  ;;  %vm504_vm12 = vweird.f32 %v5708_v17 }
 0x10b   : > { %8894 = vst [vmem:[#allocation42_spill] sm:$0xff] %v5789_v23  ;;  %vm505_vm1 = vweird.f32 %v5720_v3  ;;  %v797_v44 = vadd.f32 %v781_v48, %v764_v33  ;;  %v662_v51 = vmul.f32 %v4948_v27, %v628_v6  ;;  %v745_v56 = vmul.f32 %v4954_v31, %v628_v6 }
 0x10c   : > { %v811_v46 = vmul.f32 %v4959_v38, %v612_v14  ;;  %v1151_v2 = vsel %vm5760_vm14, %v5753_v13, %v5758_v4  ;;  %v5802_v45 = vadd.f32 %v864_v26, %v847_v21  ;;  %v896_v10 = vand.u32 2147483647, %v5789_v23 }
 0x10d   : > { %v828_v9 = vmul.f32 %v4961_v40, %v628_v6  ;;  %v912_v54 = vand.u32 2147483647, %v797_v44  ;;  %v678_v48 = vadd.f32 %v662_v51, %v645_v22  ;;  %v778_v61 = vmul.f32 %v4957_v37, %v497_v19 }
 0x10e   : > { %8895 = vst [vmem:[#allocation43_spill] sm:$0xff] %v5802_v45  ;;  %v4610_v55 = vpop.eup %4609  ;;  %v861_v60 = vmul.f32 %v4963_v43, %v497_v19  ;;  %v928_v14 = vand.u32 2147483647, %v5802_v45  ;;  %vm1088_vm15 = vcmp.ge.f32.partialorder %v797_v44, 0.0  ;;  %v761_v33 = vadd.f32 %v745_v56, %v728_v39 }
 0x10f   : > { %v1343_v25 = vmul.f32 %v4610_v55, %v1039_v5  ;;  %v944_v12 = vmax.f32 %v896_v10, %v912_v54  ;;  %v8705_v21 = vsub.f32 0.0, %v5802_v45  ;;  %v5810_v13 = vadd.f32 %v695_v7, %v678_v48 }
 0x110   : > { %v844_v4 = vadd.f32 %v828_v9, %v811_v46  ;;  %vm992_vm5 = vcmp.gt.f32.partialorder %v912_v54, %v896_v10  ;;  %vm8703_vm4 = vcmp.ge.f32.partialorder %v5802_v45, 0.0  ;;  %vm8704_vm11 = vcmp.ge.f32.partialorder %v5789_v23, 0.0 }
 0x111   : > { %8896 = vst [vmem:[#allocation44_spill] sm:$0xff] %v5810_v13  ;;  %v1359_v26 = vsub.f32 2.0, %v1343_v25  ;;  %v1311_v22 = vsel %vm5760_vm14, %v1279_v63, %v1295_v59  ;;  %vm5816_vm9 = vcmp.gt.f32.partialorder %v928_v14, %v944_v12  ;;  %v8897_v19 = vmov 0 }
 0x112   : > { %v8898_v19 = vsel %vm5816_vm9, 4294967295, %v8897_v19  ;;  %v1104_v5 = vsel %vm1088_vm15, 2, %v8872_v57  ;;  %v1136_v6 = vsel %vm8704_vm11, 0, %v8874_v50  ;;  %v5828_v7 = vsel %vm5739_vm7, %v5750_v35, %v1151_v2  ;;  %vm976_vm8 = vmxor %vm5816_vm9, %vm8889_vm3 }
 0x113   : > { %8899 = vst [vmem:[#allocation45_spill] sm:$0xff] %v8898_v19  ;;  %v5830_v39 = vmul.f32 %v4610_v55, %v1359_v26  ;;  %v5835_v12 = vadd.f32 %v778_v61, %v761_v33  ;;  %v5837_v59 = vadd.f32 %v861_v60, %v844_v4  ;;  %vm5839_vm10 = vmand %vm976_vm8, %vm992_vm5  ;;  %v8902_v63 = vmov 0 }
 0x114   : > { %v8903_v63 = vsel %vm5839_vm10, 4294967295, %v8902_v63  ;;  %v1072_v51 = vsel %vm8703_vm4, 4, %v8867_v18  ;;  %v1280_v35 = vsel %vm1088_vm15, %v5802_v45, %v8705_v21  ;;  %v1296_v56 = vsub.f32 0.0, %v797_v44  ;;  %vm506_vm15 = vmor %vm504_vm12, %vm505_vm1 }
 0x115   : > { %8900 = vst [vmem:[#allocation46_spill] sm:$0xff] %v5830_v39  ;;  %v893_v46 = vand.u32 2147483647, %v5810_v13  ;;  %v1439_v2 = vmul.f32 %v5830_v39, %v1311_v22  ;;  %v1024_v9 = vsel %vm5839_vm10, %v912_v54, %v896_v10  ;;  %v1152_v55 = vsel %vm5839_vm10, %v1104_v5, %v1136_v6 }
 0x116   : > { %8901 = vst [vmem:[#allocation47_spill] sm:$0xff] %v5837_v59  ;;  %v503_v48 = vmul.f32 %v5720_v3, %v502_v53  ;;  %v1040_v61 = vsel %vm5816_vm9, %v928_v14, %v1024_v9  ;;  %v909_v60 = vand.u32 2147483647, %v5835_v12  ;;  %v925_v25 = vand.u32 2147483647, %v5837_v59 }
 0x117   : > { %8904 = vst [vmem:[#allocation48_spill] sm:$0xff] %v8903_v63  ;;  %v1455_v44 = vadd.f32 1.0, %v1439_v2  ;;  %4611 = vrcp.f32 %v1040_v61  ;;  %v5868_v54 = vsel %vm5816_vm9, %v1072_v51, %v1152_v55  ;;  %v1312_v53 = vsel %vm5839_vm10, %v1280_v35, %v1296_v56 }
 0x118   : > { %v941_v14 = vmax.f32 %v893_v46, %v909_v60  ;;  %vm989_vm5 = vcmp.gt.f32.partialorder %v909_v60, %v893_v46  ;;  %v8706_v4 = vsub.f32 0.0, %v5837_v59  ;;  %v507_v26 = vsel %vm506_vm15, %v5720_v3, %v503_v48 }
 0x119   : > { %v1471_v33 = vmul.f32 0.5, %v1455_v44  ;;  %v8905_v17 = vmov 0  ;;  %vm1085_vm12 = vcmp.ge.f32.partialorder %v5835_v12, 0.0  ;;  %vm8714_vm1 = vcmp.ge.f32.partialorder %v5810_v13, 0.0 }
 0x11a   : > { %vm5874_vm8 = vcmp.gt.f32.partialorder %v925_v25, %v941_v14  ;;  %v613_v22 = vmul.f32 %v507_v26, %v5684_v49  ;;  %vm8715_vm11 = vcmp.ge.f32.partialorder %v5837_v59, 0.0  ;;  %v1293_v3 = vsub.f32 0.0, %v5835_v12 }
 0x11b   : > { %v8906_v17 = vsel %vm5874_vm8, 4294967295, %v8905_v17  ;;  %v1519_v5 = vmul.f32 16.0, %v1471_v33  ;;  %vm973_vm4 = vmxor %vm5874_vm8, %vm8889_vm3  ;;  %v8908_v51 = vmov 0  ;;  %v5894_v35 = vsel %vm1085_vm12, 2, %v8872_v57 }
 0x11c   : > { %8907 = vst [vmem:[#allocation49_spill] sm:$0xff] %v8906_v17  ;;  %vm5887_vm15 = vmand %vm973_vm4, %vm989_vm5  ;;  %v5899_v49 = vsel %vm8714_vm1, 0, %v8874_v50  ;;  %v629_v56 = vmul.f32 %v507_v26, %v5700_v47  ;;  %v646_v2 = vmul.f32 %v4946_v24, %v613_v22  ;;  %v5908_v44 = vsel %vm8715_vm11, 4, %v8867_v18 }
 0x11d   : > { %v8909_v51 = vsel %vm5887_vm15, 4294967295, %v8908_v51  ;;  %v4612_v9 = vpop.eup %4611  ;;  %v4371_v55 = vadd.f32 -0.5, %v1519_v5  ;;  %v1021_v48 = vsel %vm5887_vm15, %v909_v60, %v893_v46  ;;  %v1277_v14 = vsel %vm1085_vm12, %v5837_v59, %v8706_v4 }
 0x11e   : > { %8910 = vst [vmem:[#allocation50_spill] sm:$0xff] %v8909_v51  ;;  %v1344_v33 = vmul.f32 %v4612_v9, %v1040_v61  ;;  %v1037_v47 = vsel %vm5874_vm8, %v925_v25, %v1021_v48  ;;  %v663_v5 = vmul.f32 %v4948_v27, %v629_v56  ;;  %v696_v21 = vmul.f32 %v4952_v30, %v507_v26 }
 0x11f   : > { %v1567_v46 = vfloor.f32 %v4371_v55  ;;  %4613 = vrcp.f32 %v1037_v47  ;;  %v729_v6 = vmul.f32 %v4950_v28, %v613_v22  ;;  %v746_v61 = vmul.f32 %v4954_v31, %v629_v56 }
 0x120   : > { %v1360_v10 = vsub.f32 2.0, %v1344_v33  ;;  %v679_v12 = vadd.f32 %v663_v5, %v646_v2  ;;  %v779_v4 = vmul.f32 %v4957_v37, %v507_v26  ;;  %v812_v19 = vmul.f32 %v4959_v38, %v613_v22 }
 0x121   : > { %v5926_v25 = vsub.f32 %v4371_v55, %v1567_v46  ;;  %v4500_v48 = vcvt.f32.s32 %v1567_v46  ;;  %v829_v63 = vmul.f32 %v4961_v40, %v629_v56  ;;  %v762_v60 = vadd.f32 %v746_v61, %v729_v6 }
 0x122   : > { %v5930_v45 = vmul.f32 %v4612_v9, %v1360_v10  ;;  %v5932_v23 = vadd.f32 %v696_v21, %v679_v12  ;;  %v862_v39 = vmul.f32 %v4963_v43, %v507_v26  ;;  %v1309_v33 = vsel %vm5887_vm15, %v1277_v14, %v1293_v3 }
 0x123   : > { %vm1797_vm4 = vcmp.gt.s32.totalorder %v4500_v48, 0  ;;  %v1855_v2 = vadd.s32 1, %v4500_v48  ;;  %v845_v5 = vadd.f32 %v829_v63, %v812_v19  ;;  %v5938_v46 = vsub.f32 1.0, %v5926_v25 }
 0x124   : > { %8911 = vst [vmem:[#allocation51_spill] sm:$0xff] %v5930_v45  ;;  %v1798_v55 = vsel %vm1797_vm4, %v4500_v48, 0  ;;  %v1440_v22 = vmul.f32 %v5930_v45, %v1312_v53  ;;  %v5941_v56 = vadd.f32 %v779_v4, %v762_v60  ;;  %v894_v26 = vand.u32 2147483647, %v5932_v23 }
 0x125   : > { %8912 = vst [vmem:[#allocation52_spill] sm:$0xff] %v5932_v23  ;;  %v4614_v10 = vpop.eup %4613  ;;  %vm1829_vm5 = vcmp.lt.s32.totalorder %v1798_v55, 15  ;;  %vm1877_vm12 = vcmp.gt.s32.totalorder %v1855_v2, 0  ;;  %v5943_v21 = vadd.f32 %v862_v39, %v845_v5  ;;  %v8914_v19 = vmul.u32 16, %v5828_v7 }
 0x126   : > { %v1830_v6 = vsel %vm1829_vm5, %v1798_v55, 15  ;;  %v1878_v9 = vsel %vm1877_vm12, %v1855_v2, 0  ;;  %v1456_v12 = vadd.f32 1.0, %v1440_v22  ;;  %v1341_v3 = vmul.f32 %v4614_v10, %v1037_v47 }
 0x127   : > { %8913 = vst [vmem:[#allocation53_spill] sm:$0xff] %v5943_v21  ;;  %vm1909_vm1 = vcmp.lt.s32.totalorder %v1878_v9, 15  ;;  %v5948_v63 = vadd.s32 %v8914_v19, %v1830_v6  ;;  %v910_v53 = vand.u32 2147483647, %v5941_v56  ;;  %v926_v4 = vand.u32 2147483647, %v5943_v21 }
 0x128   : > { %v1910_v14 = vsel %vm1909_vm1, %v1878_v9, 15  ;;  %v1472_v60 = vmul.f32 0.5, %v1456_v12  ;;  %v1357_v61 = vsub.f32 2.0, %v1341_v3  ;;  %v5953_v39 = vadd.s32 1280, %v4871_v1 }
 0x129   : > { %v8915_v48 = vmov %v8914_v19  ;;  %vm2156_vm4 = vcmp.eq.s32.totalorder %v5100_v62, %v5948_v63  ;;  %vm2172_vm5 = vcmp.eq.s32.totalorder %v5141_v0, %v5948_v63  ;;  %v942_v47 = vmax.f32 %v894_v26, %v910_v53 }
 0x12a   : > { %v5957_v2 = vadd.s32 %v8915_v48, %v1910_v14  ;;  %v2364_v5 = vsel %vm2156_vm4, %v5938_v46, 0.0  ;;  %v2380_v55 = vsel %vm2172_vm5, %v5938_v46, 0.0  ;;  %v1520_v22 = vmul.f32 16.0, %v1472_v60 }
 0x12b   : > { %v5965_v6 = vmul.f32 %v4614_v10, %v1357_v61  ;;  %vm5971_vm11 = vcmp.gt.f32.partialorder %v926_v4, %v942_v47  ;;  %v8917_v7 = vmov 0  ;;  %vm990_vm9 = vcmp.gt.f32.partialorder %v910_v53, %v894_v26 }
 0x12c   : > { %vm2556_vm1 = vcmp.eq.s32.totalorder %v5100_v62, %v5957_v2  ;;  %vm2572_vm12 = vcmp.eq.s32.totalorder %v5141_v0, %v5957_v2  ;;  %v8918_v7 = vsel %vm5971_vm11, 4294967295, %v8917_v7  ;;  %v4372_v3 = vadd.f32 -0.5, %v1520_v22  ;;  %vm974_vm4 = vmxor %vm5971_vm11, %vm8889_vm3 }
 0x12d   : > { %8916 = vst [vmem:[#allocation54_spill] sm:$0xff] %v5965_v6  ;;  %v2748_v9 = vsel %vm2556_vm1, %v5926_v25, 0.0  ;;  %v2764_v12 = vsel %vm2572_vm12, %v5926_v25, 0.0  ;;  %v1437_v19 = vmul.f32 %v5965_v6, %v1309_v33  ;;  %vm5981_vm5 = vmand %vm974_vm4, %vm990_vm9  ;;  %v8920_v60 = vmov 0 }
 0x12e   : > { %8919 = vst [vmem:[#allocation55_spill] sm:$0xff] %v8918_v7  ;;  %v2940_v10 = vadd.f32 %v2748_v9, %v2364_v5  ;;  %v2956_v14 = vadd.f32 %v2764_v12, %v2380_v55  ;;  %v8921_v60 = vsel %vm5981_vm5, 4294967295, %v8920_v60  ;;  %vm8720_vm10 = vcmp.ge.f32.partialorder %v5943_v21, 0.0  ;;  %v5996_v9 = vld [vmem:[#allocation6 + $0x8] sm:$0xff] }
 0x12f   : > { %8922 = vst [vmem:[#allocation56_spill] sm:$0xff] %v8921_v60  ;;  %vm1086_vm7 = vcmp.ge.f32.partialorder %v5941_v56, 0.0  ;;  %v1568_v61 = vfloor.f32 %v4372_v3  ;;  %v1453_v48 = vadd.f32 1.0, %v1437_v19  ;;  %v1022_v47 = vsel %vm5981_vm5, %v910_v53, %v894_v26 }
 0x130   : > { %v1102_v33 = vsel %vm1086_vm7, 2, %v8872_v57  ;;  %v3052_v22 = vpack.c.bf16 %v2956_v14, %v2940_v10  ;;  %v1038_v5 = vsel %vm5971_vm11, %v926_v4, %v1022_v47  ;;  %vm8719_vm9 = vcmp.ge.f32.partialorder %v5932_v23, 0.0 }
 0x131   : > { %v8722_v55 = vsub.f32 0.0, %v5943_v21  ;;  %v4502_v12 = vcvt.f32.s32 %v1568_v61  ;;  %v8923_v26 = vsel %vm5887_vm15, %v5894_v35, %v5899_v49  ;;  %v1469_v19 = vmul.f32 0.5, %v1453_v48 }
 0x132   : > { %v6006_v53 = vsel %vm5874_vm8, %v5908_v44, %v8923_v26  ;;  %v1134_v4 = vsel %vm8719_vm9, 0, %v8874_v50  ;;  %3239 = vmatpush.bf16.msrb.mxu2 %v3052_v22  ;;  %v6011_v10 = vsub.f32 %v4372_v3, %v1568_v61  ;;  %v1070_v14 = vsel %vm8720_vm10, 4, %v8867_v18 }
 0x133   : > { %v1150_v35 = vsel %vm5981_vm5, %v1102_v33, %v1134_v4  ;;  %4615 = vrcp.f32 %v1038_v5  ;;  %vm8924_vm1 = vcmask 785408   ;;  %vm1799_vm12 = vcmp.gt.s32.totalorder %v4502_v12, 0 }
 0x134   : > { %4394 = vmatmul.msk.bf16.gmra.mxu0 %vm8924_vm1, %v5996_v9  ;;  %v1856_v49 = vadd.s32 1, %v4502_v12  ;;  %v1517_v44 = vmul.f32 16.0, %v1469_v19  ;;  %v1294_v48 = vsub.f32 0.0, %v5941_v56  ;;  %vm8925_vm4 = vmmov %vm8924_vm1  ;;  %v1800_v3 = vsel %vm1799_vm12, %v4502_v12, 0  ;;  %4403 = vmatmul.msk.bf16.gmra.mxu3 %vm8924_vm1, %v5996_v9 }
 0x135   : > { %4397 = vmatmul.msk.bf16.gmra.mxu1 %vm8925_vm4, %v5996_v9  ;;  %vm8926_vm9 = vmmov %vm8924_vm1  ;;  %v1933_v61 = vmul.u32 16, %v6006_v53  ;;  %v1278_v47 = vsel %vm1086_vm7, %v5943_v21, %v8722_v55  ;;  %v195_v33 = vand.u32 255, %v5953_v39  ;;  %vm1831_vm10 = vcmp.lt.s32.totalorder %v1800_v3, 15 }
 0x136   : > { %4400 = vmatmul.msk.bf16.gmra.mxu2 %vm8926_vm9, %v5996_v9  ;;  %vm1879_vm14 = vcmp.gt.s32.totalorder %v1856_v49, 0  ;;  %v4369_v22 = vadd.f32 -0.5, %v1517_v44  ;;  %v6036_v26 = vsel %vm5971_vm11, %v1070_v14, %v1150_v35  ;;  %v1832_v12 = vsel %vm1831_vm10, %v1800_v3, 15 }
 0x137   : > { %v1880_v53 = vsel %vm1879_vm14, %v1856_v49, 0  ;;  %v6039_v19 = vsub.f32 1.0, %v6011_v10  ;;  %v6042_v56 = vsub.s32 %v5953_v39, %v195_v33  ;;  %v8927_v4 = vmul.u32 16, %v5868_v54 }
 0x138   : > { %vm1911_vm7 = vcmp.lt.s32.totalorder %v1880_v53, 15  ;;  %v1565_v45 = vfloor.f32 %v4369_v22  ;;  %v1310_v44 = vsel %vm5981_vm5, %v1278_v47, %v1294_v48  ;;  %v6051_v49 = vcvt.s32.f32 %v195_v33 }
 0x139   : > { %v6046_v55 = vadd.s32 %v8927_v4, %v1832_v12  ;;  %v4616_v42 = vpop.eup %4615  ;;  %v1912_v14 = vsel %vm1911_vm7, %v1880_v53, 15  ;;  %v8928_v39 = vmov %v8927_v4  ;;  %vm2124_vm4 = vcmp.eq.s32.totalorder %v5321_v16, %v5948_v63 }
 0x13a   : > { %v6056_v11 = vadd.s32 %v8928_v39, %v1912_v14  ;;  %v6062_v12 = vsub.f32 %v4369_v22, %v1565_v45  ;;  %v4496_v33 = vcvt.f32.s32 %v1565_v45  ;;  %v1342_v53 = vmul.f32 %v4616_v42, %v1038_v5 }
 0x13b   : > { %vm2157_vm10 = vcmp.eq.s32.totalorder %v5100_v62, %v6046_v55  ;;  %vm2173_vm14 = vcmp.eq.s32.totalorder %v5141_v0, %v6046_v55  ;;  %v2332_v35 = vsel %vm2124_vm4, %v5938_v46, 0.0  ;;  %vm2540_vm4 = vcmp.eq.s32.totalorder %v5324_v32, %v5957_v2 }
 0x13c   : > { %v2365_v48 = vsel %vm2157_vm10, %v6039_v19, 0.0  ;;  %v2381_v47 = vsel %vm2173_vm14, %v6039_v19, 0.0  ;;  %vm2557_vm9 = vcmp.eq.s32.totalorder %v5100_v62, %v6056_v11  ;;  %vm2573_vm12 = vcmp.eq.s32.totalorder %v5141_v0, %v6056_v11 }
 0x13d   : > { %v6071_v54 = vsub.f32 1.0, %v6062_v12  ;;  %v2749_v22 = vsel %vm2557_vm9, %v6011_v10, 0.0  ;;  %v2765_v4 = vsel %vm2573_vm12, %v6011_v10, 0.0  ;;  %vm1793_vm1 = vcmp.gt.s32.totalorder %v4496_v33, 0 }
 0x13e   : > { %v1853_v14 = vadd.s32 1, %v4496_v33  ;;  %v2941_v45 = vadd.f32 %v2749_v22, %v2365_v48  ;;  %v2957_v5 = vadd.f32 %v2765_v4, %v2381_v47  ;;  %v1794_v39 = vsel %vm1793_vm1, %v4496_v33, 0  ;;  %v6091_v22 = vld [vmem:[#allocation6 + $0x10] sm:$0xff] }
 0x13f   : > { %v1358_v3 = vsub.f32 2.0, %v1342_v53  ;;  %vm1825_vm7 = vcmp.lt.s32.totalorder %v1794_v39, 15  ;;  %vm2140_vm14 = vcmp.eq.s32.totalorder %v5324_v32, %v5948_v63  ;;  %vm2524_vm12 = vcmp.eq.s32.totalorder %v5321_v16, %v5957_v2 }
 0x140   : > { %vm1873_vm10 = vcmp.gt.s32.totalorder %v1853_v14, 0  ;;  %v3053_v7 = vpack.c.bf16 %v2957_v5, %v2941_v45  ;;  %v1826_v60 = vsel %vm1825_vm7, %v1794_v39, 15  ;;  %v2348_v48 = vsel %vm2140_vm14, %v5938_v46, 0.0 }
 0x141   : > { %v1874_v6 = vsel %vm1873_vm10, %v1853_v14, 0  ;;  %v6080_v17 = vmul.f32 %v4616_v42, %v1358_v3  ;;  %v6082_v21 = vadd.s32 %v1933_v61, %v1826_v60  ;;  %v2716_v53 = vsel %vm2524_vm12, %v5926_v25, 0.0 }
 0x142   : > { %vm1905_vm9 = vcmp.lt.s32.totalorder %v1874_v6, 15  ;;  %3263 = vmatpush.bf16.msrb.mxu3 %v3053_v7  ;;  %v2732_v7 = vsel %vm2540_vm4, %v5926_v25, 0.0  ;;  %v2908_v3 = vadd.f32 %v2716_v53, %v2332_v35  ;;  %vm8930_vm10 = vcmask 785408  }
 0x143   : > { %8929 = vst [vmem:[#allocation57_spill] sm:$0xff] %v6080_v17  ;;  %v1906_v47 = vsel %vm1905_vm9, %v1874_v6, 15  ;;  %v1438_v33 = vmul.f32 %v6080_v17, %v1310_v44  ;;  %vm2154_vm1 = vcmp.eq.s32.totalorder %v5100_v62, %v6082_v21  ;;  %vm2170_vm7 = vcmp.eq.s32.totalorder %v5141_v0, %v6082_v21  ;;  %vm8931_vm14 = vmmov %vm8930_vm10 }
 0x144   : > { %v6093_v42 = vadd.s32 %v1933_v61, %v1906_v47  ;;  %v2362_v6 = vsel %vm2154_vm1, %v6071_v54, 0.0  ;;  %v2378_v60 = vsel %vm2170_vm7, %v6071_v54, 0.0  ;;  %4395 = vmatmul.msk.bf16.gmra.mxu0 %vm8930_vm10, %v6091_v22  ;;  %v2924_v61 = vadd.f32 %v2732_v7, %v2348_v48  ;;  %vm8932_vm1 = vmmov %vm8930_vm10 }
 0x145   : > { %v1454_v44 = vadd.f32 1.0, %v1438_v33  ;;  %4398 = vmatmul.msk.bf16.gmra.mxu1 %vm8931_vm14, %v6091_v22  ;;  %vm2125_vm4 = vcmp.eq.s32.totalorder %v5321_v16, %v6046_v55  ;;  %vm2141_vm7 = vcmp.eq.s32.totalorder %v5324_v32, %v6046_v55  ;;  %vm8933_vm10 = vmmov %vm8932_vm1  ;;  %vm2525_vm14 = vcmp.eq.s32.totalorder %v5321_v16, %v6056_v11 }
 0x146   : > { %vm2554_vm9 = vcmp.eq.s32.totalorder %v5100_v62, %v6093_v42  ;;  %vm2570_vm12 = vcmp.eq.s32.totalorder %v5141_v0, %v6093_v42  ;;  %4401 = vmatmul.msk.bf16.gmra.mxu2 %vm8932_vm1, %v6091_v22  ;;  %4404 = vmatmul.msk.bf16.gmra.mxu3 %vm8933_vm10, %v6091_v22  ;;  %v3036_v39 = vpack.c.bf16 %v2924_v61, %v2908_v3  ;;  %v2333_v48 = vsel %vm2125_vm4, %v6039_v19, 0.0 }
 0x147   : > { %v2746_v35 = vsel %vm2554_vm9, %v6062_v12, 0.0  ;;  %v2762_v4 = vsel %vm2570_vm12, %v6062_v12, 0.0  ;;  %v1470_v14 = vmul.f32 0.5, %v1454_v44  ;;  %v2349_v33 = vsel %vm2141_vm7, %v6039_v19, 0.0 }
 0x148   : > { %v2938_v45 = vadd.f32 %v2746_v35, %v2362_v6  ;;  %v2954_v5 = vadd.f32 %v2762_v4, %v2378_v60  ;;  %vm2541_vm9 = vcmp.eq.s32.totalorder %v5324_v32, %v6056_v11  ;;  %3240 = vmatpush.bf16.msrb.mxu2 %v3036_v39  ;;  %v2717_v7 = vsel %vm2525_vm14, %v6011_v10, 0.0 }
 0x149   : > { %v1518_v47 = vmul.f32 16.0, %v1470_v14  ;;  %v2733_v44 = vsel %vm2541_vm9, %v6011_v10, 0.0  ;;  %vm2122_vm12 = vcmp.eq.s32.totalorder %v5321_v16, %v6082_v21  ;;  %v2909_v60 = vadd.f32 %v2717_v7, %v2333_v48 }
 0x14a   : > { %v3050_v53 = vpack.c.bf16 %v2954_v5, %v2938_v45  ;;  %v2925_v3 = vadd.f32 %v2733_v44, %v2349_v33  ;;  %vm2138_vm4 = vcmp.eq.s32.totalorder %v5324_v32, %v6082_v21  ;;  %v2330_v61 = vsel %vm2122_vm12, %v6071_v54, 0.0 }
 0x14b   : > { %v4370_v6 = vadd.f32 -0.5, %v1518_v47  ;;  %v2346_v35 = vsel %vm2138_vm4, %v6071_v54, 0.0  ;;  %vm2522_vm1 = vcmp.eq.s32.totalorder %v5321_v16, %v6093_v42  ;;  %vm2538_vm7 = vcmp.eq.s32.totalorder %v5324_v32, %v6093_v42 }
 0x14c   : > { %3191 = vmatpush.bf16.msrb.mxu0 %v3050_v53  ;;  %v3037_v14 = vpack.c.bf16 %v2925_v3, %v2909_v60  ;;  %v2714_v45 = vsel %vm2522_vm1, %v6062_v12, 0.0  ;;  %v2730_v5 = vsel %vm2538_vm7, %v6062_v12, 0.0  ;;  %vm2092_vm10 = vcmp.eq.s32.totalorder %v5389_v34, %v5948_v63 }
 0x14d   : > { %v1566_v4 = vfloor.f32 %v4370_v6  ;;  %v2906_v39 = vadd.f32 %v2714_v45, %v2330_v61  ;;  %v2922_v48 = vadd.f32 %v2730_v5, %v2346_v35  ;;  %vm2108_vm14 = vcmp.eq.s32.totalorder %v5392_v29, %v5948_v63 }
 0x14e   : > { %3264 = vmatpush.bf16.msrb.mxu3 %v3037_v14  ;;  %v2300_v53 = vsel %vm2092_vm10, %v5938_v46, 0.0  ;;  %v2316_v7 = vsel %vm2108_vm14, %v5938_v46, 0.0  ;;  %vm2492_vm9 = vcmp.eq.s32.totalorder %v5389_v34, %v5957_v2  ;;  %vm2508_vm12 = vcmp.eq.s32.totalorder %v5392_v29, %v5957_v2 }
 0x14f   : > { %v6144_v47 = vsub.f32 %v4370_v6, %v1566_v4  ;;  %v4498_v33 = vcvt.f32.s32 %v1566_v4  ;;  %v3034_v44 = vpack.c.bf16 %v2922_v48, %v2906_v39  ;;  %vm2093_vm4 = vcmp.eq.s32.totalorder %v5389_v34, %v6046_v55 }
 0x150   : > { %v2684_v3 = vsel %vm2492_vm9, %v5926_v25, 0.0  ;;  %v2700_v35 = vsel %vm2508_vm12, %v5926_v25, 0.0  ;;  %vm2109_vm7 = vcmp.eq.s32.totalorder %v5392_v29, %v6046_v55  ;;  %v2301_v45 = vsel %vm2093_vm4, %v6039_v19, 0.0 }
 0x151   : > { %vm1795_vm1 = vcmp.gt.s32.totalorder %v4498_v33, 0  ;;  %v1854_v60 = vadd.s32 1, %v4498_v33  ;;  %v6155_v6 = vsub.f32 1.0, %v6144_v47  ;;  %3192 = vmatpush.bf16.msrb.mxu0 %v3034_v44  ;;  %v2876_v4 = vadd.f32 %v2684_v3, %v2300_v53 }
 0x152   : > { %v1796_v61 = vsel %vm1795_vm1, %v4498_v33, 0  ;;  %v2892_v14 = vadd.f32 %v2700_v35, %v2316_v7  ;;  %v2317_v48 = vsel %vm2109_vm7, %v6039_v19, 0.0  ;;  %vm2493_vm9 = vcmp.eq.s32.totalorder %v5389_v34, %v6056_v11 }
 0x153   : > { %vm1827_vm10 = vcmp.lt.s32.totalorder %v1796_v61, 15  ;;  %vm1875_vm14 = vcmp.gt.s32.totalorder %v1854_v60, 0  ;;  %v8934_v33 = vmul.u32 16, %v6036_v26  ;;  %vm2509_vm12 = vcmp.eq.s32.totalorder %v5392_v29, %v6056_v11 }
 0x154   : > { %v1828_v5 = vsel %vm1827_vm10, %v1796_v61, 15  ;;  %v1876_v39 = vsel %vm1875_vm14, %v1854_v60, 0  ;;  %v3020_v53 = vpack.c.bf16 %v2892_v14, %v2876_v4  ;;  %v2685_v7 = vsel %vm2493_vm9, %v6011_v10, 0.0 }
 0x155   : > { %vm1907_vm1 = vcmp.lt.s32.totalorder %v1876_v39, 15  ;;  %v6167_v44 = vadd.s32 %v8934_v33, %v1828_v5  ;;  %v2701_v61 = vsel %vm2509_vm12, %v6011_v10, 0.0  ;;  %v8935_v60 = vmov %v8934_v33 }
 0x156   : > { %v1908_v3 = vsel %vm1907_vm1, %v1876_v39, 15  ;;  %3241 = vmatpush.bf16.msrb.mxu2 %v3020_v53  ;;  %v2877_v59 = vadd.f32 %v2685_v7, %v2301_v45  ;;  %v2893_v13 = vadd.f32 %v2701_v61, %v2317_v48 }
 0x157   : > { %v6177_v35 = vadd.s32 %v8935_v60, %v1908_v3  ;;  %vm2155_vm7 = vcmp.eq.s32.totalorder %v5100_v62, %v6167_v44  ;;  %vm2171_vm10 = vcmp.eq.s32.totalorder %v5141_v0, %v6167_v44  ;;  %vm2123_vm14 = vcmp.eq.s32.totalorder %v5321_v16, %v6167_v44 }
 0x158   : > { %v2363_v4 = vsel %vm2155_vm7, %v6155_v6, 0.0  ;;  %v2379_v14 = vsel %vm2171_vm10, %v6155_v6, 0.0  ;;  %vm2139_vm9 = vcmp.eq.s32.totalorder %v5324_v32, %v6167_v44  ;;  %v2331_v26 = vsel %vm2123_vm14, %v6155_v6, 0.0 }
 0x159   : > { %vm2555_vm1 = vcmp.eq.s32.totalorder %v5100_v62, %v6177_v35  ;;  %vm2571_vm12 = vcmp.eq.s32.totalorder %v5141_v0, %v6177_v35  ;;  %v2347_v5 = vsel %vm2139_vm9, %v6155_v6, 0.0  ;;  %vm2523_vm4 = vcmp.eq.s32.totalorder %v5321_v16, %v6177_v35 }
 0x15a   : > { %v2747_v39 = vsel %vm2555_vm1, %v6144_v47, 0.0  ;;  %v2763_v33 = vsel %vm2571_vm12, %v6144_v47, 0.0  ;;  %vm2539_vm7 = vcmp.eq.s32.totalorder %v5324_v32, %v6177_v35  ;;  %v2715_v53 = vsel %vm2523_vm4, %v6144_v47, 0.0 }
 0x15b   : > { %v2939_v3 = vadd.f32 %v2747_v39, %v2363_v4  ;;  %v2955_v60 = vadd.f32 %v2763_v33, %v2379_v14  ;;  %v2731_v17 = vsel %vm2539_vm7, %v6144_v47, 0.0  ;;  %v2907_v51 = vadd.f32 %v2715_v53, %v2331_v26 }
 0x15c   : > { %v2923_v23 = vadd.f32 %v2731_v17, %v2347_v5  ;;  %vm2106_vm10 = vcmp.eq.s32.totalorder %v5392_v29, %v6082_v21  ;;  %vm8936_vm14 = vcmp.eq.s32.totalorder %v5389_v34, %v6082_v21  ;;  %vm2490_vm4 = vcmp.eq.s32.totalorder %v5389_v34, %v6093_v42 }
 0x15d   : > { %v3051_v16 = vpack.c.bf16 %v2955_v60, %v2939_v3  ;;  %v2298_v0 = vsel %vm8936_vm14, %v6071_v54, 0.0  ;;  %v2314_v32 = vsel %vm2106_vm10, %v6071_v54, 0.0  ;;  %v3021_v14 = vpack.c.bf16 %v2893_v13, %v2877_v59 }
 0x15e   : > { %v3035_v4 = vpack.c.bf16 %v2923_v23, %v2907_v51  ;;  %vm2506_vm9 = vcmp.eq.s32.totalorder %v5392_v29, %v6093_v42  ;;  %v2682_v17 = vsel %vm2490_vm4, %v6062_v12, 0.0  ;;  %vm2091_vm1 = vcmp.eq.s32.totalorder %v5389_v34, %v6167_v44 }
 0x15f   : > { %3215 = vmatpush.bf16.msrb.mxu1 %v3051_v16  ;;  %v2698_v45 = vsel %vm2506_vm9, %v6062_v12, 0.0  ;;  %v2874_v48 = vadd.f32 %v2682_v17, %v2298_v0  ;;  %vm2107_vm12 = vcmp.eq.s32.totalorder %v5392_v29, %v6167_v44  ;;  %3265 = vmatpush.bf16.msrb.mxu3 %v3021_v14  ;;  %v2299_v23 = vsel %vm2091_vm1, %v6155_v6, 0.0 }
 0x160   : > { %v2890_v7 = vadd.f32 %v2698_v45, %v2314_v32  ;;  %v2315_v13 = vsel %vm2107_vm12, %v6155_v6, 0.0  ;;  %vm2491_vm7 = vcmp.eq.s32.totalorder %v5389_v34, %v6177_v35  ;;  %vm2507_vm10 = vcmp.eq.s32.totalorder %v5392_v29, %v6177_v35 }
 0x161   : > { %v2683_v0 = vsel %vm2491_vm7, %v6144_v47, 0.0  ;;  %vm2060_vm14 = vcmp.eq.s32.totalorder %v5435_v36, %v5948_v63  ;;  %vm2076_vm4 = vcmp.eq.s32.totalorder %v5442_v58, %v5948_v63  ;;  %v2699_v32 = vsel %vm2507_vm10, %v6144_v47, 0.0 }
 0x162   : > { %v3018_v16 = vpack.c.bf16 %v2890_v7, %v2874_v48  ;;  %v2875_v59 = vadd.f32 %v2683_v0, %v2299_v23  ;;  %v2268_v51 = vsel %vm2060_vm14, %v5938_v46, 0.0  ;;  %v2891_v61 = vadd.f32 %v2699_v32, %v2315_v13 }
 0x163   : > { %3216 = vmatpush.bf16.msrb.mxu1 %v3035_v4  ;;  %v2284_v26 = vsel %vm2076_vm4, %v5938_v46, 0.0  ;;  %vm2460_vm9 = vcmp.eq.s32.totalorder %v5435_v36, %v5957_v2  ;;  %vm2476_vm1 = vcmp.eq.s32.totalorder %v5442_v58, %v5957_v2  ;;  %vm2061_vm12 = vcmp.eq.s32.totalorder %v5435_v36, %v6046_v55 }
 0x164   : > { %3193 = vmatpush.bf16.msrb.mxu0 %v3018_v16  ;;  %v2652_v5 = vsel %vm2460_vm9, %v5926_v25, 0.0  ;;  %v2668_v39 = vsel %vm2476_vm1, %v5926_v25, 0.0  ;;  %vm2077_vm7 = vcmp.eq.s32.totalorder %v5442_v58, %v6046_v55  ;;  %v3019_v33 = vpack.c.bf16 %v2891_v61, %v2875_v59 }
 0x165   : > { %v2844_v53 = vadd.f32 %v2652_v5, %v2268_v51  ;;  %v2860_v3 = vadd.f32 %v2668_v39, %v2284_v26  ;;  %v2269_v60 = vsel %vm2061_vm12, %v6039_v19, 0.0  ;;  %v2285_v4 = vsel %vm2077_vm7, %v6039_v19, 0.0 }
 0x166   : > { %vm2461_vm10 = vcmp.eq.s32.totalorder %v5435_v36, %v6056_v11  ;;  %vm2477_vm14 = vcmp.eq.s32.totalorder %v5442_v58, %v6056_v11  ;;  %vm2058_vm4 = vcmp.eq.s32.totalorder %v5435_v36, %v6082_v21  ;;  %vm2074_vm9 = vcmp.eq.s32.totalorder %v5442_v58, %v6082_v21 }
 0x167   : > { %3217 = vmatpush.bf16.msrb.mxu1 %v3019_v33  ;;  %v3004_v14 = vpack.c.bf16 %v2860_v3, %v2844_v53  ;;  %v2653_v17 = vsel %vm2461_vm10, %v6011_v10, 0.0  ;;  %v2669_v45 = vsel %vm2477_vm14, %v6011_v10, 0.0  ;;  %v2266_v23 = vsel %vm2058_vm4, %v6071_v54, 0.0 }
 0x168   : > { %v2845_v48 = vadd.f32 %v2653_v17, %v2269_v60  ;;  %v2861_v7 = vadd.f32 %v2669_v45, %v2285_v4  ;;  %v2282_v13 = vsel %vm2074_vm9, %v6071_v54, 0.0  ;;  %vm2458_vm1 = vcmp.eq.s32.totalorder %v5435_v36, %v6093_v42 }
 0x169   : > { %3242 = vmatpush.bf16.msrb.mxu2 %v3004_v14  ;;  %vm2474_vm12 = vcmp.eq.s32.totalorder %v5442_v58, %v6093_v42  ;;  %vm2059_vm7 = vcmp.eq.s32.totalorder %v5435_v36, %v6167_v44  ;;  %vm2075_vm10 = vcmp.eq.s32.totalorder %v5442_v58, %v6167_v44  ;;  %v2650_v16 = vsel %vm2458_vm1, %v6062_v12, 0.0 }
 0x16a   : > { %v3005_v0 = vpack.c.bf16 %v2861_v7, %v2845_v48  ;;  %v2666_v32 = vsel %vm2474_vm12, %v6062_v12, 0.0  ;;  %v2267_v59 = vsel %vm2059_vm7, %v6155_v6, 0.0  ;;  %v2842_v51 = vadd.f32 %v2650_v16, %v2266_v23 }
 0x16b   : > { %v2858_v61 = vadd.f32 %v2666_v32, %v2282_v13  ;;  %v2283_v26 = vsel %vm2075_vm10, %v6155_v6, 0.0  ;;  %vm2459_vm14 = vcmp.eq.s32.totalorder %v5435_v36, %v6177_v35  ;;  %vm2475_vm4 = vcmp.eq.s32.totalorder %v5442_v58, %v6177_v35 }
 0x16c   : > { %3266 = vmatpush.bf16.msrb.mxu3 %v3005_v0  ;;  %v2651_v5 = vsel %vm2459_vm14, %v6144_v47, 0.0  ;;  %vm2028_vm9 = vcmp.eq.s32.totalorder %v5543_v52, %v5948_v63  ;;  %vm2044_vm1 = vcmp.eq.s32.totalorder %v5546_v15, %v5948_v63  ;;  %v2667_v33 = vsel %vm2475_vm4, %v6144_v47, 0.0 }
 0x16d   : > { %v3002_v39 = vpack.c.bf16 %v2858_v61, %v2842_v51  ;;  %v2843_v53 = vadd.f32 %v2651_v5, %v2267_v59  ;;  %v2236_v3 = vsel %vm2028_vm9, %v5938_v46, 0.0  ;;  %v2859_v60 = vadd.f32 %v2667_v33, %v2283_v26 }
 0x16e   : > { %v2252_v4 = vsel %vm2044_vm1, %v5938_v46, 0.0  ;;  %vm2428_vm12 = vcmp.eq.s32.totalorder %v5543_v52, %v5957_v2  ;;  %vm2444_vm7 = vcmp.eq.s32.totalorder %v5546_v15, %v5957_v2  ;;  %vm2029_vm10 = vcmp.eq.s32.totalorder %v5543_v52, %v6046_v55 }
 0x16f   : > { %3194 = vmatpush.bf16.msrb.mxu0 %v3002_v39  ;;  %v2620_v14 = vsel %vm2428_vm12, %v5926_v25, 0.0  ;;  %v2636_v17 = vsel %vm2444_vm7, %v5926_v25, 0.0  ;;  %vm2045_vm14 = vcmp.eq.s32.totalorder %v5546_v15, %v6046_v55  ;;  %v3003_v45 = vpack.c.bf16 %v2859_v60, %v2843_v53 }
 0x170   : > { %v2812_v48 = vadd.f32 %v2620_v14, %v2236_v3  ;;  %v2828_v7 = vadd.f32 %v2636_v17, %v2252_v4  ;;  %v2237_v23 = vsel %vm2029_vm10, %v6039_v19, 0.0  ;;  %v2253_v13 = vsel %vm2045_vm14, %v6039_v19, 0.0 }
 0x171   : > { %vm2429_vm4 = vcmp.eq.s32.totalorder %v5543_v52, %v6056_v11  ;;  %vm2445_vm9 = vcmp.eq.s32.totalorder %v5546_v15, %v6056_v11  ;;  %vm2026_vm1 = vcmp.eq.s32.totalorder %v5543_v52, %v6082_v21  ;;  %3218 = vmatpush.bf16.msrb.mxu1 %v3003_v45  ;;  %vm2042_vm12 = vcmp.eq.s32.totalorder %v5546_v15, %v6082_v21 }
 0x172   : > { %v2988_v0 = vpack.c.bf16 %v2828_v7, %v2812_v48  ;;  %v2621_v16 = vsel %vm2429_vm4, %v6011_v10, 0.0  ;;  %v2637_v32 = vsel %vm2445_vm9, %v6011_v10, 0.0  ;;  %v2234_v61 = vsel %vm2026_vm1, %v6071_v54, 0.0 }
 0x173   : > { %v2813_v59 = vadd.f32 %v2621_v16, %v2237_v23  ;;  %v2829_v51 = vadd.f32 %v2637_v32, %v2253_v13  ;;  %v2250_v26 = vsel %vm2042_vm12, %v6071_v54, 0.0  ;;  %vm2426_vm7 = vcmp.eq.s32.totalorder %v5543_v52, %v6093_v42 }
 0x174   : > { %3243 = vmatpush.bf16.msrb.mxu2 %v2988_v0  ;;  %vm2442_vm10 = vcmp.eq.s32.totalorder %v5546_v15, %v6093_v42  ;;  %vm2027_vm14 = vcmp.eq.s32.totalorder %v5543_v52, %v6167_v44  ;;  %vm2043_vm4 = vcmp.eq.s32.totalorder %v5546_v15, %v6167_v44  ;;  %v2618_v39 = vsel %vm2426_vm7, %v6062_v12, 0.0 }
 0x175   : > { %v2989_v5 = vpack.c.bf16 %v2829_v51, %v2813_v59  ;;  %v2634_v33 = vsel %vm2442_vm10, %v6062_v12, 0.0  ;;  %v2235_v53 = vsel %vm2027_vm14, %v6155_v6, 0.0  ;;  %v2810_v3 = vadd.f32 %v2618_v39, %v2234_v61 }
 0x176   : > { %v2826_v60 = vadd.f32 %v2634_v33, %v2250_v26  ;;  %v2251_v4 = vsel %vm2043_vm4, %v6155_v6, 0.0  ;;  %vm2427_vm9 = vcmp.eq.s32.totalorder %v5543_v52, %v6177_v35  ;;  %vm2443_vm1 = vcmp.eq.s32.totalorder %v5546_v15, %v6177_v35 }
 0x177   : > { %3267 = vmatpush.bf16.msrb.mxu3 %v2989_v5  ;;  %v2619_v14 = vsel %vm2427_vm9, %v6144_v47, 0.0  ;;  %vm1996_vm12 = vcmp.eq.s32.totalorder %v5062_v20, %v5948_v63  ;;  %vm2012_vm7 = vcmp.eq.s32.totalorder %v5549_v41, %v5948_v63  ;;  %v2635_v45 = vsel %vm2443_vm1, %v6144_v47, 0.0 }
 0x178   : > { %v2986_v17 = vpack.c.bf16 %v2826_v60, %v2810_v3  ;;  %v2811_v48 = vadd.f32 %v2619_v14, %v2235_v53  ;;  %v2204_v7 = vsel %vm1996_vm12, %v5938_v46, 0.0  ;;  %v2827_v23 = vadd.f32 %v2635_v45, %v2251_v4 }
 0x179   : > { %v2220_v13 = vsel %vm2012_vm7, %v5938_v46, 0.0  ;;  %vm2396_vm10 = vcmp.eq.s32.totalorder %v5062_v20, %v5957_v2  ;;  %vm2412_vm14 = vcmp.eq.s32.totalorder %v5549_v41, %v5957_v2  ;;  %vm1997_vm4 = vcmp.eq.s32.totalorder %v5062_v20, %v6046_v55 }
 0x17a   : > { %3195 = vmatpush.bf16.msrb.mxu0 %v2986_v17  ;;  %v2588_v0 = vsel %vm2396_vm10, %v5926_v25, 0.0  ;;  %v2604_v63 = vsel %vm2412_vm14, %v5926_v25, 0.0  ;;  %vm2013_vm9 = vcmp.eq.s32.totalorder %v5549_v41, %v6046_v55  ;;  %v2987_v16 = vpack.c.bf16 %v2827_v23, %v2811_v48  ;;  %v8939_v48 = vld [vmem:[#allocation11_spill] sm:$0xff] }
 0x17b   : > { %v2780_v32 = vadd.f32 %v2588_v0, %v2204_v7  ;;  %v2796_v46 = vadd.f32 %v2604_v63, %v2220_v13  ;;  %v2205_v59 = vsel %vm1997_vm4, %v6039_v19, 0.0  ;;  %v2221_v51 = vsel %vm2013_vm9, %v6039_v19, 0.0 }
 0x17c   : > { %vm2397_vm1 = vcmp.eq.s32.totalorder %v5062_v20, %v6056_v11  ;;  %vm2413_vm12 = vcmp.eq.s32.totalorder %v5549_v41, %v6056_v11  ;;  %vm1994_vm7 = vcmp.eq.s32.totalorder %v5062_v20, %v6082_v21  ;;  %3219 = vmatpush.bf16.msrb.mxu1 %v2987_v16  ;;  %vm2010_vm10 = vcmp.eq.s32.totalorder %v5549_v41, %v6082_v21 }
 0x17d   : > { %v2972_v25 = vpack.c.bf16 %v2796_v46, %v2780_v32  ;;  %v2589_v2 = vsel %vm2397_vm1, %v6011_v10, 0.0  ;;  %v2605_v55 = vsel %vm2413_vm12, %v6011_v10, 0.0  ;;  %v2202_v26 = vsel %vm1994_vm7, %v6071_v54, 0.0 }
 0x17e   : > { %v2781_v61 = vadd.f32 %v2589_v2, %v2205_v59  ;;  %v2797_v19 = vadd.f32 %v2605_v55, %v2221_v51  ;;  %v2218_v5 = vsel %vm2010_vm10, %v6071_v54, 0.0  ;;  %vm2394_vm14 = vcmp.eq.s32.totalorder %v5062_v20, %v6093_v42 }
 0x17f   : > { %3244 = vmatpush.bf16.msrb.mxu2 %v2972_v25  ;;  %vm2410_vm4 = vcmp.eq.s32.totalorder %v5549_v41, %v6093_v42  ;;  %vm1995_vm9 = vcmp.eq.s32.totalorder %v5062_v20, %v6167_v44  ;;  %vm2011_vm1 = vcmp.eq.s32.totalorder %v5549_v41, %v6167_v44  ;;  %v2586_v21 = vsel %vm2394_vm14, %v6062_v12, 0.0  ;;  %v4649_v44 = vld [vmem:[#allocation6] sm:$0xff] }
 0x180   : > { %v2973_v11 = vpack.c.bf16 %v2797_v19, %v2781_v61  ;;  %v2602_v10 = vsel %vm2410_vm4, %v6062_v12, 0.0  ;;  %v2203_v54 = vsel %vm1995_vm9, %v6155_v6, 0.0  ;;  %v2778_v39 = vadd.f32 %v2586_v21, %v2202_v26 }
 0x181   : > { %v2794_v33 = vadd.f32 %v2602_v10, %v2218_v5  ;;  %v2219_v53 = vsel %vm2011_vm1, %v6155_v6, 0.0  ;;  %vm2395_vm12 = vcmp.eq.s32.totalorder %v5062_v20, %v6177_v35  ;;  %vm2411_vm7 = vcmp.eq.s32.totalorder %v5549_v41, %v6177_v35 }
 0x182   : > { %3268 = vmatpush.bf16.msrb.mxu3 %v2973_v11  ;;  %v2587_v42 = vsel %vm2395_vm12, %v6144_v47, 0.0  ;;  %vm8937_vm10 = vcmask 785408   ;;  %v8938_v12 = vcvt.s32.f32 %v6042_v56  ;;  %v295_v60 = vsub.f32 %v6051_v49, %v4878_v8  ;;  %v8941_v49 = vld [vmem:[#allocation12_spill] sm:$0xff]  ;;  %v8944_v11 = vld [vmem:[#allocation14_spill] sm:$0xff] }
 0x183   : > { %4411 = vmatmul.msk.bf16.vlgmr.msrb.gmra.mxu2 %vm8937_vm10, %v4649_v44  ;;  %v2970_v4 = vpack.c.bf16 %v2794_v33, %v2778_v39  ;;  %v2603_v6 = vsel %vm2411_vm7, %v6144_v47, 0.0  ;;  %v2779_v14 = vadd.f32 %v2587_v42, %v2203_v54  ;;  %v180_v17 = vadd.s32 1408, %v4871_v1  ;;  %vm8940_vm14 = vmmov %vm8937_vm10  ;;  %v8942_v47 = vld [vmem:[#allocation13_spill] sm:$0xff] }
 0x184   : > { %v259_v3 = vmul.f32 0.00390625, %v8938_v12  ;;  %v2795_v45 = vadd.f32 %v2603_v6, %v2219_v53  ;;  %v311_v7 = vadd.f32 0.5, %v295_v60  ;;  %v177_v23 = vadd.s32 1024, %v4871_v1  ;;  %vm8943_vm4 = vmmov %vm8937_vm10 }
 0x185   : > { %3196 = vmatpush.bf16.msrb.mxu0 %v2970_v4  ;;  %4414 = vmatmul.msk.bf16.vlgmr.msrb.gmra.mxu3 %vm8940_vm14, %v4649_v44  ;;  %v196_v56 = vand.u32 255, %v180_v17  ;;  %v178_v13 = vadd.s32 1152, %v4871_v1  ;;  %vm8945_vm9 = vmmov %vm8943_vm4 }
 0x186   : > { %v278_v35 = vadd.f32 %v8939_v48, %v259_v3  ;;  %v2971_v0 = vpack.c.bf16 %v2795_v45, %v2779_v14  ;;  %v6383_v63 = vmul.f32 %v8941_v49, %v311_v7  ;;  %v193_v32 = vand.u32 255, %v177_v23  ;;  %vm8946_vm1 = vmmov %vm8943_vm4 }
 0x187   : > { %v212_v46 = vcvt.s32.f32 %v196_v56  ;;  %v228_v59 = vsub.s32 %v180_v17, %v196_v56  ;;  %v194_v51 = vand.u32 255, %v178_v13  ;;  %vm8947_vm12 = vmmov %vm8946_vm1 }
 0x188   : > { %v345_v16 = vsub.f32 %v278_v35, %v8942_v47  ;;  %3220 = vmatpush.bf16.msrb.mxu1 %v2971_v0  ;;  %4405 = vmatmul.msk.bf16.vlgmr.msrb.gmra.mxu0 %vm8943_vm4, %v4649_v44  ;;  %v209_v2 = vcvt.s32.f32 %v193_v32  ;;  %v225_v55 = vsub.s32 %v177_v23, %v193_v32  ;;  %v394_v10 = vmul.f32 %v6383_v63, %v6383_v63  ;;  %vm8948_vm7 = vmmov %vm8946_vm1 }
 0x189   : > { %v244_v61 = vcvt.s32.f32 %v228_v59  ;;  %v296_v19 = vsub.f32 %v212_v46, %v4878_v8  ;;  %v210_v26 = vcvt.s32.f32 %v194_v51  ;;  %v226_v5 = vsub.s32 %v178_v13, %v194_v51  ;;  %vm8949_vm10 = vmmov %vm8946_vm1 }
 0x18a   : > { %v361_v25 = vadd.f32 0.5, %v345_v16  ;;  %v241_v54 = vcvt.s32.f32 %v225_v55  ;;  %v293_v39 = vsub.f32 %v209_v2, %v4878_v8 }
 0x18b   : > { %4408 = vmatmul.msk.bf16.vlgmr.msrb.gmra.mxu1 %vm8945_vm9, %v4649_v44  ;;  %v260_v33 = vmul.f32 0.00390625, %v244_v61  ;;  %v312_v53 = vadd.f32 0.5, %v296_v19  ;;  %v242_v42 = vcvt.s32.f32 %v226_v5  ;;  %v294_v12 = vsub.f32 %v210_v26, %v4878_v8 }
 0x18c   : > { %v6389_v21 = vmul.f32 %v8944_v11, %v361_v25  ;;  %v257_v60 = vmul.f32 0.00390625, %v241_v54  ;;  %v309_v4 = vadd.f32 0.5, %v293_v39 }
 0x18d   : > { %v279_v6 = vadd.f32 %v8939_v48, %v260_v33  ;;  %v258_v14 = vmul.f32 0.00390625, %v242_v42  ;;  %v310_v17 = vadd.f32 0.5, %v294_v12  ;;  %v6401_v7 = vmul.f32 %v8941_v49, %v312_v53 }
 0x18e   : > { %v410_v3 = vmul.f32 %v6389_v21, %v6389_v21  ;;  %v276_v35 = vadd.f32 %v8939_v48, %v257_v60  ;;  %v6406_v13 = vmul.f32 %v8941_v49, %v309_v4 }
 0x18f   : > { %v346_v44 = vsub.f32 %v279_v6, %v8942_v47  ;;  %v277_v23 = vadd.f32 %v8939_v48, %v258_v14  ;;  %v6410_v32 = vmul.f32 %v8941_v49, %v310_v17  ;;  %v395_v25 = vmul.f32 %v6401_v7, %v6401_v7 }
 0x190   : > { %v426_v45 = vadd.f32 %v410_v3, %v394_v10  ;;  %v343_v0 = vsub.f32 %v276_v35, %v8942_v47  ;;  %v392_v61 = vmul.f32 %v6406_v13, %v6406_v13 }
 0x191   : > { %v362_v16 = vadd.f32 0.5, %v346_v44  ;;  %v344_v46 = vsub.f32 %v277_v23, %v8942_v47  ;;  %v393_v5 = vmul.f32 %v6410_v32, %v6410_v32 }
 0x192   : > { %v442_v56 = vadd.f32 1.0, %v426_v45  ;;  %v359_v59 = vadd.f32 0.5, %v343_v0 }
 0x193   : > { %4412 = vmatmul.msk.bf16.gmra.mxu2 %vm8946_vm1, %v5996_v9  ;;  %v6416_v51 = vmul.f32 %v8944_v11, %v362_v16  ;;  %v360_v2 = vadd.f32 0.5, %v344_v46 }
 0x194   : > { %4617 = vrsqrt.f32 %v442_v56  ;;  %v6421_v55 = vmul.f32 %v8944_v11, %v359_v59  ;;  %vm554_vm14 = vweird.f32 %v442_v56 }
 0x195   : > { %v411_v19 = vmul.f32 %v6416_v51, %v6416_v51  ;;  %v6428_v26 = vmul.f32 %v8944_v11, %v360_v2  ;;  %4415 = vmatmul.msk.bf16.gmra.mxu3 %vm8947_vm12, %v5996_v9 }
 0x196   : > { %v408_v10 = vmul.f32 %v6421_v55, %v6421_v55 }
 0x197   : > { %v427_v54 = vadd.f32 %v411_v19, %v395_v25  ;;  %v409_v39 = vmul.f32 %v6428_v26, %v6428_v26 }
 0x198   : > { %v424_v53 = vadd.f32 %v408_v10, %v392_v61  ;;  %4406 = vmatmul.msk.bf16.gmra.mxu0 %vm8948_vm7, %v5996_v9 }
 0x199   : > { %v443_v12 = vadd.f32 1.0, %v427_v54  ;;  %v425_v3 = vadd.f32 %v409_v39, %v393_v5 }
 0x19a   : > { %v4618_v33 = vpop.eup %4617  ;;  %v440_v60 = vadd.f32 1.0, %v424_v53 }
 0x19b   : > { %v549_v42 = vmul.f32 %v4618_v33, %v442_v56  ;;  %4619 = vrsqrt.f32 %v443_v12  ;;  %v6440_v6 = vadd.f32 1.0, %v425_v3  ;;  %4409 = vmatmul.msk.bf16.gmra.mxu1 %vm8949_vm10, %v5996_v9  ;;  %vm555_vm4 = vweird.f32 %v4618_v33  ;;  %vm8950_vm10 = vmmov %vm8946_vm1 }
 0x19c   : > { %4621 = vrsqrt.f32 %v440_v60  ;;  %vm556_vm9 = vmor %vm554_vm14, %vm555_vm4  ;;  %vm564_vm12 = vweird.f32 %v443_v12  ;;  %vm534_vm7 = vweird.f32 %v440_v60 }
 0x19d   : > { %v550_v4 = vmul.f32 %v4618_v33, %v549_v42  ;;  %4623 = vrsqrt.f32 %v6440_v6 }
 0x19f   : > { %v551_v14 = vmul.f32 0.5, %v550_v4 }
 0x1a1   : > { %v552_v17 = vsub.f32 1.5, %v551_v14  ;;  %v4620_v45 = vpop.eup %4619 }
 0x1a2   : > { %v4622_v44 = vpop.eup %4621  ;;  %v559_v23 = vmul.f32 %v4620_v45, %v443_v12  ;;  %vm565_vm14 = vweird.f32 %v4620_v45 }
 0x1a3   : > { %v553_v35 = vmul.f32 %v4618_v33, %v552_v17  ;;  %4413 = vmatmul.msk.bf16.gmra.mxu2 %vm8946_vm1, %v6091_v22  ;;  %v6447_v0 = vpop.eup %4623  ;;  %v529_v9 = vmul.f32 %v4622_v44, %v440_v60  ;;  %vm535_vm4 = vweird.f32 %v4622_v44 }
 0x1a4   : > { %v560_v61 = vmul.f32 %v4620_v45, %v559_v23  ;;  %v539_v5 = vmul.f32 %v6447_v0, %v6440_v6 }
 0x1a5   : > { %v557_v16 = vsel %vm556_vm9, %v4618_v33, %v553_v35  ;;  %v530_v19 = vmul.f32 %v4622_v44, %v529_v9  ;;  %4416 = vmatmul.msk.bf16.gmra.mxu3 %vm8950_vm10, %v6091_v22  ;;  %vm8951_vm9 = vmmov %vm8946_vm1 }
 0x1a6   : > { %v618_v56 = vmul.f32 %v557_v16, %v6383_v63  ;;  %v634_v46 = vmul.f32 %v557_v16, %v6389_v21  ;;  %v701_v59 = vmul.f32 %v4952_v30, %v557_v16  ;;  %v784_v25 = vmul.f32 %v4957_v37, %v557_v16  ;;  %vm566_vm1 = vmor %vm564_vm12, %vm565_vm14 }
 0x1a7   : > { %v867_v2 = vmul.f32 %v4963_v43, %v557_v16  ;;  %v561_v53 = vmul.f32 0.5, %v560_v61  ;;  %v531_v42 = vmul.f32 0.5, %v530_v19  ;;  %v540_v23 = vmul.f32 %v6447_v0, %v539_v5  ;;  %vm8954_vm10 = vmmov %vm8951_vm9 }
 0x1a8   : > { %v651_v10 = vmul.f32 %v4946_v24, %v618_v56  ;;  %v668_v63 = vmul.f32 %v4948_v27, %v634_v46  ;;  %v734_v21 = vmul.f32 %v4950_v28, %v618_v56  ;;  %v751_v54 = vmul.f32 %v4954_v31, %v634_v46  ;;  %4407 = vmatmul.msk.bf16.gmra.mxu0 %vm8951_vm9, %v6091_v22  ;;  %vm536_vm9 = vmor %vm534_vm7, %vm535_vm4 }
 0x1a9   : > { %v817_v39 = vmul.f32 %v4959_v38, %v618_v56  ;;  %v834_v33 = vmul.f32 %v4961_v40, %v634_v46  ;;  %v562_v17 = vsub.f32 1.5, %v561_v53  ;;  %v532_v35 = vsub.f32 1.5, %v531_v42 }
 0x1aa   : > { %v684_v3 = vadd.f32 %v668_v63, %v651_v10  ;;  %v767_v4 = vadd.f32 %v751_v54, %v734_v21  ;;  %v8955_v5 = vmov 0  ;;  %v8958_v53 = vmov 0 }
 0x1ab   : > { %v850_v14 = vadd.f32 %v834_v33, %v817_v39  ;;  %v563_v46 = vmul.f32 %v4620_v45, %v562_v17  ;;  %v533_v61 = vmul.f32 %v4622_v44, %v532_v35  ;;  %4410 = vmatmul.msk.bf16.gmra.mxu1 %vm8954_vm10, %v6091_v22 }
 0x1ac   : > { %v6467_v16 = vadd.f32 %v701_v59, %v684_v3  ;;  %v6469_v9 = vadd.f32 %v784_v25, %v767_v4  ;;  %v6481_v25 = vmul.f32 0.5, %v540_v23 }
 0x1ad   : > { %v6471_v56 = vadd.f32 %v867_v2, %v850_v14  ;;  %v567_v12 = vsel %vm566_vm1, %v4620_v45, %v563_v46  ;;  %v537_v60 = vsel %vm536_vm9, %v4622_v44, %v533_v61 }
 0x1ae   : > { %8952 = vst [vmem:[#allocation11_spill] sm:$0xff] %v6467_v16  ;;  %v899_v19 = vand.u32 2147483647, %v6467_v16  ;;  %v915_v10 = vand.u32 2147483647, %v6469_v9  ;;  %vm1091_vm12 = vcmp.ge.f32.partialorder %v6469_v9, 0.0  ;;  %v619_v21 = vmul.f32 %v567_v12, %v6401_v7 }
 0x1af   : > { %8953 = vst [vmem:[#allocation12_spill] sm:$0xff] %v6471_v56  ;;  %v931_v59 = vand.u32 2147483647, %v6471_v56  ;;  %vm8754_vm11 = vcmp.ge.f32.partialorder %v6471_v56, 0.0  ;;  %vm8755_vm14 = vcmp.ge.f32.partialorder %v6467_v16, 0.0  ;;  %v6489_v22 = vsel %vm1091_vm12, 2, %v8872_v57 }
 0x1b0   : > { %v947_v2 = vmax.f32 %v899_v19, %v915_v10  ;;  %vm995_vm5 = vcmp.gt.f32.partialorder %v915_v10, %v899_v19  ;;  %v8751_v63 = vsub.f32 0.0, %v6471_v56  ;;  %v635_v54 = vmul.f32 %v567_v12, %v6416_v51 }
 0x1b1   : > { %v1139_v39 = vsel %vm8755_vm14, 0, %v8874_v50  ;;  %v702_v45 = vmul.f32 %v4952_v30, %v567_v12  ;;  %v785_v44 = vmul.f32 %v4957_v37, %v567_v12  ;;  %v616_v33 = vmul.f32 %v537_v60, %v6406_v13 }
 0x1b2   : > { %vm6491_vm7 = vcmp.gt.f32.partialorder %v931_v59, %v947_v2  ;;  %v652_v7 = vmul.f32 %v4946_v24, %v619_v21  ;;  %v669_v51 = vmul.f32 %v4948_v27, %v635_v54  ;;  %v735_v42 = vmul.f32 %v4950_v28, %v619_v21 }
 0x1b3   : > { %v8956_v5 = vsel %vm6491_vm7, 4294967295, %v8955_v5  ;;  %vm979_vm4 = vmxor %vm6491_vm7, %vm8889_vm3  ;;  %v752_v3 = vmul.f32 %v4954_v31, %v635_v54  ;;  %v1075_v14 = vsel %vm8754_vm11, 4, %v8867_v18  ;;  %v1299_v13 = vsub.f32 0.0, %v6469_v9 }
 0x1b4   : > { %8957 = vst [vmem:[#allocation13_spill] sm:$0xff] %v8956_v5  ;;  %vm6507_vm1 = vmand %vm979_vm4, %vm995_vm5  ;;  %v818_v17 = vmul.f32 %v4959_v38, %v619_v21  ;;  %v1283_v23 = vsel %vm1091_vm12, %v6471_v56, %v8751_v63  ;;  %v685_v46 = vadd.f32 %v669_v51, %v652_v7  ;;  %v632_v2 = vmul.f32 %v537_v60, %v6421_v55 }
 0x1b5   : > { %v8959_v53 = vsel %vm6507_vm1, 4294967295, %v8958_v53  ;;  %v1027_v4 = vsel %vm6507_vm1, %v915_v10, %v899_v19  ;;  %v768_v61 = vadd.f32 %v752_v3, %v735_v42  ;;  %v835_v19 = vmul.f32 %v4961_v40, %v635_v54 }
 0x1b6   : > { %8960 = vst [vmem:[#allocation58_spill] sm:$0xff] %v8959_v53  ;;  %v1043_v35 = vsel %vm6491_vm7, %v931_v59, %v1027_v4  ;;  %v868_v10 = vmul.f32 %v4963_v43, %v567_v12  ;;  %v6532_v16 = vadd.f32 %v702_v45, %v685_v46  ;;  %v649_v59 = vmul.f32 %v4946_v24, %v616_v33 }
 0x1b7   : > { %4625 = vrcp.f32 %v1043_v35  ;;  %v6534_v21 = vadd.f32 %v785_v44, %v768_v61  ;;  %v699_v4 = vmul.f32 %v4952_v30, %v537_v60  ;;  %v851_v11 = vadd.f32 %v835_v19, %v818_v17 }
 0x1b8   : > { %8961 = vst [vmem:[#allocation59_spill] sm:$0xff] %v6532_v16  ;;  %v666_v9 = vmul.f32 %v4948_v27, %v632_v2  ;;  %v732_v7 = vmul.f32 %v4950_v28, %v616_v33  ;;  %v749_v51 = vmul.f32 %v4954_v31, %v632_v2  ;;  %v1155_v55 = vsel %vm6507_vm1, %v6489_v22, %v1139_v39 }
 0x1b9   : > { %v900_v12 = vand.u32 2147483647, %v6532_v16  ;;  %v916_v54 = vand.u32 2147483647, %v6534_v21  ;;  %v542_v45 = vsub.f32 1.5, %v6481_v25  ;;  %v6549_v44 = vadd.f32 %v868_v10, %v851_v11 }
 0x1ba   : > { %v682_v42 = vadd.f32 %v666_v9, %v649_v59  ;;  %v765_v3 = vadd.f32 %v749_v51, %v732_v7  ;;  %v782_v17 = vmul.f32 %v4957_v37, %v537_v60  ;;  %v1315_v46 = vsel %vm6507_vm1, %v1283_v23, %v1299_v13 }
 0x1bb   : > { %8962 = vst [vmem:[#allocation60_spill] sm:$0xff] %v6549_v44  ;;  %v948_v61 = vmax.f32 %v900_v12, %v916_v54  ;;  %v815_v19 = vmul.f32 %v4959_v38, %v616_v33  ;;  %v832_v22 = vmul.f32 %v4961_v40, %v632_v2  ;;  %v932_v63 = vand.u32 2147483647, %v6549_v44 }
 0x1bc   : > { %vm996_vm9 = vcmp.gt.f32.partialorder %v916_v54, %v900_v12  ;;  %v6557_v56 = vadd.f32 %v699_v4, %v682_v42  ;;  %v6559_v11 = vadd.f32 %v782_v17, %v765_v3  ;;  %v8761_v10 = vsub.f32 0.0, %v6549_v44 }
 0x1bd   : > { %v4626_v39 = vpop.eup %4625  ;;  %v848_v59 = vadd.f32 %v832_v22, %v815_v19  ;;  %v865_v9 = vmul.f32 %v4963_v43, %v537_v60  ;;  %vm6563_vm12 = vcmp.gt.f32.partialorder %v932_v63, %v948_v61  ;;  %v8964_v13 = vmov 0 }
 0x1be   : > { %8963 = vst [vmem:[#allocation61_spill] sm:$0xff] %v6557_v56  ;;  %v1347_v25 = vmul.f32 %v4626_v39, %v1043_v35  ;;  %v8965_v13 = vsel %vm6563_vm12, 4294967295, %v8964_v13  ;;  %vm1092_vm4 = vcmp.ge.f32.partialorder %v6534_v21, 0.0  ;;  %vm8756_vm11 = vcmp.ge.f32.partialorder %v6532_v16, 0.0  ;;  %vm980_vm14 = vmxor %vm6563_vm12, %vm8889_vm3 }
 0x1bf   : > { %8966 = vst [vmem:[#allocation62_spill] sm:$0xff] %v8965_v13  ;;  %v897_v33 = vand.u32 2147483647, %v6557_v56  ;;  %v6572_v23 = vsel %vm6491_vm7, %v1075_v14, %v1155_v55  ;;  %vm8758_vm5 = vcmp.ge.f32.partialorder %v6549_v44, 0.0  ;;  %v1300_v60 = vsub.f32 0.0, %v6534_v21  ;;  %vm6580_vm10 = vmand %vm980_vm14, %vm996_vm9 }
 0x1c0   : > { %v1363_v35 = vsub.f32 2.0, %v1347_v25  ;;  %v8967_v2 = vmov 0  ;;  %v1108_v4 = vsel %vm1092_vm4, 2, %v8872_v57  ;;  %v1140_v14 = vsel %vm8756_vm11, 0, %v8874_v50 }
 0x1c1   : > { %v8968_v2 = vsel %vm6580_vm10, 4294967295, %v8967_v2  ;;  %v6588_v7 = vadd.f32 %v865_v9, %v848_v59  ;;  %v913_v51 = vand.u32 2147483647, %v6559_v11  ;;  %v1028_v21 = vsel %vm6580_vm10, %v916_v54, %v900_v12 }
 0x1c2   : > { %8969 = vst [vmem:[#allocation63_spill] sm:$0xff] %v8968_v2  ;;  %v6591_v55 = vmul.f32 %v4626_v39, %v1363_v35  ;;  %v1284_v42 = vsel %vm1092_vm4, %v6549_v44, %v8761_v10  ;;  %v543_v3 = vmul.f32 %v6447_v0, %v542_v45  ;;  %v1044_v17 = vsel %vm6563_vm12, %v932_v63, %v1028_v21 }
 0x1c3   : > { %8970 = vst [vmem:[#allocation64_spill] sm:$0xff] %v6588_v7  ;;  %v1076_v61 = vsel %vm8758_vm5, 4, %v8867_v18  ;;  %v929_v19 = vand.u32 2147483647, %v6588_v7  ;;  %v945_v22 = vmax.f32 %v897_v33, %v913_v51  ;;  %v1156_v12 = vsel %vm6580_vm10, %v1108_v4, %v1140_v14 }
 0x1c4   : > { %8971 = vst [vmem:[#allocation65_spill] sm:$0xff] %v6591_v55  ;;  %v1443_v39 = vmul.f32 %v6591_v55, %v1315_v46  ;;  %4627 = vrcp.f32 %v1044_v17  ;;  %vm993_vm14 = vcmp.gt.f32.partialorder %v913_v51, %v897_v33  ;;  %vm8972_vm9 = vweird.f32 %v6447_v0 }
 0x1c5   : > { %vm8973_vm4 = vweird.f32 %v6440_v6  ;;  %vm6613_vm7 = vcmp.gt.f32.partialorder %v929_v19, %v945_v22  ;;  %v8974_v54 = vmov 0  ;;  %vm8770_vm5 = vcmp.ge.f32.partialorder %v6557_v56, 0.0 }
 0x1c6   : > { %vm546_vm11 = vmor %vm8973_vm4, %vm8972_vm9  ;;  %v8975_v54 = vsel %vm6613_vm7, 4294967295, %v8974_v54  ;;  %v8762_v45 = vsub.f32 0.0, %v6588_v7  ;;  %v1459_v46 = vadd.f32 1.0, %v1443_v39  ;;  %v1316_v25 = vsel %vm6580_vm10, %v1284_v42, %v1300_v60 }
 0x1c7   : > { %8976 = vst [vmem:[#allocation66_spill] sm:$0xff] %v8975_v54  ;;  %vm977_vm1 = vmxor %vm6613_vm7, %vm8889_vm3  ;;  %vm8769_vm9 = vcmp.ge.f32.partialorder %v6588_v7, 0.0  ;;  %vm1089_vm4 = vcmp.ge.f32.partialorder %v6559_v11, 0.0  ;;  %v6628_v6 = vsel %vm6563_vm12, %v1076_v61, %v1156_v12  ;;  %v8977_v59 = vmov 0 }
 0x1c8   : > { %vm6630_vm8 = vmand %vm977_vm1, %vm993_vm14  ;;  %v1105_v9 = vsel %vm1089_vm4, 2, %v8872_v57  ;;  %v1137_v35 = vsel %vm8770_vm5, 0, %v8874_v50  ;;  %v547_v60 = vsel %vm546_vm11, %v6447_v0, %v543_v3  ;;  %v1475_v4 = vmul.f32 0.5, %v1459_v46 }
 0x1c9   : > { %v8978_v59 = vsel %vm6630_vm8, 4294967295, %v8977_v59  ;;  %v1025_v14 = vsel %vm6630_vm8, %v913_v51, %v897_v33  ;;  %v1073_v21 = vsel %vm8769_vm9, 4, %v8867_v18  ;;  %v1297_v42 = vsub.f32 0.0, %v6559_v11 }
 0x1ca   : > { %8979 = vst [vmem:[#allocation67_spill] sm:$0xff] %v8978_v59  ;;  %v1041_v61 = vsel %vm6613_vm7, %v929_v19, %v1025_v14  ;;  %v1281_v22 = vsel %vm1089_vm4, %v6588_v7, %v8762_v45  ;;  %v617_v39 = vmul.f32 %v547_v60, %v6410_v32  ;;  %v633_v0 = vmul.f32 %v547_v60, %v6428_v26  ;;  %v4628_v3 = vpop.eup %4627 }
 0x1cb   : > { %v1523_v12 = vmul.f32 16.0, %v1475_v4  ;;  %v1153_v33 = vsel %vm6630_vm8, %v1105_v9, %v1137_v35  ;;  %4629 = vrcp.f32 %v1041_v61  ;;  %v700_v51 = vmul.f32 %v4952_v30, %v547_v60 }
 0x1cc   : > { %v1348_v11 = vmul.f32 %v4628_v3, %v1044_v17  ;;  %v650_v46 = vmul.f32 %v4946_v24, %v617_v39  ;;  %v667_v19 = vmul.f32 %v4948_v27, %v633_v0  ;;  %v733_v14 = vmul.f32 %v4950_v28, %v617_v39 }
 0x1cd   : > { %v4375_v10 = vadd.f32 -0.5, %v1523_v12  ;;  %v750_v32 = vmul.f32 %v4954_v31, %v633_v0  ;;  %v783_v26 = vmul.f32 %v4957_v37, %v547_v60  ;;  %v816_v4 = vmul.f32 %v4959_v38, %v617_v39 }
 0x1ce   : > { %v1364_v45 = vsub.f32 2.0, %v1348_v11  ;;  %v683_v63 = vadd.f32 %v667_v19, %v650_v46  ;;  %v833_v9 = vmul.f32 %v4961_v40, %v633_v0  ;;  %v866_v35 = vmul.f32 %v4963_v43, %v547_v60 }
 0x1cf   : > { %v1571_v17 = vfloor.f32 %v4375_v10  ;;  %v1313_v2 = vsel %vm6630_vm8, %v1281_v22, %v1297_v42  ;;  %v766_v44 = vadd.f32 %v750_v32, %v733_v14  ;;  %v6670_v16 = vsel %vm6613_vm7, %v1073_v21, %v1153_v33 }
 0x1d0   : > { %v6666_v12 = vmul.f32 %v4628_v3, %v1364_v45  ;;  %v6672_v39 = vadd.f32 %v700_v51, %v683_v63  ;;  %v849_v11 = vadd.f32 %v833_v9, %v816_v4  ;;  %v6679_v13 = vadd.s32 1792, %v4871_v1 }
 0x1d1   : > { %v4630_v46 = vpop.eup %4629  ;;  %v6674_v0 = vsub.f32 %v4375_v10, %v1571_v17  ;;  %v4508_v60 = vcvt.f32.s32 %v1571_v17  ;;  %v6676_v19 = vadd.f32 %v783_v26, %v766_v44  ;;  %v8984_v9 = vmul.u32 16, %v6572_v23 }
 0x1d2   : > { %8980 = vst [vmem:[#allocation68_spill] sm:$0xff] %v6666_v12  ;;  %v1444_v42 = vmul.f32 %v6666_v12, %v1316_v25  ;;  %v1345_v45 = vmul.f32 %v4630_v46, %v1041_v61  ;;  %v6682_v22 = vadd.f32 %v866_v35, %v849_v11  ;;  %v898_v21 = vand.u32 2147483647, %v6672_v39 }
 0x1d3   : > { %8981 = vst [vmem:[#allocation69_spill] sm:$0xff] %v6672_v39  ;;  %vm1805_vm11 = vcmp.gt.s32.totalorder %v4508_v60, 0  ;;  %v1859_v63 = vadd.s32 1, %v4508_v60  ;;  %v6686_v3 = vsub.f32 1.0, %v6674_v0  ;;  %v914_v10 = vand.u32 2147483647, %v6676_v19 }
 0x1d4   : > { %8982 = vst [vmem:[#allocation70_spill] sm:$0xff] %v6682_v22  ;;  %v1806_v33 = vsel %vm1805_vm11, %v4508_v60, 0  ;;  %v1460_v44 = vadd.f32 1.0, %v1444_v42  ;;  %v1361_v51 = vsub.f32 2.0, %v1345_v45  ;;  %v930_v14 = vand.u32 2147483647, %v6682_v22 }
 0x1d5   : > { %vm1837_vm1 = vcmp.lt.s32.totalorder %v1806_v33, 15  ;;  %vm1885_vm14 = vcmp.gt.s32.totalorder %v1859_v63, 0  ;;  %v946_v25 = vmax.f32 %v898_v21, %v914_v10  ;;  %vm994_vm4 = vcmp.gt.f32.partialorder %v914_v10, %v898_v21 }
 0x1d6   : > { %v1838_v61 = vsel %vm1837_vm1, %v1806_v33, 15  ;;  %v1886_v32 = vsel %vm1885_vm14, %v1859_v63, 0  ;;  %v1476_v26 = vmul.f32 0.5, %v1460_v44  ;;  %v6690_v4 = vmul.f32 %v4630_v46, %v1361_v51  ;;  %v8989_v33 = vld [vmem:[#allocation27_spill] sm:$0xff] }
 0x1d7   : > { %vm1917_vm9 = vcmp.lt.s32.totalorder %v1886_v32, 15  ;;  %v6694_v35 = vadd.s32 %v8984_v9, %v1838_v61  ;;  %vm6696_vm5 = vcmp.gt.f32.partialorder %v930_v14, %v946_v25  ;;  %v8985_v17 = vmov 0 }
 0x1d8   : > { %8983 = vst [vmem:[#allocation71_spill] sm:$0xff] %v6690_v4  ;;  %v8986_v17 = vsel %vm6696_vm5, 4294967295, %v8985_v17  ;;  %vm8773_vm11 = vcmp.ge.f32.partialorder %v6682_v22, 0.0  ;;  %v1918_v11 = vsel %vm1917_vm9, %v1886_v32, 15  ;;  %v1524_v60 = vmul.f32 16.0, %v1476_v26  ;;  %vm978_vm1 = vmxor %vm6696_vm5, %vm8889_vm3 }
 0x1d9   : > { %8987 = vst [vmem:[#allocation72_spill] sm:$0xff] %v8986_v17  ;;  %v1441_v42 = vmul.f32 %v6690_v4, %v1313_v2  ;;  %v1074_v46 = vsel %vm8773_vm11, 4, %v8867_v18  ;;  %v8988_v45 = vmov %v8984_v9  ;;  %vm2160_vm14 = vcmp.eq.s32.totalorder %v5100_v62, %v6694_v35  ;;  %vm6717_vm12 = vmand %vm978_vm1, %vm994_vm4  ;;  %v8995_v17 = vld [vmem:[#allocation35_spill] sm:$0xff] }
 0x1da   : > { %v6710_v63 = vadd.s32 %v8988_v45, %v1918_v11  ;;  %vm2176_vm9 = vcmp.eq.s32.totalorder %v8989_v33, %v6694_v35  ;;  %v8990_v2 = vmov 0  ;;  %vm1090_vm10 = vcmp.ge.f32.partialorder %v6676_v19, 0.0 }
 0x1db   : > { %v8991_v2 = vsel %vm6717_vm12, 4294967295, %v8990_v2  ;;  %v2368_v44 = vsel %vm2160_vm14, %v6686_v3, 0.0  ;;  %v2384_v51 = vsel %vm2176_vm9, %v6686_v3, 0.0  ;;  %v4376_v23 = vadd.f32 -0.5, %v1524_v60 }
 0x1dc   : > { %8992 = vst [vmem:[#allocation27_spill] sm:$0xff] %v8991_v2  ;;  %v1457_v25 = vadd.f32 1.0, %v1441_v42  ;;  %vm2560_vm11 = vcmp.eq.s32.totalorder %v5100_v62, %v6710_v63  ;;  %vm2576_vm7 = vcmp.eq.s32.totalorder %v8989_v33, %v6710_v63  ;;  %v1026_v61 = vsel %vm6717_vm12, %v914_v10, %v898_v21  ;;  %v8996_v2 = vld [vmem:[#allocation36_spill] sm:$0xff] }
 0x1dd   : > { %v1106_v32 = vsel %vm1090_vm10, 2, %v8872_v57  ;;  %v2752_v26 = vsel %vm2560_vm11, %v6674_v0, 0.0  ;;  %v2768_v9 = vsel %vm2576_vm7, %v6674_v0, 0.0  ;;  %v1572_v11 = vfloor.f32 %v4376_v23 }
 0x1de   : > { %v1473_v60 = vmul.f32 0.5, %v1457_v25  ;;  %v2944_v42 = vadd.f32 %v2752_v26, %v2368_v44  ;;  %v2960_v45 = vadd.f32 %v2768_v9, %v2384_v51  ;;  %v1042_v12 = vsel %vm6696_vm5, %v930_v14, %v1026_v61 }
 0x1df   : > { %vm8783_vm4 = vcmp.ge.f32.partialorder %v6672_v39, 0.0  ;;  %v6738_v55 = vsub.f32 %v4376_v23, %v1572_v11  ;;  %v4510_v21 = vcvt.f32.s32 %v1572_v11  ;;  %v8780_v44 = vsub.f32 0.0, %v6682_v22 }
 0x1e0   : > { %v1521_v10 = vmul.f32 16.0, %v1473_v60  ;;  %v1138_v5 = vsel %vm8783_vm4, 0, %v8874_v50  ;;  %v3056_v53 = vpack.c.bf16 %v2960_v45, %v2944_v42  ;;  %v1298_v51 = vsub.f32 0.0, %v6676_v19 }
 0x1e1   : > { %v1154_v4 = vsel %vm6717_vm12, %v1106_v32, %v1138_v5  ;;  %vm1807_vm7 = vcmp.gt.s32.totalorder %v4510_v21, 0  ;;  %v1860_v14 = vadd.s32 1, %v4510_v21  ;;  %v1937_v23 = vmul.u32 16, %v6670_v16 }
 0x1e2   : > { %v4373_v25 = vadd.f32 -0.5, %v1521_v10  ;;  %3335 = vmatpush.bf16.msra.mxu2 %v3056_v53  ;;  %v1808_v61 = vsel %vm1807_vm7, %v4510_v21, 0  ;;  %v6750_v26 = vsel %vm6696_vm5, %v1074_v46, %v1154_v4  ;;  %v1282_v5 = vsel %vm1090_vm10, %v6682_v22, %v8780_v44 }
 0x1e3   : > { %v199_v32 = vand.u32 255, %v6679_v13  ;;  %vm1839_vm11 = vcmp.lt.s32.totalorder %v1808_v61, 15  ;;  %vm1887_vm1 = vcmp.gt.s32.totalorder %v1860_v14, 0  ;;  %4631 = vrcp.f32 %v1042_v12 }
 0x1e4   : > { %v1569_v9 = vfloor.f32 %v4373_v25  ;;  %v1840_v11 = vsel %vm1839_vm11, %v1808_v61, 15  ;;  %v1888_v16 = vsel %vm1887_vm1, %v1860_v14, 0  ;;  %v6759_v53 = vsub.f32 1.0, %v6738_v55 }
 0x1e5   : > { %v1314_v4 = vsel %vm6717_vm12, %v1282_v5, %v1298_v51  ;;  %vm1919_vm14 = vcmp.lt.s32.totalorder %v1888_v16, 15  ;;  %v8993_v46 = vmul.u32 16, %v6628_v6  ;;  %v6770_v10 = vcvt.s32.f32 %v199_v32 }
 0x1e6   : > { %v6767_v19 = vsub.f32 %v4373_v25, %v1569_v9  ;;  %v4504_v42 = vcvt.f32.s32 %v1569_v9  ;;  %v1920_v45 = vsel %vm1919_vm14, %v1888_v16, 15  ;;  %v6773_v14 = vsub.s32 %v6679_v13, %v199_v32 }
 0x1e7   : > { %v6765_v60 = vadd.s32 %v8993_v46, %v1840_v11  ;;  %v8994_v61 = vmov %v8993_v46  ;;  %vm2144_vm4 = vcmp.eq.s32.totalorder %v8996_v2, %v6694_v35 }
 0x1e8   : > { %v6777_v44 = vadd.s32 %v8994_v61, %v1920_v45  ;;  %vm1801_vm7 = vcmp.gt.s32.totalorder %v4504_v42, 0  ;;  %v1857_v9 = vadd.s32 1, %v4504_v42  ;;  %v6790_v13 = vsub.f32 1.0, %v6767_v19 }
 0x1e9   : > { %vm2161_vm10 = vcmp.eq.s32.totalorder %v5100_v62, %v6765_v60  ;;  %vm2177_vm9 = vcmp.eq.s32.totalorder %v8989_v33, %v6765_v60  ;;  %v1802_v5 = vsel %vm1801_vm7, %v4504_v42, 0  ;;  %v4632_v11 = vpop.eup %4631  ;;  %vm2128_vm7 = vcmp.eq.s32.totalorder %v8995_v17, %v6694_v35 }
 0x1ea   : > { %v2369_v51 = vsel %vm2161_vm10, %v6759_v53, 0.0  ;;  %v2385_v25 = vsel %vm2177_vm9, %v6759_v53, 0.0  ;;  %vm2561_vm11 = vcmp.eq.s32.totalorder %v5100_v62, %v6777_v44  ;;  %vm2577_vm1 = vcmp.eq.s32.totalorder %v8989_v33, %v6777_v44 }
 0x1eb   : > { %vm1833_vm14 = vcmp.lt.s32.totalorder %v1802_v5, 15  ;;  %v2753_v6 = vsel %vm2561_vm11, %v6738_v55, 0.0  ;;  %v2769_v32 = vsel %vm2577_vm1, %v6738_v55, 0.0  ;;  %vm1881_vm10 = vcmp.gt.s32.totalorder %v1857_v9, 0 }
 0x1ec   : > { %v1834_v16 = vsel %vm1833_vm14, %v1802_v5, 15  ;;  %v2945_v46 = vadd.f32 %v2753_v6, %v2369_v51  ;;  %v2961_v45 = vadd.f32 %v2769_v32, %v2385_v25  ;;  %v1882_v42 = vsel %vm1881_vm10, %v1857_v9, 0 }
 0x1ed   : > { %v6794_v61 = vadd.s32 %v1937_v23, %v1834_v16  ;;  %vm1913_vm9 = vcmp.lt.s32.totalorder %v1882_v42, 15  ;;  %v1346_v21 = vmul.f32 %v4632_v11, %v1042_v12  ;;  %v2336_v9 = vsel %vm2128_vm7, %v6686_v3, 0.0 }
 0x1ee   : > { %v3057_v22 = vpack.c.bf16 %v2961_v45, %v2945_v46  ;;  %v1914_v54 = vsel %vm1913_vm9, %v1882_v42, 15  ;;  %v2352_v6 = vsel %vm2144_vm4, %v6686_v3, 0.0  ;;  %vm2528_vm14 = vcmp.eq.s32.totalorder %v8995_v17, %v6710_v63 }
 0x1ef   : > { %vm2158_vm11 = vcmp.eq.s32.totalorder %v5100_v62, %v6794_v61  ;;  %vm2174_vm1 = vcmp.eq.s32.totalorder %v8989_v33, %v6794_v61  ;;  %v6804_v51 = vadd.s32 %v1937_v23, %v1914_v54  ;;  %v1362_v5 = vsub.f32 2.0, %v1346_v21 }
 0x1f0   : > { %v2366_v25 = vsel %vm2158_vm11, %v6790_v13, 0.0  ;;  %v2382_v12 = vsel %vm2174_vm1, %v6790_v13, 0.0  ;;  %3359 = vmatpush.bf16.msra.mxu3 %v3057_v22  ;;  %vm2544_vm10 = vcmp.eq.s32.totalorder %v8996_v2, %v6710_v63  ;;  %v2720_v22 = vsel %vm2528_vm14, %v6674_v0, 0.0 }
 0x1f1   : > { %vm2558_vm9 = vcmp.eq.s32.totalorder %v5100_v62, %v6804_v51  ;;  %vm2574_vm11 = vcmp.eq.s32.totalorder %v8989_v33, %v6804_v51  ;;  %v6818_v54 = vmul.f32 %v4632_v11, %v1362_v5  ;;  %v2736_v32 = vsel %vm2544_vm10, %v6674_v0, 0.0 }
 0x1f2   : > { %v2750_v23 = vsel %vm2558_vm9, %v6767_v19, 0.0  ;;  %v2766_v21 = vsel %vm2574_vm11, %v6767_v19, 0.0  ;;  %v2912_v16 = vadd.f32 %v2720_v22, %v2336_v9  ;;  %v2928_v39 = vadd.f32 %v2736_v32, %v2352_v6 }
 0x1f3   : > { %8997 = vst [vmem:[#allocation35_spill] sm:$0xff] %v6818_v54  ;;  %v2942_v46 = vadd.f32 %v2750_v23, %v2366_v25  ;;  %v2958_v45 = vadd.f32 %v2766_v21, %v2382_v12  ;;  %v1442_v42 = vmul.f32 %v6818_v54, %v1314_v4  ;;  %vm2129_vm4 = vcmp.eq.s32.totalorder %v8995_v17, %v6765_v60 }
 0x1f4   : > { %vm2145_vm7 = vcmp.eq.s32.totalorder %v8996_v2, %v6765_v60  ;;  %vm2529_vm1 = vcmp.eq.s32.totalorder %v8995_v17, %v6777_v44  ;;  %vm2545_vm14 = vcmp.eq.s32.totalorder %v8996_v2, %v6777_v44  ;;  %v3040_v9 = vpack.c.bf16 %v2928_v39, %v2912_v16 }
 0x1f5   : > { %v3054_v11 = vpack.c.bf16 %v2958_v45, %v2942_v46  ;;  %v1458_v5 = vadd.f32 1.0, %v1442_v42  ;;  %v2337_v25 = vsel %vm2129_vm4, %v6759_v53, 0.0  ;;  %v2353_v4 = vsel %vm2145_vm7, %v6759_v53, 0.0 }
 0x1f6   : > { %v2721_v12 = vsel %vm2529_vm1, %v6738_v55, 0.0  ;;  %v2737_v6 = vsel %vm2545_vm14, %v6738_v55, 0.0  ;;  %vm2126_vm10 = vcmp.eq.s32.totalorder %v8995_v17, %v6794_v61  ;;  %3336 = vmatpush.bf16.msra.mxu2 %v3040_v9  ;;  %vm2142_vm9 = vcmp.eq.s32.totalorder %v8996_v2, %v6794_v61 }
 0x1f7   : > { %3287 = vmatpush.bf16.msra.mxu0 %v3054_v11  ;;  %v1474_v22 = vmul.f32 0.5, %v1458_v5  ;;  %v2913_v23 = vadd.f32 %v2721_v12, %v2337_v25  ;;  %v2929_v21 = vadd.f32 %v2737_v6, %v2353_v4  ;;  %v2334_v39 = vsel %vm2126_vm10, %v6790_v13, 0.0 }
 0x1f8   : > { %v2350_v32 = vsel %vm2142_vm9, %v6790_v13, 0.0  ;;  %vm2526_vm11 = vcmp.eq.s32.totalorder %v8995_v17, %v6804_v51  ;;  %vm2542_vm4 = vcmp.eq.s32.totalorder %v8996_v2, %v6804_v51  ;;  %vm2096_vm7 = vcmp.eq.s32.totalorder %v5389_v34, %v6694_v35 }
 0x1f9   : > { %v1522_v16 = vmul.f32 16.0, %v1474_v22  ;;  %v3041_v46 = vpack.c.bf16 %v2929_v21, %v2913_v23  ;;  %v2718_v45 = vsel %vm2526_vm11, %v6767_v19, 0.0  ;;  %v2734_v42 = vsel %vm2542_vm4, %v6767_v19, 0.0 }
 0x1fa   : > { %v2910_v11 = vadd.f32 %v2718_v45, %v2334_v39  ;;  %v2926_v5 = vadd.f32 %v2734_v42, %v2350_v32  ;;  %vm2112_vm1 = vcmp.eq.s32.totalorder %v5392_v29, %v6694_v35  ;;  %v2304_v25 = vsel %vm2096_vm7, %v6686_v3, 0.0 }
 0x1fb   : > { %v4374_v9 = vadd.f32 -0.5, %v1522_v16  ;;  %3360 = vmatpush.bf16.msra.mxu3 %v3041_v46  ;;  %v2320_v4 = vsel %vm2112_vm1, %v6686_v3, 0.0  ;;  %vm2496_vm14 = vcmp.eq.s32.totalorder %v5389_v34, %v6710_v63  ;;  %vm2512_vm10 = vcmp.eq.s32.totalorder %v5392_v29, %v6710_v63 }
 0x1fc   : > { %v3038_v12 = vpack.c.bf16 %v2926_v5, %v2910_v11  ;;  %v2688_v6 = vsel %vm2496_vm14, %v6674_v0, 0.0  ;;  %vm2097_vm9 = vcmp.eq.s32.totalorder %v5389_v34, %v6765_v60  ;;  %v2704_v23 = vsel %vm2512_vm10, %v6674_v0, 0.0 }
 0x1fd   : > { %v1570_v22 = vfloor.f32 %v4374_v9  ;;  %v2880_v21 = vadd.f32 %v2688_v6, %v2304_v25  ;;  %vm2113_vm11 = vcmp.eq.s32.totalorder %v5392_v29, %v6765_v60  ;;  %v2896_v39 = vadd.f32 %v2704_v23, %v2320_v4 }
 0x1fe   : > { %3288 = vmatpush.bf16.msra.mxu0 %v3038_v12  ;;  %v2305_v32 = vsel %vm2097_vm9, %v6759_v53, 0.0  ;;  %v2321_v16 = vsel %vm2113_vm11, %v6759_v53, 0.0  ;;  %vm2497_vm4 = vcmp.eq.s32.totalorder %v5389_v34, %v6777_v44  ;;  %vm2513_vm7 = vcmp.eq.s32.totalorder %v5392_v29, %v6777_v44 }
 0x1ff   : > { %v6869_v46 = vsub.f32 %v4374_v9, %v1570_v22  ;;  %v4506_v45 = vcvt.f32.s32 %v1570_v22  ;;  %v2689_v42 = vsel %vm2497_vm4, %v6738_v55, 0.0  ;;  %v3024_v11 = vpack.c.bf16 %v2896_v39, %v2880_v21 }
 0x200   : > { %v2705_v5 = vsel %vm2513_vm7, %v6738_v55, 0.0  ;;  %v2881_v25 = vadd.f32 %v2689_v42, %v2305_v32  ;;  %vm2094_vm1 = vcmp.eq.s32.totalorder %v5389_v34, %v6794_v61  ;;  %vm2110_vm10 = vcmp.eq.s32.totalorder %v5392_v29, %v6794_v61 }
 0x201   : > { %vm1803_vm14 = vcmp.gt.s32.totalorder %v4506_v45, 0  ;;  %v1858_v4 = vadd.s32 1, %v4506_v45  ;;  %v6878_v12 = vsub.f32 1.0, %v6869_v46  ;;  %v2897_v9 = vadd.f32 %v2705_v5, %v2321_v16  ;;  %3337 = vmatpush.bf16.msra.mxu2 %v3024_v11 }
 0x202   : > { %v1804_v6 = vsel %vm1803_vm14, %v4506_v45, 0  ;;  %v2302_v22 = vsel %vm2094_vm1, %v6790_v13, 0.0  ;;  %vm2494_vm9 = vcmp.eq.s32.totalorder %v5389_v34, %v6804_v51  ;;  %v2318_v21 = vsel %vm2110_vm10, %v6790_v13, 0.0 }
 0x203   : > { %vm1835_vm11 = vcmp.lt.s32.totalorder %v1804_v6, 15  ;;  %vm1883_vm4 = vcmp.gt.s32.totalorder %v1858_v4, 0  ;;  %v3025_v23 = vpack.c.bf16 %v2897_v9, %v2881_v25  ;;  %vm2510_vm7 = vcmp.eq.s32.totalorder %v5392_v29, %v6804_v51 }
 0x204   : > { %v1836_v39 = vsel %vm1835_vm11, %v1804_v6, 15  ;;  %v1884_v32 = vsel %vm1883_vm4, %v1858_v4, 0  ;;  %v2686_v16 = vsel %vm2494_vm9, %v6767_v19, 0.0  ;;  %v8998_v45 = vmul.u32 16, %v6750_v26 }
 0x205   : > { %vm1915_vm14 = vcmp.lt.s32.totalorder %v1884_v32, 15  ;;  %3361 = vmatpush.bf16.msra.mxu3 %v3025_v23  ;;  %v2702_v11 = vsel %vm2510_vm7, %v6767_v19, 0.0  ;;  %v2878_v5 = vadd.f32 %v2686_v16, %v2302_v22 }
 0x206   : > { %v6891_v42 = vadd.s32 %v8998_v45, %v1836_v39  ;;  %v1916_v54 = vsel %vm1915_vm14, %v1884_v32, 15  ;;  %v2894_v25 = vadd.f32 %v2702_v11, %v2318_v21  ;;  %v8999_v4 = vmov %v8998_v45 }
 0x207   : > { %v6900_v9 = vadd.s32 %v8999_v4, %v1916_v54 }
 0x208   : > { %vm2159_vm9 = vcmp.eq.s32.totalorder %v5100_v62, %v6891_v42  ;;  %vm2175_vm11 = vcmp.eq.s32.totalorder %v8989_v33, %v6891_v42  ;;  %vm2127_vm4 = vcmp.eq.s32.totalorder %v8995_v17, %v6891_v42  ;;  %vm2143_vm7 = vcmp.eq.s32.totalorder %v8996_v2, %v6891_v42 }
 0x209   : > { %v2367_v6 = vsel %vm2159_vm9, %v6878_v12, 0.0  ;;  %v2383_v22 = vsel %vm2175_vm11, %v6878_v12, 0.0  ;;  %v2335_v26 = vsel %vm2127_vm4, %v6878_v12, 0.0  ;;  %vm2559_vm14 = vcmp.eq.s32.totalorder %v5100_v62, %v6900_v9 }
 0x20a   : > { %vm2575_vm10 = vcmp.eq.s32.totalorder %v8989_v33, %v6900_v9  ;;  %v2351_v54 = vsel %vm2143_vm7, %v6878_v12, 0.0  ;;  %vm2527_vm1 = vcmp.eq.s32.totalorder %v8995_v17, %v6900_v9  ;;  %v2751_v23 = vsel %vm2559_vm14, %v6869_v46, 0.0 }
 0x20b   : > { %v2767_v21 = vsel %vm2575_vm10, %v6869_v46, 0.0  ;;  %vm2543_vm9 = vcmp.eq.s32.totalorder %v8996_v2, %v6900_v9  ;;  %v2719_v39 = vsel %vm2527_vm1, %v6869_v46, 0.0  ;;  %v2943_v32 = vadd.f32 %v2751_v23, %v2367_v6 }
 0x20c   : > { %v2959_v16 = vadd.f32 %v2767_v21, %v2383_v22  ;;  %v2735_v45 = vsel %vm2543_vm9, %v6869_v46, 0.0  ;;  %v2911_v11 = vadd.f32 %v2719_v39, %v2335_v26  ;;  %v3022_v59 = vpack.c.bf16 %v2894_v25, %v2878_v5 }
 0x20d   : > { %v2927_v4 = vadd.f32 %v2735_v45, %v2351_v54  ;;  %vm2095_vm11 = vcmp.eq.s32.totalorder %v5389_v34, %v6891_v42  ;;  %vm2111_vm4 = vcmp.eq.s32.totalorder %v5392_v29, %v6891_v42  ;;  %vm2495_vm1 = vcmp.eq.s32.totalorder %v5389_v34, %v6900_v9 }
 0x20e   : > { %v3055_v7 = vpack.c.bf16 %v2959_v16, %v2943_v32  ;;  %v2303_v56 = vsel %vm2095_vm11, %v6878_v12, 0.0  ;;  %v2319_v2 = vsel %vm2111_vm4, %v6878_v12, 0.0  ;;  %3289 = vmatpush.bf16.msra.mxu0 %v3022_v59  ;;  %vm2511_vm10 = vcmp.eq.s32.totalorder %v5392_v29, %v6900_v9 }
 0x20f   : > { %v3039_v6 = vpack.c.bf16 %v2927_v4, %v2911_v11  ;;  %v2687_v5 = vsel %vm2495_vm1, %v6869_v46, 0.0  ;;  %vm9000_vm7 = vcmp.eq.s32.totalorder %v5435_v36, %v6694_v35  ;;  %v2703_v22 = vsel %vm2511_vm10, %v6869_v46, 0.0 }
 0x210   : > { %v2272_v25 = vsel %vm9000_vm7, %v6686_v3, 0.0  ;;  %3311 = vmatpush.bf16.msra.mxu1 %v3055_v7  ;;  %v2879_v26 = vadd.f32 %v2687_v5, %v2303_v56  ;;  %vm9001_vm14 = vcmp.eq.s32.totalorder %v5442_v58, %v6694_v35  ;;  %vm2464_vm9 = vcmp.eq.s32.totalorder %v5435_v36, %v6710_v63 }
 0x211   : > { %v2288_v54 = vsel %vm9001_vm14, %v6686_v3, 0.0  ;;  %v2895_v59 = vadd.f32 %v2703_v22, %v2319_v2  ;;  %vm2480_vm11 = vcmp.eq.s32.totalorder %v5442_v58, %v6710_v63  ;;  %v2656_v23 = vsel %vm2464_vm9, %v6674_v0, 0.0 }
 0x212   : > { %vm2065_vm4 = vcmp.eq.s32.totalorder %v5435_v36, %v6765_v60  ;;  %v2672_v7 = vsel %vm2480_vm11, %v6674_v0, 0.0  ;;  %v2848_v56 = vadd.f32 %v2656_v23, %v2272_v25  ;;  %vm2081_vm1 = vcmp.eq.s32.totalorder %v5442_v58, %v6765_v60 }
 0x213   : > { %v2273_v21 = vsel %vm2065_vm4, %v6759_v53, 0.0  ;;  %v3023_v39 = vpack.c.bf16 %v2895_v59, %v2879_v26  ;;  %v2864_v32 = vadd.f32 %v2672_v7, %v2288_v54  ;;  %v2289_v2 = vsel %vm2081_vm1, %v6759_v53, 0.0 }
 0x214   : > { %vm2465_vm10 = vcmp.eq.s32.totalorder %v5435_v36, %v6777_v44  ;;  %3312 = vmatpush.bf16.msra.mxu1 %v3039_v6  ;;  %vm2481_vm7 = vcmp.eq.s32.totalorder %v5442_v58, %v6777_v44  ;;  %vm2062_vm14 = vcmp.eq.s32.totalorder %v5435_v36, %v6794_v61  ;;  %vm2078_vm9 = vcmp.eq.s32.totalorder %v5442_v58, %v6794_v61 }
 0x215   : > { %v2657_v16 = vsel %vm2465_vm10, %v6738_v55, 0.0  ;;  %v3008_v45 = vpack.c.bf16 %v2864_v32, %v2848_v56  ;;  %v2673_v11 = vsel %vm2481_vm7, %v6738_v55, 0.0  ;;  %v2270_v5 = vsel %vm2062_vm14, %v6790_v13, 0.0 }
 0x216   : > { %v2849_v4 = vadd.f32 %v2657_v16, %v2273_v21  ;;  %v2865_v25 = vadd.f32 %v2673_v11, %v2289_v2  ;;  %v2286_v6 = vsel %vm2078_vm9, %v6790_v13, 0.0  ;;  %vm2462_vm11 = vcmp.eq.s32.totalorder %v5435_v36, %v6804_v51 }
 0x217   : > { %vm2478_vm4 = vcmp.eq.s32.totalorder %v5442_v58, %v6804_v51  ;;  %3338 = vmatpush.bf16.msra.mxu2 %v3008_v45  ;;  %v2654_v22 = vsel %vm2462_vm11, %v6767_v19, 0.0  ;;  %vm2063_vm1 = vcmp.eq.s32.totalorder %v5435_v36, %v6891_v42  ;;  %vm2079_vm10 = vcmp.eq.s32.totalorder %v5442_v58, %v6891_v42 }
 0x218   : > { %v2670_v26 = vsel %vm2478_vm4, %v6767_v19, 0.0  ;;  %3313 = vmatpush.bf16.msra.mxu1 %v3023_v39  ;;  %v3009_v54 = vpack.c.bf16 %v2865_v25, %v2849_v4  ;;  %v2846_v59 = vadd.f32 %v2654_v22, %v2270_v5  ;;  %v2271_v7 = vsel %vm2063_vm1, %v6878_v12, 0.0 }
 0x219   : > { %v2862_v23 = vadd.f32 %v2670_v26, %v2286_v6  ;;  %v2287_v56 = vsel %vm2079_vm10, %v6878_v12, 0.0  ;;  %vm2463_vm7 = vcmp.eq.s32.totalorder %v5435_v36, %v6900_v9  ;;  %vm2479_vm14 = vcmp.eq.s32.totalorder %v5442_v58, %v6900_v9 }
 0x21a   : > { %vm2032_vm9 = vcmp.eq.s32.totalorder %v5543_v52, %v6694_v35  ;;  %3362 = vmatpush.bf16.msra.mxu3 %v3009_v54  ;;  %v2655_v39 = vsel %vm2463_vm7, %v6869_v46, 0.0  ;;  %v2671_v32 = vsel %vm2479_vm14, %v6869_v46, 0.0  ;;  %vm2048_vm11 = vcmp.eq.s32.totalorder %v5546_v15, %v6694_v35 }
 0x21b   : > { %v3006_v21 = vpack.c.bf16 %v2862_v23, %v2846_v59  ;;  %v2847_v2 = vadd.f32 %v2655_v39, %v2271_v7  ;;  %v2863_v16 = vadd.f32 %v2671_v32, %v2287_v56  ;;  %v2240_v45 = vsel %vm2032_vm9, %v6686_v3, 0.0 }
 0x21c   : > { %v2256_v11 = vsel %vm2048_vm11, %v6686_v3, 0.0  ;;  %vm2432_vm4 = vcmp.eq.s32.totalorder %v5543_v52, %v6710_v63  ;;  %vm2448_vm1 = vcmp.eq.s32.totalorder %v5546_v15, %v6710_v63  ;;  %vm2033_vm10 = vcmp.eq.s32.totalorder %v5543_v52, %v6765_v60 }
 0x21d   : > { %3290 = vmatpush.bf16.msra.mxu0 %v3006_v21  ;;  %vm2049_vm7 = vcmp.eq.s32.totalorder %v5546_v15, %v6765_v60  ;;  %v3007_v4 = vpack.c.bf16 %v2863_v16, %v2847_v2  ;;  %v2624_v5 = vsel %vm2432_vm4, %v6674_v0, 0.0  ;;  %v2640_v25 = vsel %vm2448_vm1, %v6674_v0, 0.0 }
 0x21e   : > { %v2241_v6 = vsel %vm2033_vm10, %v6759_v53, 0.0  ;;  %v2816_v22 = vadd.f32 %v2624_v5, %v2240_v45  ;;  %v2832_v26 = vadd.f32 %v2640_v25, %v2256_v11  ;;  %v2257_v54 = vsel %vm2049_vm7, %v6759_v53, 0.0 }
 0x21f   : > { %vm2433_vm14 = vcmp.eq.s32.totalorder %v5543_v52, %v6777_v44  ;;  %3314 = vmatpush.bf16.msra.mxu1 %v3007_v4  ;;  %vm2449_vm9 = vcmp.eq.s32.totalorder %v5546_v15, %v6777_v44  ;;  %vm2030_vm11 = vcmp.eq.s32.totalorder %v5543_v52, %v6794_v61  ;;  %vm2046_vm4 = vcmp.eq.s32.totalorder %v5546_v15, %v6794_v61 }
 0x220   : > { %v2625_v59 = vsel %vm2433_vm14, %v6738_v55, 0.0  ;;  %v2992_v23 = vpack.c.bf16 %v2832_v26, %v2816_v22  ;;  %v2641_v7 = vsel %vm2449_vm9, %v6738_v55, 0.0  ;;  %v2238_v21 = vsel %vm2030_vm11, %v6790_v13, 0.0 }
 0x221   : > { %v2817_v56 = vadd.f32 %v2625_v59, %v2241_v6  ;;  %v2833_v39 = vadd.f32 %v2641_v7, %v2257_v54  ;;  %v2254_v32 = vsel %vm2046_vm4, %v6790_v13, 0.0  ;;  %vm2430_vm1 = vcmp.eq.s32.totalorder %v5543_v52, %v6804_v51 }
 0x222   : > { %vm2446_vm10 = vcmp.eq.s32.totalorder %v5546_v15, %v6804_v51  ;;  %3339 = vmatpush.bf16.msra.mxu2 %v2992_v23  ;;  %v2622_v2 = vsel %vm2430_vm1, %v6767_v19, 0.0  ;;  %vm2031_vm7 = vcmp.eq.s32.totalorder %v5543_v52, %v6891_v42  ;;  %vm2047_vm14 = vcmp.eq.s32.totalorder %v5546_v15, %v6891_v42 }
 0x223   : > { %v2638_v16 = vsel %vm2446_vm10, %v6767_v19, 0.0  ;;  %v2993_v45 = vpack.c.bf16 %v2833_v39, %v2817_v56  ;;  %v2814_v11 = vadd.f32 %v2622_v2, %v2238_v21  ;;  %v2239_v5 = vsel %vm2031_vm7, %v6878_v12, 0.0 }
 0x224   : > { %v2830_v4 = vadd.f32 %v2638_v16, %v2254_v32  ;;  %v2255_v25 = vsel %vm2047_vm14, %v6878_v12, 0.0  ;;  %vm2431_vm9 = vcmp.eq.s32.totalorder %v5543_v52, %v6900_v9  ;;  %vm2447_vm11 = vcmp.eq.s32.totalorder %v5546_v15, %v6900_v9 }
 0x225   : > { %vm2000_vm4 = vcmp.eq.s32.totalorder %v5062_v20, %v6694_v35  ;;  %3363 = vmatpush.bf16.msra.mxu3 %v2993_v45  ;;  %v2623_v22 = vsel %vm2431_vm9, %v6869_v46, 0.0  ;;  %v2639_v26 = vsel %vm2447_vm11, %v6869_v46, 0.0  ;;  %vm2016_vm1 = vcmp.eq.s32.totalorder %v5549_v41, %v6694_v35 }
 0x226   : > { %v2990_v6 = vpack.c.bf16 %v2830_v4, %v2814_v11  ;;  %v2815_v54 = vadd.f32 %v2623_v22, %v2239_v5  ;;  %v2831_v59 = vadd.f32 %v2639_v26, %v2255_v25  ;;  %v2208_v23 = vsel %vm2000_vm4, %v6686_v3, 0.0  ;;  %v4650_v22 = vld [vmem:[#allocation6] sm:$0xff] }
 0x227   : > { %v2224_v7 = vsel %vm2016_vm1, %v6686_v3, 0.0  ;;  %vm2400_vm10 = vcmp.eq.s32.totalorder %v5062_v20, %v6710_v63  ;;  %vm2416_vm7 = vcmp.eq.s32.totalorder %v5549_v41, %v6710_v63  ;;  %vm2001_vm14 = vcmp.eq.s32.totalorder %v5062_v20, %v6765_v60 }
 0x228   : > { %3291 = vmatpush.bf16.msra.mxu0 %v2990_v6  ;;  %vm2017_vm9 = vcmp.eq.s32.totalorder %v5549_v41, %v6765_v60  ;;  %v2991_v35 = vpack.c.bf16 %v2831_v59, %v2815_v54  ;;  %v2592_v56 = vsel %vm2400_vm10, %v6674_v0, 0.0  ;;  %v2608_v21 = vsel %vm2416_vm7, %v6674_v0, 0.0 }
 0x229   : > { %v2209_v3 = vsel %vm2001_vm14, %v6759_v53, 0.0  ;;  %v2784_v39 = vadd.f32 %v2592_v56, %v2208_v23  ;;  %v2800_v32 = vadd.f32 %v2608_v21, %v2224_v7  ;;  %v2225_v2 = vsel %vm2017_vm9, %v6759_v53, 0.0 }
 0x22a   : > { %vm2401_vm11 = vcmp.eq.s32.totalorder %v5062_v20, %v6777_v44  ;;  %3315 = vmatpush.bf16.msra.mxu1 %v2991_v35  ;;  %vm2417_vm4 = vcmp.eq.s32.totalorder %v5549_v41, %v6777_v44  ;;  %vm1998_vm1 = vcmp.eq.s32.totalorder %v5062_v20, %v6794_v61  ;;  %vm2014_vm10 = vcmp.eq.s32.totalorder %v5549_v41, %v6794_v61 }
 0x22b   : > { %v2593_v63 = vsel %vm2401_vm11, %v6738_v55, 0.0  ;;  %v2976_v0 = vpack.c.bf16 %v2800_v32, %v2784_v39  ;;  %v2609_v60 = vsel %vm2417_vm4, %v6738_v55, 0.0  ;;  %v2206_v53 = vsel %vm1998_vm1, %v6790_v13, 0.0 }
 0x22c   : > { %v2785_v16 = vadd.f32 %v2593_v63, %v2209_v3  ;;  %v2801_v45 = vadd.f32 %v2609_v60, %v2225_v2  ;;  %v2222_v11 = vsel %vm2014_vm10, %v6790_v13, 0.0  ;;  %vm2398_vm7 = vcmp.eq.s32.totalorder %v5062_v20, %v6804_v51 }
 0x22d   : > { %vm2414_vm14 = vcmp.eq.s32.totalorder %v5549_v41, %v6804_v51  ;;  %3340 = vmatpush.bf16.msra.mxu2 %v2976_v0  ;;  %v2590_v44 = vsel %vm2398_vm7, %v6767_v19, 0.0  ;;  %vm1999_vm9 = vcmp.eq.s32.totalorder %v5062_v20, %v6891_v42  ;;  %vm2015_vm11 = vcmp.eq.s32.totalorder %v5549_v41, %v6891_v42 }
 0x22e   : > { %v2606_v61 = vsel %vm2414_vm14, %v6767_v19, 0.0  ;;  %v2977_v55 = vpack.c.bf16 %v2801_v45, %v2785_v16  ;;  %v2782_v4 = vadd.f32 %v2590_v44, %v2206_v53  ;;  %v2207_v5 = vsel %vm1999_vm9, %v6878_v12, 0.0 }
 0x22f   : > { %v2798_v13 = vadd.f32 %v2606_v61, %v2222_v11  ;;  %v2223_v25 = vsel %vm2015_vm11, %v6878_v12, 0.0  ;;  %vm2399_vm4 = vcmp.eq.s32.totalorder %v5062_v20, %v6900_v9  ;;  %vm2415_vm1 = vcmp.eq.s32.totalorder %v5549_v41, %v6900_v9 }
 0x230   : > { %v247_v19 = vcvt.s32.f32 %v6773_v14  ;;  %3364 = vmatpush.bf16.msra.mxu3 %v2977_v55  ;;  %v2591_v6 = vsel %vm2399_vm4, %v6869_v46, 0.0  ;;  %v2607_v42 = vsel %vm2415_vm1, %v6869_v46, 0.0  ;;  %vm9002_vm10 = vcmask 785408  }
 0x231   : > { %v2974_v51 = vpack.c.bf16 %v2798_v13, %v2782_v4  ;;  %4423 = vmatmul.msk.bf16.vlgmr.msra.gmra.mxu2 %vm9002_vm10, %v4650_v22  ;;  %v299_v12 = vsub.f32 %v6770_v10, %v4878_v8  ;;  %v2783_v26 = vadd.f32 %v2591_v6, %v2207_v5  ;;  %v2799_v54 = vadd.f32 %v2607_v42, %v2223_v25  ;;  %vm9003_vm7 = vmmov %vm9002_vm10  ;;  %v9006_v4 = vld [vmem:[#allocation14_spill] sm:$0xff] }
 0x232   : > { %v263_v59 = vmul.f32 0.00390625, %v247_v19  ;;  %v184_v23 = vadd.s32 1920, %v4871_v1  ;;  %v181_v14 = vadd.s32 1536, %v4871_v1  ;;  %v182_v7 = vadd.s32 1664, %v4871_v1  ;;  %vm9004_vm14 = vmmov %vm9003_vm7 }
 0x233   : > { %3292 = vmatpush.bf16.msra.mxu0 %v2974_v51  ;;  %v315_v9 = vadd.f32 0.5, %v299_v12  ;;  %v2975_v35 = vpack.c.bf16 %v2799_v54, %v2783_v26  ;;  %4426 = vmatmul.msk.bf16.vlgmr.msra.gmra.mxu3 %vm9003_vm7, %v4650_v22  ;;  %vm9005_vm9 = vmmov %vm9003_vm7 }
 0x234   : > { %v282_v46 = vadd.f32 %v8939_v48, %v263_v59  ;;  %v200_v56 = vand.u32 255, %v184_v23  ;;  %v197_v10 = vand.u32 255, %v181_v14  ;;  %v198_v3 = vand.u32 255, %v182_v7  ;;  %vm9007_vm11 = vmmov %vm9003_vm7 }
 0x235   : > { %v7094_v21 = vmul.f32 %v8941_v49, %v315_v9  ;;  %3316 = vmatpush.bf16.msra.mxu1 %v2975_v35  ;;  %vm9008_vm4 = vmmov %vm9003_vm7 }
 0x236   : > { %4417 = vmatmul.msk.bf16.vlgmr.msra.gmra.mxu0 %vm9004_vm14, %v4650_v22  ;;  %v349_v39 = vsub.f32 %v282_v46, %v8942_v47  ;;  %v216_v32 = vcvt.s32.f32 %v200_v56  ;;  %v232_v2 = vsub.s32 %v184_v23, %v200_v56  ;;  %v213_v63 = vcvt.s32.f32 %v197_v10  ;;  %vm9009_vm1 = vmmov %vm9008_vm4 }
 0x237   : > { %v229_v1 = vsub.s32 %v181_v14, %v197_v10  ;;  %v214_v0 = vcvt.s32.f32 %v198_v3  ;;  %v230_v45 = vsub.s32 %v182_v7, %v198_v3  ;;  %v398_v11 = vmul.f32 %v7094_v21, %v7094_v21  ;;  %vm9010_vm10 = vmmov %vm9009_vm1 }
 0x238   : > { %v365_v60 = vadd.f32 0.5, %v349_v39  ;;  %v248_v16 = vcvt.s32.f32 %v232_v2  ;;  %v300_v53 = vsub.f32 %v216_v32, %v4878_v8  ;;  %4420 = vmatmul.msk.bf16.vlgmr.msra.gmra.mxu1 %vm9005_vm9, %v4650_v22  ;;  %v297_v61 = vsub.f32 %v213_v63, %v4878_v8  ;;  %v4651_v39 = vld [vmem:[#allocation6 + $0x8] sm:$0xff] }
 0x239   : > { %v245_v44 = vcvt.s32.f32 %v229_v1  ;;  %v298_v55 = vsub.f32 %v214_v0, %v4878_v8  ;;  %v246_v19 = vcvt.s32.f32 %v230_v45 }
 0x23a   : > { %v7105_v13 = vmul.f32 %v9006_v4, %v365_v60  ;;  %v264_v5 = vmul.f32 0.00390625, %v248_v16  ;;  %v316_v25 = vadd.f32 0.5, %v300_v53  ;;  %v313_v6 = vadd.f32 0.5, %v297_v61 }
 0x23b   : > { %v261_v51 = vmul.f32 0.00390625, %v245_v44  ;;  %v262_v12 = vmul.f32 0.00390625, %v246_v19  ;;  %v314_v26 = vadd.f32 0.5, %v298_v55 }
 0x23c   : > { %v414_v42 = vmul.f32 %v7105_v13, %v7105_v13  ;;  %v283_v22 = vadd.f32 %v8939_v48, %v264_v5  ;;  %v7112_v8 = vmul.f32 %v8941_v49, %v316_v25  ;;  %v7117_v14 = vmul.f32 %v8941_v49, %v313_v6 }
 0x23d   : > { %v280_v54 = vadd.f32 %v8939_v48, %v261_v51  ;;  %v281_v9 = vadd.f32 %v8939_v48, %v262_v12  ;;  %v7121_v56 = vmul.f32 %v8941_v49, %v314_v26  ;;  %v4652_v26 = vld [vmem:[#allocation6 + $0x10] sm:$0xff] }
 0x23e   : > { %v430_v59 = vadd.f32 %v414_v42, %v398_v11  ;;  %v350_v23 = vsub.f32 %v283_v22, %v8942_v47  ;;  %v399_v48 = vmul.f32 %v7112_v8, %v7112_v8  ;;  %v396_v49 = vmul.f32 %v7117_v14, %v7117_v14 }
 0x23f   : > { %v347_v7 = vsub.f32 %v280_v54, %v8942_v47  ;;  %v348_v10 = vsub.f32 %v281_v9, %v8942_v47  ;;  %v397_v0 = vmul.f32 %v7121_v56, %v7121_v56 }
 0x240   : > { %v446_v35 = vadd.f32 1.0, %v430_v59  ;;  %v366_v46 = vadd.f32 0.5, %v350_v23 }
 0x241   : > { %v363_v3 = vadd.f32 0.5, %v347_v7  ;;  %4424 = vmatmul.msk.bf16.gmra.mxu2 %vm9007_vm11, %v4651_v39  ;;  %v364_v2 = vadd.f32 0.5, %v348_v10  ;;  %vm9011_vm11 = vmmov %vm9009_vm1 }
 0x242   : > { %4633 = vrsqrt.f32 %v446_v35  ;;  %v7126_v32 = vmul.f32 %v9006_v4, %v366_v46  ;;  %vm594_vm7 = vweird.f32 %v446_v35 }
 0x243   : > { %v7131_v63 = vmul.f32 %v9006_v4, %v363_v3  ;;  %v7138_v1 = vmul.f32 %v9006_v4, %v364_v2  ;;  %4427 = vmatmul.msk.bf16.gmra.mxu3 %vm9008_vm4, %v4651_v39 }
 0x244   : > { %v415_v47 = vmul.f32 %v7126_v32, %v7126_v32 }
 0x245   : > { %v412_v60 = vmul.f32 %v7131_v63, %v7131_v63  ;;  %v413_v53 = vmul.f32 %v7138_v1, %v7138_v1 }
 0x246   : > { %v431_v16 = vadd.f32 %v415_v47, %v399_v48  ;;  %4418 = vmatmul.msk.bf16.gmra.mxu0 %vm9009_vm1, %v4651_v39 }
 0x247   : > { %v428_v45 = vadd.f32 %v412_v60, %v396_v49  ;;  %v429_v61 = vadd.f32 %v413_v53, %v397_v0 }
 0x248   : > { %v4634_v11 = vpop.eup %4633  ;;  %v447_v44 = vadd.f32 1.0, %v431_v16  ;;  %4421 = vmatmul.msk.bf16.gmra.mxu1 %vm9010_vm10, %v4651_v39 }
 0x249   : > { %v589_v55 = vmul.f32 %v4634_v11, %v446_v35  ;;  %v7148_v4 = vadd.f32 1.0, %v428_v45  ;;  %v7151_v5 = vadd.f32 1.0, %v429_v61  ;;  %vm595_vm14 = vweird.f32 %v4634_v11 }
 0x24a   : > { %4635 = vrsqrt.f32 %v447_v44  ;;  %vm596_vm9 = vmor %vm594_vm7, %vm595_vm14  ;;  %vm604_vm4 = vweird.f32 %v447_v44 }
 0x24b   : > { %v590_v25 = vmul.f32 %v4634_v11, %v589_v55  ;;  %4637 = vrsqrt.f32 %v7148_v4  ;;  %vm9012_vm7 = vmmov %vm9010_vm10 }
 0x24c   : > { %4639 = vrsqrt.f32 %v7151_v5 }
 0x24d   : > { %v591_v19 = vmul.f32 0.5, %v590_v25 }
 0x24f   : > { %v592_v51 = vsub.f32 1.5, %v591_v19 }
 0x250   : > { %v4636_v6 = vpop.eup %4635 }
 0x251   : > { %v7155_v42 = vpop.eup %4637  ;;  %v593_v22 = vmul.f32 %v4634_v11, %v592_v51  ;;  %v599_v12 = vmul.f32 %v4636_v6, %v447_v44  ;;  %4425 = vmatmul.msk.bf16.gmra.mxu2 %vm9011_vm11, %v4652_v26  ;;  %vm605_vm1 = vweird.f32 %v4636_v6  ;;  %vm574_vm11 = vweird.f32 %v7148_v4 }
 0x252   : > { %v7158_v54 = vpop.eup %4639  ;;  %v569_v59 = vmul.f32 %v7155_v42, %v7148_v4  ;;  %vm606_vm14 = vmor %vm604_vm4, %vm605_vm1 }
 0x253   : > { %v597_v23 = vsel %vm596_vm9, %v4634_v11, %v593_v22  ;;  %v600_v9 = vmul.f32 %v4636_v6, %v599_v12  ;;  %v579_v7 = vmul.f32 %v7158_v54, %v7151_v5  ;;  %4428 = vmatmul.msk.bf16.gmra.mxu3 %vm9010_vm10, %v4652_v26  ;;  %vm9013_vm9 = vmmov %vm9012_vm7  ;;  %vm575_vm10 = vweird.f32 %v7155_v42 }
 0x254   : > { %v622_v35 = vmul.f32 %v597_v23, %v7094_v21  ;;  %v638_v46 = vmul.f32 %v597_v23, %v7105_v13  ;;  %v705_v10 = vmul.f32 %v4952_v30, %v597_v23  ;;  %v788_v3 = vmul.f32 %v4957_v37, %v597_v23 }
 0x255   : > { %v871_v39 = vmul.f32 %v4963_v43, %v597_v23  ;;  %v601_v48 = vmul.f32 0.5, %v600_v9  ;;  %v570_v2 = vmul.f32 %v7155_v42, %v569_v59  ;;  %v580_v49 = vmul.f32 %v7158_v54, %v579_v7 }
 0x256   : > { %v655_v47 = vmul.f32 %v4946_v24, %v622_v35  ;;  %v672_v0 = vmul.f32 %v4948_v27, %v638_v46  ;;  %v738_v21 = vmul.f32 %v4950_v28, %v622_v35  ;;  %v755_v13 = vmul.f32 %v4954_v31, %v638_v46  ;;  %4419 = vmatmul.msk.bf16.gmra.mxu0 %vm9012_vm7, %v4652_v26 }
 0x257   : > { %v821_v60 = vmul.f32 %v4959_v38, %v622_v35  ;;  %v838_v16 = vmul.f32 %v4961_v40, %v638_v46  ;;  %v602_v53 = vsub.f32 1.5, %v601_v48  ;;  %v571_v45 = vmul.f32 0.5, %v570_v2 }
 0x258   : > { %v688_v11 = vadd.f32 %v672_v0, %v655_v47  ;;  %v771_v61 = vadd.f32 %v755_v13, %v738_v21  ;;  %4422 = vmatmul.msk.bf16.gmra.mxu1 %vm9013_vm9, %v4652_v26  ;;  %v581_v12 = vmul.f32 0.5, %v580_v49  ;;  %vm7198_vm9 = vmor %vm574_vm11, %vm575_vm10  ;;  %vm585_vm10 = vweird.f32 %v7158_v54 }
 0x259   : > { %v854_v55 = vadd.f32 %v838_v16, %v821_v60  ;;  %v603_v25 = vmul.f32 %v4636_v6, %v602_v53  ;;  %v572_v22 = vsub.f32 1.5, %v571_v45  ;;  %v9019_v47 = vmov 0 }
 0x25a   : > { %v7182_v19 = vadd.f32 %v705_v10, %v688_v11  ;;  %v7184_v51 = vadd.f32 %v788_v3, %v771_v61  ;;  %v582_v46 = vsub.f32 1.5, %v581_v12 }
 0x25b   : > { %v7186_v59 = vadd.f32 %v871_v39, %v854_v55  ;;  %v607_v7 = vsel %vm606_vm14, %v4636_v6, %v603_v25  ;;  %v573_v35 = vmul.f32 %v7155_v42, %v572_v22  ;;  %v9016_v6 = vmov 0 }
 0x25c   : > { %v903_v23 = vand.u32 2147483647, %v7182_v19  ;;  %v919_v9 = vand.u32 2147483647, %v7184_v51  ;;  %v623_v4 = vmul.f32 %v607_v7, %v7112_v8  ;;  %v639_v10 = vmul.f32 %v607_v7, %v7126_v32 }
 0x25d   : > { %v935_v44 = vand.u32 2147483647, %v7186_v59  ;;  %v706_v39 = vmul.f32 %v4952_v30, %v607_v7  ;;  %v789_v48 = vmul.f32 %v4957_v37, %v607_v7  ;;  %v872_v13 = vmul.f32 %v4963_v43, %v607_v7 }
 0x25e   : > { %v951_v26 = vmax.f32 %v903_v23, %v919_v9  ;;  %vm999_vm1 = vcmp.gt.f32.partialorder %v919_v9, %v903_v23  ;;  %v656_v8 = vmul.f32 %v4946_v24, %v623_v4  ;;  %v673_v32 = vmul.f32 %v4948_v27, %v639_v10 }
 0x25f   : > { %v739_v2 = vmul.f32 %v4950_v28, %v623_v4  ;;  %v756_v49 = vmul.f32 %v4954_v31, %v639_v10  ;;  %v822_v0 = vmul.f32 %v4959_v38, %v623_v4  ;;  %v839_v21 = vmul.f32 %v4961_v40, %v639_v10 }
 0x260   : > { %vm7202_vm14 = vcmp.gt.f32.partialorder %v935_v44, %v951_v26  ;;  %v577_v60 = vsel %vm7198_vm9, %v7155_v42, %v573_v35  ;;  %vm9022_vm11 = vcmp.ge.f32.partialorder %v7184_v51, 0.0  ;;  %v8809_v45 = vsub.f32 0.0, %v7186_v59 }
 0x261   : > { %v9017_v6 = vsel %vm7202_vm14, 4294967295, %v9016_v6  ;;  %vm983_vm7 = vmxor %vm7202_vm14, %vm8889_vm3  ;;  %v1111_v53 = vsel %vm9022_vm11, 2, %v8872_v57  ;;  %v689_v11 = vadd.f32 %v673_v32, %v656_v8  ;;  %v772_v25 = vadd.f32 %v756_v49, %v739_v2 }
 0x262   : > { %9018 = vst [vmem:[#allocation14_spill] sm:$0xff] %v9017_v6  ;;  %vm7219_vm4 = vmand %vm983_vm7, %vm999_vm1  ;;  %vm9023_vm1 = vcmp.ge.f32.partialorder %v7182_v19, 0.0  ;;  %v855_v22 = vadd.f32 %v839_v21, %v822_v0  ;;  %vm9024_vm7 = vcmp.ge.f32.partialorder %v7186_v59, 0.0  ;;  %v703_v32 = vmul.f32 %v4952_v30, %v577_v60 }
 0x263   : > { %v9020_v47 = vsel %vm7219_vm4, 4294967295, %v9019_v47  ;;  %v1031_v16 = vsel %vm7219_vm4, %v919_v9, %v903_v23  ;;  %v1143_v55 = vsel %vm9023_vm1, 0, %v8874_v50  ;;  %v1079_v42 = vsel %vm9024_vm7, 4, %v8867_v18  ;;  %vm9027_vm9 = vmmov %vm9022_vm11 }
 0x264   : > { %9021 = vst [vmem:[#allocation73_spill] sm:$0xff] %v9020_v47  ;;  %v1047_v61 = vsel %vm7202_vm14, %v935_v44, %v1031_v16  ;;  %v7243_v12 = vadd.f32 %v706_v39, %v689_v11  ;;  %v620_v23 = vmul.f32 %v577_v60, %v7117_v14  ;;  %v1303_v9 = vsub.f32 0.0, %v7184_v51 }
 0x265   : > { %4641 = vrcp.f32 %v1047_v61  ;;  %v805_v7 = vadd.f32 %v789_v48, %v772_v25  ;;  %v7247_v26 = vadd.f32 %v872_v13, %v855_v22  ;;  %v636_v44 = vmul.f32 %v577_v60, %v7131_v63 }
 0x266   : > { %9025 = vst [vmem:[#allocation74_spill] sm:$0xff] %v7243_v12  ;;  %v1287_v35 = vsel %vm9027_vm9, %v7186_v59, %v8809_v45  ;;  %v904_v4 = vand.u32 2147483647, %v7243_v12  ;;  %v653_v10 = vmul.f32 %v4946_v24, %v620_v23  ;;  %v736_v3 = vmul.f32 %v4950_v28, %v620_v23 }
 0x267   : > { %9026 = vst [vmem:[#allocation75_spill] sm:$0xff] %v7247_v26  ;;  %v1159_v14 = vsel %vm7219_vm4, %v1111_v53, %v1143_v55  ;;  %v920_v39 = vand.u32 2147483647, %v805_v7  ;;  %v936_v48 = vand.u32 2147483647, %v7247_v26  ;;  %v583_v63 = vmul.f32 %v7158_v54, %v582_v46 }
 0x268   : > { %v670_v8 = vmul.f32 %v4948_v27, %v636_v44  ;;  %v753_v51 = vmul.f32 %v4954_v31, %v636_v44  ;;  %v819_v2 = vmul.f32 %v4959_v38, %v620_v23  ;;  %v1319_v49 = vsel %vm7219_vm4, %v1287_v35, %v1303_v9 }
 0x269   : > { %v952_v0 = vmax.f32 %v904_v4, %v920_v39  ;;  %v786_v21 = vmul.f32 %v4957_v37, %v577_v60  ;;  %v836_v13 = vmul.f32 %v4961_v40, %v636_v44  ;;  %v869_v11 = vmul.f32 %v4963_v43, %v577_v60 }
 0x26a   : > { %v686_v53 = vadd.f32 %v670_v8, %v653_v10  ;;  %v769_v46 = vadd.f32 %v753_v51, %v736_v3  ;;  %v9028_v25 = vmov 0  ;;  %vm9031_vm9 = vweird.f32 %v7151_v5 }
 0x26b   : > { %v4642_v16 = vpop.eup %4641  ;;  %vm7271_vm1 = vcmp.gt.f32.partialorder %v936_v48, %v952_v0  ;;  %v852_v22 = vadd.f32 %v836_v13, %v819_v2  ;;  %vm7280_vm4 = vmor %vm9031_vm9, %vm585_vm10  ;;  %vm1096_vm5 = vcmp.ge.f32.partialorder %v805_v7, 0.0  ;;  %v8800_v60 = vsub.f32 0.0, %v7247_v26 }
 0x26c   : > { %v1351_v55 = vmul.f32 %v4642_v16, %v1047_v61  ;;  %v9029_v25 = vsel %vm7271_vm1, 4294967295, %v9028_v25  ;;  %vm984_vm11 = vmxor %vm7271_vm1, %vm8889_vm3  ;;  %v1304_v61 = vsub.f32 0.0, %v805_v7  ;;  %v7288_v9 = vadd.f32 %v703_v32, %v686_v53 }
 0x26d   : > { %9030 = vst [vmem:[#allocation76_spill] sm:$0xff] %v9029_v25  ;;  %vm9034_vm7 = vcmp.gt.f32.partialorder %v920_v39, %v904_v4  ;;  %v9035_v35 = vmov 0  ;;  %vm8799_vm10 = vcmp.ge.f32.partialorder %v7247_v26, 0.0  ;;  %v7296_v5 = vadd.f32 %v786_v21, %v769_v46 }
 0x26e   : > { %v1367_v44 = vsub.f32 2.0, %v1351_v55  ;;  %vm7291_vm12 = vmand %vm984_vm11, %vm9034_vm7  ;;  %v7298_v10 = vadd.f32 %v869_v11, %v852_v22  ;;  %v1112_v8 = vsel %vm1096_vm5, 2, %v8872_v57  ;;  %vm9038_vm9 = vcmp.ge.f32.partialorder %v7243_v12, 0.0 }
 0x26f   : > { %v9036_v35 = vsel %vm7291_vm12, 4294967295, %v9035_v35  ;;  %v1032_v3 = vsel %vm7291_vm12, %v920_v39, %v904_v4  ;;  %v1144_v32 = vsel %vm9038_vm9, 0, %v8874_v50  ;;  %v901_v51 = vand.u32 2147483647, %v7288_v9 }
 0x270   : > { %9037 = vst [vmem:[#allocation77_spill] sm:$0xff] %v9036_v35  ;;  %v7308_v2 = vmul.f32 %v4642_v16, %v1367_v44  ;;  %v1048_v0 = vsel %vm7271_vm1, %v936_v48, %v1032_v3  ;;  %v917_v21 = vand.u32 2147483647, %v7296_v5  ;;  %v587_v4 = vsel %vm7280_vm4, %v7158_v54, %v583_v63 }
 0x271   : > { %v7318_v39 = vsel %vm7202_vm14, %v1079_v42, %v1159_v14  ;;  %v1288_v13 = vsel %vm1096_vm5, %v7247_v26, %v8800_v60  ;;  %4643 = vrcp.f32 %v1048_v0  ;;  %v933_v16 = vand.u32 2147483647, %v7298_v10 }
 0x272   : > { %9039 = vst [vmem:[#allocation78_spill] sm:$0xff] %v7308_v2  ;;  %v1447_v48 = vmul.f32 %v7308_v2, %v1319_v49  ;;  %v1080_v53 = vsel %vm8799_vm10, 4, %v8867_v18  ;;  %v1160_v54 = vsel %vm7291_vm12, %v1112_v8, %v1144_v32  ;;  %v949_v63 = vmax.f32 %v901_v51, %v917_v21 }
 0x273   : > { %vm997_vm4 = vcmp.gt.f32.partialorder %v917_v21, %v901_v51  ;;  %v8811_v42 = vsub.f32 0.0, %v7298_v10  ;;  %v621_v14 = vmul.f32 %v587_v4, %v7121_v56  ;;  %v637_v7 = vmul.f32 %v587_v4, %v7138_v1 }
 0x274   : > { %v1463_v46 = vadd.f32 1.0, %v1447_v48  ;;  %v1320_v11 = vsel %vm7291_vm12, %v1288_v13, %v1304_v61  ;;  %vm7336_vm5 = vcmp.gt.f32.partialorder %v933_v16, %v949_v63  ;;  %v7343_v55 = vsel %vm7271_vm1, %v1080_v53, %v1160_v54 }
 0x275   : > { %vm981_vm7 = vmxor %vm7336_vm5, %vm8889_vm3  ;;  %v1301_v56 = vsub.f32 0.0, %v7296_v5  ;;  %v654_v1 = vmul.f32 %v4946_v24, %v621_v14  ;;  %v704_v22 = vmul.f32 %v4952_v30, %v587_v4  ;;  %vm8802_vm10 = vcmp.ge.f32.partialorder %v7288_v9, 0.0 }
 0x276   : > { %v1479_v23 = vmul.f32 0.5, %v1463_v46  ;;  %vm7351_vm9 = vmand %vm981_vm7, %vm997_vm4  ;;  %v671_v44 = vmul.f32 %v4948_v27, %v637_v7  ;;  %v737_v3 = vmul.f32 %v4950_v28, %v621_v14  ;;  %vm8801_vm11 = vcmp.ge.f32.partialorder %v7298_v10, 0.0 }
 0x277   : > { %v4644_v8 = vpop.eup %4643  ;;  %v1029_v32 = vsel %vm7351_vm9, %v917_v21, %v901_v51  ;;  %vm9044_vm4 = vcmp.ge.f32.partialorder %v7296_v5, 0.0  ;;  %v754_v30 = vmul.f32 %v4954_v31, %v637_v7  ;;  %v1141_v51 = vsel %vm8802_vm10, 0, %v8874_v50 }
 0x278   : > { %v1285_v24 = vsel %vm9044_vm4, %v7298_v10, %v8811_v42  ;;  %v1527_v13 = vmul.f32 16.0, %v1479_v23  ;;  %v1352_v48 = vmul.f32 %v4644_v8, %v1048_v0  ;;  %v1045_v27 = vsel %vm7336_vm5, %v933_v16, %v1029_v32  ;;  %vm9045_vm7 = vmmov %vm9044_vm4 }
 0x279   : > { %v1109_v28 = vsel %vm9045_vm7, 2, %v8872_v57  ;;  %4645 = vrcp.f32 %v1045_v27  ;;  %v687_v21 = vadd.f32 %v671_v44, %v654_v1  ;;  %v770_v53 = vadd.f32 %v754_v30, %v737_v3 }
 0x27a   : > { %v4379_v54 = vadd.f32 -0.5, %v1527_v13  ;;  %v1368_v63 = vsub.f32 2.0, %v1352_v48  ;;  %v787_v31 = vmul.f32 %v4957_v37, %v587_v4  ;;  %v820_v0 = vmul.f32 %v4959_v38, %v621_v14 }
 0x27b   : > { %v1077_v16 = vsel %vm8801_vm11, 4, %v8867_v18  ;;  %v7380_v46 = vadd.f32 %v704_v22, %v687_v21  ;;  %v837_v5 = vmul.f32 %v4961_v40, %v637_v7  ;;  %v870_v23 = vmul.f32 %v4963_v43, %v587_v4 }
 0x27c   : > { %v1575_v32 = vfloor.f32 %v4379_v54  ;;  %v7384_v60 = vmul.f32 %v4644_v8, %v1368_v63  ;;  %v1157_v1 = vsel %vm7351_vm9, %v1109_v28, %v1141_v51  ;;  %v7388_v44 = vadd.f32 %v787_v31, %v770_v53 }
 0x27d   : > { %v1943_v37 = vmul.u32 16, %v7318_v39  ;;  %v1944_v38 = vmul.u32 16, %v7343_v55  ;;  %v853_v14 = vadd.f32 %v837_v5, %v820_v0  ;;  %v902_v22 = vand.u32 2147483647, %v7380_v46 }
 0x27e   : > { %9046 = vst [vmem:[#allocation79_spill] sm:$0xff] %v7384_v60  ;;  %v7393_v3 = vsub.f32 %v4379_v54, %v1575_v32  ;;  %v4516_v40 = vcvt.f32.s32 %v1575_v32  ;;  %v1448_v43 = vmul.f32 %v7384_v60, %v1320_v11  ;;  %v918_v4 = vand.u32 2147483647, %v7388_v44 }
 0x27f   : > { %v4646_v7 = vpop.eup %4645  ;;  %v7399_v8 = vsel %vm7336_vm5, %v1077_v16, %v1157_v1  ;;  %v1317_v39 = vsel %vm7351_vm9, %v1285_v24, %v1301_v56  ;;  %v7403_v30 = vadd.f32 %v870_v23, %v853_v14  ;;  %v9047_v31 = vmov 0 }
 0x280   : > { %vm1813_vm7 = vcmp.gt.s32.totalorder %v4516_v40, 0  ;;  %v1863_v13 = vadd.s32 1, %v4516_v40  ;;  %v7407_v48 = vsub.f32 1.0, %v7393_v3  ;;  %v1464_v11 = vadd.f32 1.0, %v1448_v43 }
 0x281   : > { %v1814_v28 = vsel %vm1813_vm7, %v4516_v40, 0  ;;  %v1349_v51 = vmul.f32 %v4646_v7, %v1045_v27  ;;  %v934_v21 = vand.u32 2147483647, %v7403_v30  ;;  %v950_v53 = vmax.f32 %v902_v22, %v918_v4 }
 0x282   : > { %vm1845_vm11 = vcmp.lt.s32.totalorder %v1814_v28, 15  ;;  %vm1893_vm10 = vcmp.gt.s32.totalorder %v1863_v13, 0  ;;  %v1480_v54 = vmul.f32 0.5, %v1464_v11  ;;  %vm998_vm1 = vcmp.gt.f32.partialorder %v918_v4, %v902_v22 }
 0x283   : > { %v1846_v56 = vsel %vm1845_vm11, %v1814_v28, 15  ;;  %v1894_v24 = vsel %vm1893_vm10, %v1863_v13, 0  ;;  %v1365_v63 = vsub.f32 2.0, %v1349_v51  ;;  %vm7410_vm12 = vcmp.gt.f32.partialorder %v934_v21, %v950_v53 }
 0x284   : > { %v9048_v31 = vsel %vm7410_vm12, 4294967295, %v9047_v31  ;;  %vm1925_vm4 = vcmp.lt.s32.totalorder %v1894_v24, 15  ;;  %v7414_v0 = vadd.s32 %v1943_v37, %v1846_v56  ;;  %v1528_v16 = vmul.f32 16.0, %v1480_v54  ;;  %vm982_vm7 = vmxor %vm7410_vm12, %vm8889_vm3 }
 0x285   : > { %vm8806_vm14 = vcmp.ge.f32.partialorder %v7403_v30, 0.0  ;;  %v1926_v27 = vsel %vm1925_vm4, %v1894_v24, 15  ;;  %v7420_v5 = vmul.f32 %v4646_v7, %v1365_v63  ;;  %vm7422_vm11 = vmand %vm982_vm7, %vm998_vm1  ;;  %vm9051_vm10 = vcmp.ge.f32.partialorder %v7388_v44, 0.0 }
 0x286   : > { %v1078_v32 = vsel %vm8806_vm14, 4, %v8867_v18  ;;  %v1110_v1 = vsel %vm9051_vm10, 2, %v8872_v57  ;;  %v7432_v14 = vadd.s32 %v1943_v37, %v1926_v27  ;;  %vm2164_vm3 = vcmp.eq.s32.totalorder %v5100_v62, %v7414_v0 }
 0x287   : > { %vm2180_vm4 = vcmp.eq.s32.totalorder %v8989_v33, %v7414_v0  ;;  %v4380_v40 = vadd.f32 -0.5, %v1528_v16  ;;  %v2372_v43 = vsel %vm2164_vm3, %v7407_v48, 0.0  ;;  %v1445_v13 = vmul.f32 %v7420_v5, %v1317_v39 }
 0x288   : > { %v2388_v7 = vsel %vm2180_vm4, %v7407_v48, 0.0  ;;  %v1030_v18 = vsel %vm7422_vm11, %v918_v4, %v902_v22  ;;  %vm2564_vm1 = vcmp.eq.s32.totalorder %v5100_v62, %v7432_v14  ;;  %vm2580_vm7 = vcmp.eq.s32.totalorder %v8989_v33, %v7432_v14 }
 0x289   : > { %v1576_v57 = vfloor.f32 %v4380_v40  ;;  %v1046_v37 = vsel %vm7410_vm12, %v934_v21, %v1030_v18  ;;  %v2756_v11 = vsel %vm2564_vm1, %v7393_v3, 0.0  ;;  %v2772_v28 = vsel %vm2580_vm7, %v7393_v3, 0.0 }
 0x28a   : > { %v1461_v51 = vadd.f32 1.0, %v1445_v13  ;;  %vm8807_vm10 = vcmp.ge.f32.partialorder %v7380_v46, 0.0  ;;  %v2948_v39 = vadd.f32 %v2756_v11, %v2372_v43  ;;  %v2964_v53 = vadd.f32 %v2772_v28, %v2388_v7 }
 0x28b   : > { %v7452_v22 = vsub.f32 %v4380_v40, %v1576_v57  ;;  %v4518_v4 = vcvt.f32.s32 %v1576_v57  ;;  %v1142_v56 = vsel %vm8807_vm10, 0, %v8874_v50  ;;  %v8810_v24 = vsub.f32 0.0, %v7403_v30 }
 0x28c   : > { %v1477_v54 = vmul.f32 0.5, %v1461_v51  ;;  %4647 = vrcp.f32 %v1046_v37  ;;  %v3060_v21 = vpack.c.bf16 %v2964_v53, %v2948_v39  ;;  %v1302_v16 = vsub.f32 0.0, %v7388_v44 }
 0x28d   : > { %vm1815_vm3 = vcmp.gt.s32.totalorder %v4518_v4, 0  ;;  %v1864_v63 = vadd.s32 1, %v4518_v4  ;;  %v1158_v40 = vsel %vm7422_vm11, %v1110_v1, %v1142_v56  ;;  %vm9052_vm4 = vcmp.ge.f32.partialorder %v7388_v44, 0.0 }
 0x28e   : > { %v1816_v27 = vsel %vm1815_vm3, %v4518_v4, 0  ;;  %v1525_v13 = vmul.f32 16.0, %v1477_v54  ;;  %v1286_v43 = vsel %vm9052_vm4, %v7403_v30, %v8810_v24  ;;  %3431 = vmatpush.bf16.msrb.mxu2 %v3060_v21  ;;  %v7468_v50 = vsel %vm7410_vm12, %v1078_v32, %v1158_v40  ;;  %v9053_v4 = vld [vmem:[#allocation15_spill] sm:$0xff] }
 0x28f   : > { %vm1847_vm1 = vcmp.lt.s32.totalorder %v1816_v27, 15  ;;  %vm1895_vm7 = vcmp.gt.s32.totalorder %v1864_v63, 0  ;;  %v7471_v57 = vsub.f32 1.0, %v7452_v22  ;;  %v1941_v44 = vmul.u32 16, %v7399_v8 }
 0x290   : > { %v1848_v7 = vsel %vm1847_vm1, %v1816_v27, 15  ;;  %v1896_v18 = vsel %vm1895_vm7, %v1864_v63, 0  ;;  %v4377_v11 = vadd.f32 -0.5, %v1525_v13  ;;  %v1318_v28 = vsel %vm7422_vm11, %v1286_v43, %v1302_v16 }
 0x291   : > { %vm1927_vm3 = vcmp.lt.s32.totalorder %v1896_v18, 15  ;;  %v7475_v1 = vadd.s32 %v1944_v38, %v1848_v7  ;;  %v1942_v53 = vmul.u32 16, %v7468_v50  ;;  %vm2132_vm14 = vcmp.eq.s32.totalorder %v8995_v17, %v7414_v0 }
 0x292   : > { %v4648_v51 = vpop.eup %4647  ;;  %v1928_v39 = vsel %vm1927_vm3, %v1896_v18, 15  ;;  %v1573_v32 = vfloor.f32 %v4377_v11 }
 0x293   : > { %v7484_v56 = vadd.s32 %v1944_v38, %v1928_v39  ;;  %vm2165_vm4 = vcmp.eq.s32.totalorder %v5100_v62, %v7475_v1  ;;  %vm2181_vm1 = vcmp.eq.s32.totalorder %v8989_v33, %v7475_v1  ;;  %v1350_v8 = vmul.f32 %v4648_v51, %v1046_v37  ;;  %v9054_v39 = vld [vmem:[#allocation36_spill] sm:$0xff] }
 0x294   : > { %v2373_v21 = vsel %vm2165_vm4, %v7471_v57, 0.0  ;;  %v2389_v63 = vsel %vm2181_vm1, %v7471_v57, 0.0  ;;  %v7492_v16 = vsub.f32 %v4377_v11, %v1573_v32  ;;  %v4512_v27 = vcvt.f32.s32 %v1573_v32 }
 0x295   : > { %vm2565_vm7 = vcmp.eq.s32.totalorder %v5100_v62, %v7484_v56  ;;  %vm2581_vm3 = vcmp.eq.s32.totalorder %v8989_v33, %v7484_v56  ;;  %v1366_v55 = vsub.f32 2.0, %v1350_v8  ;;  %vm2148_vm12 = vcmp.eq.s32.totalorder %v9054_v39, %v7414_v0 }
 0x296   : > { %v2757_v38 = vsel %vm2565_vm7, %v7452_v22, 0.0  ;;  %v2773_v37 = vsel %vm2581_vm3, %v7452_v22, 0.0  ;;  %vm1809_vm4 = vcmp.gt.s32.totalorder %v4512_v27, 0  ;;  %v1861_v13 = vadd.s32 1, %v4512_v27 }
 0x297   : > { %v2949_v40 = vadd.f32 %v2757_v38, %v2373_v21  ;;  %v2965_v43 = vadd.f32 %v2773_v37, %v2389_v63  ;;  %v1810_v7 = vsel %vm1809_vm4, %v4512_v27, 0  ;;  %v7503_v18 = vsub.f32 1.0, %v7492_v16 }
 0x298   : > { %vm1841_vm1 = vcmp.lt.s32.totalorder %v1810_v7, 15  ;;  %vm1889_vm10 = vcmp.gt.s32.totalorder %v1861_v13, 0  ;;  %v7505_v11 = vmul.f32 %v4648_v51, %v1366_v55  ;;  %v2340_v21 = vsel %vm2132_vm14, %v7407_v48, 0.0 }
 0x299   : > { %v3061_v32 = vpack.c.bf16 %v2965_v43, %v2949_v40  ;;  %v1842_v8 = vsel %vm1841_vm1, %v1810_v7, 15  ;;  %v1890_v45 = vsel %vm1889_vm10, %v1861_v13, 0  ;;  %v2356_v38 = vsel %vm2148_vm12, %v7407_v48, 0.0 }
 0x29a   : > { %vm1921_vm7 = vcmp.lt.s32.totalorder %v1890_v45, 15  ;;  %v7513_v63 = vadd.s32 %v1941_v44, %v1842_v8  ;;  %v1446_v27 = vmul.f32 %v7505_v11, %v1318_v28  ;;  %vm2532_vm3 = vcmp.eq.s32.totalorder %v8995_v17, %v7432_v14 }
 0x29b   : > { %3455 = vmatpush.bf16.msrb.mxu3 %v3061_v32  ;;  %v1922_v51 = vsel %vm1921_vm7, %v1890_v45, 15  ;;  %vm2548_vm10 = vcmp.eq.s32.totalorder %v9054_v39, %v7432_v14  ;;  %vm2133_vm4 = vcmp.eq.s32.totalorder %v8995_v17, %v7475_v1  ;;  %v2724_v13 = vsel %vm2532_vm3, %v7393_v3, 0.0 }
 0x29c   : > { %v7523_v55 = vadd.s32 %v1941_v44, %v1922_v51  ;;  %vm2162_vm14 = vcmp.eq.s32.totalorder %v5100_v62, %v7513_v63  ;;  %vm2178_vm1 = vcmp.eq.s32.totalorder %v8989_v33, %v7513_v63  ;;  %v1462_v28 = vadd.f32 1.0, %v1446_v27 }
 0x29d   : > { %v2370_v45 = vsel %vm2162_vm14, %v7503_v18, 0.0  ;;  %v2386_v37 = vsel %vm2178_vm1, %v7503_v18, 0.0  ;;  %v2740_v40 = vsel %vm2548_vm10, %v7393_v3, 0.0  ;;  %v2916_v43 = vadd.f32 %v2724_v13, %v2340_v21 }
 0x29e   : > { %vm2562_vm12 = vcmp.eq.s32.totalorder %v5100_v62, %v7523_v55  ;;  %vm2578_vm7 = vcmp.eq.s32.totalorder %v8989_v33, %v7523_v55  ;;  %v1478_v44 = vmul.f32 0.5, %v1462_v28  ;;  %v2932_v8 = vadd.f32 %v2740_v40, %v2356_v38 }
 0x29f   : > { %v2754_v7 = vsel %vm2562_vm12, %v7492_v16, 0.0  ;;  %v2770_v32 = vsel %vm2578_vm7, %v7492_v16, 0.0  ;;  %vm2149_vm14 = vcmp.eq.s32.totalorder %v9054_v39, %v7475_v1  ;;  %v2341_v42 = vsel %vm2133_vm4, %v7471_v57, 0.0 }
 0x2a0   : > { %v2946_v27 = vadd.f32 %v2754_v7, %v2370_v45  ;;  %v2962_v51 = vadd.f32 %v2770_v32, %v2386_v37  ;;  %v1526_v24 = vmul.f32 16.0, %v1478_v44  ;;  %v3044_v54 = vpack.c.bf16 %v2932_v8, %v2916_v43 }
 0x2a1   : > { %v2357_v28 = vsel %vm2149_vm14, %v7471_v57, 0.0  ;;  %vm2533_vm3 = vcmp.eq.s32.totalorder %v8995_v17, %v7484_v56  ;;  %vm2549_vm10 = vcmp.eq.s32.totalorder %v9054_v39, %v7484_v56  ;;  %vm2130_vm4 = vcmp.eq.s32.totalorder %v8995_v17, %v7513_v63 }
 0x2a2   : > { %v3058_v21 = vpack.c.bf16 %v2962_v51, %v2946_v27  ;;  %v4378_v38 = vadd.f32 -0.5, %v1526_v24  ;;  %v2725_v45 = vsel %vm2533_vm3, %v7452_v22, 0.0  ;;  %v2741_v37 = vsel %vm2549_vm10, %v7452_v22, 0.0  ;;  %3432 = vmatpush.bf16.msrb.mxu2 %v3044_v54 }
 0x2a3   : > { %v2917_v13 = vadd.f32 %v2725_v45, %v2341_v42  ;;  %v2933_v40 = vadd.f32 %v2741_v37, %v2357_v28  ;;  %vm2146_vm1 = vcmp.eq.s32.totalorder %v9054_v39, %v7513_v63  ;;  %v2338_v43 = vsel %vm2130_vm4, %v7503_v18, 0.0 }
 0x2a4   : > { %3383 = vmatpush.bf16.msrb.mxu0 %v3058_v21  ;;  %v1574_v44 = vfloor.f32 %v4378_v38  ;;  %v2354_v7 = vsel %vm2146_vm1, %v7503_v18, 0.0  ;;  %vm2530_vm12 = vcmp.eq.s32.totalorder %v8995_v17, %v7523_v55  ;;  %vm2546_vm7 = vcmp.eq.s32.totalorder %v9054_v39, %v7523_v55 }
 0x2a5   : > { %v3045_v24 = vpack.c.bf16 %v2933_v40, %v2917_v13  ;;  %v2722_v42 = vsel %vm2530_vm12, %v7492_v16, 0.0  ;;  %vm2100_vm14 = vcmp.eq.s32.totalorder %v5389_v34, %v7414_v0  ;;  %v2738_v8 = vsel %vm2546_vm7, %v7492_v16, 0.0 }
 0x2a6   : > { %v7565_v54 = vsub.f32 %v4378_v38, %v1574_v44  ;;  %v4514_v32 = vcvt.f32.s32 %v1574_v44  ;;  %v2914_v27 = vadd.f32 %v2722_v42, %v2338_v43  ;;  %v2930_v51 = vadd.f32 %v2738_v8, %v2354_v7 }
 0x2a7   : > { %3456 = vmatpush.bf16.msrb.mxu3 %v3045_v24  ;;  %vm2116_vm3 = vcmp.eq.s32.totalorder %v5392_v29, %v7414_v0  ;;  %v2308_v28 = vsel %vm2100_vm14, %v7407_v48, 0.0  ;;  %vm2500_vm10 = vcmp.eq.s32.totalorder %v5389_v34, %v7432_v14  ;;  %vm2516_vm1 = vcmp.eq.s32.totalorder %v5392_v29, %v7432_v14 }
 0x2a8   : > { %vm1811_vm4 = vcmp.gt.s32.totalorder %v4514_v32, 0  ;;  %v1862_v21 = vadd.s32 1, %v4514_v32  ;;  %v7574_v45 = vsub.f32 1.0, %v7565_v54  ;;  %v2324_v38 = vsel %vm2116_vm3, %v7407_v48, 0.0 }
 0x2a9   : > { %v1812_v37 = vsel %vm1811_vm4, %v4514_v32, 0  ;;  %v3042_v13 = vpack.c.bf16 %v2930_v51, %v2914_v27  ;;  %v2692_v40 = vsel %vm2500_vm10, %v7393_v3, 0.0  ;;  %v2708_v44 = vsel %vm2516_vm1, %v7393_v3, 0.0 }
 0x2aa   : > { %vm1843_vm12 = vcmp.lt.s32.totalorder %v1812_v37, 15  ;;  %vm1891_vm7 = vcmp.gt.s32.totalorder %v1862_v21, 0  ;;  %v2884_v43 = vadd.f32 %v2692_v40, %v2308_v28  ;;  %v2900_v42 = vadd.f32 %v2708_v44, %v2324_v38 }
 0x2ab   : > { %v1844_v7 = vsel %vm1843_vm12, %v1812_v37, 15  ;;  %v1892_v24 = vsel %vm1891_vm7, %v1862_v21, 0  ;;  %3384 = vmatpush.bf16.msrb.mxu0 %v3042_v13  ;;  %vm2101_vm14 = vcmp.eq.s32.totalorder %v5389_v34, %v7475_v1  ;;  %vm2117_vm10 = vcmp.eq.s32.totalorder %v5392_v29, %v7475_v1 }
 0x2ac   : > { %vm1923_vm3 = vcmp.lt.s32.totalorder %v1892_v24, 15  ;;  %v7585_v32 = vadd.s32 %v1942_v53, %v1844_v7  ;;  %v2309_v8 = vsel %vm2101_vm14, %v7471_v57, 0.0  ;;  %v3028_v51 = vpack.c.bf16 %v2900_v42, %v2884_v43 }
 0x2ad   : > { %v1924_v27 = vsel %vm1923_vm3, %v1892_v24, 15  ;;  %v2325_v28 = vsel %vm2117_vm10, %v7471_v57, 0.0 }
 0x2ae   : > { %v7595_v21 = vadd.s32 %v1942_v53, %v1924_v27  ;;  %vm2163_vm1 = vcmp.eq.s32.totalorder %v5100_v62, %v7585_v32  ;;  %vm2179_vm12 = vcmp.eq.s32.totalorder %v8989_v33, %v7585_v32  ;;  %vm2131_vm7 = vcmp.eq.s32.totalorder %v8995_v17, %v7585_v32  ;;  %3433 = vmatpush.bf16.msrb.mxu2 %v3028_v51 }
 0x2af   : > { %v2371_v38 = vsel %vm2163_vm1, %v7574_v45, 0.0  ;;  %v2387_v37 = vsel %vm2179_vm12, %v7574_v45, 0.0  ;;  %vm2147_vm14 = vcmp.eq.s32.totalorder %v9054_v39, %v7585_v32  ;;  %v2339_v50 = vsel %vm2131_vm7, %v7574_v45, 0.0 }
 0x2b0   : > { %vm2563_vm3 = vcmp.eq.s32.totalorder %v5100_v62, %v7595_v21  ;;  %vm2579_vm10 = vcmp.eq.s32.totalorder %v8989_v33, %v7595_v21  ;;  %v2355_v53 = vsel %vm2147_vm14, %v7574_v45, 0.0  ;;  %vm2531_vm4 = vcmp.eq.s32.totalorder %v8995_v17, %v7595_v21 }
 0x2b1   : > { %v2755_v13 = vsel %vm2563_vm3, %v7565_v54, 0.0  ;;  %v2771_v40 = vsel %vm2579_vm10, %v7565_v54, 0.0  ;;  %vm2547_vm1 = vcmp.eq.s32.totalorder %v9054_v39, %v7595_v21  ;;  %v2723_v44 = vsel %vm2531_vm4, %v7565_v54, 0.0 }
 0x2b2   : > { %v2947_v43 = vadd.f32 %v2755_v13, %v2371_v38  ;;  %v2963_v7 = vadd.f32 %v2771_v40, %v2387_v37  ;;  %v2739_v62 = vsel %vm2547_vm1, %v7565_v54, 0.0  ;;  %v2915_v24 = vadd.f32 %v2723_v44, %v2339_v50 }
 0x2b3   : > { %v2931_v33 = vadd.f32 %v2739_v62, %v2355_v53  ;;  %vm2517_vm12 = vcmp.eq.s32.totalorder %v5392_v29, %v7484_v56  ;;  %vm9055_vm7 = vcmp.eq.s32.totalorder %v5389_v34, %v7484_v56  ;;  %vm2098_vm14 = vcmp.eq.s32.totalorder %v5389_v34, %v7513_v63 }
 0x2b4   : > { %v2693_v17 = vsel %vm9055_vm7, %v7452_v22, 0.0  ;;  %v3059_v39 = vpack.c.bf16 %v2963_v7, %v2947_v43  ;;  %v2709_v42 = vsel %vm2517_vm12, %v7452_v22, 0.0  ;;  %vm2114_vm4 = vcmp.eq.s32.totalorder %v5392_v29, %v7513_v63 }
 0x2b5   : > { %v2885_v27 = vadd.f32 %v2693_v17, %v2309_v8  ;;  %v3043_v51 = vpack.c.bf16 %v2931_v33, %v2915_v24  ;;  %v2901_v38 = vadd.f32 %v2709_v42, %v2325_v28  ;;  %v2306_v37 = vsel %vm2098_vm14, %v7503_v18, 0.0 }
 0x2b6   : > { %v2322_v50 = vsel %vm2114_vm4, %v7503_v18, 0.0  ;;  %3407 = vmatpush.bf16.msrb.mxu1 %v3059_v39  ;;  %vm2498_vm3 = vcmp.eq.s32.totalorder %v5389_v34, %v7523_v55  ;;  %vm2514_vm10 = vcmp.eq.s32.totalorder %v5392_v29, %v7523_v55  ;;  %vm2099_vm1 = vcmp.eq.s32.totalorder %v5389_v34, %v7585_v32 }
 0x2b7   : > { %vm2115_vm12 = vcmp.eq.s32.totalorder %v5392_v29, %v7585_v32  ;;  %v3029_v8 = vpack.c.bf16 %v2901_v38, %v2885_v27  ;;  %v2690_v28 = vsel %vm2498_vm3, %v7492_v16, 0.0  ;;  %v2706_v53 = vsel %vm2514_vm10, %v7492_v16, 0.0 }
 0x2b8   : > { %v2307_v13 = vsel %vm2099_vm1, %v7574_v45, 0.0  ;;  %v2882_v40 = vadd.f32 %v2690_v28, %v2306_v37  ;;  %v2898_v44 = vadd.f32 %v2706_v53, %v2322_v50  ;;  %v2323_v43 = vsel %vm2115_vm12, %v7574_v45, 0.0  ;;  %v9057_v28 = vld [vmem:[#allocation16_spill] sm:$0xff] }
 0x2b9   : > { %vm2499_vm7 = vcmp.eq.s32.totalorder %v5389_v34, %v7595_v21  ;;  %3457 = vmatpush.bf16.msrb.mxu3 %v3029_v8  ;;  %vm2515_vm14 = vcmp.eq.s32.totalorder %v5392_v29, %v7595_v21  ;;  %vm2068_vm4 = vcmp.eq.s32.totalorder %v5435_v36, %v7414_v0  ;;  %vm2084_vm3 = vcmp.eq.s32.totalorder %v5442_v58, %v7414_v0 }
 0x2ba   : > { %v2691_v7 = vsel %vm2499_vm7, %v7565_v54, 0.0  ;;  %3408 = vmatpush.bf16.msrb.mxu1 %v3043_v51  ;;  %v3026_v62 = vpack.c.bf16 %v2898_v44, %v2882_v40  ;;  %v2707_v24 = vsel %vm2515_vm14, %v7565_v54, 0.0  ;;  %v2276_v17 = vsel %vm2068_vm4, %v7407_v48, 0.0 }
 0x2bb   : > { %v2883_v33 = vadd.f32 %v2691_v7, %v2307_v13  ;;  %v2899_v34 = vadd.f32 %v2707_v24, %v2323_v43  ;;  %v2292_v39 = vsel %vm2084_vm3, %v7407_v48, 0.0  ;;  %vm2468_vm10 = vcmp.eq.s32.totalorder %v5435_v36, %v7432_v14 }
 0x2bc   : > { %vm2484_vm1 = vcmp.eq.s32.totalorder %v5442_v58, %v7432_v14  ;;  %3385 = vmatpush.bf16.msrb.mxu0 %v3026_v62  ;;  %v2660_v29 = vsel %vm2468_vm10, %v7393_v3, 0.0  ;;  %vm2069_vm12 = vcmp.eq.s32.totalorder %v5435_v36, %v7475_v1  ;;  %vm2085_vm7 = vcmp.eq.s32.totalorder %v5442_v58, %v7475_v1 }
 0x2bd   : > { %v2676_v42 = vsel %vm2484_vm1, %v7393_v3, 0.0  ;;  %v3027_v27 = vpack.c.bf16 %v2899_v34, %v2883_v33  ;;  %v2852_v51 = vadd.f32 %v2660_v29, %v2276_v17  ;;  %v2277_v37 = vsel %vm2069_vm12, %v7471_v57, 0.0  ;;  %v9062_v34 = vld [vmem:[#allocation18_spill] sm:$0xff] }
 0x2be   : > { %v2868_v38 = vadd.f32 %v2676_v42, %v2292_v39  ;;  %v2293_v50 = vsel %vm2085_vm7, %v7471_v57, 0.0  ;;  %vm2469_vm14 = vcmp.eq.s32.totalorder %v5435_v36, %v7484_v56  ;;  %vm2485_vm4 = vcmp.eq.s32.totalorder %v5442_v58, %v7484_v56 }
 0x2bf   : > { %v9056_v8 = vsub.f32 0.0, %v9053_v4  ;;  %vm9058_vm3 = vcmp.ge.f32.partialorder %v9057_v28, 0.0  ;;  %3409 = vmatpush.bf16.msrb.mxu1 %v3027_v27  ;;  %v2661_v40 = vsel %vm2469_vm14, %v7452_v22, 0.0  ;;  %v2677_v44 = vsel %vm2485_vm4, %v7452_v22, 0.0  ;;  %v9064_v27 = vld [vmem:[#allocation20_spill] sm:$0xff] }
 0x2c0   : > { %v3012_v13 = vpack.c.bf16 %v2868_v38, %v2852_v51  ;;  %v9059_v43 = vsub.f32 0.0, %v9057_v28  ;;  %vm9060_vm10 = vcmp.ge.f32.partialorder %v9053_v4, 0.0  ;;  %v2853_v62 = vadd.f32 %v2661_v40, %v2277_v37 }
 0x2c1   : > { %v1193_v53 = vsel %vm9058_vm3, %v9053_v4, %v9056_v8  ;;  %v2869_v24 = vadd.f32 %v2677_v44, %v2293_v50  ;;  %v1178_v39 = vsub.f32 0.0, %v9062_v34  ;;  %v9065_v51 = vsub.f32 0.0, %v9064_v27 }
 0x2c2   : > { %v1225_v7 = vsel %vm9060_vm10, %v9059_v43, %v9057_v28  ;;  %3434 = vmatpush.bf16.msrb.mxu2 %v3012_v13  ;;  %vm9066_vm1 = vcmp.ge.f32.partialorder %v9062_v34, 0.0  ;;  %vm2066_vm12 = vcmp.eq.s32.totalorder %v5435_v36, %v7513_v63  ;;  %vm2082_vm7 = vcmp.eq.s32.totalorder %v5442_v58, %v7513_v63 }
 0x2c3   : > { %v1241_v17 = vsel %vm5026_vm0, %v9053_v4, %v1225_v7  ;;  %v1226_v38 = vsel %vm9066_vm1, %v9065_v51, %v9064_v27  ;;  %v3013_v37 = vpack.c.bf16 %v2869_v24, %v2853_v62  ;;  %v9067_v4 = vld [vmem:[#allocation25_spill] sm:$0xff]  ;;  %vm9068_vm0 = vcmp.ge.f32.partialorder %v9064_v27, 0.0 }
 0x2c4   : > { %v1257_v42 = vsel %vm5005_vm13, %v1193_v53, %v1241_v17  ;;  %v1194_v8 = vsel %vm9068_vm0, %v9062_v34, %v1178_v39  ;;  %v1242_v53 = vsel %vm5083_vm6, %v9062_v34, %v1226_v38  ;;  %v2274_v44 = vsel %vm2066_vm12, %v7503_v18, 0.0  ;;  %v9071_v62 = vld [vmem:[#allocation29_spill] sm:$0xff] }
 0x2c5   : > { %v1385_v50 = vmul.f32 %v9067_v4, %v1257_v42  ;;  %v1258_v40 = vsel %vm5067_vm2, %v1194_v8, %v1242_v53  ;;  %v2290_v43 = vsel %vm2082_vm7, %v7503_v18, 0.0  ;;  %vm2466_vm13 = vcmp.eq.s32.totalorder %v5435_v36, %v7523_v55  ;;  %3458 = vmatpush.bf16.msrb.mxu3 %v3013_v37 }
 0x2c6   : > { %v1386_v24 = vmul.f32 %v9071_v62, %v1258_v40  ;;  %vm2482_vm14 = vcmp.eq.s32.totalorder %v5442_v58, %v7523_v55  ;;  %v2658_v33 = vsel %vm2466_vm13, %v7492_v16, 0.0  ;;  %vm2067_vm2 = vcmp.eq.s32.totalorder %v5435_v36, %v7585_v32 }
 0x2c7   : > { %v1401_v7 = vadd.f32 1.0, %v1385_v50  ;;  %v2674_v17 = vsel %vm2482_vm14, %v7492_v16, 0.0  ;;  %v2850_v34 = vadd.f32 %v2658_v33, %v2274_v44  ;;  %vm2083_vm6 = vcmp.eq.s32.totalorder %v5442_v58, %v7585_v32 }
 0x2c8   : > { %v1402_v29 = vadd.f32 1.0, %v1386_v24  ;;  %v2866_v42 = vadd.f32 %v2674_v17, %v2290_v43  ;;  %v2275_v27 = vsel %vm2067_vm2, %v7574_v45, 0.0  ;;  %v2291_v51 = vsel %vm2083_vm6, %v7574_v45, 0.0 }
 0x2c9   : > { %v1417_v39 = vmul.f32 0.5, %v1401_v7  ;;  %vm2467_vm4 = vcmp.eq.s32.totalorder %v5435_v36, %v7595_v21  ;;  %vm2483_vm3 = vcmp.eq.s32.totalorder %v5442_v58, %v7595_v21  ;;  %vm2036_vm10 = vcmp.eq.s32.totalorder %v5543_v52, %v7414_v0 }
 0x2ca   : > { %v1418_v37 = vmul.f32 0.5, %v1402_v29  ;;  %v3010_v4 = vpack.c.bf16 %v2866_v42, %v2850_v34  ;;  %v2659_v50 = vsel %vm2467_vm4, %v7565_v54, 0.0  ;;  %v2675_v8 = vsel %vm2483_vm3, %v7565_v54, 0.0 }
 0x2cb   : > { %v1481_v38 = vmul.f32 16.0, %v1417_v39  ;;  %v2851_v28 = vadd.f32 %v2659_v50, %v2275_v27  ;;  %vm2052_vm1 = vcmp.eq.s32.totalorder %v5546_v15, %v7414_v0  ;;  %v2244_v53 = vsel %vm2036_vm10, %v7407_v48, 0.0 }
 0x2cc   : > { %v1482_v13 = vmul.f32 16.0, %v1418_v37  ;;  %3386 = vmatpush.bf16.msrb.mxu0 %v3010_v4  ;;  %v2867_v58 = vadd.f32 %v2675_v8, %v2291_v51  ;;  %v2260_v40 = vsel %vm2052_vm1, %v7407_v48, 0.0  ;;  %vm2436_vm12 = vcmp.eq.s32.totalorder %v5543_v52, %v7432_v14  ;;  %v9072_v51 = vld [vmem:[#allocation22_spill] sm:$0xff]  ;;  %v9073_v37 = vld [vmem:[#allocation24_spill] sm:$0xff] }
 0x2cd   : > { %v4349_v36 = vadd.f32 -0.5, %v1481_v38  ;;  %vm2452_vm7 = vcmp.eq.s32.totalorder %v5546_v15, %v7432_v14  ;;  %vm2037_vm0 = vcmp.eq.s32.totalorder %v5543_v52, %v7475_v1  ;;  %vm2053_vm13 = vcmp.eq.s32.totalorder %v5546_v15, %v7475_v1 }
 0x2ce   : > { %v4350_v43 = vadd.f32 -0.5, %v1482_v13  ;;  %v3011_v7 = vpack.c.bf16 %v2867_v58, %v2851_v28  ;;  %v2628_v62 = vsel %vm2436_vm12, %v7393_v3, 0.0  ;;  %v2644_v24 = vsel %vm2452_vm7, %v7393_v3, 0.0  ;;  %v3102_v28 = vpop.f32.mrf.mxu0 }
 0x2cf   : > { %v1545_v44 = vfloor.f32 %v4349_v36  ;;  %v2820_v33 = vadd.f32 %v2628_v62, %v2244_v53  ;;  %v2245_v17 = vsel %vm2037_vm0, %v7471_v57, 0.0  ;;  %v2261_v34 = vsel %vm2053_vm13, %v7471_v57, 0.0 }
 0x2d0   : > { %v1546_v42 = vfloor.f32 %v4350_v43  ;;  %3410 = vmatpush.bf16.msrb.mxu1 %v3011_v7  ;;  %v2836_v27 = vadd.f32 %v2644_v24, %v2260_v40  ;;  %vm2437_vm14 = vcmp.eq.s32.totalorder %v5543_v52, %v7484_v56  ;;  %vm2453_vm2 = vcmp.eq.s32.totalorder %v5546_v15, %v7484_v56 }
 0x2d1   : > { %v1577_v39 = vsub.f32 %v4349_v36, %v1545_v44  ;;  %v4456_v29 = vcvt.f32.s32 %v1545_v44  ;;  %v1179_v38 = vsub.f32 0.0, %v9072_v51  ;;  %v9074_v4 = vsub.f32 0.0, %v9073_v37 }
 0x2d2   : > { %vm9075_vm6 = vcmp.ge.f32.partialorder %v9072_v51, 0.0  ;;  %v1578_v36 = vsub.f32 %v4350_v43, %v1546_v42  ;;  %v4458_v58 = vcvt.f32.s32 %v1546_v42  ;;  %v2996_v40 = vpack.c.bf16 %v2836_v27, %v2820_v33  ;;  %v3126_v43 = vpop.f32.mrf.mxu1 }
 0x2d3   : > { %v1227_v50 = vsel %vm9075_vm6, %v9074_v4, %v9073_v37  ;;  %vm1625_vm4 = vcmp.gt.s32.totalorder %v4456_v29, 0  ;;  %v1689_v8 = vadd.s32 1, %v4456_v29  ;;  %v3509_v53 = vsub.f32 1.0, %v1577_v39 }
 0x2d4   : > { %v1626_v13 = vsel %vm1625_vm4, %v4456_v29, 0  ;;  %v2629_v44 = vsel %vm2437_vm14, %v7452_v22, 0.0  ;;  %v3510_v7 = vsub.f32 1.0, %v1578_v36  ;;  %v2645_v62 = vsel %vm2453_vm2, %v7452_v22, 0.0  ;;  %3435 = vmatpush.bf16.msrb.mxu2 %v2996_v40 }
 0x2d5   : > { %vm1657_vm3 = vcmp.lt.s32.totalorder %v1626_v13, 15  ;;  %vm1705_vm10 = vcmp.gt.s32.totalorder %v1689_v8, 0  ;;  %vm1627_vm1 = vcmp.gt.s32.totalorder %v4458_v58, 0  ;;  %v1690_v25 = vadd.s32 1, %v4458_v58 }
 0x2d6   : > { %v1658_v24 = vsel %vm1657_vm3, %v1626_v13, 15  ;;  %v1706_v60 = vsel %vm1705_vm10, %v1689_v8, 0  ;;  %v1628_v4 = vsel %vm1627_vm1, %v4458_v58, 0  ;;  %v2821_v29 = vadd.f32 %v2629_v44, %v2245_v17 }
 0x2d7   : > { %vm1737_vm12 = vcmp.lt.s32.totalorder %v1706_v60, 15  ;;  %vm3477_vm7 = vcmp.eq.s32.totalorder %v5062_v20, %v1658_v24  ;;  %vm1659_vm0 = vcmp.lt.s32.totalorder %v1628_v4, 15  ;;  %vm1707_vm13 = vcmp.gt.s32.totalorder %v1690_v25, 0 }
 0x2d8   : > { %v1738_v42 = vsel %vm1737_vm12, %v1706_v60, 15  ;;  %v3525_v33 = vsel %vm3477_vm7, %v3509_v53, 0.0  ;;  %v1660_v27 = vsel %vm1659_vm0, %v1628_v4, 15  ;;  %v1708_v35 = vsel %vm1707_vm13, %v1690_v25, 0  ;;  %v9077_v4 = vld [vmem:[#allocation28_spill] sm:$0xff] }
 0x2d9   : > { %vm3557_vm14 = vcmp.eq.s32.totalorder %v5062_v20, %v1738_v42  ;;  %v2837_v26 = vadd.f32 %v2645_v62, %v2261_v34  ;;  %vm1739_vm2 = vcmp.lt.s32.totalorder %v1708_v35, 15  ;;  %vm3478_vm6 = vcmp.eq.s32.totalorder %v5062_v20, %v1660_v27  ;;  %v3104_v62 = vpop.f32.mrf.mxu0 }
 0x2da   : > { %v3589_v13 = vsel %vm3557_vm14, %v1577_v39, 0.0  ;;  %vm3493_vm4 = vcmp.eq.s32.totalorder %v5549_v41, %v1658_v24  ;;  %v1740_v58 = vsel %vm1739_vm2, %v1708_v35, 15  ;;  %v3526_v40 = vsel %vm3478_vm6, %v3510_v7, 0.0 }
 0x2db   : > { %v7765_v8 = vadd.f32 %v3589_v13, %v3525_v33  ;;  %v2997_v17 = vpack.c.bf16 %v2837_v26, %v2821_v29  ;;  %vm3558_vm3 = vcmp.eq.s32.totalorder %v5062_v20, %v1740_v58  ;;  %v3541_v60 = vsel %vm3493_vm4, %v3509_v53, 0.0  ;;  %v9079_v53 = vld [vmem:[#allocation26_spill] sm:$0xff]  ;;  %v7782_v33 = vpop.f32.mrf.mxu2 }
 0x2dc   : > { %vm3573_vm10 = vcmp.eq.s32.totalorder %v5549_v41, %v1738_v42  ;;  %vm9076_vm1 = vcmp.ge.f32.partialorder %v9073_v37, 0.0  ;;  %v3590_v44 = vsel %vm3558_vm3, %v1578_v36, 0.0  ;;  %vm9078_vm12 = vnez %v9077_v4 }
 0x2dd   : > { %v1195_v25 = vsel %vm9076_vm1, %v9072_v51, %v1179_v38  ;;  %v3653_v34 = vmul.f32 %v7765_v8, %v3102_v28  ;;  %3459 = vmatpush.bf16.msrb.mxu3 %v2997_v17  ;;  %v3605_v24 = vsel %vm3573_vm10, %v1577_v39, 0.0  ;;  %v1243_v35 = vsel %vm9078_vm12, %v9072_v51, %v1227_v50  ;;  %v9081_v38 = vld [vmem:[#allocation30_spill] sm:$0xff]  ;;  %v9082_v28 = vld [vmem:[#allocation32_spill] sm:$0xff]  ;;  %v9083_v17 = vld [vmem:[#allocation31_spill] sm:$0xff] }
 0x2de   : > { %v7776_v26 = vadd.f32 %v3590_v44, %v3526_v40  ;;  %v7778_v29 = vadd.f32 %v3605_v24, %v3541_v60  ;;  %vm9080_vm7 = vnez %v9079_v53  ;;  %v1180_v37 = vsub.f32 0.0, %v9081_v38  ;;  %v9087_v40 = vld [vmem:[#allocation34_spill] sm:$0xff]  ;;  %v9089_v44 = vld [vmem:[#allocation33_spill] sm:$0xff] }
 0x2df   : > { %v1259_v42 = vsel %vm9080_vm7, %v1195_v25, %v1243_v35  ;;  %v9084_v39 = vsub.f32 0.0, %v9083_v17  ;;  %vm9085_vm0 = vcmp.ge.f32.partialorder %v9081_v38, 0.0  ;;  %vm3494_vm13 = vcmp.eq.s32.totalorder %v5549_v41, %v1660_v27  ;;  %v3128_v35 = vpop.f32.mrf.mxu1 }
 0x2e0   : > { %v1387_v13 = vmul.f32 %v9082_v28, %v1259_v42  ;;  %vm3574_vm14 = vcmp.eq.s32.totalorder %v5549_v41, %v1740_v58  ;;  %v3669_v51 = vmul.f32 %v7778_v29, %v3104_v62  ;;  %vm9086_vm2 = vcmp.ge.f32.partialorder %v9083_v17, 0.0  ;;  %v9091_v28 = vld [vmem:[#allocation37_spill] sm:$0xff] }
 0x2e1   : > { %v1228_v4 = vsel %vm9085_vm0, %v9084_v39, %v9083_v17  ;;  %v1196_v50 = vsel %vm9086_vm2, %v9081_v38, %v1180_v37  ;;  %vm9088_vm6 = vnez %v9087_v40  ;;  %vm9090_vm4 = vnez %v9089_v44  ;;  %v7804_v39 = vpop.f32.mrf.mxu3 }
 0x2e2   : > { %v1244_v60 = vsel %vm9088_vm6, %v9081_v38, %v1228_v4  ;;  %v1403_v25 = vadd.f32 1.0, %v1387_v13  ;;  %v3542_v53 = vsel %vm3494_vm13, %v3510_v7, 0.0  ;;  %v3606_v42 = vsel %vm3574_vm14, %v1578_v36, 0.0 }
 0x2e3   : > { %v1260_v24 = vsel %vm9090_vm4, %v1196_v50, %v1244_v60  ;;  %v3654_v27 = vmul.f32 %v7776_v26, %v3126_v43  ;;  %v3685_v58 = vadd.f32 %v3669_v51, %v3653_v34  ;;  %v7806_v17 = vadd.f32 %v3606_v42, %v3542_v53 }
 0x2e4   : > { %v1388_v62 = vmul.f32 %v9091_v28, %v1260_v24  ;;  %v1419_v37 = vmul.f32 0.5, %v1403_v25  ;;  %vm2034_vm3 = vcmp.eq.s32.totalorder %v5543_v52, %v7513_v63  ;;  %vm2050_vm10 = vcmp.eq.s32.totalorder %v5546_v15, %v7513_v63  ;;  %v7823_v28 = vpop.f32.mrf.mxu2 }
 0x2e5   : > { %vm2434_vm1 = vcmp.eq.s32.totalorder %v5543_v52, %v7523_v55  ;;  %v3686_v36 = vrot.slane %v3685_v58, 4  ;;  %v3670_v43 = vmul.f32 %v7806_v17, %v3128_v35  ;;  %v2242_v34 = vsel %vm2034_vm3, %v7503_v18, 0.0 }
 0x2e6   : > { %v1404_v7 = vadd.f32 1.0, %v1388_v62  ;;  %v1483_v38 = vmul.f32 16.0, %v1419_v37  ;;  %v2258_v13 = vsel %vm2050_vm10, %v7503_v18, 0.0  ;;  %vm2450_vm12 = vcmp.eq.s32.totalorder %v5546_v15, %v7523_v55 }
 0x2e7   : > { %v2626_v4 = vsel %vm2434_vm1, %v7492_v16, 0.0  ;;  %v3687_v51 = vadd.f32 %v3686_v36, %v3685_v58  ;;  %v3692_v40 = vadd.f32 %v3670_v43, %v3654_v27  ;;  %v2642_v60 = vsel %vm2450_vm12, %v7492_v16, 0.0  ;;  %v7830_v43 = vpop.f32.mrf.mxu0  ;;  %v7844_v6 = vpop.f32.mrf.mxu1 }
 0x2e8   : > { %v1420_v50 = vmul.f32 0.5, %v1404_v7  ;;  %v4351_v25 = vadd.f32 -0.5, %v1483_v38  ;;  %v2818_v44 = vadd.f32 %v2626_v4, %v2242_v34  ;;  %v2834_v24 = vadd.f32 %v2642_v60, %v2258_v13 }
 0x2e9   : > { %vm2035_vm7 = vcmp.eq.s32.totalorder %v5543_v52, %v7585_v32  ;;  %v3688_v35 = vrot.slane %v3687_v51, 2  ;;  %v3693_v42 = vrot.slane %v3692_v40, 4  ;;  %vm2051_vm0 = vcmp.eq.s32.totalorder %v5546_v15, %v7585_v32  ;;  %v7839_v60 = vpop.f32.mrf.mxu3 }
 0x2ea   : > { %v1484_v53 = vmul.f32 16.0, %v1420_v50  ;;  %v1547_v62 = vfloor.f32 %v4351_v25  ;;  %v2994_v37 = vpack.c.bf16 %v2834_v24, %v2818_v44  ;;  %v2243_v27 = vsel %vm2035_vm7, %v7574_v45, 0.0 }
 0x2eb   : > { %v3689_v58 = vadd.f32 %v3688_v35, %v3687_v51  ;;  %v3694_v7 = vadd.f32 %v3693_v42, %v3692_v40  ;;  %vm2435_vm13 = vcmp.eq.s32.totalorder %v5543_v52, %v7595_v21  ;;  %vm2451_vm14 = vcmp.eq.s32.totalorder %v5546_v15, %v7595_v21 }
 0x2ec   : > { %v4352_v36 = vadd.f32 -0.5, %v1484_v53  ;;  %v7832_v34 = vsub.f32 %v4351_v25, %v1547_v62  ;;  %v4460_v38 = vcvt.f32.s32 %v1547_v62  ;;  %3387 = vmatpush.bf16.msrb.mxu0 %v2994_v37  ;;  %v2627_v13 = vsel %vm2435_vm13, %v7565_v54, 0.0 }
 0x2ed   : > { %v3695_v50 = vrot.slane %v3694_v7, 2  ;;  %v2259_v51 = vsel %vm2051_vm0, %v7574_v45, 0.0  ;;  %v2643_v40 = vsel %vm2451_vm14, %v7565_v54, 0.0  ;;  %v3690_v52 = vrot.slane %v3689_v58, 1 }
 0x2ee   : > { %v1548_v4 = vfloor.f32 %v4352_v36  ;;  %vm1629_vm2 = vcmp.gt.s32.totalorder %v4460_v38, 0  ;;  %v1691_v44 = vadd.s32 1, %v4460_v38  ;;  %vm3827_vm6 = vcmask 1040384  }
 0x2ef   : > { %v1630_v24 = vsel %vm1629_vm2, %v4460_v38, 0  ;;  %v2819_v15 = vadd.f32 %v2627_v13, %v2243_v27  ;;  %v3696_v42 = vadd.f32 %v3695_v50, %v3694_v7  ;;  %v2835_v62 = vadd.f32 %v2643_v40, %v2259_v51  ;;  %v7850_v7 = vpop.f32.mrf.mxu2 }
 0x2f0   : > { %v7842_v35 = vsub.f32 %v4352_v36, %v1548_v4  ;;  %v4462_v53 = vcvt.f32.s32 %v1548_v4  ;;  %vm1661_vm4 = vcmp.lt.s32.totalorder %v1630_v24, 15  ;;  %vm1709_vm3 = vcmp.gt.s32.totalorder %v1691_v44, 0 }
 0x2f1   : > { %v1662_v37 = vsel %vm1661_vm4, %v1630_v24, 15  ;;  %v1710_v2 = vsel %vm1709_vm3, %v1691_v44, 0  ;;  %v9092_v4 = vsub.f32 1.0, %v7832_v34  ;;  %v3697_v51 = vrot.slane %v3696_v42, 1  ;;  %v7855_v24 = vpop.f32.mrf.mxu0 }
 0x2f2   : > { %vm1631_vm10 = vcmp.gt.s32.totalorder %v4462_v53, 0  ;;  %v1692_v12 = vadd.s32 1, %v4462_v53  ;;  %vm1741_vm1 = vcmp.lt.s32.totalorder %v1710_v2, 15  ;;  %vm3479_vm12 = vcmp.eq.s32.totalorder %v5062_v20, %v1662_v37 }
 0x2f3   : > { %v1632_v25 = vsel %vm1631_vm10, %v4462_v53, 0  ;;  %v3512_v36 = vsub.f32 1.0, %v7842_v35  ;;  %v1742_v38 = vsel %vm1741_vm1, %v1710_v2, 15  ;;  %v3527_v27 = vsel %vm3479_vm12, %v9092_v4, 0.0 }
 0x2f4   : > { %vm1663_vm7 = vcmp.lt.s32.totalorder %v1632_v25, 15  ;;  %vm1711_vm0 = vcmp.gt.s32.totalorder %v1692_v12, 0  ;;  %vm3559_vm13 = vcmp.eq.s32.totalorder %v5062_v20, %v1742_v38  ;;  %v2995_v44 = vpack.c.bf16 %v2835_v62, %v2819_v15 }
 0x2f5   : > { %v1664_v13 = vsel %vm1663_vm7, %v1632_v25, 15  ;;  %v1712_v50 = vsel %vm1711_vm0, %v1692_v12, 0  ;;  %v3591_v40 = vsel %vm3559_vm13, %v7832_v34, 0.0  ;;  %v3691_v2 = vadd.f32 %v3690_v52, %v3689_v58  ;;  %v7866_v12 = vpop.f32.mrf.mxu3 }
 0x2f6   : > { %vm1743_vm14 = vcmp.lt.s32.totalorder %v1712_v50, 15  ;;  %vm3480_vm2 = vcmp.eq.s32.totalorder %v5062_v20, %v1664_v13  ;;  %v7857_v53 = vadd.f32 %v3591_v40, %v3527_v27  ;;  %v3698_v47 = vadd.f32 %v3697_v51, %v3696_v42  ;;  %3411 = vmatpush.bf16.msrb.mxu1 %v2995_v44 }
 0x2f7   : > { %v1744_v4 = vsel %vm1743_vm14, %v1712_v50, 15  ;;  %vm2004_vm3 = vcmp.eq.s32.totalorder %v5062_v20, %v7414_v0  ;;  %vm2020_vm10 = vcmp.eq.s32.totalorder %v5549_v41, %v7414_v0  ;;  %vm2404_vm1 = vcmp.eq.s32.totalorder %v5062_v20, %v7432_v14 }
 0x2f8   : > { %vm3560_vm4 = vcmp.eq.s32.totalorder %v5062_v20, %v1744_v4  ;;  %v3528_v25 = vsel %vm3480_vm2, %v3512_v36, 0.0  ;;  %v3813_v52 = vrot.slane %v3698_v47, 7  ;;  %v2212_v15 = vsel %vm2004_vm3, %v7407_v48, 0.0 }
 0x2f9   : > { %v3592_v58 = vsel %vm3560_vm4, %v7842_v35, 0.0  ;;  %v2228_v42 = vsel %vm2020_vm10, %v7407_v48, 0.0  ;;  %vm2420_vm12 = vcmp.eq.s32.totalorder %v5549_v41, %v7432_v14  ;;  %v2596_v62 = vsel %vm2404_vm1, %v7393_v3, 0.0  ;;  %v7885_v14 = vpop.f32.mrf.mxu1 }
 0x2fa   : > { %v7875_v0 = vsel %vm3827_vm6, %v3691_v2, %v3813_v52  ;;  %v2612_v27 = vsel %vm2420_vm12, %v7393_v3, 0.0  ;;  %v2788_v50 = vadd.f32 %v2596_v62, %v2212_v15  ;;  %vm2005_vm7 = vcmp.eq.s32.totalorder %v5062_v20, %v7475_v1 }
 0x2fb   : > { %v7880_v51 = vadd.f32 %v3592_v58, %v3528_v25  ;;  %v2804_v47 = vadd.f32 %v2612_v27, %v2228_v42  ;;  %vm2021_vm0 = vcmp.eq.s32.totalorder %v5549_v41, %v7475_v1  ;;  %v2213_v48 = vsel %vm2005_vm7, %v7471_v57, 0.0  ;;  %v7897_v25 = vpop.f32.mrf.mxu2 }
 0x2fc   : > { %v3655_v40 = vmul.f32 %v7857_v53, %v7782_v33  ;;  %v2229_v44 = vsel %vm2021_vm0, %v7471_v57, 0.0  ;;  %vm2405_vm13 = vcmp.eq.s32.totalorder %v5062_v20, %v7484_v56  ;;  %vm2421_vm14 = vcmp.eq.s32.totalorder %v5549_v41, %v7484_v56 }
 0x2fd   : > { %v2980_v3 = vpack.c.bf16 %v2804_v47, %v2788_v50  ;;  %v2597_v2 = vsel %vm2405_vm13, %v7452_v22, 0.0  ;;  %v2613_v1 = vsel %vm2421_vm14, %v7452_v22, 0.0  ;;  %vm3495_vm2 = vcmp.eq.s32.totalorder %v5549_v41, %v1662_v37  ;;  %v3112_v22 = vpop.f32.mrf.mxu0 }
 0x2fe   : > { %v2789_v58 = vadd.f32 %v2597_v2, %v2213_v48  ;;  %v2805_v52 = vadd.f32 %v2613_v1, %v2229_v44  ;;  %v9093_v33 = vsub.f32 1.0, %v7832_v34  ;;  %vm3575_vm4 = vcmp.eq.s32.totalorder %v5549_v41, %v1742_v38 }
 0x2ff   : > { %v3656_v15 = vmul.f32 %v7880_v51, %v7804_v39  ;;  %3436 = vmatpush.bf16.msrb.mxu2 %v2980_v3  ;;  %v3607_v56 = vsel %vm3575_vm4, %v7832_v34, 0.0  ;;  %vm3496_vm3 = vcmp.eq.s32.totalorder %v5549_v41, %v1664_v13  ;;  %vm3576_vm10 = vcmp.eq.s32.totalorder %v5549_v41, %v1744_v4  ;;  %v3181_v39 = vpop.f32.mrf.mxu3 }
 0x300   : > { %v3543_v57 = vsel %vm3495_vm2, %v9093_v33, 0.0  ;;  %v2981_v37 = vpack.c.bf16 %v2805_v52, %v2789_v58  ;;  %v3544_v62 = vsel %vm3496_vm3, %v3512_v36, 0.0  ;;  %v3608_v27 = vsel %vm3576_vm10, %v7842_v35, 0.0 }
 0x301   : > { %v7907_v42 = vadd.f32 %v3607_v56, %v3543_v57  ;;  %v3853_v38 = vmul.f32 %v7765_v8, %v7830_v43  ;;  %v7912_v50 = vadd.f32 %v3608_v27, %v3544_v62  ;;  %vm2002_vm1 = vcmp.eq.s32.totalorder %v5062_v20, %v7513_v63  ;;  %v4653_v43 = vld [vmem:[#allocation6] sm:$0xff] }
 0x302   : > { %vm2018_vm12 = vcmp.eq.s32.totalorder %v5549_v41, %v7513_v63  ;;  %3460 = vmatpush.bf16.msrb.mxu3 %v2981_v37  ;;  %v2210_v36 = vsel %vm2002_vm1, %v7503_v18, 0.0  ;;  %vm2402_vm7 = vcmp.eq.s32.totalorder %v5062_v20, %v7523_v55  ;;  %vm9094_vm0 = vcmask 785408  }
 0x303   : > { %v3671_v34 = vmul.f32 %v7907_v42, %v7823_v28  ;;  %v2226_v35 = vsel %vm2018_vm12, %v7503_v18, 0.0  ;;  %4435 = vmatmul.msk.bf16.vlgmr.msrb.gmra.mxu2 %vm9094_vm0, %v4653_v43  ;;  %v3672_v13 = vmul.f32 %v7912_v50, %v7839_v60  ;;  %vm2418_vm13 = vcmp.eq.s32.totalorder %v5549_v41, %v7523_v55  ;;  %vm9095_vm4 = vmmov %vm9094_vm0  ;;  %v3136_v55 = vpop.f32.mrf.mxu1  ;;  %v3160_v1 = vpop.f32.mrf.mxu2 }
 0x304   : > { %v2594_v63 = vsel %vm2402_vm7, %v7492_v16, 0.0  ;;  %v3854_v28 = vmul.f32 %v7776_v26, %v7844_v6  ;;  %v2610_v18 = vsel %vm2418_vm13, %v7492_v16, 0.0  ;;  %vm2003_vm14 = vcmp.eq.s32.totalorder %v5062_v20, %v7585_v32  ;;  %vm9096_vm1 = vmmov %vm9094_vm0 }
 0x305   : > { %v3699_v4 = vadd.f32 %v3671_v34, %v3655_v40  ;;  %v2786_v47 = vadd.f32 %v2594_v63, %v2210_v36  ;;  %v3706_v48 = vadd.f32 %v3672_v13, %v3656_v15  ;;  %v2802_v44 = vadd.f32 %v2610_v18, %v2226_v35  ;;  %4438 = vmatmul.msk.bf16.vlgmr.msrb.gmra.mxu3 %vm9095_vm4, %v4653_v43  ;;  %v3114_v37 = vpop.f32.mrf.mxu0  ;;  %vm9097_vm12 = vmmov %vm9094_vm0 }
 0x306   : > { %vm2019_vm2 = vcmp.eq.s32.totalorder %v5549_v41, %v7585_v32  ;;  %v2211_v60 = vsel %vm2003_vm14, %v7574_v45, 0.0  ;;  %vm2403_vm3 = vcmp.eq.s32.totalorder %v5062_v20, %v7595_v21  ;;  %vm2419_vm10 = vcmp.eq.s32.totalorder %v5549_v41, %v7595_v21  ;;  %vm9098_vm14 = vmmov %vm9094_vm0 }
 0x307   : > { %v3700_v3 = vrot.slane %v3699_v4, 4  ;;  %v2227_v6 = vsel %vm2019_vm2, %v7574_v45, 0.0  ;;  %v3707_v16 = vrot.slane %v3706_v48, 4  ;;  %v2978_v40 = vpack.c.bf16 %v2802_v44, %v2786_v47  ;;  %vm9102_vm4 = vmmov %vm9094_vm0 }
 0x308   : > { %v2595_v2 = vsel %vm2403_vm3, %v7565_v54, 0.0  ;;  %v2611_v32 = vsel %vm2419_vm10, %v7565_v54, 0.0  ;;  %v3869_v57 = vmul.f32 %v7778_v29, %v7855_v24  ;;  %v3855_v15 = vmul.f32 %v7857_v53, %v7850_v7  ;;  %v3184_v7 = vpop.f32.mrf.mxu3 }
 0x309   : > { %v3701_v58 = vadd.f32 %v3700_v3, %v3699_v4  ;;  %v2787_v52 = vadd.f32 %v2595_v2, %v2211_v60  ;;  %v2803_v33 = vadd.f32 %v2611_v32, %v2227_v6  ;;  %v3708_v45 = vadd.f32 %v3707_v16, %v3706_v48  ;;  %3388 = vmatpush.bf16.msrb.mxu0 %v2978_v40 }
 0x30a   : > { %v3856_v21 = vmul.f32 %v7880_v51, %v7866_v12  ;;  %v3870_v56 = vmul.f32 %v7806_v17, %v7885_v14  ;;  %v3885_v27 = vadd.f32 %v3869_v57, %v3853_v38  ;;  %v4047_v34 = vmul.f32 %v7765_v8, %v3112_v22  ;;  %v4654_v57 = vld [vmem:[#allocation6 + $0x8] sm:$0xff] }
 0x30b   : > { %v3702_v54 = vrot.slane %v3701_v58, 2  ;;  %v2979_v62 = vpack.c.bf16 %v2803_v33, %v2787_v52  ;;  %v3709_v36 = vrot.slane %v3708_v45, 2  ;;  %v3871_v24 = vmul.f32 %v7907_v42, %v7897_v25  ;;  %v3138_v60 = vpop.f32.mrf.mxu1  ;;  %v3162_v32 = vpop.f32.mrf.mxu2 }
 0x30c   : > { %v3892_v35 = vadd.f32 %v3870_v56, %v3854_v28  ;;  %v3872_v13 = vmul.f32 %v7912_v50, %v3181_v39  ;;  %4429 = vmatmul.msk.bf16.vlgmr.msrb.gmra.mxu0 %vm9096_vm1, %v4653_v43  ;;  %v3886_v12 = vrot.slane %v3885_v27, 4  ;;  %v4063_v14 = vmul.f32 %v7778_v29, %v3114_v37 }
 0x30d   : > { %v3703_v63 = vadd.f32 %v3702_v54, %v3701_v58  ;;  %3412 = vmatpush.bf16.msrb.mxu1 %v2979_v62  ;;  %v3710_v4 = vadd.f32 %v3709_v36, %v3708_v45  ;;  %v3899_v38 = vadd.f32 %v3871_v24, %v3855_v15  ;;  %vm3829_vm7 = vcmask 1042434  }
 0x30e   : > { %v3893_v18 = vrot.slane %v3892_v35, 4  ;;  %v3906_v47 = vadd.f32 %v3872_v13, %v3856_v21  ;;  %v3887_v22 = vadd.f32 %v3886_v12, %v3885_v27  ;;  %v4079_v28 = vadd.f32 %v4063_v14, %v4047_v34  ;;  %v9099_v12 = vld [vmem:[#allocation44_spill] sm:$0xff] }
 0x30f   : > { %v3704_v8 = vrot.slane %v3703_v63, 1  ;;  %v3711_v48 = vrot.slane %v3710_v4, 1  ;;  %v3900_v39 = vrot.slane %v3899_v38, 4  ;;  %v4048_v33 = vmul.f32 %v7776_v26, %v3136_v55 }
 0x310   : > { %4432 = vmatmul.msk.bf16.vlgmr.msrb.gmra.mxu1 %vm9097_vm12, %v4653_v43  ;;  %v3894_v25 = vadd.f32 %v3893_v18, %v3892_v35  ;;  %v3907_v44 = vrot.slane %v3906_v47, 4  ;;  %v3888_v6 = vrot.slane %v3887_v22, 2  ;;  %v4080_v2 = vrot.slane %v4079_v28, 4  ;;  %v3186_v55 = vpop.f32.mrf.mxu3  ;;  %vm9112_vm12 = vmmov %vm9094_vm0 }
 0x311   : > { %v3705_v3 = vadd.f32 %v3704_v8, %v3703_v63  ;;  %v3712_v16 = vadd.f32 %v3711_v48, %v3710_v4  ;;  %v3901_v40 = vadd.f32 %v3900_v39, %v3899_v38  ;;  %v4064_v43 = vmul.f32 %v7806_v17, %v3138_v60  ;;  %v7975_v8 = vpop.f32.mrf.mxu0 }
 0x312   : > { %v3908_v29 = vadd.f32 %v3907_v44, %v3906_v47  ;;  %v3895_v52 = vrot.slane %v3894_v25, 2  ;;  %vm8822_vm13 = vcmask 1041408   ;;  %v4065_v37 = vmul.f32 %v7907_v42, %v3162_v32  ;;  %v9105_v44 = vld [vmem:[#allocation52_spill] sm:$0xff] }
 0x313   : > { %v3814_v58 = vrot.slane %v3705_v3, 6  ;;  %4436 = vmatmul.msk.bf16.gmra.mxu2 %vm9094_vm0, %v4654_v57  ;;  %v3815_v45 = vrot.slane %v3712_v16, 5  ;;  %v3902_v15 = vrot.slane %v3901_v40, 2  ;;  %v4086_v56 = vadd.f32 %v4064_v43, %v4048_v33  ;;  %v9107_v16 = vld [vmem:[#allocation53_spill] sm:$0xff] }
 0x314   : > { %v3909_v21 = vrot.slane %v3908_v29, 2  ;;  %v3889_v62 = vadd.f32 %v3888_v6, %v3887_v22  ;;  %v4081_v27 = vadd.f32 %v4080_v2, %v4079_v28  ;;  %v4049_v26 = vmul.f32 %v7857_v53, %v3160_v1  ;;  %v9100_v22 = vld [vmem:[#allocation47_spill] sm:$0xff] }
 0x315   : > { %v3830_v54 = vsel %vm3829_vm7, %v3814_v58, %v3815_v45  ;;  %4439 = vmatmul.msk.bf16.gmra.mxu3 %vm9098_vm14, %v4654_v57  ;;  %v3896_v17 = vadd.f32 %v3895_v52, %v3894_v25  ;;  %v3903_v36 = vadd.f32 %v3902_v15, %v3901_v40  ;;  %v4087_v35 = vrot.slane %v4086_v56, 4  ;;  %v9110_v52 = vld [vmem:[#allocation49_spill] sm:$0xff]  ;;  %v9113_v45 = vld [vmem:[#allocation54_spill] sm:$0xff] }
 0x316   : > { %v7970_v34 = vsel %vm8822_vm13, %v7875_v0, %v3830_v54  ;;  %v3910_v24 = vadd.f32 %v3909_v21, %v3908_v29  ;;  %v4093_v13 = vadd.f32 %v4065_v37, %v4049_v26  ;;  %v4066_v42 = vmul.f32 %v7912_v50, %v3186_v55  ;;  %v9117_v26 = vld [vmem:[#allocation55_spill] sm:$0xff]  ;;  %v9119_v55 = vld [vmem:[#allocation38_spill] sm:$0xff] }
 0x317   : > { %v4088_v63 = vadd.f32 %v4087_v35, %v4086_v56  ;;  %v1181_v14 = vsub.f32 0.0, %v9099_v12  ;;  %v3890_v4 = vrot.slane %v3889_v62, 1  ;;  %v3897_v38 = vrot.slane %v3896_v17, 1  ;;  %v9115_v56 = vld [vmem:[#allocation56_spill] sm:$0xff] }
 0x318   : > { %v4094_v18 = vrot.slane %v4093_v13, 4  ;;  %v3904_v47 = vrot.slane %v3903_v36, 1  ;;  %v4082_v53 = vrot.slane %v4081_v27, 2  ;;  %v4050_v1 = vmul.f32 %v7880_v51, %v3184_v7 }
 0x319   : > { %v3911_v0 = vrot.slane %v3910_v24, 1  ;;  %vm9101_vm2 = vcmp.ge.f32.partialorder %v9100_v22, 0.0  ;;  %v4089_v48 = vrot.slane %v4088_v63, 2  ;;  %v9103_v25 = vsub.f32 0.0, %v9100_v22 }
 0x31a   : > { %v1197_v28 = vsel %vm9101_vm2, %v9099_v12, %v1181_v14  ;;  %v4100_v50 = vadd.f32 %v4066_v42, %v4050_v1  ;;  %vm9104_vm3 = vcmp.ge.f32.partialorder %v9099_v12, 0.0  ;;  %v1182_v60 = vsub.f32 0.0, %v9105_v44 }
 0x31b   : > { %v1229_v39 = vsel %vm9104_vm3, %v9103_v25, %v9100_v22  ;;  %v3891_v51 = vadd.f32 %v3890_v4, %v3889_v62  ;;  %v4095_v7 = vadd.f32 %v4094_v18, %v4093_v13  ;;  %v9108_v40 = vsub.f32 0.0, %v9107_v16  ;;  %v9121_v13 = vld [vmem:[#allocation39_spill] sm:$0xff]  ;;  %v4655_v18 = vld [vmem:[#allocation6 + $0x10] sm:$0xff]  ;;  %v9127_v22 = vld [vmem:[#allocation40_spill] sm:$0xff] }
 0x31c   : > { %4430 = vmatmul.msk.bf16.gmra.mxu0 %vm9102_vm4, %v4654_v57  ;;  %v1245_v6 = vsel %vm5887_vm15, %v9099_v12, %v1229_v39  ;;  %vm9109_vm10 = vcmp.ge.f32.partialorder %v9105_v44, 0.0  ;;  %v3898_v2 = vadd.f32 %v3897_v38, %v3896_v17  ;;  %v3905_v32 = vadd.f32 %v3904_v47, %v3903_v36  ;;  %v9125_v38 = vld [vmem:[#allocation41_spill] sm:$0xff]  ;;  %v8023_v39 = vpop.f32.mrf.mxu1 }
 0x31d   : > { %v1230_v29 = vsel %vm9109_vm10, %v9108_v40, %v9107_v16  ;;  %v4083_v58 = vadd.f32 %v4082_v53, %v4081_v27  ;;  %vm9111_vm1 = vnez %v9110_v52  ;;  %v3912_v43 = vadd.f32 %v3911_v0, %v3910_v24  ;;  %v9132_v52 = vld [vmem:[#allocation43_spill] sm:$0xff] }
 0x31e   : > { %v1261_v33 = vsel %vm9111_vm1, %v1197_v28, %v1245_v6  ;;  %vm9114_vm15 = vcmp.ge.f32.partialorder %v9107_v16, 0.0  ;;  %vm9116_vm0 = vnez %v9115_v56  ;;  %v4090_v54 = vadd.f32 %v4089_v48, %v4088_v63  ;;  %v9130_v6 = vld [vmem:[#allocation42_spill] sm:$0xff] }
 0x31f   : > { %v1389_v15 = vmul.f32 %v9113_v45, %v1261_v33  ;;  %v1198_v21 = vsel %vm9114_vm15, %v9105_v44, %v1182_v60  ;;  %v1246_v37 = vsel %vm9116_vm0, %v9105_v44, %v1230_v29  ;;  %v4101_v62 = vrot.slane %v4100_v50, 4  ;;  %v8025_v44 = vpop.f32.mrf.mxu0  ;;  %v9129_v60 = vld [vmem:[#allocation46_spill] sm:$0xff] }
 0x320   : > { %4433 = vmatmul.msk.bf16.gmra.mxu1 %vm9112_vm12, %v4654_v57  ;;  %vm9118_vm14 = vnez %v9117_v26  ;;  %v1183_v17 = vsub.f32 0.0, %v9119_v55  ;;  %v4096_v36 = vrot.slane %v4095_v7, 2  ;;  %v9120_v57 = vld [vmem:[#allocation57_spill] sm:$0xff]  ;;  %v9122_v42 = vsub.f32 0.0, %v9121_v13  ;;  %vm9131_vm12 = vmmov %vm9102_vm4 }
 0x321   : > { %v1262_v27 = vsel %vm9118_vm14, %v1198_v21, %v1246_v37  ;;  %v1405_v35 = vadd.f32 1.0, %v1389_v15  ;;  %vm9123_vm2 = vcmp.ge.f32.partialorder %v9119_v55, 0.0  ;;  %v4014_v14 = vrot.slane %v3905_v32, 6  ;;  %v8035_v15 = vpop.f32.mrf.mxu2  ;;  %v8043_v37 = vpop.f32.mrf.mxu3 }
 0x322   : > { %v1390_v24 = vmul.f32 %v9120_v57, %v1262_v27  ;;  %v1231_v12 = vsel %vm9123_vm2, %v9122_v42, %v9121_v13  ;;  %v4084_v4 = vrot.slane %v4083_v58, 1  ;;  %vm9124_vm3 = vcmp.ge.f32.partialorder %v9121_v13, 0.0  ;;  %v9140_v57 = vld [vmem:[#allocation51_spill] sm:$0xff] }
 0x323   : > { %4437 = vmatmul.msk.bf16.gmra.mxu2 %vm9102_vm4, %v4655_v18  ;;  %v1199_v63 = vsel %vm9124_vm3, %v9119_v55, %v1183_v17  ;;  %vm9126_vm10 = vnez %v9125_v38  ;;  %v4015_v53 = vrot.slane %v3912_v43, 5  ;;  %v1421_v1 = vmul.f32 0.5, %v1405_v35 }
 0x324   : > { %v1247_v47 = vsel %vm9126_vm10, %v9119_v55, %v1231_v12  ;;  %v1406_v0 = vadd.f32 1.0, %v1390_v24  ;;  %vm9128_vm1 = vnez %v9127_v22  ;;  %v4091_v48 = vrot.slane %v4090_v54, 1  ;;  %v9138_v55 = vld [vmem:[#allocation45_spill] sm:$0xff] }
 0x325   : > { %v1263_v28 = vsel %vm9128_vm1, %v1199_v63, %v1247_v47  ;;  %v4102_v25 = vadd.f32 %v4101_v62, %v4100_v50  ;;  %v1184_v16 = vsub.f32 0.0, %v9130_v6  ;;  %v4097_v40 = vadd.f32 %v4096_v36, %v4095_v7  ;;  %4440 = vmatmul.msk.bf16.gmra.mxu3 %vm9131_vm12, %v4655_v18  ;;  %v9136_v7 = vld [vmem:[#allocation48_spill] sm:$0xff]  ;;  %vm9141_vm12 = vmmov %vm9102_vm4 }
 0x326   : > { %v1391_v3 = vmul.f32 %v9129_v60, %v1263_v28  ;;  %v1485_v29 = vmul.f32 16.0, %v1421_v1  ;;  %v1422_v32 = vmul.f32 0.5, %v1406_v0  ;;  %v9133_v33 = vsub.f32 0.0, %v9132_v52 }
 0x327   : > { %vm9134_vm15 = vcmp.ge.f32.partialorder %v9130_v6, 0.0  ;;  %v4013_v50 = vrot.slane %v3898_v2, 7  ;;  %vm9135_vm0 = vcmp.ge.f32.partialorder %v9132_v52, 0.0  ;;  %vm9137_vm14 = vnez %v9136_v7 }
 0x328   : > { %v1232_v43 = vsel %vm9134_vm15, %v9133_v33, %v9132_v52  ;;  %v1407_v45 = vadd.f32 1.0, %v1391_v3  ;;  %v1200_v21 = vsel %vm9135_vm0, %v9130_v6, %v1184_v16  ;;  %v4028_v62 = vsel %vm3829_vm7, %v4014_v14, %v4015_v53  ;;  %v8067_v52 = vpop.f32.mrf.mxu0 }
 0x329   : > { %v1248_v56 = vsel %vm9137_vm14, %v9130_v6, %v1232_v43  ;;  %v4353_v26 = vadd.f32 -0.5, %v1485_v29  ;;  %v1486_v27 = vmul.f32 16.0, %v1422_v32  ;;  %vm9139_vm2 = vnez %v9138_v55  ;;  %v8065_v32 = vpop.f32.mrf.mxu1 }
 0x32a   : > { %v1264_v2 = vsel %vm9139_vm2, %v1200_v21, %v1248_v56  ;;  %v8048_v17 = vadd.f32 %v4091_v48, %v4090_v54  ;;  %v4103_v36 = vrot.slane %v4102_v25, 2  ;;  %v1423_v35 = vmul.f32 0.5, %v1407_v45  ;;  %v8071_v45 = vpop.f32.mrf.mxu2  ;;  %v8073_v21 = vpop.f32.mrf.mxu3 }
 0x32b   : > { %v1392_v24 = vmul.f32 %v9140_v57, %v1264_v2  ;;  %v4098_v13 = vrot.slane %v4097_v40, 1  ;;  %v1549_v42 = vfloor.f32 %v4353_v26  ;;  %v4354_v12 = vadd.f32 -0.5, %v1486_v27 }
 0x32c   : > { %v4027_v63 = vsel %vm3827_vm6, %v3891_v51, %v4013_v50  ;;  %v8052_v38 = vadd.f32 %v4084_v4, %v4083_v58  ;;  %v1487_v47 = vmul.f32 16.0, %v1423_v35  ;;  %v4207_v22 = vrot.slane %v8048_v17, 7  ;;  %4431 = vmatmul.msk.bf16.gmra.mxu0 %vm9102_vm4, %v4655_v18 }
 0x32d   : > { %v1408_v14 = vadd.f32 1.0, %v1392_v24  ;;  %v8055_v53 = vsel %vm8822_vm13, %v4027_v63, %v4028_v62  ;;  %v1581_v1 = vsub.f32 %v4353_v26, %v1549_v42  ;;  %v4464_v0 = vcvt.f32.s32 %v1549_v42 }
 0x32e   : > { %v1550_v54 = vfloor.f32 %v4354_v12  ;;  %v8058_v28 = vadd.f32 %v4103_v36, %v4102_v25  ;;  %v4355_v48 = vadd.f32 -0.5, %v1487_v47  ;;  %v8061_v3 = vadd.f32 %v4098_v13, %v4097_v40 }
 0x32f   : > { %v1424_v60 = vmul.f32 0.5, %v1408_v14  ;;  %vm1633_vm3 = vcmp.gt.s32.totalorder %v4464_v0, 0  ;;  %v1693_v51 = vadd.s32 1, %v4464_v0  ;;  %v3513_v6 = vsub.f32 1.0, %v1581_v1 }
 0x330   : > { %v8063_v58 = vsub.f32 %v4354_v12, %v1550_v54  ;;  %v1634_v4 = vsel %vm1633_vm3, %v4464_v0, 0  ;;  %v4466_v16 = vcvt.f32.s32 %v1550_v54  ;;  %v1551_v29 = vfloor.f32 %v4355_v48  ;;  %4434 = vmatmul.msk.bf16.gmra.mxu1 %vm9141_vm12, %v4655_v18 }
 0x331   : > { %vm1665_vm10 = vcmp.lt.s32.totalorder %v1634_v4, 15  ;;  %vm1713_vm1 = vcmp.gt.s32.totalorder %v1693_v51, 0  ;;  %v1488_v40 = vmul.f32 16.0, %v1424_v60  ;;  %v4105_v12 = vrot.slane %v8058_v28, 1  ;;  %v8096_v60 = vpop.f32.mrf.mxu1 }
 0x332   : > { %v3514_v25 = vsub.f32 1.0, %v8063_v58  ;;  %v1666_v33 = vsel %vm1665_vm10, %v1634_v4, 15  ;;  %v1714_v43 = vsel %vm1713_vm1, %v1693_v51, 0  ;;  %vm1635_vm15 = vcmp.gt.s32.totalorder %v4466_v16, 0 }
 0x333   : > { %v1694_v50 = vadd.s32 1, %v4466_v16  ;;  %vm1745_vm0 = vcmp.lt.s32.totalorder %v1714_v43, 15  ;;  %vm3481_vm14 = vcmp.eq.s32.totalorder %v5062_v20, %v1666_v33  ;;  %v1636_v7 = vsel %vm1635_vm15, %v4466_v16, 0 }
 0x334   : > { %vm3497_vm2 = vcmp.eq.s32.totalorder %v5549_v41, %v1666_v33  ;;  %v1746_v56 = vsel %vm1745_vm0, %v1714_v43, 15  ;;  %v3529_v62 = vsel %vm3481_vm14, %v3513_v6, 0.0  ;;  %vm1667_vm4 = vcmp.lt.s32.totalorder %v1636_v7, 15 }
 0x335   : > { %vm1715_vm3 = vcmp.gt.s32.totalorder %v1694_v50, 0  ;;  %vm3561_vm12 = vcmp.eq.s32.totalorder %v5062_v20, %v1746_v56  ;;  %v1668_v18 = vsel %vm1667_vm4, %v1636_v7, 15  ;;  %v3545_v27 = vsel %vm3497_vm2, %v3513_v6, 0.0 }
 0x336   : > { %v1716_v26 = vsel %vm1715_vm3, %v1694_v50, 0  ;;  %v3593_v55 = vsel %vm3561_vm12, %v1581_v1, 0.0  ;;  %vm3482_vm1 = vcmp.eq.s32.totalorder %v5062_v20, %v1668_v18  ;;  %vm3577_vm13 = vcmp.eq.s32.totalorder %v5549_v41, %v1746_v56 }
 0x337   : > { %vm1747_vm10 = vcmp.lt.s32.totalorder %v1716_v26, 15  ;;  %v8080_v2 = vadd.f32 %v3593_v55, %v3529_v62  ;;  %v3530_v35 = vsel %vm3482_vm1, %v3514_v25, 0.0  ;;  %v3609_v57 = vsel %vm3577_vm13, %v1581_v1, 0.0 }
 0x338   : > { %v1748_v36 = vsel %vm1747_vm10, %v1716_v26, 15  ;;  %v8085_v24 = vadd.f32 %v3609_v57, %v3545_v27  ;;  %v8087_v13 = vsub.f32 %v4355_v48, %v1551_v29  ;;  %v4468_v42 = vcvt.f32.s32 %v1551_v29  ;;  %v8098_v48 = vpop.f32.mrf.mxu0  ;;  %v8104_v29 = vpop.f32.mrf.mxu2 }
 0x339   : > { %vm3562_vm15 = vcmp.eq.s32.totalorder %v5062_v20, %v1748_v36  ;;  %v3657_v63 = vmul.f32 %v8080_v2, %v7975_v8  ;;  %v4356_v14 = vadd.f32 -0.5, %v1488_v40  ;;  %v4208_v0 = vrot.slane %v8061_v3, 6 }
 0x33a   : > { %v3594_v47 = vsel %vm3562_vm15, %v8063_v58, 0.0  ;;  %v3673_v1 = vmul.f32 %v8085_v24, %v8025_v44  ;;  %vm1637_vm13 = vcmp.gt.s32.totalorder %v4468_v42, 0  ;;  %v1695_v54 = vadd.s32 1, %v4468_v42  ;;  %v8106_v44 = vpop.f32.mrf.mxu3 }
 0x33b   : > { %v8100_v51 = vadd.f32 %v3594_v47, %v3530_v35  ;;  %v1638_v4 = vsel %vm1637_vm13, %v4468_v42, 0  ;;  %v1552_v6 = vfloor.f32 %v4356_v14  ;;  %vm3498_vm0 = vcmp.eq.s32.totalorder %v5549_v41, %v1668_v18 }
 0x33c   : > { %v3713_v8 = vadd.f32 %v3673_v1, %v3657_v63  ;;  %vm1669_vm14 = vcmp.lt.s32.totalorder %v1638_v4, 15  ;;  %vm1717_vm2 = vcmp.gt.s32.totalorder %v1695_v54, 0  ;;  %v3515_v16 = vsub.f32 1.0, %v8087_v13 }
 0x33d   : > { %v1670_v40 = vsel %vm1669_vm14, %v1638_v4, 15  ;;  %v1718_v33 = vsel %vm1717_vm2, %v1695_v54, 0  ;;  %v1584_v43 = vsub.f32 %v4356_v14, %v1552_v6  ;;  %v4470_v50 = vcvt.f32.s32 %v1552_v6 }
 0x33e   : > { %v3714_v7 = vrot.slane %v3713_v8, 4  ;;  %vm1749_vm4 = vcmp.lt.s32.totalorder %v1718_v33, 15  ;;  %vm3483_vm3 = vcmp.eq.s32.totalorder %v5062_v20, %v1670_v40  ;;  %vm3578_vm12 = vcmp.eq.s32.totalorder %v5549_v41, %v1748_v36 }
 0x33f   : > { %v1750_v56 = vsel %vm1749_vm4, %v1718_v33, 15  ;;  %vm1639_vm10 = vcmp.gt.s32.totalorder %v4470_v50, 0  ;;  %v1696_v62 = vadd.s32 1, %v4470_v50  ;;  %v3546_v26 = vsel %vm3498_vm0, %v3514_v25, 0.0 }
 0x340   : > { %v3715_v27 = vadd.f32 %v3714_v7, %v3713_v8  ;;  %vm3563_vm1 = vcmp.eq.s32.totalorder %v5062_v20, %v1750_v56  ;;  %v1640_v55 = vsel %vm1639_vm10, %v4470_v50, 0  ;;  %v3516_v35 = vsub.f32 1.0, %v1584_v43  ;;  %v3208_v8 = vpop.f32.mrf.mxu0 }
 0x341   : > { %v3531_v57 = vsel %vm3483_vm3, %v3515_v16, 0.0  ;;  %vm1671_vm15 = vcmp.lt.s32.totalorder %v1640_v55, 15  ;;  %vm1719_vm13 = vcmp.gt.s32.totalorder %v1696_v62, 0  ;;  %v3610_v42 = vsel %vm3578_vm12, %v8063_v58, 0.0  ;;  %v3229_v58 = vpop.f32.mrf.mxu1 }
 0x342   : > { %v3716_v63 = vrot.slane %v3715_v27, 2  ;;  %v3595_v36 = vsel %vm3563_vm1, %v8087_v13, 0.0  ;;  %v1672_v47 = vsel %vm1671_vm15, %v1640_v55, 15  ;;  %v1720_v14 = vsel %vm1719_vm13, %v1696_v62, 0  ;;  %v3277_v62 = vpop.f32.mrf.mxu3 }
 0x343   : > { %v8118_v1 = vadd.f32 %v4105_v12, %v8058_v28  ;;  %vm1751_vm14 = vcmp.lt.s32.totalorder %v1720_v14, 15  ;;  %vm3484_vm0 = vcmp.eq.s32.totalorder %v5062_v20, %v1672_v47  ;;  %v8121_v25 = vadd.f32 %v3610_v42, %v3546_v26 }
 0x344   : > { %v3658_v18 = vmul.f32 %v8100_v51, %v8023_v39  ;;  %v3717_v54 = vadd.f32 %v3716_v63, %v3715_v27  ;;  %v1752_v4 = vsel %vm1751_vm14, %v1720_v14, 15  ;;  %v3532_v6 = vsel %vm3484_vm0, %v3516_v35, 0.0  ;;  %v3253_v39 = vpop.f32.mrf.mxu2 }
 0x345   : > { %v8125_v33 = vadd.f32 %v3595_v36, %v3531_v57  ;;  %vm3564_vm2 = vcmp.eq.s32.totalorder %v5062_v20, %v1752_v4  ;;  %v3674_v28 = vmul.f32 %v8121_v25, %v8065_v32  ;;  %vm3499_vm4 = vcmp.eq.s32.totalorder %v5549_v41, %v1670_v40 }
 0x346   : > { %v3718_v12 = vrot.slane %v3717_v54, 1  ;;  %v3596_v50 = vsel %vm3564_vm2, %v1584_v43, 0.0  ;;  %v3547_v7 = vsel %vm3499_vm4, %v3515_v16, 0.0  ;;  %vm3579_vm3 = vcmp.eq.s32.totalorder %v5549_v41, %v1750_v56 }
 0x347   : > { %v8132_v26 = vadd.f32 %v3596_v50, %v3532_v6  ;;  %v3720_v27 = vadd.f32 %v3674_v28, %v3658_v18  ;;  %v3611_v55 = vsel %vm3579_vm3, %v8087_v13, 0.0  ;;  %vm3500_vm12 = vcmp.eq.s32.totalorder %v5549_v41, %v1672_v47 }
 0x348   : > { %v8136_v57 = vadd.f32 %v3718_v12, %v3717_v54  ;;  %v8138_v42 = vadd.f32 %v3611_v55, %v3547_v7  ;;  %v3548_v32 = vsel %vm3500_vm12, %v3516_v35, 0.0  ;;  %vm3580_vm10 = vcmp.eq.s32.totalorder %v5549_v41, %v1752_v4 }
 0x349   : > { %v4209_v16 = vrot.slane %v8118_v1, 5  ;;  %v3721_v40 = vrot.slane %v3720_v27, 4  ;;  %v3857_v56 = vmul.f32 %v8080_v2, %v8067_v52  ;;  %v3612_v63 = vsel %vm3580_vm10, %v1584_v43, 0.0 }
 0x34a   : > { %v3659_v36 = vmul.f32 %v8125_v33, %v8035_v15  ;;  %v3660_v13 = vmul.f32 %v8132_v26, %v8043_v37  ;;  %v3675_v47 = vmul.f32 %v8138_v42, %v8071_v45  ;;  %v8150_v14 = vadd.f32 %v3612_v63, %v3548_v32 }
 0x34b   : > { %v3816_v35 = vrot.slane %v8136_v57, 4  ;;  %v3722_v18 = vadd.f32 %v3721_v40, %v3720_v27  ;;  %v3858_v54 = vmul.f32 %v8100_v51, %v8096_v60  ;;  %v3873_v52 = vmul.f32 %v8085_v24, %v8098_v48  ;;  %v3232_v27 = vpop.f32.mrf.mxu1 }
 0x34c   : > { %vm3833_vm1 = vcmask 1044484   ;;  %v3727_v43 = vadd.f32 %v3675_v47, %v3659_v36  ;;  %v3676_v15 = vmul.f32 %v8150_v14, %v8073_v21  ;;  %v3859_v37 = vmul.f32 %v8125_v33, %v8104_v29  ;;  %v3210_v21 = vpop.f32.mrf.mxu0  ;;  %v3256_v63 = vpop.f32.mrf.mxu2 }
 0x34d   : > { %v3860_v45 = vmul.f32 %v8132_v26, %v8106_v44  ;;  %v3723_v4 = vrot.slane %v3722_v18, 2  ;;  %v3913_v6 = vadd.f32 %v3873_v52, %v3857_v56  ;;  %v3874_v28 = vmul.f32 %v8121_v25, %v3229_v58 }
 0x34e   : > { %v4051_v60 = vmul.f32 %v8080_v2, %v3208_v8  ;;  %v3728_v12 = vrot.slane %v3727_v43, 4  ;;  %v3734_v50 = vadd.f32 %v3676_v15, %v3660_v13  ;;  %v3875_v48 = vmul.f32 %v8138_v42, %v3253_v39  ;;  %v3280_v2 = vpop.f32.mrf.mxu3 }
 0x34f   : > { %v3876_v7 = vmul.f32 %v8150_v14, %v3277_v62  ;;  %v3724_v55 = vadd.f32 %v3723_v4, %v3722_v18  ;;  %v3914_v57 = vrot.slane %v3913_v6, 4  ;;  %v3920_v29 = vadd.f32 %v3874_v28, %v3858_v54 }
 0x350   : > { %v8168_v32 = vmul.f32 %v8100_v51, %v3232_v27  ;;  %v3729_v44 = vadd.f32 %v3728_v12, %v3727_v43  ;;  %v3735_v40 = vrot.slane %v3734_v50, 4  ;;  %v3927_v56 = vadd.f32 %v3875_v48, %v3859_v37 }
 0x351   : > { %v3934_v58 = vadd.f32 %v3876_v7, %v3860_v45  ;;  %v3725_v8 = vrot.slane %v3724_v55, 1  ;;  %v3915_v36 = vadd.f32 %v3914_v57, %v3913_v6  ;;  %v3921_v13 = vrot.slane %v3920_v29, 4 }
 0x352   : > { %v4067_v39 = vmul.f32 %v8085_v24, %v3210_v21  ;;  %v3730_v62 = vrot.slane %v3729_v44, 2  ;;  %v3736_v47 = vadd.f32 %v3735_v40, %v3734_v50  ;;  %v3928_v52 = vrot.slane %v3927_v56, 4 }
 0x353   : > { %v3935_v18 = vrot.slane %v3934_v58, 4  ;;  %v3726_v15 = vadd.f32 %v3725_v8, %v3724_v55  ;;  %vm3835_vm15 = vcmask 1046534   ;;  %v3916_v54 = vrot.slane %v3915_v36, 2 }
 0x354   : > { %v3922_v51 = vadd.f32 %v3921_v13, %v3920_v29  ;;  %v4107_v4 = vadd.f32 %v4067_v39, %v4051_v60  ;;  %v3731_v43 = vadd.f32 %v3730_v62, %v3729_v44  ;;  %v3737_v28 = vrot.slane %v3736_v47, 2  ;;  %v3234_v62 = vpop.f32.mrf.mxu1 }
 0x355   : > { %vm8824_vm13 = vcmask 1045508   ;;  %v3929_v37 = vadd.f32 %v3928_v52, %v3927_v56  ;;  %v3936_v45 = vadd.f32 %v3935_v18, %v3934_v58  ;;  %v3817_v12 = vrot.slane %v3726_v15, 3 }
 0x356   : > { %vm8823_vm14 = vcmask 1043456   ;;  %v3917_v6 = vadd.f32 %v3916_v54, %v3915_v36  ;;  %v3923_v48 = vrot.slane %v3922_v51, 2  ;;  %v4108_v24 = vrot.slane %v4107_v4, 4  ;;  %v3282_v54 = vpop.f32.mrf.mxu3 }
 0x357   : > { %v3732_v7 = vrot.slane %v3731_v43, 1  ;;  %v3738_v50 = vadd.f32 %v3737_v28, %v3736_v47  ;;  %v3930_v27 = vrot.slane %v3929_v37, 2  ;;  %v3937_v21 = vrot.slane %v3936_v45, 2 }
 0x358   : > { %v3834_v55 = vsel %vm3833_vm1, %v3816_v35, %v3817_v12  ;;  %v3918_v57 = vrot.slane %v3917_v6, 1  ;;  %v3924_v29 = vadd.f32 %v3923_v48, %v3922_v51  ;;  %v4109_v60 = vadd.f32 %v4108_v24, %v4107_v4  ;;  %v3258_v35 = vpop.f32.mrf.mxu2 }
 0x359   : > { %v3733_v44 = vadd.f32 %v3732_v7, %v3731_v43  ;;  %v3739_v40 = vrot.slane %v3738_v50, 1  ;;  %v3931_v56 = vadd.f32 %v3930_v27, %v3929_v37  ;;  %v3938_v58 = vadd.f32 %v3937_v21, %v3936_v45 }
 0x35a   : > { %v3919_v8 = vadd.f32 %v3918_v57, %v3917_v6  ;;  %v3925_v13 = vrot.slane %v3924_v29, 1  ;;  %v4110_v36 = vrot.slane %v4109_v60, 2  ;;  %v4053_v39 = vmul.f32 %v8125_v33, %v3256_v63 }
 0x35b   : > { %v3818_v47 = vrot.slane %v3733_v44, 2  ;;  %v3740_v52 = vadd.f32 %v3739_v40, %v3738_v50  ;;  %v3932_v18 = vrot.slane %v3931_v56, 1  ;;  %v3939_v15 = vrot.slane %v3938_v58, 1  ;;  %v9143_v40 = vld [vmem:[#allocation64_spill] sm:$0xff] }
 0x35c   : > { %v4016_v51 = vrot.slane %v3919_v8, 4  ;;  %v3926_v4 = vadd.f32 %v3925_v13, %v3924_v29  ;;  %v4111_v43 = vadd.f32 %v4110_v36, %v4109_v60  ;;  %v4054_v28 = vmul.f32 %v8132_v26, %v3280_v2  ;;  %v9171_v36 = vld [vmem:[#allocation59_spill] sm:$0xff] }
 0x35d   : > { %v3819_v37 = vrot.slane %v3740_v52, 1  ;;  %v3933_v45 = vadd.f32 %v3932_v18, %v3931_v56  ;;  %v3940_v12 = vadd.f32 %v3939_v15, %v3938_v58  ;;  %v4068_v6 = vmul.f32 %v8121_v25, %v3234_v62  ;;  %v9148_v62 = vld [vmem:[#allocation69_spill] sm:$0xff]  ;;  %v9149_v18 = vld [vmem:[#allocation66_spill] sm:$0xff] }
 0x35e   : > { %v4017_v33 = vrot.slane %v3926_v4, 3  ;;  %v4112_v63 = vrot.slane %v4111_v43, 1  ;;  %v4069_v48 = vmul.f32 %v8138_v42, %v3258_v35  ;;  %v4070_v24 = vmul.f32 %v8150_v14, %v3282_v54  ;;  %v9151_v35 = vld [vmem:[#allocation70_spill] sm:$0xff] }
 0x35f   : > { %v3836_v7 = vsel %vm3835_vm15, %v3818_v47, %v3819_v37  ;;  %v4018_v50 = vrot.slane %v3933_v45, 2  ;;  %v4019_v27 = vrot.slane %v3940_v12, 1  ;;  %v4114_v21 = vadd.f32 %v4068_v6, %v8168_v32  ;;  %v8224_v37 = vpop.f32.mrf.mxu0  ;;  %v9156_v12 = vld [vmem:[#allocation27_spill] sm:$0xff] }
 0x360   : > { %v8187_v26 = vsel %vm3829_vm7, %v4208_v0, %v4209_v16  ;;  %v3838_v25 = vsel %vm8824_vm13, %v3834_v55, %v3836_v7  ;;  %v4030_v2 = vsel %vm3833_vm1, %v4016_v51, %v4017_v33  ;;  %v4121_v42 = vadd.f32 %v4069_v48, %v4053_v39  ;;  %v9142_v16 = vld [vmem:[#allocation61_spill] sm:$0xff]  ;;  %v9158_v48 = vld [vmem:[#allocation72_spill] sm:$0xff]  ;;  %v9160_v7 = vld [vmem:[#allocation11_spill] sm:$0xff] }
 0x361   : > { %v3840_v14 = vsel %vm8823_vm14, %v7970_v34, %v3838_v25  ;;  %v4031_v57 = vsel %vm3835_vm15, %v4018_v50, %v4019_v27  ;;  %v4115_v29 = vrot.slane %v4114_v21, 4  ;;  %v4128_v60 = vadd.f32 %v4070_v24, %v4054_v28  ;;  %v9161_v25 = vld [vmem:[#allocation35_spill] sm:$0xff] }
 0x362   : > { %3850 = vst [vmem:[%s8194_s3] ss:$4 sm:$0xff] %v3840_v14  ;;  %v4032_v3 = vsel %vm8824_vm13, %v4030_v2, %v4031_v57  ;;  %v8198_v0 = vadd.f32 %v4112_v63, %v4111_v43  ;;  %v4122_v1 = vrot.slane %v4121_v42, 4  ;;  %v1185_v32 = vsub.f32 0.0, %v9142_v16  ;;  %v9154_v43 = vld [vmem:[#allocation71_spill] sm:$0xff] }
 0x363   : > { %v4033_v55 = vsel %vm8823_vm14, %v8055_v53, %v4032_v3  ;;  %v4116_v34 = vadd.f32 %v4115_v29, %v4114_v21  ;;  %v4129_v44 = vrot.slane %v4128_v60, 4  ;;  %v9144_v56 = vsub.f32 0.0, %v9143_v40 }
 0x364   : > { %vm9145_vm0 = vcmp.ge.f32.partialorder %v9142_v16, 0.0  ;;  %4442 = vst [vmem:[%s8194_s3 + $0x1] ss:$4 sm:$0xff] %v4033_v55  ;;  %v4123_v8 = vadd.f32 %v4122_v1, %v4121_v42  ;;  %vm9146_vm2 = vcmp.ge.f32.partialorder %v9143_v40, 0.0  ;;  %v1186_v53 = vsub.f32 0.0, %v9148_v62  ;;  %v9162_v42 = vld [vmem:[#allocation12_spill] sm:$0xff] }
 0x365   : > { %v1233_v58 = vsel %vm9145_vm0, %v9144_v56, %v9143_v40  ;;  %v1201_v13 = vsel %vm9146_vm2, %v9142_v16, %v1185_v32  ;;  %v4117_v47 = vrot.slane %v4116_v34, 2  ;;  %v4130_v52 = vadd.f32 %v4129_v44, %v4128_v60  ;;  %v9166_v1 = vld [vmem:[#allocation58_spill] sm:$0xff]  ;;  %v9168_v44 = vld [vmem:[#allocation13_spill] sm:$0xff] }
 0x366   : > { %v1249_v39 = vsel %vm6630_vm8, %v9142_v16, %v1233_v58  ;;  %vm9150_vm4 = vnez %v9149_v18  ;;  %v9152_v54 = vsub.f32 0.0, %v9151_v35  ;;  %vm9153_vm3 = vcmp.ge.f32.partialorder %v9148_v62, 0.0 }
 0x367   : > { %v1265_v15 = vsel %vm9150_vm4, %v1201_v13, %v1249_v39  ;;  %v4124_v4 = vrot.slane %v4123_v8, 2  ;;  %vm9155_vm8 = vcmp.ge.f32.partialorder %v9151_v35, 0.0  ;;  %vm9157_vm12 = vnez %v9156_v12 }
 0x368   : > { %v1234_v51 = vsel %vm9153_vm3, %v9152_v54, %v9151_v35  ;;  %v1393_v28 = vmul.f32 %v9154_v43, %v1265_v15  ;;  %v1202_v45 = vsel %vm9155_vm8, %v9148_v62, %v1186_v53  ;;  %v4118_v33 = vadd.f32 %v4117_v47, %v4116_v34  ;;  %v8258_v43 = vpop.f32.mrf.mxu2 }
 0x369   : > { %v1250_v6 = vsel %vm9157_vm12, %v9148_v62, %v1234_v51  ;;  %v4131_v63 = vrot.slane %v4130_v52, 2  ;;  %vm9159_vm10 = vnez %v9158_v48  ;;  %v1187_v50 = vsub.f32 0.0, %v9160_v7  ;;  %v8256_v51 = vpop.f32.mrf.mxu1 }
 0x36a   : > { %v1266_v24 = vsel %vm9159_vm10, %v1202_v45, %v1250_v6  ;;  %v4125_v27 = vadd.f32 %v4124_v4, %v4123_v8  ;;  %v1409_v21 = vadd.f32 1.0, %v1393_v28  ;;  %v9163_v14 = vsub.f32 0.0, %v9162_v42  ;;  %v9170_v8 = vld [vmem:[#allocation65_spill] sm:$0xff] }
 0x36b   : > { %v1394_v2 = vmul.f32 %v9161_v25, %v1266_v24  ;;  %vm9164_vm0 = vcmp.ge.f32.partialorder %v9160_v7, 0.0  ;;  %v4119_v29 = vrot.slane %v4118_v33, 1  ;;  %v4132_v60 = vadd.f32 %v4131_v63, %v4130_v52  ;;  %v9172_v52 = vld [vmem:[#allocation60_spill] sm:$0xff] }
 0x36c   : > { %v1235_v57 = vsel %vm9164_vm0, %v9163_v14, %v9162_v42  ;;  %vm9165_vm2 = vcmp.ge.f32.partialorder %v9162_v42, 0.0  ;;  %vm9167_vm4 = vnez %v9166_v1  ;;  %v4126_v32 = vrot.slane %v4125_v27, 1  ;;  %v3296_v42 = vpop.f32.mrf.mxu0  ;;  %v9180_v14 = vld [vmem:[#allocation68_spill] sm:$0xff] }
 0x36d   : > { %v1203_v3 = vsel %vm9165_vm2, %v9160_v7, %v1187_v50  ;;  %v1251_v16 = vsel %vm9167_vm4, %v9160_v7, %v1235_v57  ;;  %v1425_v55 = vmul.f32 0.5, %v1409_v21  ;;  %v1410_v34 = vadd.f32 1.0, %v1394_v2  ;;  %v9178_v50 = vld [vmem:[#allocation62_spill] sm:$0xff] }
 0x36e   : > { %vm9169_vm3 = vnez %v9168_v44  ;;  %v4120_v56 = vadd.f32 %v4119_v29, %v4118_v33  ;;  %v4133_v58 = vrot.slane %v4132_v60, 1  ;;  %v1188_v39 = vsub.f32 0.0, %v9171_v36  ;;  %v9176_v33 = vld [vmem:[#allocation63_spill] sm:$0xff]  ;;  %v8274_v29 = vpop.f32.mrf.mxu3 }
 0x36f   : > { %v1267_v40 = vsel %vm9169_vm3, %v1203_v3, %v1251_v16  ;;  %v4127_v62 = vadd.f32 %v4126_v32, %v4125_v27  ;;  %v1489_v53 = vmul.f32 16.0, %v1425_v55  ;;  %v1426_v47 = vmul.f32 0.5, %v1410_v34 }
 0x370   : > { %v1395_v13 = vmul.f32 %v9170_v8, %v1267_v40  ;;  %v9173_v18 = vsub.f32 0.0, %v9172_v52  ;;  %vm9174_vm8 = vcmp.ge.f32.partialorder %v9171_v36, 0.0  ;;  %v4211_v35 = vrot.slane %v4120_v56, 3 }
 0x371   : > { %v4134_v54 = vadd.f32 %v4133_v58, %v4132_v60  ;;  %vm9175_vm12 = vcmp.ge.f32.partialorder %v9172_v52, 0.0  ;;  %v4212_v45 = vrot.slane %v4127_v62, 2  ;;  %v4357_v12 = vadd.f32 -0.5, %v1489_v53 }
 0x372   : > { %v1236_v15 = vsel %vm9174_vm8, %v9173_v18, %v9172_v52  ;;  %v1411_v4 = vadd.f32 1.0, %v1395_v13  ;;  %v1204_v28 = vsel %vm9175_vm12, %v9171_v36, %v1188_v39  ;;  %v1490_v6 = vmul.f32 16.0, %v1426_v47  ;;  %v8286_v47 = vpop.f32.mrf.mxu1  ;;  %v8288_v52 = vpop.f32.mrf.mxu2 }
 0x373   : > { %vm9177_vm10 = vnez %v9176_v33  ;;  %v4210_v48 = vrot.slane %v8198_v0, 4  ;;  %v4213_v24 = vrot.slane %v4134_v54, 1  ;;  %vm9179_vm0 = vnez %v9178_v50 }
 0x374   : > { %v1252_v63 = vsel %vm9177_vm10, %v9171_v36, %v1236_v15  ;;  %v1427_v7 = vmul.f32 0.5, %v1411_v4  ;;  %v4221_v21 = vsel %vm3827_vm6, %v8052_v38, %v4207_v22  ;;  %v1553_v25 = vfloor.f32 %v4357_v12 }
 0x375   : > { %v1268_v27 = vsel %vm9179_vm0, %v1204_v28, %v1252_v63  ;;  %v4358_v2 = vadd.f32 -0.5, %v1490_v6  ;;  %vm9181_vm2 = vcmask 1041408   ;;  %v4224_v60 = vsel %vm3833_vm1, %v4210_v48, %v4211_v35 }
 0x376   : > { %v1396_v57 = vmul.f32 %v9180_v14, %v1268_v27  ;;  %v4223_v0 = vsel %vm9181_vm2, %v4221_v21, %v8187_v26  ;;  %v4225_v3 = vsel %vm3835_vm15, %v4212_v45, %v4213_v24  ;;  %v1491_v1 = vmul.f32 16.0, %v1427_v7  ;;  %v8293_v45 = vpop.f32.mrf.mxu0 }
 0x377   : > { %v4226_v17 = vsel %vm8824_vm13, %v4224_v60, %v4225_v3  ;;  %v1585_v16 = vsub.f32 %v4357_v12, %v1553_v25  ;;  %v4472_v38 = vcvt.f32.s32 %v1553_v25  ;;  %v1554_v22 = vfloor.f32 %v4358_v2  ;;  %v8295_v12 = vpop.f32.mrf.mxu3 }
 0x378   : > { %v4227_v32 = vsel %vm8823_vm14, %v4223_v0, %v4226_v17  ;;  %v4359_v55 = vadd.f32 -0.5, %v1491_v1  ;;  %v1412_v34 = vadd.f32 1.0, %v1396_v57 }
 0x379   : > { %4444 = vst [vmem:[%s8194_s3 + $0x2] ss:$4 sm:$0xff] %v4227_v32  ;;  %vm1641_vm4 = vcmp.gt.s32.totalorder %v4472_v38, 0  ;;  %v1697_v44 = vadd.s32 1, %v4472_v38  ;;  %v8283_v40 = vsub.f32 %v4358_v2, %v1554_v22  ;;  %v3517_v56 = vsub.f32 1.0, %v1585_v16 }
 0x37a   : > { %v1642_v26 = vsel %vm1641_vm4, %v4472_v38, 0  ;;  %v4474_v58 = vcvt.f32.s32 %v1554_v22  ;;  %v1555_v8 = vfloor.f32 %v4359_v55  ;;  %v1428_v36 = vmul.f32 0.5, %v1412_v34  ;;  %v8311_v38 = vpop.f32.mrf.mxu1 }
 0x37b   : > { %vm1673_vm3 = vcmp.lt.s32.totalorder %v1642_v26, 15  ;;  %vm1721_vm8 = vcmp.gt.s32.totalorder %v1697_v44, 0  ;;  %v3518_v13 = vsub.f32 1.0, %v8283_v40 }
 0x37c   : > { %v1674_v39 = vsel %vm1673_vm3, %v1642_v26, 15  ;;  %v1722_v62 = vsel %vm1721_vm8, %v1697_v44, 0  ;;  %vm1643_vm12 = vcmp.gt.s32.totalorder %v4474_v58, 0  ;;  %v1698_v53 = vadd.s32 1, %v4474_v58 }
 0x37d   : > { %vm1753_vm10 = vcmp.lt.s32.totalorder %v1722_v62, 15  ;;  %vm3485_vm0 = vcmp.eq.s32.totalorder %v5062_v20, %v1674_v39  ;;  %v1644_v18 = vsel %vm1643_vm12, %v4474_v58, 0  ;;  %vm3501_vm2 = vcmp.eq.s32.totalorder %v5549_v41, %v1674_v39 }
 0x37e   : > { %v1754_v15 = vsel %vm1753_vm10, %v1722_v62, 15  ;;  %v3533_v35 = vsel %vm3485_vm0, %v3517_v56, 0.0  ;;  %vm1675_vm4 = vcmp.lt.s32.totalorder %v1644_v18, 15  ;;  %vm1723_vm14 = vcmp.gt.s32.totalorder %v1698_v53, 0  ;;  %v3301_v58 = vpop.f32.mrf.mxu0 }
 0x37f   : > { %vm3565_vm13 = vcmp.eq.s32.totalorder %v5062_v20, %v1754_v15  ;;  %v1676_v54 = vsel %vm1675_vm4, %v1644_v18, 15  ;;  %v1724_v4 = vsel %vm1723_vm14, %v1698_v53, 0  ;;  %v3549_v28 = vsel %vm3501_vm2, %v3517_v56, 0.0 }
 0x380   : > { %v3597_v6 = vsel %vm3565_vm13, %v1585_v16, 0.0  ;;  %vm1755_vm3 = vcmp.lt.s32.totalorder %v1724_v4, 15  ;;  %vm3486_vm8 = vcmp.eq.s32.totalorder %v5062_v20, %v1676_v54  ;;  %vm3581_vm12 = vcmp.eq.s32.totalorder %v5549_v41, %v1754_v15 }
 0x381   : > { %v8299_v33 = vadd.f32 %v3597_v6, %v3533_v35  ;;  %v1756_v63 = vsel %vm1755_vm3, %v1724_v4, 15  ;;  %v3534_v48 = vsel %vm3486_vm8, %v3518_v13, 0.0  ;;  %v3613_v24 = vsel %vm3581_vm12, %v1585_v16, 0.0 }
 0x382   : > { %vm3566_vm10 = vcmp.eq.s32.totalorder %v5062_v20, %v1756_v63  ;;  %v8302_v7 = vadd.f32 %v3613_v24, %v3549_v28  ;;  %v1587_v50 = vsub.f32 %v4359_v55, %v1555_v8  ;;  %v4476_v27 = vcvt.f32.s32 %v1555_v8  ;;  %v3371_v8 = vpop.f32.mrf.mxu3 }
 0x383   : > { %v3661_v21 = vmul.f32 %v8299_v33, %v8224_v37  ;;  %v3598_v25 = vsel %vm3566_vm10, %v8283_v40, 0.0  ;;  %v1492_v2 = vmul.f32 16.0, %v1428_v36  ;;  %vm3502_vm13 = vcmp.eq.s32.totalorder %v5549_v41, %v1676_v54  ;;  %v8313_v37 = vpop.f32.mrf.mxu2 }
 0x384   : > { %v3677_v14 = vmul.f32 %v8302_v7, %v3296_v42  ;;  %vm1645_vm14 = vcmp.gt.s32.totalorder %v4476_v27, 0  ;;  %v1699_v57 = vadd.s32 1, %v4476_v27  ;;  %v8309_v0 = vadd.f32 %v3598_v25, %v3534_v48 }
 0x385   : > { %v1646_v60 = vsel %vm1645_vm14, %v4476_v27, 0  ;;  %v3519_v3 = vsub.f32 1.0, %v1587_v50  ;;  %v4360_v1 = vadd.f32 -0.5, %v1492_v2  ;;  %v3550_v16 = vsel %vm3502_vm13, %v3518_v13, 0.0 }
 0x386   : > { %v3741_v17 = vadd.f32 %v3677_v14, %v3661_v21  ;;  %vm1677_vm0 = vcmp.lt.s32.totalorder %v1646_v60, 15  ;;  %vm1725_vm2 = vcmp.gt.s32.totalorder %v1699_v57, 0  ;;  %vm3582_vm4 = vcmp.eq.s32.totalorder %v5549_v41, %v1756_v63 }
 0x387   : > { %v1678_v22 = vsel %vm1677_vm0, %v1646_v60, 15  ;;  %v1726_v32 = vsel %vm1725_vm2, %v1699_v57, 0  ;;  %v1556_v55 = vfloor.f32 %v4360_v1  ;;  %v3614_v34 = vsel %vm3582_vm4, %v8283_v40, 0.0 }
 0x388   : > { %v3742_v42 = vrot.slane %v3741_v17, 4  ;;  %vm1757_vm3 = vcmp.lt.s32.totalorder %v1726_v32, 15  ;;  %vm3487_vm8 = vcmp.eq.s32.totalorder %v5062_v20, %v1678_v22  ;;  %v3662_v13 = vmul.f32 %v8309_v0, %v8256_v51 }
 0x389   : > { %v1758_v44 = vsel %vm1757_vm3, %v1726_v32, 15  ;;  %v1588_v26 = vsub.f32 %v4360_v1, %v1556_v55  ;;  %v4478_v56 = vcvt.f32.s32 %v1556_v55  ;;  %v8321_v36 = vadd.f32 %v3614_v34, %v3550_v16  ;;  %v3304_v16 = vpop.f32.mrf.mxu0 }
 0x38a   : > { %vm3567_vm12 = vcmp.eq.s32.totalorder %v5062_v20, %v1758_v44  ;;  %v3535_v39 = vsel %vm3487_vm8, %v3519_v3, 0.0  ;;  %v3743_v18 = vadd.f32 %v3742_v42, %v3741_v17  ;;  %vm3503_vm0 = vcmp.eq.s32.totalorder %v5549_v41, %v1678_v22  ;;  %v3373_v22 = vpop.f32.mrf.mxu3 }
 0x38b   : > { %v3599_v62 = vsel %vm3567_vm12, %v1587_v50, 0.0  ;;  %vm1647_vm10 = vcmp.gt.s32.totalorder %v4478_v56, 0  ;;  %v1700_v53 = vadd.s32 1, %v4478_v56  ;;  %v3520_v35 = vsub.f32 1.0, %v1588_v26  ;;  %v3349_v21 = vpop.f32.mrf.mxu2 }
 0x38c   : > { %v1648_v15 = vsel %vm1647_vm10, %v4478_v56, 0  ;;  %v3678_v40 = vmul.f32 %v8321_v36, %v8286_v47  ;;  %vm3583_vm2 = vcmp.eq.s32.totalorder %v5549_v41, %v1758_v44  ;;  %v8327_v51 = vadd.f32 %v3599_v62, %v3535_v39  ;;  %v3325_v47 = vpop.f32.mrf.mxu1 }
 0x38d   : > { %vm1679_vm13 = vcmp.lt.s32.totalorder %v1648_v15, 15  ;;  %vm1727_vm14 = vcmp.gt.s32.totalorder %v1700_v53, 0  ;;  %v3551_v6 = vsel %vm3503_vm0, %v3519_v3, 0.0  ;;  %v3744_v63 = vrot.slane %v3743_v18, 2 }
 0x38e   : > { %v1680_v54 = vsel %vm1679_vm13, %v1648_v15, 15  ;;  %v1728_v4 = vsel %vm1727_vm14, %v1700_v53, 0  ;;  %v3748_v28 = vadd.f32 %v3678_v40, %v3662_v13  ;;  %v3615_v27 = vsel %vm3583_vm2, %v1587_v50, 0.0 }
 0x38f   : > { %vm1759_vm4 = vcmp.lt.s32.totalorder %v1728_v4, 15  ;;  %vm3488_vm3 = vcmp.eq.s32.totalorder %v5062_v20, %v1680_v54  ;;  %v8331_v2 = vadd.f32 %v3615_v27, %v3551_v6  ;;  %vm3504_vm12 = vcmp.eq.s32.totalorder %v5549_v41, %v1680_v54 }
 0x390   : > { %v1760_v48 = vsel %vm1759_vm4, %v1728_v4, 15  ;;  %v3536_v24 = vsel %vm3488_vm3, %v3520_v35, 0.0  ;;  %v3749_v25 = vrot.slane %v3748_v28, 4  ;;  %v3663_v14 = vmul.f32 %v8327_v51, %v8258_v43 }
 0x391   : > { %vm3568_vm8 = vcmp.eq.s32.totalorder %v5062_v20, %v1760_v48  ;;  %v3552_v60 = vsel %vm3504_vm12, %v3520_v35, 0.0  ;;  %vm3584_vm10 = vcmp.eq.s32.totalorder %v5549_v41, %v1760_v48  ;;  %v3679_v50 = vmul.f32 %v8331_v2, %v8288_v52 }
 0x392   : > { %v3600_v57 = vsel %vm3568_vm8, %v1588_v26, 0.0  ;;  %v3750_v1 = vadd.f32 %v3749_v25, %v3748_v28  ;;  %v3616_v17 = vsel %vm3584_vm10, %v1588_v26, 0.0  ;;  %v3745_v32 = vadd.f32 %v3744_v63, %v3743_v18 }
 0x393   : > { %v8337_v3 = vadd.f32 %v3600_v57, %v3536_v24  ;;  %v3861_v55 = vmul.f32 %v8299_v33, %v8293_v45  ;;  %v8343_v42 = vadd.f32 %v3616_v17, %v3552_v60  ;;  %v3877_v43 = vmul.f32 %v8302_v7, %v3301_v58  ;;  %v3306_v60 = vpop.f32.mrf.mxu0 }
 0x394   : > { %v3751_v34 = vrot.slane %v3750_v1, 2  ;;  %v3755_v44 = vadd.f32 %v3679_v50, %v3663_v14  ;;  %v3862_v56 = vmul.f32 %v8309_v0, %v8311_v38  ;;  %v3863_v13 = vmul.f32 %v8327_v51, %v8313_v37  ;;  %v3328_v6 = vpop.f32.mrf.mxu1 }
 0x395   : > { %v3664_v52 = vmul.f32 %v8337_v3, %v8274_v29  ;;  %v3680_v26 = vmul.f32 %v8343_v42, %v8295_v12  ;;  %v3864_v45 = vmul.f32 %v8337_v3, %v3371_v8  ;;  %v3878_v39 = vmul.f32 %v8321_v36, %v3325_v47  ;;  %v3352_v8 = vpop.f32.mrf.mxu2 }
 0x396   : > { %v3752_v62 = vadd.f32 %v3751_v34, %v3750_v1  ;;  %v3756_v58 = vrot.slane %v3755_v44, 4  ;;  %v3879_v53 = vmul.f32 %v8331_v2, %v3349_v21  ;;  %v3880_v18 = vmul.f32 %v8343_v42, %v3373_v22  ;;  %v3376_v1 = vpop.f32.mrf.mxu3 }
 0x397   : > { %v3746_v38 = vrot.slane %v3745_v32, 1  ;;  %v3762_v15 = vadd.f32 %v3680_v26, %v3664_v52  ;;  %v3941_v35 = vadd.f32 %v3877_v43, %v3861_v55  ;;  %v3948_v37 = vadd.f32 %v3878_v39, %v3862_v56 }
 0x398   : > { %v3753_v40 = vrot.slane %v3752_v62, 1  ;;  %v3757_v54 = vadd.f32 %v3756_v58, %v3755_v44  ;;  %v3955_v29 = vadd.f32 %v3879_v53, %v3863_v13  ;;  %v3962_v4 = vadd.f32 %v3880_v18, %v3864_v45 }
 0x399   : > { %v3763_v28 = vrot.slane %v3762_v15, 4  ;;  %v3949_v12 = vrot.slane %v3948_v37, 4  ;;  %v3747_v24 = vadd.f32 %v3746_v38, %v3745_v32  ;;  %v3942_v47 = vrot.slane %v3941_v35, 4 }
 0x39a   : > { %v3754_v63 = vadd.f32 %v3753_v40, %v3752_v62  ;;  %v3758_v48 = vrot.slane %v3757_v54, 2  ;;  %v3956_v14 = vrot.slane %v3955_v29, 4  ;;  %v3963_v57 = vrot.slane %v3962_v4, 4 }
 0x39b   : > { %v3764_v27 = vadd.f32 %v3763_v28, %v3762_v15  ;;  %v3950_v17 = vadd.f32 %v3949_v12, %v3948_v37  ;;  %v3943_v34 = vadd.f32 %v3942_v47, %v3941_v35  ;;  %v4055_v44 = vmul.f32 %v8299_v33, %v3304_v16 }
 0x39c   : > { %v3820_v21 = vrot.slane %v3754_v63, 7  ;;  %v3759_v25 = vadd.f32 %v3758_v48, %v3757_v54  ;;  %v4071_v56 = vmul.f32 %v8302_v7, %v3306_v60  ;;  %v3957_v13 = vadd.f32 %v3956_v14, %v3955_v29  ;;  %v3330_v18 = vpop.f32.mrf.mxu1  ;;  %v8382_v14 = vpop.f32.mrf.mxu0 }
 0x39d   : > { %v3765_v50 = vrot.slane %v3764_v27, 2  ;;  %v3964_v52 = vadd.f32 %v3963_v57, %v3962_v4  ;;  %v3951_v45 = vrot.slane %v3950_v17, 2  ;;  %v3944_v58 = vrot.slane %v3943_v34, 2  ;;  %v3354_v38 = vpop.f32.mrf.mxu2 }
 0x39e   : > { %v3841_v22 = vsel %vm3827_vm6, %v3747_v24, %v3820_v21  ;;  %v3760_v55 = vrot.slane %v3759_v25, 1  ;;  %v8361_v53 = vadd.f32 %v4071_v56, %v4055_v44  ;;  %v3958_v15 = vrot.slane %v3957_v13, 2  ;;  %v3378_v16 = vpop.f32.mrf.mxu3 }
 0x39f   : > { %v3766_v43 = vadd.f32 %v3765_v50, %v3764_v27  ;;  %v3965_v37 = vrot.slane %v3964_v52, 2  ;;  %v3952_v35 = vadd.f32 %v3951_v45, %v3950_v17  ;;  %v4072_v33 = vmul.f32 %v8321_v36, %v3330_v18  ;;  %v9197_v45 = vld [vmem:[#allocation74_spill] sm:$0xff] }
 0x3a0   : > { %v3761_v32 = vadd.f32 %v3760_v55, %v3759_v25  ;;  %v4073_v7 = vmul.f32 %v8331_v2, %v3354_v38  ;;  %v3945_v29 = vadd.f32 %v3944_v58, %v3943_v34  ;;  %v4056_v4 = vmul.f32 %v8309_v0, %v3328_v6 }
 0x3a1   : > { %v3767_v26 = vrot.slane %v3766_v43, 1  ;;  %v4136_v28 = vrot.slane %v8361_v53, 4  ;;  %vm9182_vm13 = vcmask 1041408   ;;  %v3959_v63 = vadd.f32 %v3958_v15, %v3957_v13 }
 0x3a2   : > { %v3821_v39 = vrot.slane %v3761_v32, 6  ;;  %v3966_v48 = vadd.f32 %v3965_v37, %v3964_v52  ;;  %v4057_v24 = vmul.f32 %v8327_v51, %v3352_v8  ;;  %v3953_v27 = vrot.slane %v3952_v35, 1 }
 0x3a3   : > { %v3768_v62 = vadd.f32 %v3767_v26, %v3766_v43  ;;  %v4074_v36 = vmul.f32 %v8343_v42, %v3378_v16  ;;  %v1189_v2 = vsub.f32 0.0, %v7288_v9  ;;  %v9183_v47 = vsub.f32 0.0, %v7298_v10  ;;  %v9195_v26 = vld [vmem:[#allocation14_spill] sm:$0xff] }
 0x3a4   : > { %vm9184_vm14 = vcmp.ge.f32.partialorder %v7288_v9, 0.0  ;;  %v4142_v6 = vadd.f32 %v4072_v33, %v4056_v4  ;;  %v4149_v21 = vadd.f32 %v4073_v7, %v4057_v24  ;;  %v1190_v51 = vsub.f32 0.0, %v7380_v46  ;;  %v8421_v38 = vpop.f32.mrf.mxu1  ;;  %v9199_v33 = vld [vmem:[#allocation75_spill] sm:$0xff] }
 0x3a5   : > { %v3822_v40 = vrot.slane %v3768_v62, 5  ;;  %v1237_v0 = vsel %vm9184_vm14, %v9183_v47, %v7298_v10  ;;  %v4058_v42 = vmul.f32 %v8337_v3, %v3376_v1  ;;  %vm9185_vm0 = vcmp.ge.f32.partialorder %v7298_v10, 0.0 }
 0x3a6   : > { %v1253_v25 = vsel %vm7351_vm9, %v7288_v9, %v1237_v0  ;;  %v1205_v8 = vsel %vm9185_vm0, %v7288_v9, %v1189_v2  ;;  %v9186_v57 = vsub.f32 0.0, %v7403_v30  ;;  %vm9187_vm2 = vcmp.ge.f32.partialorder %v7380_v46, 0.0  ;;  %v9203_v2 = vld [vmem:[#allocation77_spill] sm:$0xff] }
 0x3a7   : > { %v3842_v54 = vsel %vm3829_vm7, %v3821_v39, %v3822_v40  ;;  %v1191_v50 = vsub.f32 0.0, %v7182_v19  ;;  %v3960_v61 = vrot.slane %v3959_v63, 1  ;;  %v3967_v17 = vrot.slane %v3966_v48, 1 }
 0x3a8   : > { %v8369_v12 = vsel %vm9182_vm13, %v3841_v22, %v3842_v54  ;;  %v1238_v60 = vsel %vm9187_vm2, %v9186_v57, %v7403_v30  ;;  %v1269_v22 = vsel %vm7336_vm5, %v1205_v8, %v1253_v25  ;;  %vm9188_vm9 = vcmp.ge.f32.partialorder %v7403_v30, 0.0 }
 0x3a9   : > { %v1206_v3 = vsel %vm9188_vm9, %v7380_v46, %v1190_v51  ;;  %v4156_v1 = vadd.f32 %v4074_v36, %v4058_v42  ;;  %v1397_v9 = vmul.f32 %v7420_v5, %v1269_v22  ;;  %v1254_v10 = vsel %vm7422_vm11, %v7380_v46, %v1238_v60  ;;  %v9193_v46 = vld [vmem:[#allocation73_spill] sm:$0xff]  ;;  %v8437_v36 = vpop.f32.mrf.mxu2 }
 0x3aa   : > { %vm9189_vm4 = vcmp.ge.f32.partialorder %v7186_v59, 0.0  ;;  %v4143_v43 = vrot.slane %v4142_v6, 4  ;;  %v4150_v34 = vrot.slane %v4149_v21, 4  ;;  %vm9190_vm3 = vnez %v9048_v31 }
 0x3ab   : > { %v1207_v55 = vsel %vm9189_vm4, %v7182_v19, %v1191_v50  ;;  %v1270_v49 = vsel %vm9190_vm3, %v1206_v3, %v1254_v10  ;;  %v9191_v30 = vsub.f32 0.0, %v7186_v59  ;;  %vm9192_vm5 = vcmp.ge.f32.partialorder %v7182_v19, 0.0  ;;  %v9207_v3 = vld [vmem:[#allocation79_spill] sm:$0xff] }
 0x3ac   : > { %v3946_v5 = vrot.slane %v3945_v29, 1  ;;  %v1413_v56 = vadd.f32 1.0, %v1397_v9  ;;  %v1398_v23 = vmul.f32 %v7505_v11, %v1270_v49  ;;  %vm9194_vm11 = vnez %v9193_v46  ;;  %v8463_v46 = vpop.f32.mrf.mxu1 }
 0x3ad   : > { %v1239_v44 = vsel %vm9192_vm5, %v9191_v30, %v7186_v59  ;;  %v3954_v13 = vadd.f32 %v3953_v27, %v3952_v35  ;;  %v3961_v52 = vadd.f32 %v3960_v61, %v3959_v63  ;;  %vm9196_vm8 = vnez %v9195_v26  ;;  %v9198_v59 = vld [vmem:[#allocation78_spill] sm:$0xff]  ;;  %v8435_v27 = vpop.f32.mrf.mxu0 }
 0x3ae   : > { %v1255_v32 = vsel %vm9194_vm11, %v7182_v19, %v1239_v44  ;;  %v1192_v39 = vsub.f32 0.0, %v9197_v45  ;;  %v3968_v62 = vadd.f32 %v3967_v17, %v3966_v48  ;;  %v1429_v58 = vmul.f32 0.5, %v1413_v56 }
 0x3af   : > { %v1271_v31 = vsel %vm9196_vm8, %v1207_v55, %v1255_v32  ;;  %v1414_v18 = vadd.f32 1.0, %v1398_v23  ;;  %v4144_v37 = vadd.f32 %v4143_v43, %v4142_v6  ;;  %v4151_v11 = vadd.f32 %v4150_v34, %v4149_v21 }
 0x3b0   : > { %v1399_v15 = vmul.f32 %v9198_v59, %v1271_v31  ;;  %v4157_v40 = vrot.slane %v4156_v1, 4  ;;  %v9200_v19 = vsub.f32 0.0, %v9199_v33  ;;  %vm9201_vm12 = vcmp.ge.f32.partialorder %v9197_v45, 0.0 }
 0x3b1   : > { %v1493_v7 = vmul.f32 16.0, %v1429_v58  ;;  %v1430_v16 = vmul.f32 0.5, %v1414_v18  ;;  %vm9202_vm10 = vcmp.ge.f32.partialorder %v9199_v33, 0.0  ;;  %v3947_v63 = vadd.f32 %v3946_v5, %v3945_v29  ;;  %v9205_v29 = vld [vmem:[#allocation76_spill] sm:$0xff]  ;;  %v8468_v59 = vpop.f32.mrf.mxu2 }
 0x3b2   : > { %v1240_v35 = vsel %vm9201_vm12, %v9200_v19, %v9199_v33  ;;  %v1415_v54 = vadd.f32 1.0, %v1399_v15  ;;  %v1208_v4 = vsel %vm9202_vm10, %v9197_v45, %v1192_v39  ;;  %v4020_v48 = vrot.slane %v3954_v13, 7 }
 0x3b3   : > { %v8433_v24 = vadd.f32 %v4136_v28, %v8361_v53  ;;  %vm9204_vm13 = vnez %v9203_v2  ;;  %v4021_v0 = vrot.slane %v3961_v52, 6  ;;  %v4361_v6 = vadd.f32 -0.5, %v1493_v7  ;;  %v8446_v28 = vpop.f32.mrf.mxu3 }
 0x3b4   : > { %v1256_v47 = vsel %vm9204_vm13, %v9197_v45, %v1240_v35  ;;  %v1494_v21 = vmul.f32 16.0, %v1430_v16  ;;  %v1431_v25 = vmul.f32 0.5, %v1415_v54  ;;  %v4022_v51 = vrot.slane %v3968_v62, 5 }
 0x3b5   : > { %v4145_v42 = vrot.slane %v4144_v37, 2  ;;  %v8442_v8 = vadd.f32 %v4157_v40, %v4156_v1  ;;  %vm9206_vm14 = vnez %v9205_v29  ;;  %v4152_v57 = vrot.slane %v4151_v11, 2  ;;  %v8466_v18 = vpop.f32.mrf.mxu0 }
 0x3b6   : > { %v1272_v53 = vsel %vm9206_vm14, %v1208_v4, %v1256_v47  ;;  %v1557_v60 = vfloor.f32 %v4361_v6  ;;  %v4362_v50 = vadd.f32 -0.5, %v1494_v21  ;;  %v1495_v61 = vmul.f32 16.0, %v1431_v25  ;;  %v8488_v25 = vpop.f32.mrf.mxu1 }
 0x3b7   : > { %v8449_v17 = vsel %vm3827_vm6, %v3947_v63, %v4020_v48  ;;  %v4138_v22 = vrot.slane %v8433_v24, 2  ;;  %v1400_v9 = vmul.f32 %v9207_v3, %v1272_v53  ;;  %v8454_v34 = vsel %vm3829_vm7, %v4021_v0, %v4022_v51 }
 0x3b8   : > { %v1589_v10 = vsub.f32 %v4361_v6, %v1557_v60  ;;  %v4480_v55 = vcvt.f32.s32 %v1557_v60  ;;  %v1558_v1 = vfloor.f32 %v4362_v50  ;;  %v4363_v43 = vadd.f32 -0.5, %v1495_v61 }
 0x3b9   : > { %v8456_v49 = vadd.f32 %v4145_v42, %v4144_v37  ;;  %v4159_v30 = vrot.slane %v8442_v8, 2  ;;  %v1416_v44 = vadd.f32 1.0, %v1400_v9  ;;  %v8459_v5 = vadd.f32 %v4152_v57, %v4151_v11  ;;  %v8497_v57 = vpop.f32.mrf.mxu2 }
 0x3ba   : > { %vm1649_vm0 = vcmp.gt.s32.totalorder %v4480_v55, 0  ;;  %v1701_v56 = vadd.s32 1, %v4480_v55  ;;  %v8461_v23 = vsub.f32 %v4362_v50, %v1558_v1  ;;  %v3521_v13 = vsub.f32 1.0, %v1589_v10 }
 0x3bb   : > { %v1650_v32 = vsel %vm1649_vm0, %v4480_v55, 0  ;;  %v4482_v52 = vcvt.f32.s32 %v1558_v1  ;;  %v1559_v26 = vfloor.f32 %v4363_v43  ;;  %v1432_v45 = vmul.f32 0.5, %v1416_v44  ;;  %v8472_v37 = vpop.f32.mrf.mxu3 }
 0x3bc   : > { %vm1681_vm2 = vcmp.lt.s32.totalorder %v1650_v32, 15  ;;  %vm1729_vm9 = vcmp.gt.s32.totalorder %v1701_v56, 0  ;;  %v3522_v31 = vsub.f32 1.0, %v8461_v23  ;;  %v8491_v51 = vadd.f32 %v4159_v30, %v8442_v8 }
 0x3bd   : > { %v1682_v39 = vsel %vm1681_vm2, %v1650_v32, 15  ;;  %v1730_v62 = vsel %vm1729_vm9, %v1701_v56, 0  ;;  %vm1651_vm4 = vcmp.gt.s32.totalorder %v4482_v52, 0  ;;  %v1702_v58 = vadd.s32 1, %v4482_v52  ;;  %v8495_v53 = vpop.f32.mrf.mxu0 }
 0x3be   : > { %vm1761_vm3 = vcmp.lt.s32.totalorder %v1730_v62, 15  ;;  %vm3489_vm5 = vcmp.eq.s32.totalorder %v5062_v20, %v1682_v39  ;;  %v1652_v15 = vsel %vm1651_vm4, %v4482_v52, 0  ;;  %vm3505_vm11 = vcmp.eq.s32.totalorder %v5549_v41, %v1682_v39 }
 0x3bf   : > { %v1762_v11 = vsel %vm1761_vm3, %v1730_v62, 15  ;;  %v3537_v40 = vsel %vm3489_vm5, %v3521_v13, 0.0  ;;  %vm1683_vm8 = vcmp.lt.s32.totalorder %v1652_v15, 15  ;;  %vm1731_vm12 = vcmp.gt.s32.totalorder %v1702_v58, 0 }
 0x3c0   : > { %vm3569_vm10 = vcmp.eq.s32.totalorder %v5062_v20, %v1762_v11  ;;  %v1684_v33 = vsel %vm1683_vm8, %v1652_v15, 15  ;;  %v1732_v19 = vsel %vm1731_vm12, %v1702_v58, 0  ;;  %v3553_v35 = vsel %vm3505_vm11, %v3521_v13, 0.0 }
 0x3c1   : > { %v3601_v7 = vsel %vm3569_vm10, %v1589_v10, 0.0  ;;  %vm1763_vm13 = vcmp.lt.s32.totalorder %v1732_v19, 15  ;;  %vm3490_vm14 = vcmp.eq.s32.totalorder %v5062_v20, %v1684_v33  ;;  %vm3585_vm0 = vcmp.eq.s32.totalorder %v5549_v41, %v1762_v11 }
 0x3c2   : > { %v8477_v16 = vadd.f32 %v3601_v7, %v3537_v40  ;;  %v1764_v54 = vsel %vm1763_vm13, %v1732_v19, 15  ;;  %v3538_v4 = vsel %vm3490_vm14, %v3522_v31, 0.0  ;;  %v3617_v63 = vsel %vm3585_vm0, %v1589_v10, 0.0  ;;  %v3445_v7 = vpop.f32.mrf.mxu2 }
 0x3c3   : > { %vm3570_vm2 = vcmp.eq.s32.totalorder %v5062_v20, %v1764_v54  ;;  %v8480_v48 = vadd.f32 %v3617_v63, %v3553_v35  ;;  %v8482_v2 = vsub.f32 %v4363_v43, %v1559_v26  ;;  %v4484_v47 = vcvt.f32.s32 %v1559_v26  ;;  %v8502_v3 = vpop.f32.mrf.mxu3 }
 0x3c4   : > { %v3665_v0 = vmul.f32 %v8477_v16, %v8382_v14  ;;  %v3602_v6 = vsel %vm3570_vm2, %v8461_v23, 0.0  ;;  %v1496_v21 = vmul.f32 16.0, %v1432_v45  ;;  %vm3506_vm9 = vcmp.eq.s32.totalorder %v5549_v41, %v1684_v33 }
 0x3c5   : > { %v3681_v42 = vmul.f32 %v8480_v48, %v8435_v27  ;;  %vm1653_vm4 = vcmp.gt.s32.totalorder %v4484_v47, 0  ;;  %v1703_v29 = vadd.s32 1, %v4484_v47  ;;  %v8499_v14 = vadd.f32 %v3602_v6, %v3538_v4  ;;  %v3400_v35 = vpop.f32.mrf.mxu0 }
 0x3c6   : > { %v1654_v60 = vsel %vm1653_vm4, %v4484_v47, 0  ;;  %v3523_v50 = vsub.f32 1.0, %v8482_v2  ;;  %v4364_v61 = vadd.f32 -0.5, %v1496_v21  ;;  %v3554_v27 = vsel %vm3506_vm9, %v3522_v31, 0.0 }
 0x3c7   : > { %v3769_v9 = vadd.f32 %v3681_v42, %v3665_v0  ;;  %vm1685_vm3 = vcmp.lt.s32.totalorder %v1654_v60, 15  ;;  %vm1733_vm5 = vcmp.gt.s32.totalorder %v1703_v29, 0  ;;  %vm3586_vm11 = vcmp.eq.s32.totalorder %v5549_v41, %v1764_v54 }
 0x3c8   : > { %v1686_v8 = vsel %vm1685_vm3, %v1654_v60, 15  ;;  %v1734_v10 = vsel %vm1733_vm5, %v1703_v29, 0  ;;  %v1560_v55 = vfloor.f32 %v4364_v61  ;;  %v3618_v43 = vsel %vm3586_vm11, %v8461_v23, 0.0 }
 0x3c9   : > { %v3770_v1 = vrot.slane %v3769_v9, 4  ;;  %vm1765_vm8 = vcmp.lt.s32.totalorder %v1734_v10, 15  ;;  %vm3491_vm12 = vcmp.eq.s32.totalorder %v5062_v20, %v1686_v8  ;;  %v4154_v30 = vrot.slane %v8459_v5, 1 }
 0x3ca   : > { %v1766_v44 = vsel %vm1765_vm8, %v1734_v10, 15  ;;  %v1592_v56 = vsub.f32 %v4364_v61, %v1560_v55  ;;  %v4486_v32 = vcvt.f32.s32 %v1560_v55  ;;  %v3666_v13 = vmul.f32 %v8499_v14, %v8421_v38  ;;  %v3421_v38 = vpop.f32.mrf.mxu1 }
 0x3cb   : > { %v3771_v52 = vadd.f32 %v3770_v1, %v3769_v9  ;;  %vm3571_vm10 = vcmp.eq.s32.totalorder %v5062_v20, %v1766_v44  ;;  %v8513_v26 = vadd.f32 %v3618_v43, %v3554_v27  ;;  %v3539_v31 = vsel %vm3491_vm12, %v3523_v50, 0.0  ;;  %v3469_v4 = vpop.f32.mrf.mxu3 }
 0x3cc   : > { %v3603_v45 = vsel %vm3571_vm10, %v8482_v2, 0.0  ;;  %vm1655_vm13 = vcmp.gt.s32.totalorder %v4486_v32, 0  ;;  %v1704_v39 = vadd.s32 1, %v4486_v32  ;;  %v3524_v58 = vsub.f32 1.0, %v1592_v56 }
 0x3cd   : > { %v3772_v62 = vrot.slane %v3771_v52, 2  ;;  %v1656_v23 = vsel %vm1655_vm13, %v4486_v32, 0  ;;  %v3682_v15 = vmul.f32 %v8513_v26, %v8463_v46  ;;  %vm3507_vm2 = vcmp.eq.s32.totalorder %v5549_v41, %v1686_v8 }
 0x3ce   : > { %vm1687_vm14 = vcmp.lt.s32.totalorder %v1656_v23, 15  ;;  %vm1735_vm0 = vcmp.gt.s32.totalorder %v1704_v39, 0  ;;  %vm3587_vm9 = vcmp.eq.s32.totalorder %v5549_v41, %v1766_v44  ;;  %v8520_v11 = vadd.f32 %v3603_v45, %v3539_v31 }
 0x3cf   : > { %v1688_v40 = vsel %vm1687_vm14, %v1656_v23, 15  ;;  %v1736_v33 = vsel %vm1735_vm0, %v1704_v39, 0  ;;  %v3865_v19 = vmul.f32 %v8477_v16, %v8466_v18  ;;  %v3776_v46 = vadd.f32 %v3682_v15, %v3666_v13 }
 0x3d0   : > { %vm1767_vm4 = vcmp.lt.s32.totalorder %v1736_v33, 15  ;;  %vm3492_vm3 = vcmp.eq.s32.totalorder %v5062_v20, %v1688_v40  ;;  %v3555_v54 = vsel %vm3507_vm2, %v3523_v50, 0.0  ;;  %v3773_v63 = vadd.f32 %v3772_v62, %v3771_v52  ;;  %v3448_v62 = vpop.f32.mrf.mxu2 }
 0x3d1   : > { %v1768_v47 = vsel %vm1767_vm4, %v1736_v33, 15  ;;  %v3540_v0 = vsel %vm3492_vm3, %v3524_v58, 0.0  ;;  %v3619_v6 = vsel %vm3587_vm9, %v8482_v2, 0.0  ;;  %v3777_v21 = vrot.slane %v3776_v46, 4 }
 0x3d2   : > { %vm3572_vm5 = vcmp.eq.s32.totalorder %v5062_v20, %v1768_v47  ;;  %v8529_v42 = vadd.f32 %v3619_v6, %v3555_v54  ;;  %vm3508_vm11 = vcmp.eq.s32.totalorder %v5549_v41, %v1688_v40  ;;  %v3667_v18 = vmul.f32 %v8520_v11, %v8437_v36  ;;  %v3424_v52 = vpop.f32.mrf.mxu1 }
 0x3d3   : > { %v3604_v29 = vsel %vm3572_vm5, %v1592_v56, 0.0  ;;  %v3556_v60 = vsel %vm3508_vm11, %v3524_v58, 0.0  ;;  %vm3588_vm8 = vcmp.eq.s32.totalorder %v5549_v41, %v1768_v47  ;;  %v3778_v61 = vadd.f32 %v3777_v21, %v3776_v46 }
 0x3d4   : > { %v8535_v50 = vadd.f32 %v3604_v29, %v3540_v0  ;;  %v3683_v2 = vmul.f32 %v8529_v42, %v8468_v59  ;;  %v3620_v9 = vsel %vm3588_vm8, %v1592_v56, 0.0  ;;  %v4161_v20 = vrot.slane %v8491_v51, 1 }
 0x3d5   : > { %v3774_v27 = vrot.slane %v3773_v63, 1  ;;  %v8540_v8 = vadd.f32 %v3620_v9, %v3556_v60  ;;  %v3881_v10 = vmul.f32 %v8480_v48, %v8495_v53  ;;  %v3779_v55 = vrot.slane %v3778_v61, 2 }
 0x3d6   : > { %v3668_v36 = vmul.f32 %v8535_v50, %v8446_v28  ;;  %v3783_v41 = vadd.f32 %v3683_v2, %v3667_v18  ;;  %v3866_v1 = vmul.f32 %v8499_v14, %v8488_v25  ;;  %v3867_v44 = vmul.f32 %v8520_v11, %v8497_v57 }
 0x3d7   : > { %v3684_v59 = vmul.f32 %v8540_v8, %v8472_v37  ;;  %v3969_v43 = vadd.f32 %v3881_v10, %v3865_v19  ;;  %v3882_v56 = vmul.f32 %v8513_v26, %v3421_v38  ;;  %v3780_v32 = vadd.f32 %v3779_v55, %v3778_v61  ;;  %v3402_v37 = vpop.f32.mrf.mxu0  ;;  %v3472_v38 = vpop.f32.mrf.mxu3 }
 0x3d8   : > { %v3784_v13 = vrot.slane %v3783_v41, 4  ;;  %v3868_v53 = vmul.f32 %v8535_v50, %v8502_v3  ;;  %v3883_v28 = vmul.f32 %v8529_v42, %v3445_v7  ;;  %v3884_v39 = vmul.f32 %v8540_v8, %v3469_v4 }
 0x3d9   : > { %v3790_v31 = vadd.f32 %v3684_v59, %v3668_v36  ;;  %v3970_v45 = vrot.slane %v3969_v43, 4  ;;  %v3976_v25 = vadd.f32 %v3882_v56, %v3866_v1  ;;  %v3781_v23 = vrot.slane %v3780_v32, 1 }
 0x3da   : > { %v3785_v58 = vadd.f32 %v3784_v13, %v3783_v41  ;;  %v4059_v57 = vmul.f32 %v8477_v16, %v3400_v35  ;;  %v3983_v15 = vadd.f32 %v3883_v28, %v3867_v44  ;;  %v3990_v3 = vadd.f32 %v3884_v39, %v3868_v53 }
 0x3db   : > { %v3791_v40 = vrot.slane %v3790_v31, 4  ;;  %v3971_v33 = vadd.f32 %v3970_v45, %v3969_v43  ;;  %v3977_v19 = vrot.slane %v3976_v25, 4  ;;  %v3775_v46 = vadd.f32 %v3774_v27, %v3773_v63  ;;  %v3450_v45 = vpop.f32.mrf.mxu2 }
 0x3dc   : > { %v3786_v7 = vrot.slane %v3785_v58, 2  ;;  %v3984_v54 = vrot.slane %v3983_v15, 4  ;;  %v4075_v47 = vmul.f32 %v8480_v48, %v3402_v37  ;;  %v3991_v21 = vrot.slane %v3990_v3, 4 }
 0x3dd   : > { %v3792_v0 = vadd.f32 %v3791_v40, %v3790_v31  ;;  %v3972_v6 = vrot.slane %v3971_v33, 2  ;;  %v3978_v4 = vadd.f32 %v3977_v19, %v3976_v25  ;;  %v3782_v18 = vadd.f32 %v3781_v23, %v3780_v32  ;;  %v3426_v31 = vpop.f32.mrf.mxu1 }
 0x3de   : > { %v3787_v29 = vadd.f32 %v3786_v7, %v3785_v58  ;;  %v3985_v60 = vadd.f32 %v3984_v54, %v3983_v15  ;;  %v4163_v61 = vadd.f32 %v4075_v47, %v4059_v57  ;;  %v3992_v9 = vadd.f32 %v3991_v21, %v3990_v3 }
 0x3df   : > { %v3793_v16 = vrot.slane %v3792_v0, 2  ;;  %v3973_v35 = vadd.f32 %v3972_v6, %v3971_v33  ;;  %v3979_v2 = vrot.slane %v3978_v4, 2  ;;  %v3823_v10 = vrot.slane %v3775_v46, 4  ;;  %v3474_v58 = vpop.f32.mrf.mxu3 }
 0x3e0   : > { %v3788_v36 = vrot.slane %v3787_v29, 1  ;;  %v3986_v55 = vrot.slane %v3985_v60, 2  ;;  %v4164_v63 = vrot.slane %v4163_v61, 4  ;;  %v3993_v48 = vrot.slane %v3992_v9, 2 }
 0x3e1   : > { %v3794_v27 = vadd.f32 %v3793_v16, %v3792_v0  ;;  %v3974_v41 = vrot.slane %v3973_v35, 1  ;;  %v3980_v1 = vadd.f32 %v3979_v2, %v3978_v4  ;;  %v4060_v44 = vmul.f32 %v8499_v14, %v3424_v52 }
 0x3e2   : > { %v3789_v59 = vadd.f32 %v3788_v36, %v3787_v29  ;;  %v3987_v43 = vadd.f32 %v3986_v55, %v3985_v60  ;;  %v4165_v56 = vadd.f32 %v4164_v63, %v4163_v61  ;;  %v3824_v32 = vrot.slane %v3782_v18, 3 }
 0x3e3   : > { %v3795_v13 = vrot.slane %v3794_v27, 1  ;;  %v3981_v53 = vrot.slane %v3980_v1, 1  ;;  %v3994_v28 = vadd.f32 %v3993_v48, %v3992_v9  ;;  %v3975_v39 = vadd.f32 %v3974_v41, %v3973_v35 }
 0x3e4   : > { %v3825_v25 = vrot.slane %v3789_v59, 2  ;;  %v3988_v37 = vrot.slane %v3987_v43, 1  ;;  %v4061_v23 = vmul.f32 %v8520_v11, %v3448_v62  ;;  %v4166_v33 = vrot.slane %v4165_v56, 2 }
 0x3e5   : > { %v3796_v57 = vadd.f32 %v3795_v13, %v3794_v27  ;;  %v3982_v15 = vadd.f32 %v3981_v53, %v3980_v1  ;;  %v3995_v40 = vrot.slane %v3994_v28, 1  ;;  %v4062_v14 = vmul.f32 %v8535_v50, %v3472_v38 }
 0x3e6   : > { %v3989_v19 = vadd.f32 %v3988_v37, %v3987_v43  ;;  %v4076_v52 = vmul.f32 %v8513_v26, %v3426_v31  ;;  %v4077_v3 = vmul.f32 %v8529_v42, %v3450_v45  ;;  %v4078_v47 = vmul.f32 %v8540_v8, %v3474_v58 }
 0x3e7   : > { %v3826_v46 = vrot.slane %v3796_v57, 1  ;;  %v4024_v7 = vrot.slane %v3982_v15, 3  ;;  %v3996_v54 = vadd.f32 %v3995_v40, %v3994_v28  ;;  %v3844_v0 = vsel %vm3833_vm1, %v3823_v10, %v3824_v32 }
 0x3e8   : > { %v4025_v11 = vrot.slane %v3989_v19, 2  ;;  %v4170_v62 = vadd.f32 %v4076_v52, %v4060_v44  ;;  %v4177_v6 = vadd.f32 %v4077_v3, %v4061_v23  ;;  %v4023_v21 = vrot.slane %v3975_v39, 4 }
 0x3e9   : > { %v3845_v4 = vsel %vm3835_vm15, %v3825_v25, %v3826_v46  ;;  %v4026_v18 = vrot.slane %v3996_v54, 1  ;;  %v4184_v50 = vadd.f32 %v4078_v47, %v4062_v14  ;;  %vm9208_vm12 = vcmask 1045508  }
 0x3ea   : > { %v3846_v26 = vsel %vm9208_vm12, %v3844_v0, %v3845_v4  ;;  %v4167_v38 = vadd.f32 %v4166_v33, %v4165_v56  ;;  %v4171_v42 = vrot.slane %v4170_v62, 4  ;;  %v4178_v29 = vrot.slane %v4177_v6, 4  ;;  %vm9211_vm14 = vmmov %vm9208_vm12 }
 0x3eb   : > { %vm9209_vm10 = vcmask 1043456   ;;  %v4037_v60 = vsel %vm3833_vm1, %v4023_v21, %v4024_v7  ;;  %v4038_v61 = vsel %vm3835_vm15, %v4025_v11, %v4026_v18  ;;  %v4185_v16 = vrot.slane %v4184_v50, 4  ;;  %vm9214_vm9 = vmmov %vm9208_vm12 }
 0x3ec   : > { %v3847_v8 = vsel %vm9209_vm10, %v8369_v12, %v3846_v26  ;;  %vm9210_vm13 = vcmask 1041408   ;;  %v4039_v2 = vsel %vm9211_vm14, %v4037_v60, %v4038_v61  ;;  %v4172_v9 = vadd.f32 %v4171_v42, %v4170_v62  ;;  %vm9212_vm0 = vmmov %vm9209_vm10 }
 0x3ed   : > { %v4036_v35 = vsel %vm9210_vm13, %v8449_v17, %v8454_v34  ;;  %4441 = vst [vmem:[%s8194_s3 + $0x20] ss:$4 sm:$0xff] %v3847_v8  ;;  %v4179_v10 = vadd.f32 %v4178_v29, %v4177_v6  ;;  %v4147_v36 = vrot.slane %v8456_v49, 1  ;;  %v4186_v12 = vadd.f32 %v4185_v16, %v4184_v50  ;;  %vm9213_vm2 = vmmov %vm9210_vm13 }
 0x3ee   : > { %v4040_v55 = vsel %vm9212_vm0, %v4036_v35, %v4039_v2  ;;  %v4139_v63 = vadd.f32 %v4138_v22, %v8433_v24  ;;  %v4173_v27 = vrot.slane %v4172_v9, 2  ;;  %v4155_v17 = vadd.f32 %v4154_v30, %v8459_v5  ;;  %vm9215_vm4 = vmmov %vm9212_vm0 }
 0x3ef   : > { %4443 = vst [vmem:[%s8194_s3 + $0x21] ss:$4 sm:$0xff] %v4040_v55  ;;  %v4180_v41 = vrot.slane %v4179_v10, 2  ;;  %v4162_v34 = vadd.f32 %v4161_v20, %v8491_v51  ;;  %v4168_v1 = vrot.slane %v4167_v38, 1  ;;  %v4187_v48 = vrot.slane %v4186_v12, 2 }
 0x3f0   : > { %v4174_v59 = vadd.f32 %v4173_v27, %v4172_v9  ;;  %v4148_v44 = vadd.f32 %v4147_v36, %v8456_v49  ;;  %v4140_v24 = vrot.slane %v4139_v63, 1  ;;  %v4215_v13 = vrot.slane %v4155_v17, 6 }
 0x3f1   : > { %v4181_v43 = vadd.f32 %v4180_v41, %v4179_v10  ;;  %v4188_v56 = vadd.f32 %v4187_v48, %v4186_v12  ;;  %v4216_v53 = vrot.slane %v4162_v34, 5  ;;  %v4169_v28 = vadd.f32 %v4168_v1, %v4167_v38 }
 0x3f2   : > { %v4175_v22 = vrot.slane %v4174_v59, 1  ;;  %v4214_v51 = vrot.slane %v4148_v44, 7  ;;  %v4141_v25 = vadd.f32 %v4140_v24, %v4139_v63 }
 0x3f3   : > { %v4182_v32 = vrot.slane %v4181_v43, 1  ;;  %v4189_v5 = vrot.slane %v4188_v56, 1  ;;  %v4229_v39 = vsel %vm3829_vm7, %v4215_v13, %v4216_v53  ;;  %v4217_v37 = vrot.slane %v4169_v28, 4 }
 0x3f4   : > { %v4176_v30 = vadd.f32 %v4175_v22, %v4174_v59  ;;  %v4228_v58 = vsel %vm3827_vm6, %v4141_v25, %v4214_v51 }
 0x3f5   : > { %v4183_v31 = vadd.f32 %v4182_v32, %v4181_v43  ;;  %v4190_v20 = vadd.f32 %v4189_v5, %v4188_v56  ;;  %v4230_v40 = vsel %vm9213_vm2, %v4228_v58, %v4229_v39 }
 0x3f6   : > { %v4218_v45 = vrot.slane %v4176_v30, 3 }
 0x3f7   : > { %v4219_v49 = vrot.slane %v4183_v31, 2  ;;  %v4220_v23 = vrot.slane %v4190_v20, 1 }
 0x3f8   : > { %v4231_v57 = vsel %vm3833_vm1, %v4217_v37, %v4218_v45 }
 0x3f9   : > { %v4232_v15 = vsel %vm3835_vm15, %v4219_v49, %v4220_v23 }
 0x3fa   : > { %v4233_v33 = vsel %vm9214_vm9, %v4231_v57, %v4232_v15 }
 0x3fb   : > { %v4234_v19 = vsel %vm9215_vm4, %v4230_v40, %v4233_v33 }
 0x3fc   : > { %4445 = vst [vmem:[%s8194_s3 + $0x22] ss:$4 sm:$0xff] %v4234_v19 }
 0x3fd   : > { %4728 = shalt.err (!%p4725_p7)
}
 0x3fe   : > { %4527 = dma.vmem_to_hbm [thread:$0]  (%p4834_p5), %s4256_s13, 1024, %s4258_s8, %s4242_s14  }
 0x3ff PF: > { %p4544_p8 = scmp.ge.s32.totalorder %s4771_s12, 2  ;;  %s4269_s26 = sand.u32 1, %s4759_s9  }
 0x400   : > { %s4270_s27 = scalar_lea.sflag [#allocation4], %s4269_s26 }
 0x401   : > { %p4537_p9 = pnand %p4544_p8, %p4838_p6 }
 0x403   : > { %p4538_p10 = pneg %p4537_p9 }
 0x405   : > { %4754 = dma.done.wait (%p4538_p10), %s4270_s27, 1024  }
 0x406   : > { %4756 = vsyncadd (%p4538_p10), %s4270_s27, 4294966272  ;;  %p14_p11 = scmp.ge.s32.totalorder %s4821_s15, 6   ;;  %s9216_s9 = smov %s4763_s10 }
 0x407   : > { %s9217_s10 = smov %s4767_s11  ;;  %s9218_s11 = smov %s4832_s18 }
 0x408   : > { %s9219_s12 = smov %s4821_s15  ;;  %16 = sbr.rel (!%p14_p11) target bundleno = 5 (0x5), region = 75 }
 0x40d   :  { %4276 = vsyncpa [#allocation3], 1 }
 0x40e   :  { %4278 = vsyncpa [#allocation3 + $0x1], 1 }
 0x40f   :  { %4279 = vsyncpa [#allocation4], 1 }
 0x410   :  { %4281 = vsyncpa [#allocation4 + $0x1], 1 }
 0x411   :  { %4282 = vsyncpa [#allocation5], 1 }
 0x412   :  { %4284 = vsyncpa [#allocation5 + $0x1], 1 }

</bundles_post_ra>
